<compile_context>
chip_gen: v6e
topology: v6e:2x2x1
jax: 0.10.0
libtpu: 0.0.40
codegen_flags: <defaults>
</compile_context>

<pallas_src>
import jax
import jax.numpy as jnp
from jax.experimental import pallas as pl
from jax.experimental.pallas import tpu as pltpu
import numpy as np


def _round_up(x, m):
    return ((x + m - 1) // m) * m


_HALF = 64  # lane offset separating the h-half and the g-half of fused outputs


# ---------------------------------------------------------------------------
# Pallas kernels
# ---------------------------------------------------------------------------
def _gated_conv_kernel(p_ref, w_ref, b_ref, o_ref):
    """Fused GatedConv2d hot path on im2col patches.

       acc = P @ [Wh | Wg] + [bh | bg]        (bf16 in, f32 accumulate on MXU)
       out = acc[:, :64] * sigmoid(acc[:, 64:])   (torch activation=None)

    Padded columns of the h-half are exactly zero (zero weight + zero bias),
    so the padded output lanes are 0 and are sliced away by the caller."""
    acc = jnp.dot(p_ref[...], w_ref[...],
                  preferred_element_type=jnp.float32) + b_ref[...]
    o_ref[...] = acc[:, :_HALF] * jax.nn.sigmoid(acc[:, _HALF:])


def _head_kernel(h_ref, w_ref, b_ref, mean_ref, lv_ref):
    """Fused linear heads:  acc = h @ [Wm | Wv] + [bm | bv]
       q_z_mean   = acc[:, :64]                      (first Z_DIM lanes valid)
       q_z_logvar = Hardtanh(acc[:, 64:], -6.0, 2.0)"""
    acc = jnp.dot(h_ref[...], w_ref[...],
                  preferred_element_type=jnp.float32) + b_ref[...]
    mean_ref[...] = acc[:, :_HALF]
    lv_ref[...] = jnp.clip(acc[:, _HALF:], -6.0, 2.0)


# ---------------------------------------------------------------------------
# Glue: im2col patch extraction (pure data rearrangement, plain JAX)
# ---------------------------------------------------------------------------
# TODO(synk): the 7x7/5x5 layers still materialize im2col patches in HBM
# (25-49x read inflation); an implicit-GEMM kernel (accumulate over (kh,kw)
# shifted windows in VMEM) would remove that traffic.
def _extract_patches(x, kh, kw, stride, padding):
    # x: (B, H, W, Cin) -> (B*OH*OW, KH*KW*Cin), plus (OH, OW)
    B, H, W, C = x.shape
    xp = jnp.pad(x, ((0, 0), (padding, padding), (padding, padding), (0, 0)))
    Hp, Wp = H + 2 * padding, W + 2 * padding
    OH = (Hp - kh) // stride + 1
    OW = (Wp - kw) // stride + 1
    cols = []
    for i in range(kh):
        for j in range(kw):
            sl = xp[:, i:i + stride * (OH - 1) + 1:stride,
                       j:j + stride * (OW - 1) + 1:stride, :]
            cols.append(sl)
    patches = jnp.concatenate(cols, axis=-1)          # (B, OH, OW, KH*KW*Cin)
    return patches.reshape(B * OH * OW, kh * kw * C), OH, OW


def _fuse_gated_weights(wh, bh, wg, bg):
    """HWIO (KH,KW,Cin,Cout) pair -> bf16 (Kp, 128) fused weight, f32 (1,128) bias."""
    KH, KW, Cin, Cout = wh.shape
    K = KH * KW * Cin
    Kp = _round_up(K, 128)
    wf = jnp.zeros((Kp, 2 * _HALF), jnp.float32)
    wf = wf.at[:K, :Cout].set(wh.reshape(K, Cout))
    wf = wf.at[:K, _HALF:_HALF + Cout].set(wg.reshape(K, Cout))
    bf = jnp.zeros((1, 2 * _HALF), jnp.float32)
    bf = bf.at[0, :Cout].set(bh)
    bf = bf.at[0, _HALF:_HALF + Cout].set(bg)
    return wf.astype(jnp.bfloat16), bf


def gated_conv2d(x, wh, bh, wg, bg, stride, padding):
    """x: (B,H,W,Cin) f32;  wh/wg: (KH,KW,Cin,Cout) HWIO;  -> (B,OH,OW,Cout) f32."""
    KH, KW, Cin, Cout = wh.shape
    assert Cout <= _HALF
    B = x.shape[0]
    patches, OH, OW = _extract_patches(x, KH, KW, stride, padding)
    M, K = patches.shape
    Kp = _round_up(K, 128)

    # M-tile: <=512 rows keeps all generations (incl. v7x 64 MiB VMEM) happy
    # while staying well past the ~85% pipeline-efficiency knee.
    TM = min(512, _round_up(M, 8))
    Mp = _round_up(M, TM)

    pat = jnp.pad(patches.astype(jnp.bfloat16), ((0, Mp - M), (0, Kp - K)))
    wf, bf = _fuse_gated_weights(wh, bh, wg, bg)

    out = pl.pallas_call(
        _gated_conv_kernel,
        out_shape=jax.ShapeDtypeStruct((Mp, _HALF), jnp.float32),
        grid_spec=pltpu.PrefetchScalarGridSpec(
            num_scalar_prefetch=0,
            grid=(Mp // TM,),
            in_specs=[
                pl.BlockSpec((TM, Kp), lambda i: (i, 0)),          # patch tile
                pl.BlockSpec((Kp, 2 * _HALF), lambda i: (0, 0)),   # fused weights (resident)
                pl.BlockSpec((1, 2 * _HALF), lambda i: (0, 0)),    # fused bias   (resident)
            ],
            out_specs=pl.BlockSpec((TM, _HALF), lambda i: (i, 0)),
        ),
        compiler_params=pltpu.CompilerParams(
            dimension_semantics=("parallel",)),   # megacore sharding on v7x
    )(pat, wf, bf)

    return out[:M, :Cout].reshape(B, OH, OW, Cout)


# ---------------------------------------------------------------------------
# Parameter construction (deterministic, matches module shapes)
# ---------------------------------------------------------------------------
# q_z_layers: GatedConv2d(1,32,7,1,3) -> (32,32,3,2,1) -> (32,64,5,1,2)
#             -> (64,64,3,2,1) -> (64,6,3,1,1)
_CONV_CFG = [
    # (Cin, Cout, K, stride, padding)
    (1, 32, 7, 1, 3),
    (32, 32, 3, 2, 1),
    (32, 64, 5, 1, 2),
    (64, 64, 3, 2, 1),
    (64, 6, 3, 1, 1),
]
H_DIM = 6 * 7 * 7   # = 294, flattened conv output for 28x28 input
Z_DIM = 40
_H_PAD = _round_up(H_DIM, 128)   # 384


def init_params(key):
    params = {"convs": []}
    for (cin, cout, k, _, _) in _CONV_CFG:
        key, k1, k2, k3, k4 = jax.random.split(key, 5)
        fan_in = cin * k * k
        s = 1.0 / np.sqrt(fan_in)
        params["convs"].append(dict(
            wh=jax.random.normal(k1, (k, k, cin, cout), jnp.float32) * s,
            bh=jax.random.normal(k2, (cout,), jnp.float32) * s,
            wg=jax.random.normal(k3, (k, k, cin, cout), jnp.float32) * s,
            bg=jax.random.normal(k4, (cout,), jnp.float32) * s,
        ))
    # he_init on linears: weight ~ N(0, sqrt(2/in_features)); bias small
    key, k1, k2, k3, k4 = jax.random.split(key, 5)
    he = np.sqrt(2.0 / H_DIM)
    params["w_mean"] = jax.random.normal(k1, (H_DIM, Z_DIM), jnp.float32) * he
    params["b_mean"] = jax.random.normal(k2, (Z_DIM,), jnp.float32) * 0.01
    params["w_logvar"] = jax.random.normal(k3, (H_DIM, Z_DIM), jnp.float32) * he
    params["b_logvar"] = jax.random.normal(k4, (Z_DIM,), jnp.float32) * 0.01
    return params


def _fuse_head_weights(w_mean, b_mean, w_logvar, b_logvar):
    wf = jnp.zeros((_H_PAD, 2 * _HALF), jnp.float32)
    wf = wf.at[:H_DIM, :Z_DIM].set(w_mean)
    wf = wf.at[:H_DIM, _HALF:_HALF + Z_DIM].set(w_logvar)
    bf = jnp.zeros((1, 2 * _HALF), jnp.float32)
    bf = bf.at[0, :Z_DIM].set(b_mean)
    bf = bf.at[0, _HALF:_HALF + Z_DIM].set(b_logvar)
    return wf, bf


# ---------------------------------------------------------------------------
# Encoder forward
# ---------------------------------------------------------------------------
# TODO(synk): the 5 conv layers could be fused into a single pallas_call over a
# batch tile (all intermediates fit in VMEM) to drop 4 HBM activation
# round-trips; kept as separate tiled calls here for simplicity.
def encoder_forward(params, x):
    # x: any shape with trailing size 784 -> view(-1, 1, 28, 28); NHWC internally
    B = x.size // (28 * 28)
    h = x.reshape(B, 1, 28, 28).transpose(0, 2, 3, 1)  # NCHW -> NHWC
    for cfg, p in zip(_CONV_CFG, params["convs"]):
        _, _, _, stride, pad = cfg
        h = gated_conv2d(h, p["wh"], p["bh"], p["wg"], p["bg"], stride, pad)
    # back to NCHW then flatten (matches PyTorch h.view(B, -1) ordering)
    h = h.transpose(0, 3, 1, 2).reshape(B, H_DIM)

    TB = min(256, _round_up(B, 8))
    Bp = _round_up(B, TB)
    hp = jnp.pad(h, ((0, Bp - B), (0, _H_PAD - H_DIM)))
    wf, bf = _fuse_head_weights(params["w_mean"], params["b_mean"],
                                params["w_logvar"], params["b_logvar"])

    z_mean, z_logvar = pl.pallas_call(
        _head_kernel,
        out_shape=(jax.ShapeDtypeStruct((Bp, _HALF), jnp.float32),
                   jax.ShapeDtypeStruct((Bp, _HALF), jnp.float32)),
        grid_spec=pltpu.PrefetchScalarGridSpec(
            num_scalar_prefetch=0,
            grid=(Bp // TB,),
            in_specs=[
                pl.BlockSpec((TB, _H_PAD), lambda i: (i, 0)),
                pl.BlockSpec((_H_PAD, 2 * _HALF), lambda i: (0, 0)),
                pl.BlockSpec((1, 2 * _HALF), lambda i: (0, 0)),
            ],
            out_specs=(pl.BlockSpec((TB, _HALF), lambda i: (i, 0)),
                       pl.BlockSpec((TB, _HALF), lambda i: (i, 0))),
        ),
        compiler_params=pltpu.CompilerParams(
            dimension_semantics=("parallel",)),
    )(hp, wf, bf)

    return z_mean[:B, :Z_DIM], z_logvar[:B, :Z_DIM]


# TODO(synk): Sample_Z (reparameterization with torch.randn) is not part of
# forward(); omitted here.

if __name__ == "__main__":
    key = jax.random.PRNGKey(0)
    pkey, xkey = jax.random.split(key)
    params = init_params(pkey)

    batch = 2
    x = jax.random.uniform(xkey, (batch, 784), jnp.float32)  # MNIST-like flat input

    fwd = jax.jit(encoder_forward)
    z_q_mean, z_q_logvar = fwd(params, x)
    jax.block_until_ready((z_q_mean, z_q_logvar))

    assert z_q_mean.shape == (batch, Z_DIM)
    assert z_q_logvar.shape == (batch, Z_DIM)
    assert bool(jnp.all(jnp.isfinite(z_q_mean)))
    assert bool(jnp.all(z_q_logvar >= -6.0)) and bool(jnp.all(z_q_logvar <= 2.0))
    print("KERNEL_OK")
</pallas_src>

<mosaic_0001>
module attributes {stable_mosaic.version = 11 : i64} {
  func.func @_gated_conv_kernel(%arg0: i32, %arg1: memref<512x128xbf16, #tpu.memory_space<vmem>>, %arg2: memref<128x128xbf16, #tpu.memory_space<vmem>>, %arg3: memref<1x128xf32, #tpu.memory_space<vmem>>, %arg4: memref<512x64xf32, #tpu.memory_space<vmem>>) attributes {dimension_semantics = [#tpu.dimension_semantics<parallel>], iteration_bounds = array<i64: 4>, scalar_prefetch = 0 : i64, scratch_operands = 0 : i64, tpu.core_type = #tpu.core_type<tc>, window_params = [{transform_indices = @transform_0, window_bounds = array<i64: 512, 128>}, {pipeline_mode = #tpu.pipeline_mode<synchronous>, transform_indices = @transform_1, window_bounds = array<i64: 128, 128>}, {pipeline_mode = #tpu.pipeline_mode<synchronous>, transform_indices = @transform_2, window_bounds = array<i64: 1, 128>}, {transform_indices = @transform_3, window_bounds = array<i64: 512, 64>}]} {
    %c0 = arith.constant 0 : index
    %c0_0 = arith.constant 0 : index
    %0 = vector.load %arg1[%c0, %c0_0] : memref<512x128xbf16, #tpu.memory_space<vmem>>, vector<512x128xbf16>
    %c0_1 = arith.constant 0 : index
    %c0_2 = arith.constant 0 : index
    %1 = vector.load %arg2[%c0_1, %c0_2] : memref<128x128xbf16, #tpu.memory_space<vmem>>, vector<128x128xbf16>
    %cst = arith.constant dense<0.000000e+00> : vector<512x128xf32>
    %2 = tpu.matmul %0, %1, %cst {dimension_numbers = #tpu.dot_dimension_numbers<[1], [0], [0], [1], [0, 0, 1, 1], [], []>} : vector<512x128xbf16>, vector<128x128xbf16>, vector<512x128xf32> -> vector<512x128xf32>
    %c0_3 = arith.constant 0 : index
    %c0_4 = arith.constant 0 : index
    %3 = vector.load %arg3[%c0_3, %c0_4] : memref<1x128xf32, #tpu.memory_space<vmem>>, vector<1x128xf32>
    %4 = vector.broadcast %3 : vector<1x128xf32> to vector<512x128xf32>
    %5 = arith.addf %2, %4 : vector<512x128xf32>
    %6 = vector.extract_strided_slice %5 {offsets = [0, 0], sizes = [512, 64], strides = [1, 1]} : vector<512x128xf32> to vector<512x64xf32>
    %7 = vector.extract_strided_slice %5 {offsets = [0, 64], sizes = [512, 64], strides = [1, 1]} : vector<512x128xf32> to vector<512x64xf32>
    %8 = arith.negf %7 : vector<512x64xf32>
    %9 = math.exp %8 : vector<512x64xf32>
    %cst_5 = arith.constant 1.000000e+00 : f32
    %10 = vector.broadcast %cst_5 : f32 to vector<512x64xf32>
    %11 = arith.addf %10, %9 : vector<512x64xf32>
    %12 = arith.divf %10, %11 : vector<512x64xf32>
    %13 = arith.mulf %6, %12 : vector<512x64xf32>
    %c0_6 = arith.constant 0 : index
    %c0_7 = arith.constant 0 : index
    %14 = vector.load %arg4[%c0_6, %c0_7] : memref<512x64xf32, #tpu.memory_space<vmem>>, vector<512x64xf32>
    tpu.vector_store %arg4[%c0_6, %c0_7], %13 {strides = array<i32>} : memref<512x64xf32, #tpu.memory_space<vmem>>, vector<512x64xf32>,
    return
  }
  func.func @transform_0(%arg0: i32) -> (i32, i32) {
    %c0_i32 = arith.constant 0 : i32
    %c0_i32_0 = arith.constant 0 : i32
    return %arg0, %c0_i32 : i32, i32
  }
  func.func @transform_1(%arg0: i32) -> (i32, i32) {
    %c0_i32 = arith.constant 0 : i32
    %c0_i32_0 = arith.constant 0 : i32
    %c0_i32_1 = arith.constant 0 : i32
    return %c0_i32, %c0_i32_0 : i32, i32
  }
  func.func @transform_2(%arg0: i32) -> (i32, i32) {
    %c0_i32 = arith.constant 0 : i32
    %c0_i32_0 = arith.constant 0 : i32
    %c0_i32_1 = arith.constant 0 : i32
    return %c0_i32, %c0_i32_0 : i32, i32
  }
  func.func @transform_3(%arg0: i32) -> (i32, i32) {
    %c0_i32 = arith.constant 0 : i32
    %c0_i32_0 = arith.constant 0 : i32
    return %arg0, %c0_i32 : i32, i32
  }
}

module attributes {stable_mosaic.version = 11 : i64} {
  func.func @_gated_conv_kernel(%arg0: i32, %arg1: memref<392x384xbf16, #tpu.memory_space<vmem>>, %arg2: memref<384x128xbf16, #tpu.memory_space<vmem>>, %arg3: memref<1x128xf32, #tpu.memory_space<vmem>>, %arg4: memref<392x64xf32, #tpu.memory_space<vmem>>) attributes {dimension_semantics = [#tpu.dimension_semantics<parallel>], iteration_bounds = array<i64: 1>, scalar_prefetch = 0 : i64, scratch_operands = 0 : i64, tpu.core_type = #tpu.core_type<tc>, window_params = [{transform_indices = @transform_0, window_bounds = array<i64: 392, 384>}, {pipeline_mode = #tpu.pipeline_mode<synchronous>, transform_indices = @transform_1, window_bounds = array<i64: 384, 128>}, {pipeline_mode = #tpu.pipeline_mode<synchronous>, transform_indices = @transform_2, window_bounds = array<i64: 1, 128>}, {transform_indices = @transform_3, window_bounds = array<i64: 392, 64>}]} {
    %c0 = arith.constant 0 : index
    %c0_0 = arith.constant 0 : index
    %0 = vector.load %arg1[%c0, %c0_0] : memref<392x384xbf16, #tpu.memory_space<vmem>>, vector<392x384xbf16>
    %c0_1 = arith.constant 0 : index
    %c0_2 = arith.constant 0 : index
    %1 = vector.load %arg2[%c0_1, %c0_2] : memref<384x128xbf16, #tpu.memory_space<vmem>>, vector<384x128xbf16>
    %cst = arith.constant dense<0.000000e+00> : vector<392x128xf32>
    %2 = tpu.matmul %0, %1, %cst {dimension_numbers = #tpu.dot_dimension_numbers<[1], [0], [0], [1], [0, 0, 1, 1], [], []>} : vector<392x384xbf16>, vector<384x128xbf16>, vector<392x128xf32> -> vector<392x128xf32>
    %c0_3 = arith.constant 0 : index
    %c0_4 = arith.constant 0 : index
    %3 = vector.load %arg3[%c0_3, %c0_4] : memref<1x128xf32, #tpu.memory_space<vmem>>, vector<1x128xf32>
    %4 = vector.broadcast %3 : vector<1x128xf32> to vector<392x128xf32>
    %5 = arith.addf %2, %4 : vector<392x128xf32>
    %6 = vector.extract_strided_slice %5 {offsets = [0, 0], sizes = [392, 64], strides = [1, 1]} : vector<392x128xf32> to vector<392x64xf32>
    %7 = vector.extract_strided_slice %5 {offsets = [0, 64], sizes = [392, 64], strides = [1, 1]} : vector<392x128xf32> to vector<392x64xf32>
    %8 = arith.negf %7 : vector<392x64xf32>
    %9 = math.exp %8 : vector<392x64xf32>
    %cst_5 = arith.constant 1.000000e+00 : f32
    %10 = vector.broadcast %cst_5 : f32 to vector<392x64xf32>
    %11 = arith.addf %10, %9 : vector<392x64xf32>
    %12 = arith.divf %10, %11 : vector<392x64xf32>
    %13 = arith.mulf %6, %12 : vector<392x64xf32>
    %c0_6 = arith.constant 0 : index
    %c0_7 = arith.constant 0 : index
    %14 = vector.load %arg4[%c0_6, %c0_7] : memref<392x64xf32, #tpu.memory_space<vmem>>, vector<392x64xf32>
    tpu.vector_store %arg4[%c0_6, %c0_7], %13 {strides = array<i32>} : memref<392x64xf32, #tpu.memory_space<vmem>>, vector<392x64xf32>,
    return
  }
  func.func @transform_0(%arg0: i32) -> (i32, i32) {
    %c0_i32 = arith.constant 0 : i32
    %c0_i32_0 = arith.constant 0 : i32
    return %arg0, %c0_i32 : i32, i32
  }
  func.func @transform_1(%arg0: i32) -> (i32, i32) {
    %c0_i32 = arith.constant 0 : i32
    %c0_i32_0 = arith.constant 0 : i32
    %c0_i32_1 = arith.constant 0 : i32
    return %c0_i32, %c0_i32_0 : i32, i32
  }
  func.func @transform_2(%arg0: i32) -> (i32, i32) {
    %c0_i32 = arith.constant 0 : i32
    %c0_i32_0 = arith.constant 0 : i32
    %c0_i32_1 = arith.constant 0 : i32
    return %c0_i32, %c0_i32_0 : i32, i32
  }
  func.func @transform_3(%arg0: i32) -> (i32, i32) {
    %c0_i32 = arith.constant 0 : i32
    %c0_i32_0 = arith.constant 0 : i32
    return %arg0, %c0_i32 : i32, i32
  }
}

module attributes {stable_mosaic.version = 11 : i64} {
  func.func @_gated_conv_kernel(%arg0: i32, %arg1: memref<392x896xbf16, #tpu.memory_space<vmem>>, %arg2: memref<896x128xbf16, #tpu.memory_space<vmem>>, %arg3: memref<1x128xf32, #tpu.memory_space<vmem>>, %arg4: memref<392x64xf32, #tpu.memory_space<vmem>>) attributes {dimension_semantics = [#tpu.dimension_semantics<parallel>], iteration_bounds = array<i64: 1>, scalar_prefetch = 0 : i64, scratch_operands = 0 : i64, tpu.core_type = #tpu.core_type<tc>, window_params = [{transform_indices = @transform_0, window_bounds = array<i64: 392, 896>}, {pipeline_mode = #tpu.pipeline_mode<synchronous>, transform_indices = @transform_1, window_bounds = array<i64: 896, 128>}, {pipeline_mode = #tpu.pipeline_mode<synchronous>, transform_indices = @transform_2, window_bounds = array<i64: 1, 128>}, {transform_indices = @transform_3, window_bounds = array<i64: 392, 64>}]} {
    %c0 = arith.constant 0 : index
    %c0_0 = arith.constant 0 : index
    %0 = vector.load %arg1[%c0, %c0_0] : memref<392x896xbf16, #tpu.memory_space<vmem>>, vector<392x896xbf16>
    %c0_1 = arith.constant 0 : index
    %c0_2 = arith.constant 0 : index
    %1 = vector.load %arg2[%c0_1, %c0_2] : memref<896x128xbf16, #tpu.memory_space<vmem>>, vector<896x128xbf16>
    %cst = arith.constant dense<0.000000e+00> : vector<392x128xf32>
    %2 = tpu.matmul %0, %1, %cst {dimension_numbers = #tpu.dot_dimension_numbers<[1], [0], [0], [1], [0, 0, 1, 1], [], []>} : vector<392x896xbf16>, vector<896x128xbf16>, vector<392x128xf32> -> vector<392x128xf32>
    %c0_3 = arith.constant 0 : index
    %c0_4 = arith.constant 0 : index
    %3 = vector.load %arg3[%c0_3, %c0_4] : memref<1x128xf32, #tpu.memory_space<vmem>>, vector<1x128xf32>
    %4 = vector.broadcast %3 : vector<1x128xf32> to vector<392x128xf32>
    %5 = arith.addf %2, %4 : vector<392x128xf32>
    %6 = vector.extract_strided_slice %5 {offsets = [0, 0], sizes = [392, 64], strides = [1, 1]} : vector<392x128xf32> to vector<392x64xf32>
    %7 = vector.extract_strided_slice %5 {offsets = [0, 64], sizes = [392, 64], strides = [1, 1]} : vector<392x128xf32> to vector<392x64xf32>
    %8 = arith.negf %7 : vector<392x64xf32>
    %9 = math.exp %8 : vector<392x64xf32>
    %cst_5 = arith.constant 1.000000e+00 : f32
    %10 = vector.broadcast %cst_5 : f32 to vector<392x64xf32>
    %11 = arith.addf %10, %9 : vector<392x64xf32>
    %12 = arith.divf %10, %11 : vector<392x64xf32>
    %13 = arith.mulf %6, %12 : vector<392x64xf32>
    %c0_6 = arith.constant 0 : index
    %c0_7 = arith.constant 0 : index
    %14 = vector.load %arg4[%c0_6, %c0_7] : memref<392x64xf32, #tpu.memory_space<vmem>>, vector<392x64xf32>
    tpu.vector_store %arg4[%c0_6, %c0_7], %13 {strides = array<i32>} : memref<392x64xf32, #tpu.memory_space<vmem>>, vector<392x64xf32>,
    return
  }
  func.func @transform_0(%arg0: i32) -> (i32, i32) {
    %c0_i32 = arith.constant 0 : i32
    %c0_i32_0 = arith.constant 0 : i32
    return %arg0, %c0_i32 : i32, i32
  }
  func.func @transform_1(%arg0: i32) -> (i32, i32) {
    %c0_i32 = arith.constant 0 : i32
    %c0_i32_0 = arith.constant 0 : i32
    %c0_i32_1 = arith.constant 0 : i32
    return %c0_i32, %c0_i32_0 : i32, i32
  }
  func.func @transform_2(%arg0: i32) -> (i32, i32) {
    %c0_i32 = arith.constant 0 : i32
    %c0_i32_0 = arith.constant 0 : i32
    %c0_i32_1 = arith.constant 0 : i32
    return %c0_i32, %c0_i32_0 : i32, i32
  }
  func.func @transform_3(%arg0: i32) -> (i32, i32) {
    %c0_i32 = arith.constant 0 : i32
    %c0_i32_0 = arith.constant 0 : i32
    return %arg0, %c0_i32 : i32, i32
  }
}

module attributes {stable_mosaic.version = 11 : i64} {
  func.func @_gated_conv_kernel(%arg0: i32, %arg1: memref<104x640xbf16, #tpu.memory_space<vmem>>, %arg2: memref<640x128xbf16, #tpu.memory_space<vmem>>, %arg3: memref<1x128xf32, #tpu.memory_space<vmem>>, %arg4: memref<104x64xf32, #tpu.memory_space<vmem>>) attributes {dimension_semantics = [#tpu.dimension_semantics<parallel>], iteration_bounds = array<i64: 1>, scalar_prefetch = 0 : i64, scratch_operands = 0 : i64, tpu.core_type = #tpu.core_type<tc>, window_params = [{transform_indices = @transform_0, window_bounds = array<i64: 104, 640>}, {pipeline_mode = #tpu.pipeline_mode<synchronous>, transform_indices = @transform_1, window_bounds = array<i64: 640, 128>}, {pipeline_mode = #tpu.pipeline_mode<synchronous>, transform_indices = @transform_2, window_bounds = array<i64: 1, 128>}, {transform_indices = @transform_3, window_bounds = array<i64: 104, 64>}]} {
    %c0 = arith.constant 0 : index
    %c0_0 = arith.constant 0 : index
    %0 = vector.load %arg1[%c0, %c0_0] : memref<104x640xbf16, #tpu.memory_space<vmem>>, vector<104x640xbf16>
    %c0_1 = arith.constant 0 : index
    %c0_2 = arith.constant 0 : index
    %1 = vector.load %arg2[%c0_1, %c0_2] : memref<640x128xbf16, #tpu.memory_space<vmem>>, vector<640x128xbf16>
    %cst = arith.constant dense<0.000000e+00> : vector<104x128xf32>
    %2 = tpu.matmul %0, %1, %cst {dimension_numbers = #tpu.dot_dimension_numbers<[1], [0], [0], [1], [0, 0, 1, 1], [], []>} : vector<104x640xbf16>, vector<640x128xbf16>, vector<104x128xf32> -> vector<104x128xf32>
    %c0_3 = arith.constant 0 : index
    %c0_4 = arith.constant 0 : index
    %3 = vector.load %arg3[%c0_3, %c0_4] : memref<1x128xf32, #tpu.memory_space<vmem>>, vector<1x128xf32>
    %4 = vector.broadcast %3 : vector<1x128xf32> to vector<104x128xf32>
    %5 = arith.addf %2, %4 : vector<104x128xf32>
    %6 = vector.extract_strided_slice %5 {offsets = [0, 0], sizes = [104, 64], strides = [1, 1]} : vector<104x128xf32> to vector<104x64xf32>
    %7 = vector.extract_strided_slice %5 {offsets = [0, 64], sizes = [104, 64], strides = [1, 1]} : vector<104x128xf32> to vector<104x64xf32>
    %8 = arith.negf %7 : vector<104x64xf32>
    %9 = math.exp %8 : vector<104x64xf32>
    %cst_5 = arith.constant 1.000000e+00 : f32
    %10 = vector.broadcast %cst_5 : f32 to vector<104x64xf32>
    %11 = arith.addf %10, %9 : vector<104x64xf32>
    %12 = arith.divf %10, %11 : vector<104x64xf32>
    %13 = arith.mulf %6, %12 : vector<104x64xf32>
    %c0_6 = arith.constant 0 : index
    %c0_7 = arith.constant 0 : index
    %14 = vector.load %arg4[%c0_6, %c0_7] : memref<104x64xf32, #tpu.memory_space<vmem>>, vector<104x64xf32>
    tpu.vector_store %arg4[%c0_6, %c0_7], %13 {strides = array<i32>} : memref<104x64xf32, #tpu.memory_space<vmem>>, vector<104x64xf32>,
    return
  }
  func.func @transform_0(%arg0: i32) -> (i32, i32) {
    %c0_i32 = arith.constant 0 : i32
    %c0_i32_0 = arith.constant 0 : i32
    return %arg0, %c0_i32 : i32, i32
  }
  func.func @transform_1(%arg0: i32) -> (i32, i32) {
    %c0_i32 = arith.constant 0 : i32
    %c0_i32_0 = arith.constant 0 : i32
    %c0_i32_1 = arith.constant 0 : i32
    return %c0_i32, %c0_i32_0 : i32, i32
  }
  func.func @transform_2(%arg0: i32) -> (i32, i32) {
    %c0_i32 = arith.constant 0 : i32
    %c0_i32_0 = arith.constant 0 : i32
    %c0_i32_1 = arith.constant 0 : i32
    return %c0_i32, %c0_i32_0 : i32, i32
  }
  func.func @transform_3(%arg0: i32) -> (i32, i32) {
    %c0_i32 = arith.constant 0 : i32
    %c0_i32_0 = arith.constant 0 : i32
    return %arg0, %c0_i32 : i32, i32
  }
}

module attributes {stable_mosaic.version = 11 : i64} {
  func.func @_head_kernel(%arg0: i32, %arg1: memref<8x384xf32, #tpu.memory_space<vmem>>, %arg2: memref<384x128xf32, #tpu.memory_space<vmem>>, %arg3: memref<1x128xf32, #tpu.memory_space<vmem>>, %arg4: memref<8x64xf32, #tpu.memory_space<vmem>>, %arg5: memref<8x64xf32, #tpu.memory_space<vmem>>) attributes {dimension_semantics = [#tpu.dimension_semantics<parallel>], iteration_bounds = array<i64: 1>, scalar_prefetch = 0 : i64, scratch_operands = 0 : i64, tpu.core_type = #tpu.core_type<tc>, window_params = [{transform_indices = @transform_0, window_bounds = array<i64: 8, 384>}, {pipeline_mode = #tpu.pipeline_mode<synchronous>, transform_indices = @transform_1, window_bounds = array<i64: 384, 128>}, {pipeline_mode = #tpu.pipeline_mode<synchronous>, transform_indices = @transform_2, window_bounds = array<i64: 1, 128>}, {transform_indices = @transform_3, window_bounds = array<i64: 8, 64>}, {transform_indices = @transform_4, window_bounds = array<i64: 8, 64>}]} {
    %c0 = arith.constant 0 : index
    %c0_0 = arith.constant 0 : index
    %0 = vector.load %arg1[%c0, %c0_0] : memref<8x384xf32, #tpu.memory_space<vmem>>, vector<8x384xf32>
    %c0_1 = arith.constant 0 : index
    %c0_2 = arith.constant 0 : index
    %1 = vector.load %arg2[%c0_1, %c0_2] : memref<384x128xf32, #tpu.memory_space<vmem>>, vector<384x128xf32>
    %cst = arith.constant dense<0.000000e+00> : vector<8x128xf32>
    %2 = tpu.matmul %0, %1, %cst {dimension_numbers = #tpu.dot_dimension_numbers<[1], [0], [0], [1], [0, 0, 1, 1], [], []>} : vector<8x384xf32>, vector<384x128xf32>, vector<8x128xf32> -> vector<8x128xf32>
    %c0_3 = arith.constant 0 : index
    %c0_4 = arith.constant 0 : index
    %3 = vector.load %arg3[%c0_3, %c0_4] : memref<1x128xf32, #tpu.memory_space<vmem>>, vector<1x128xf32>
    %4 = vector.broadcast %3 : vector<1x128xf32> to vector<8x128xf32>
    %5 = arith.addf %2, %4 : vector<8x128xf32>
    %6 = vector.extract_strided_slice %5 {offsets = [0, 0], sizes = [8, 64], strides = [1, 1]} : vector<8x128xf32> to vector<8x64xf32>
    %c0_5 = arith.constant 0 : index
    %c0_6 = arith.constant 0 : index
    %7 = vector.load %arg4[%c0_5, %c0_6] : memref<8x64xf32, #tpu.memory_space<vmem>>, vector<8x64xf32>
    tpu.vector_store %arg4[%c0_5, %c0_6], %6 {strides = array<i32>} : memref<8x64xf32, #tpu.memory_space<vmem>>, vector<8x64xf32>,
    %8 = vector.extract_strided_slice %5 {offsets = [0, 64], sizes = [8, 64], strides = [1, 1]} : vector<8x128xf32> to vector<8x64xf32>
    %cst_7 = arith.constant -6.000000e+00 : f32
    %cst_8 = arith.constant 2.000000e+00 : f32
    %9 = vector.broadcast %cst_7 : f32 to vector<8x64xf32>
    %10 = arith.maximumf %9, %8 : vector<8x64xf32>
    %11 = vector.broadcast %cst_8 : f32 to vector<8x64xf32>
    %12 = arith.minimumf %11, %10 : vector<8x64xf32>
    %c0_9 = arith.constant 0 : index
    %c0_10 = arith.constant 0 : index
    %13 = vector.load %arg5[%c0_9, %c0_10] : memref<8x64xf32, #tpu.memory_space<vmem>>, vector<8x64xf32>
    tpu.vector_store %arg5[%c0_9, %c0_10], %12 {strides = array<i32>} : memref<8x64xf32, #tpu.memory_space<vmem>>, vector<8x64xf32>,
    return
  }
  func.func @transform_0(%arg0: i32) -> (i32, i32) {
    %c0_i32 = arith.constant 0 : i32
    %c0_i32_0 = arith.constant 0 : i32
    return %arg0, %c0_i32 : i32, i32
  }
  func.func @transform_1(%arg0: i32) -> (i32, i32) {
    %c0_i32 = arith.constant 0 : i32
    %c0_i32_0 = arith.constant 0 : i32
    %c0_i32_1 = arith.constant 0 : i32
    return %c0_i32, %c0_i32_0 : i32, i32
  }
  func.func @transform_2(%arg0: i32) -> (i32, i32) {
    %c0_i32 = arith.constant 0 : i32
    %c0_i32_0 = arith.constant 0 : i32
    %c0_i32_1 = arith.constant 0 : i32
    return %c0_i32, %c0_i32_0 : i32, i32
  }
  func.func @transform_3(%arg0: i32) -> (i32, i32) {
    %c0_i32 = arith.constant 0 : i32
    %c0_i32_0 = arith.constant 0 : i32
    return %arg0, %c0_i32 : i32, i32
  }
  func.func @transform_4(%arg0: i32) -> (i32, i32) {
    %c0_i32 = arith.constant 0 : i32
    %c0_i32_0 = arith.constant 0 : i32
    return %arg0, %c0_i32 : i32, i32
  }
}

</mosaic_0001>

<bundles_post_ra>
// kernel: encoder_forward.6
= control target key start
LH: loop header
LB: loop body
LE: loop exit
PB: predicated region body
PF: predicated region fallthrough
CT: control target
= control target key end

     0   :  { %s2202_s12 = smov 0   ;;  %s2803_s0 = inlined_call_operand.vmem [shape: bf16[2048,128], index: 0, kind: input, shape index: {}]   ;;  %s2804_s1 = inlined_call_operand.vmem [shape: bf16[128,128], index: 1, kind: input, shape index: {}]   ;;  %s2805_s2 = inlined_call_operand.vmem [shape: f32[1,128], index: 2, kind: input, shape index: {}]   ;;  %s2806_s3 = inlined_call_operand.vmem [shape: f32[2048,64], index: 3, kind: output, shape index: {}]  }
   0x1 LB: > { %s1616_s13 = sadd.s32 4294967295, %s2179_s12   ;;  %p1620_p0 = scmp.ge.s32.totalorder %s2179_s12, 1  ;;  %s2179_s12 = sphi %s2202_s12, %s13_s12  }
   0x2   : > { %p138_p1 = scmp.lt.s32.totalorder %s2179_s12, 5 }
   0x4   : > { %p139_p2 = pnand %p1620_p0, %p138_p1 }
   0x6   : > { %142 = sbr.rel (%p139_p2) target bundleno = 515 (0x203), region = 32 }
   0xb   : > { %v1877_v0 = vld [vmem:[%s2804_s1 + $0x38] sm:$0xff]   ;;  %s1621_s16 = sshll.u32 %s1616_s13, 6  ;;  %v1878_v1 = vld [vmem:[%s2804_s1 + $0x30] sm:$0xff]   ;;  %v1879_v2 = vld [vmem:[%s2804_s1 + $0x28] sm:$0xff]   ;;  %s2181_s10 = smov 64   ;;  %vm1495_vm0 = vcmask 523264  }
   0xc   : > { %p163_p3 = scmp.lt.s32.totalorder %s1621_s16, 255  ;;  %1772 = vmatprep.subr.bf16.mxu0 %v1877_v0  ;;  %1852 = vmatprep.subr.bf16.mxu1 %v1877_v0  ;;  %v1880_v3 = vld [vmem:[%s2804_s1 + $0x20] sm:$0xff]   ;;  %v1881_v6 = vld [vmem:[%s2804_s1 + $0x18] sm:$0xff]   ;;  %v1882_v7 = vld [vmem:[%s2804_s1 + $0x10] sm:$0xff]  }
   0xd   : > { %1773 = vmatpush3.bf16.msra.mxu0 %v1877_v0  ;;  %1860 = vmatpush3.bf16.msra.mxu1 %v1877_v0  ;;  %v1883_v8 = vld [vmem:[%s2804_s1 + $0x8] sm:$0xff]   ;;  %v1884_v9 = vld [vmem:[%s2804_s1] sm:$0xff]  }
   0xe   : > { %s2862_s16 = smov (!%p163_p3, %s1621_s16), 255  ;;  %1774 = vmatprep.subr.bf16.mxu0 %v1878_v1  ;;  %1853 = vmatprep.subr.bf16.mxu1 %v1878_v1  ;;  %v2277_v40 = vld [vmem:[%s2805_s2] ss:$0 sm:$0xff] }
   0xf   : > { %s1622_s21 = sshll.u32 %s2862_s16, 2  ;;  %s1624_s11 = sshll.u32 %s2862_s16, 3 }
  0x10   : > { %s2225_s24 = scalar_lea.vmem %s2803_s0, %s1622_s21  ;;  %s2600_s15 = scalar_lea.vmem %s2806_s3, %s1624_s11 }
  0x11   : > { %1775 = vmatpush3.bf16.msra.mxu0 %v1878_v1  ;;  %1861 = vmatpush3.bf16.msra.mxu1 %v1878_v1  ;;  %v1885_v4 = vld [vmem:[%s2225_s24] sm:$0xff]   ;;  %v1887_v10 = vld [vmem:[%s2225_s24 + $0x8] sm:$0xff]   ;;  %v1889_v12 = vld [vmem:[%s2225_s24 + $0x10] sm:$0xff]  }
  0x12   : > { %1776 = vmatprep.subr.bf16.mxu0 %v1879_v2  ;;  %1854 = vmatprep.subr.bf16.mxu1 %v1879_v2  ;;  %v1886_v5 = vld [vmem:[%s2225_s24 + $0x80] sm:$0xff]   ;;  %v1888_v11 = vld [vmem:[%s2225_s24 + $0x88] sm:$0xff]   ;;  %v1891_v13 = vld [vmem:[%s2225_s24 + $0x90] sm:$0xff]  }
  0x13   : > { %1788 = vmatprep.mubr.bf16.mxu0 %v1885_v4  ;;  %1820 = vmatprep.mubr.bf16.mxu1 %v1886_v5  ;;  %v1890_v14 = vld [vmem:[%s2225_s24 + $0x18] sm:$0xff]   ;;  %v1893_v16 = vld [vmem:[%s2225_s24 + $0x20] sm:$0xff]   ;;  %v1894_v18 = vld [vmem:[%s2225_s24 + $0x28] sm:$0xff]  }
  0x14   : > { %v1892_v15 = vld [vmem:[%s2225_s24 + $0x98] sm:$0xff]   ;;  %v1895_v17 = vld [vmem:[%s2225_s24 + $0xa0] sm:$0xff]   ;;  %v1896_v19 = vld [vmem:[%s2225_s24 + $0xa8] sm:$0xff]  }
  0x15   : > { %1777 = vmatpush3.bf16.msra.mxu0 %v1879_v2  ;;  %1862 = vmatpush3.bf16.msra.mxu1 %v1879_v2  ;;  %v1897_v20 = vld [vmem:[%s2225_s24 + $0x30] sm:$0xff]   ;;  %v1898_v22 = vld [vmem:[%s2225_s24 + $0x38] sm:$0xff]   ;;  %v1901_v24 = vld [vmem:[%s2225_s24 + $0x40] sm:$0xff]  }
  0x16   : > { %1778 = vmatprep.subr.bf16.mxu0 %v1880_v3  ;;  %1855 = vmatprep.subr.bf16.mxu1 %v1880_v3  ;;  %v1899_v21 = vld [vmem:[%s2225_s24 + $0xb0] sm:$0xff]   ;;  %v1900_v23 = vld [vmem:[%s2225_s24 + $0xb8] sm:$0xff]   ;;  %v1903_v25 = vld [vmem:[%s2225_s24 + $0xc0] sm:$0xff]  }
  0x17   : > { %v1902_v26 = vld [vmem:[%s2225_s24 + $0x48] sm:$0xff]   ;;  %v1905_v28 = vld [vmem:[%s2225_s24 + $0x50] sm:$0xff]   ;;  %v1906_v30 = vld [vmem:[%s2225_s24 + $0x58] sm:$0xff]  }
  0x18   : > { %v1904_v27 = vld [vmem:[%s2225_s24 + $0xc8] sm:$0xff]   ;;  %v1907_v29 = vld [vmem:[%s2225_s24 + $0xd0] sm:$0xff]   ;;  %v1908_v31 = vld [vmem:[%s2225_s24 + $0xd8] sm:$0xff]  }
  0x19   : > { %1779 = vmatpush3.bf16.msra.mxu0 %v1880_v3  ;;  %1863 = vmatpush3.bf16.msra.mxu1 %v1880_v3  ;;  %v1909_v32 = vld [vmem:[%s2225_s24 + $0x60] sm:$0xff]   ;;  %v1910_v34 = vld [vmem:[%s2225_s24 + $0x68] sm:$0xff]   ;;  %v1913_v36 = vld [vmem:[%s2225_s24 + $0x70] sm:$0xff]  }
  0x1a   : > { %1780 = vmatprep.subr.bf16.mxu0 %v1881_v6  ;;  %1856 = vmatprep.subr.bf16.mxu1 %v1881_v6  ;;  %v1911_v33 = vld [vmem:[%s2225_s24 + $0xe0] sm:$0xff]   ;;  %v1912_v35 = vld [vmem:[%s2225_s24 + $0xe8] sm:$0xff]   ;;  %v1915_v37 = vld [vmem:[%s2225_s24 + $0xf0] sm:$0xff]  }
  0x1b   : > { %v1914_v38 = vld [vmem:[%s2225_s24 + $0x78] sm:$0xff]  }
  0x1c   : > { %v1916_v39 = vld [vmem:[%s2225_s24 + $0xf8] sm:$0xff]  }
  0x1d   : > { %1781 = vmatpush3.bf16.msra.mxu0 %v1881_v6  ;;  %1864 = vmatpush3.bf16.msra.mxu1 %v1881_v6 }
  0x1e   : > { %1782 = vmatprep.subr.bf16.mxu0 %v1882_v7  ;;  %1857 = vmatprep.subr.bf16.mxu1 %v1882_v7 }
  0x21   : > { %1783 = vmatpush3.bf16.msra.mxu0 %v1882_v7  ;;  %1865 = vmatpush3.bf16.msra.mxu1 %v1882_v7 }
  0x22   : > { %1784 = vmatprep.subr.bf16.mxu0 %v1883_v8  ;;  %1858 = vmatprep.subr.bf16.mxu1 %v1883_v8 }
  0x25   : > { %1785 = vmatpush3.bf16.msra.mxu0 %v1883_v8  ;;  %1866 = vmatpush3.bf16.msra.mxu1 %v1883_v8 }
  0x26   : > { %1786 = vmatprep.subr.bf16.mxu0 %v1884_v9  ;;  %1859 = vmatprep.subr.bf16.mxu1 %v1884_v9 }
  0x29   : > { %1787 = vmatpush3.bf16.msra.mxu0 %v1884_v9  ;;  %1867 = vmatpush3.bf16.msra.mxu1 %v1884_v9 }
  0x2c   : > { %1789 = vmatmul.mubr.bf16.vlgmr.msra.gmra.mxu0 %v1887_v10  ;;  %1821 = vmatmul.mubr.bf16.vlgmr.msra.gmra.mxu1 %v1888_v11 }
  0x2d   : > { %1792 = vmatprep.mubr.bf16.mxu0 %v1889_v12  ;;  %1824 = vmatprep.mubr.bf16.mxu1 %v1891_v13 }
  0x34   : > { %1793 = vmatmul.mubr.bf16.gmra.mxu0 %v1890_v14  ;;  %1825 = vmatmul.mubr.bf16.gmra.mxu1 %v1892_v15 }
  0x35   : > { %1796 = vmatprep.mubr.bf16.mxu0 %v1893_v16  ;;  %1828 = vmatprep.mubr.bf16.mxu1 %v1895_v17 }
  0x3c   : > { %1797 = vmatmul.mubr.bf16.gmra.mxu0 %v1894_v18  ;;  %1829 = vmatmul.mubr.bf16.gmra.mxu1 %v1896_v19 }
  0x3d   : > { %1800 = vmatprep.mubr.bf16.mxu0 %v1897_v20  ;;  %1832 = vmatprep.mubr.bf16.mxu1 %v1899_v21 }
  0x44   : > { %1801 = vmatmul.mubr.bf16.gmra.mxu0 %v1898_v22  ;;  %1833 = vmatmul.mubr.bf16.gmra.mxu1 %v1900_v23 }
  0x45   : > { %1804 = vmatprep.mubr.bf16.mxu0 %v1901_v24  ;;  %1836 = vmatprep.mubr.bf16.mxu1 %v1903_v25 }
  0x4c   : > { %1805 = vmatmul.mubr.bf16.gmra.mxu0 %v1902_v26  ;;  %1837 = vmatmul.mubr.bf16.gmra.mxu1 %v1904_v27 }
  0x4d   : > { %1808 = vmatprep.mubr.bf16.mxu0 %v1905_v28  ;;  %1840 = vmatprep.mubr.bf16.mxu1 %v1907_v29 }
  0x54   : > { %1809 = vmatmul.mubr.bf16.gmra.mxu0 %v1906_v30  ;;  %1841 = vmatmul.mubr.bf16.gmra.mxu1 %v1908_v31 }
  0x55   : > { %1812 = vmatprep.mubr.bf16.mxu0 %v1909_v32  ;;  %1844 = vmatprep.mubr.bf16.mxu1 %v1911_v33 }
  0x5c   : > { %1813 = vmatmul.mubr.bf16.gmra.mxu0 %v1910_v34  ;;  %1845 = vmatmul.mubr.bf16.gmra.mxu1 %v1912_v35 }
  0x5d   : > { %1816 = vmatprep.mubr.bf16.mxu0 %v1913_v36  ;;  %1848 = vmatprep.mubr.bf16.mxu1 %v1915_v37 }
  0x64   : > { %1817 = vmatmul.mubr.bf16.gmra.mxu0 %v1914_v38  ;;  %1849 = vmatmul.mubr.bf16.gmra.mxu1 %v1916_v39 }
  0xec   : > { %v1790_v41 = vpop.f32.mrf.mxu0  ;;  %v1822_v42 = vpop.f32.mrf.mxu1 }
  0xed   : > { %v2280_v43 = vadd.f32 %v1790_v41, %v2277_v40  ;;  %v2283_v44 = vadd.f32 %v1822_v42, %v2277_v40 }
  0xee   : > { %v536_v45 = vpop.f32.mrf.mxu0  ;;  %v664_v46 = vpop.f32.mrf.mxu1 }
  0xef   : > { %v1668_v47 = vmul.f32 -1.442695, %v2280_v43  ;;  %v1700_v48 = vmul.f32 -1.442695, %v2283_v44  ;;  %v2288_v49 = vadd.f32 %v2277_v40, %v536_v45  ;;  %v2291_v50 = vadd.f32 %v2277_v40, %v664_v46 }
  0xf0   : > { %v1791_v51 = vpop.f32.mrf.mxu0  ;;  %v1823_v52 = vpop.f32.mrf.mxu1 }
  0xf1   : > { %1917 = vpow2.f32 %v1668_v47  ;;  %v1666_v53 = vmul.f32 -1.442695, %v2288_v49  ;;  %v1698_v54 = vmul.f32 -1.442695, %v2291_v50  ;;  %v2296_v55 = vadd.f32 %v1791_v51, %v2277_v40 }
  0xf2   : > { %1919 = vpow2.f32 %v1700_v48  ;;  %v2299_v56 = vadd.f32 %v1823_v52, %v2277_v40  ;;  %v539_v57 = vpop.f32.mrf.mxu0  ;;  %v667_v58 = vpop.f32.mrf.mxu1 }
  0xf3   : > { %1921 = vpow2.f32 %v1666_v53  ;;  %v1669_v59 = vmul.f32 -1.442695, %v2296_v55  ;;  %v2303_v60 = vadd.f32 %v2277_v40, %v539_v57  ;;  %v2306_v61 = vadd.f32 %v2277_v40, %v667_v58 }
  0xf4   : > { %1923 = vpow2.f32 %v1698_v54  ;;  %v1701_v62 = vmul.f32 -1.442695, %v2299_v56  ;;  %v1794_v63 = vpop.f32.mrf.mxu0  ;;  %v1826_v0 = vpop.f32.mrf.mxu1 }
  0xf5   : > { %1925 = vpow2.f32 %v1669_v59  ;;  %v1667_v1 = vmul.f32 -1.442695, %v2303_v60  ;;  %v1699_v2 = vmul.f32 -1.442695, %v2306_v61  ;;  %v2312_v3 = vadd.f32 %v1794_v63, %v2277_v40 }
  0xf6   : > { %1927 = vpow2.f32 %v1701_v62  ;;  %v552_v4 = vpop.f32.mrf.mxu0  ;;  %v2315_v5 = vadd.f32 %v1826_v0, %v2277_v40  ;;  %v680_v6 = vpop.f32.mrf.mxu1 }
  0xf7   : > { %1929 = vpow2.f32 %v1667_v1  ;;  %v1672_v7 = vmul.f32 -1.442695, %v2312_v3  ;;  %v2319_v8 = vadd.f32 %v2277_v40, %v552_v4  ;;  %v2327_v14 = vadd.f32 %v2277_v40, %v680_v6 }
  0xf8   : > { %1931 = vpow2.f32 %v1699_v2  ;;  %v1704_v9 = vmul.f32 -1.442695, %v2315_v5  ;;  %v1795_v10 = vpop.f32.mrf.mxu0  ;;  %v1827_v11 = vpop.f32.mrf.mxu1 }
  0xf9   : > { %1933 = vpow2.f32 %v1672_v7  ;;  %v1670_v12 = vmul.f32 -1.442695, %v2319_v8  ;;  %v2324_v13 = vadd.f32 %v1795_v10, %v2277_v40  ;;  %v2330_v16 = vadd.f32 %v1827_v11, %v2277_v40 }
  0xfa   : > { %1935 = vpow2.f32 %v1704_v9  ;;  %v555_v15 = vpop.f32.mrf.mxu0  ;;  %v683_v17 = vpop.f32.mrf.mxu1  ;;  %v1702_v29 = vmul.f32 -1.442695, %v2327_v14 }
  0xfb   : > { %1937 = vpow2.f32 %v1670_v12  ;;  %v1673_v18 = vmul.f32 -1.442695, %v2324_v13  ;;  %v2334_v19 = vadd.f32 %v2277_v40, %v555_v15  ;;  %v2337_v20 = vadd.f32 %v2277_v40, %v683_v17 }
  0xfc   : > { %v1705_v21 = vmul.f32 -1.442695, %v2330_v16  ;;  %v1798_v22 = vpop.f32.mrf.mxu0  ;;  %v1830_v33 = vpop.f32.mrf.mxu1 }
  0xfd   : > { %1939 = vpow2.f32 %v1673_v18  ;;  %v1671_v23 = vmul.f32 -1.442695, %v2334_v19  ;;  %v1703_v24 = vmul.f32 -1.442695, %v2337_v20  ;;  %v2344_v0 = vadd.f32 %v1798_v22, %v2277_v40 }
  0xfe   : > { %v1918_v25 = vpop.eup %1917  ;;  %1941 = vpow2.f32 %v1705_v21  ;;  %v568_v26 = vpop.f32.mrf.mxu0  ;;  %v2353_v12 = vadd.f32 %v1830_v33, %v2277_v40 }
  0xff   : > { %v1920_v27 = vpop.eup %1919  ;;  %v985_v28 = vadd.f32 1.0, %v1918_v25  ;;  %1943 = vpow2.f32 %v1671_v23  ;;  %v696_v46 = vpop.f32.mrf.mxu1  ;;  %v2347_v2 = vadd.f32 %v2277_v40, %v568_v26  ;;  %v1676_v21 = vmul.f32 -1.442695, %v2344_v0 }
 0x100   : > { %v1922_v30 = vpop.eup %1921  ;;  %v1017_v31 = vadd.f32 1.0, %v1920_v27  ;;  %1945 = vpow2.f32 %v1703_v24  ;;  %v1799_v32 = vpop.f32.mrf.mxu0  ;;  %v2361_v26 = vadd.f32 %v2277_v40, %v696_v46  ;;  %v1708_v33 = vmul.f32 -1.442695, %v2353_v12 }
 0x101   : > { %v1924_v34 = vpop.eup %1923  ;;  %1947 = vrcp.f32 %v985_v28  ;;  %v983_v35 = vadd.f32 1.0, %v1922_v30  ;;  %v1831_v62 = vpop.f32.mrf.mxu1  ;;  %v2350_v9 = vadd.f32 %v1799_v32, %v2277_v40  ;;  %v1674_v25 = vmul.f32 -1.442695, %v2347_v2 }
 0x102   : > { %v1926_v36 = vpop.eup %1925  ;;  %1949 = vrcp.f32 %v1017_v31  ;;  %v1015_v37 = vadd.f32 1.0, %v1924_v34  ;;  %v571_v45 = vpop.f32.mrf.mxu0  ;;  %v2365_v31 = vadd.f32 %v1831_v62, %v2277_v40 }
 0x103   : > { %v1928_v38 = vpop.eup %1927  ;;  %v986_v39 = vadd.f32 1.0, %v1926_v36  ;;  %1951 = vpow2.f32 %v1702_v29  ;;  %v699_v15 = vpop.f32.mrf.mxu1  ;;  %v2357_v22 = vadd.f32 %v2277_v40, %v571_v45  ;;  %v1677_v30 = vmul.f32 -1.442695, %v2350_v9 }
 0x104   : > { %v1930_v41 = vpop.eup %1929  ;;  %1953 = vrcp.f32 %v983_v35  ;;  %v1018_v42 = vadd.f32 1.0, %v1928_v38  ;;  %v1802_v53 = vpop.f32.mrf.mxu0  ;;  %v2370_v34 = vadd.f32 %v2277_v40, %v699_v15 }
 0x105   : > { %v1932_v47 = vpop.eup %1931  ;;  %1955 = vrcp.f32 %v986_v39  ;;  %v984_v48 = vadd.f32 1.0, %v1930_v41  ;;  %v1834_v28 = vpop.f32.mrf.mxu1  ;;  %v1675_v36 = vmul.f32 -1.442695, %v2357_v22  ;;  %v1706_v39 = vmul.f32 -1.442695, %v2361_v26 }
 0x106   : > { %v1934_v51 = vpop.eup %1933  ;;  %1957 = vrcp.f32 %v1015_v37  ;;  %v1016_v52 = vadd.f32 1.0, %v1932_v47  ;;  %v584_v4 = vpop.f32.mrf.mxu0  ;;  %v2375_v37 = vadd.f32 %v1802_v53, %v2277_v40  ;;  %v1709_v47 = vmul.f32 -1.442695, %v2365_v31 }
 0x107   : > { %v1936_v54 = vpop.eup %1935  ;;  %1959 = vrcp.f32 %v1018_v42  ;;  %v989_v57 = vadd.f32 1.0, %v1934_v51  ;;  %v2379_v41 = vadd.f32 %v2277_v40, %v584_v4  ;;  %v712_v45 = vpop.f32.mrf.mxu1  ;;  %v2389_v53 = vadd.f32 %v1834_v28, %v2277_v40 }
 0x108   : > { %v1938_v58 = vpop.eup %1937  ;;  %1961 = vrcp.f32 %v984_v48  ;;  %v1021_v59 = vadd.f32 1.0, %v1936_v54  ;;  %v1803_v27 = vpop.f32.mrf.mxu0 }
 0x109   : > { %1963 = vrcp.f32 %v1016_v52  ;;  %v987_v63 = vadd.f32 1.0, %v1938_v58  ;;  %v2384_v48 = vadd.f32 %v1803_v27, %v2277_v40  ;;  %v1707_v52 = vmul.f32 -1.442695, %v2370_v34 }
 0x10a   : > { %v1940_v1 = vpop.eup %1939  ;;  %1965 = vrcp.f32 %v989_v57  ;;  %v587_v42 = vpop.f32.mrf.mxu0  ;;  %v1680_v57 = vmul.f32 -1.442695, %v2375_v37  ;;  %v1678_v62 = vmul.f32 -1.442695, %v2379_v41  ;;  %v2407_v27 = vadd.f32 %v2277_v40, %v712_v45 }
 0x10b   : > { %v1942_v6 = vpop.eup %1941  ;;  %1967 = vrcp.f32 %v1021_v59  ;;  %v990_v7 = vadd.f32 1.0, %v1940_v1  ;;  %v2393_v58 = vadd.f32 %v2277_v40, %v587_v42  ;;  %v1681_v4 = vmul.f32 -1.442695, %v2384_v48 }
 0x10c   : > { %v1944_v10 = vpop.eup %1943  ;;  %1969 = vrcp.f32 %v987_v63  ;;  %v1022_v11 = vadd.f32 1.0, %v1942_v6  ;;  %v1835_v63 = vpop.f32.mrf.mxu1 }
 0x10d   : > { %v1946_v17 = vpop.eup %1945  ;;  %1971 = vrcp.f32 %v990_v7  ;;  %v988_v18 = vadd.f32 1.0, %v1944_v10  ;;  %v2399_v6 = vadd.f32 %v1835_v63, %v2277_v40  ;;  %v1712_v10 = vmul.f32 -1.442695, %v2389_v53  ;;  %v1806_v28 = vpop.f32.mrf.mxu0 }
 0x10e   : > { %v1948_v23 = vpop.eup %1947  ;;  %1973 = vrcp.f32 %v1022_v11  ;;  %v1020_v24 = vadd.f32 1.0, %v1946_v17  ;;  %v1679_v15 = vmul.f32 -1.442695, %v2393_v58 }
 0x10f   : > { %v1950_v29 = vpop.eup %1949  ;;  %1975 = vrcp.f32 %v988_v18  ;;  %1243 = vrot.lane.b32.xlu1 %v1948_v23, %s2181_s10 }
 0x110   : > { %v1952_v32 = vpop.eup %1951  ;;  %1977 = vrcp.f32 %v1020_v24  ;;  %1307 = vrot.lane.b32.xlu0 %v1950_v29, %s2181_s10  ;;  %v1713_v24 = vmul.f32 -1.442695, %v2399_v6 }
 0x111   : > { %v1954_v35 = vpop.eup %1953  ;;  %1979 = vpow2.f32 %v1676_v21  ;;  %v1019_v18 = vadd.f32 1.0, %v1952_v32  ;;  %v715_v21 = vpop.f32.mrf.mxu1 }
 0x112   : > { %v1956_v38 = vpop.eup %1955  ;;  %1981 = vpow2.f32 %v1674_v25 }
 0x113   : > { %v1958_v46 = vpop.eup %1957  ;;  %1983 = vpow2.f32 %v1677_v30  ;;  %1245 = vrot.lane.b32.xlu1 %v1956_v38, %s2181_s10  ;;  %v2411_v30 = vadd.f32 %v2277_v40, %v715_v21  ;;  %v1710_v38 = vmul.f32 -1.442695, %v2407_v27  ;;  %v1838_v42 = vpop.f32.mrf.mxu1 }
 0x114   : > { %v1960_v51 = vpop.eup %1959  ;;  %1985 = vpow2.f32 %v1708_v33  ;;  %1239 = vrot.lane.b32.xlu0 %v1954_v35, %s2181_s10 }
 0x115   : > { %v1962_v54 = vpop.eup %1961  ;;  %1987 = vpow2.f32 %v1675_v36  ;;  %v728_v63 = vpop.f32.mrf.mxu1 }
 0x116   : > { %v1964_v59 = vpop.eup %1963  ;;  %1989 = vpow2.f32 %v1706_v39  ;;  %v600_v39 = vpop.f32.mrf.mxu0 }
 0x117   : > { %v1966_v1 = vpop.eup %1965  ;;  %1991 = vpow2.f32 %v1709_v47  ;;  %1309 = vrot.lane.b32.xlu1 %v1960_v51, %s2181_s10  ;;  %v1711_v47 = vmul.f32 -1.442695, %v2411_v30 }
 0x118   : > { %v1968_v7 = vpop.eup %1967  ;;  %1993 = vpow2.f32 %v1707_v52  ;;  %1303 = vrot.lane.b32.xlu0 %v1958_v46, %s2181_s10 }
 0x119   : > { %v1970_v11 = vpop.eup %1969  ;;  %1995 = vpow2.f32 %v1680_v57 }
 0x11a   : > { %v1972_v17 = vpop.eup %1971  ;;  %1997 = vpow2.f32 %v1678_v62  ;;  %v1807_v62 = vpop.f32.mrf.mxu0 }
 0x11b   : > { %v1974_v23 = vpop.eup %1973  ;;  %1999 = vpow2.f32 %v1681_v4  ;;  %1305 = vrot.lane.b32.xlu1 %v1964_v59, %s2181_s10 }
 0x11c   : > { %v1976_v25 = vpop.eup %1975  ;;  %2001 = vpow2.f32 %v1712_v10  ;;  %1241 = vrot.lane.b32.xlu0 %v1962_v54, %s2181_s10 }
 0x11d   : > { %v1978_v29 = vpop.eup %1977  ;;  %2003 = vpow2.f32 %v1679_v15 }
 0x11e   : > { %v1980_v32 = vpop.eup %1979  ;;  %2005 = vrcp.f32 %v1019_v18 }
 0x11f   : > { %v1982_v33 = vpop.eup %1981  ;;  %v993_v35 = vadd.f32 1.0, %v1980_v32  ;;  %2007 = vpow2.f32 %v1713_v24  ;;  %1253 = vrot.lane.b32.xlu1 %v1972_v17, %s2181_s10  ;;  %v1839_v32 = vpop.f32.mrf.mxu1 }
 0x120   : > { %v1984_v36 = vpop.eup %1983  ;;  %1251 = vrot.lane.b32.xlu0 %v1966_v1, %s2181_s10  ;;  %v991_v59 = vadd.f32 1.0, %v1982_v33 }
 0x121   : > { %v1986_v45 = vpop.eup %1985  ;;  %v994_v46 = vadd.f32 1.0, %v1984_v36  ;;  %2009 = vrcp.f32 %v993_v35  ;;  %v2422_v36 = vadd.f32 %v1806_v28, %v2277_v40  ;;  %v731_v28 = vpop.f32.mrf.mxu1 }
 0x122   : > { %v1988_v51 = vpop.eup %1987  ;;  %v1025_v52 = vadd.f32 1.0, %v1986_v45 }
 0x123   : > { %v1990_v54 = vpop.eup %1989  ;;  %2011 = vrcp.f32 %v994_v46  ;;  %1317 = vrot.lane.b32.xlu1 %v1974_v23, %s2181_s10  ;;  %v992_v4 = vadd.f32 1.0, %v1988_v51  ;;  %v2425_v51 = vadd.f32 %v1807_v62, %v2277_v40 }
 0x124   : > { %v1992_v57 = vpop.eup %1991  ;;  %2013 = vpow2.f32 %v1710_v38  ;;  %1315 = vrot.lane.b32.xlu0 %v1968_v7, %s2181_s10  ;;  %v1023_v17 = vadd.f32 1.0, %v1990_v54  ;;  %v603_v7 = vpop.f32.mrf.mxu0  ;;  %v2429_v54 = vadd.f32 %v1838_v42, %v2277_v40 }
 0x125   : > { %v1994_v1 = vpop.eup %1993  ;;  %v1026_v10 = vadd.f32 1.0, %v1992_v57  ;;  %2015 = vpow2.f32 %v1711_v47  ;;  %v1684_v57 = vmul.f32 -1.442695, %v2422_v36  ;;  %v1685_v42 = vmul.f32 -1.442695, %v2425_v51 }
 0x126   : > { %v1996_v15 = vpop.eup %1995  ;;  %2017 = vrcp.f32 %v1025_v52  ;;  %v1024_v21 = vadd.f32 1.0, %v1994_v1  ;;  %v1810_v46 = vpop.f32.mrf.mxu0  ;;  %v2437_v1 = vadd.f32 %v2277_v40, %v603_v7 }
 0x127   : > { %v1998_v18 = vpop.eup %1997  ;;  %2019 = vrcp.f32 %v1026_v10  ;;  %1249 = vrot.lane.b32.xlu1 %v1976_v25, %s2181_s10  ;;  %v997_v24 = vadd.f32 1.0, %v1996_v15  ;;  %v2441_v15 = vadd.f32 %v1839_v32, %v2277_v40 }
 0x128   : > { %v2000_v23 = vpop.eup %1999  ;;  %2021 = vrcp.f32 %v991_v59  ;;  %1247 = vrot.lane.b32.xlu0 %v1970_v11, %s2181_s10  ;;  %v995_v35 = vadd.f32 1.0, %v1998_v18  ;;  %v2434_v59 = vadd.f32 %v2277_v40, %v600_v39  ;;  %2826 = vst [vmem:[#allocation3_spill] sm:$0xff] %v2437_v1  ;;  %v1716_v18 = vmul.f32 -1.442695, %v2429_v54 }
 0x129   : > { %v2002_v33 = vpop.eup %2001  ;;  %2023 = vrcp.f32 %v992_v4  ;;  %v998_v45 = vadd.f32 1.0, %v2000_v23  ;;  %v1842_v4 = vpop.f32.mrf.mxu1  ;;  %v2445_v39 = vadd.f32 %v2277_v40, %v728_v63  ;;  %v1683_v32 = vmul.f32 -1.442695, %v2437_v1 }
 0x12a   : > { %v2004_v38 = vpop.eup %2003  ;;  %2025 = vrcp.f32 %v1023_v17  ;;  %v1029_v25 = vadd.f32 1.0, %v2002_v33  ;;  %2825 = vst [vmem:[#allocation2_spill] sm:$0xff] %v2434_v59  ;;  %v1682_v23 = vmul.f32 -1.442695, %v2434_v59  ;;  %v2455_v33 = vadd.f32 %v1810_v46, %v2277_v40 }
 0x12b   : > { %v2006_v47 = vpop.eup %2005  ;;  %2027 = vrcp.f32 %v1024_v21  ;;  %1313 = vrot.lane.b32.xlu1 %v1978_v29, %s2181_s10  ;;  %v996_v52 = vadd.f32 1.0, %v2004_v38  ;;  %v616_v29 = vpop.f32.mrf.mxu0  ;;  %2827 = vst [vmem:[#allocation4_spill] sm:$0xff] %v2445_v39 }
 0x12c   : > { %v2008_v11 = vpop.eup %2007  ;;  %2029 = vrcp.f32 %v997_v24  ;;  %1311 = vrot.lane.b32.xlu0 %v2006_v47, %s2181_s10  ;;  %v2450_v24 = vadd.f32 %v2277_v40, %v731_v28  ;;  %2829 = vst [vmem:[#allocation6_spill] sm:$0xff] %v2455_v33 }
 0x12d   : > { %2031 = vrcp.f32 %v995_v35  ;;  %v1030_v62 = vadd.f32 1.0, %v2008_v11  ;;  %v1811_v63 = vpop.f32.mrf.mxu0  ;;  %v744_v35 = vpop.f32.mrf.mxu1  ;;  %v1714_v11 = vmul.f32 -1.442695, %v2445_v39 }
 0x12e   : > { %2033 = vrcp.f32 %v998_v45  ;;  %v2010_v10 = vpop.eup %2009  ;;  %2828 = vst [vmem:[#allocation5_spill] sm:$0xff] %v2450_v24  ;;  %v1717_v45 = vmul.f32 -1.442695, %v2441_v15  ;;  %v2459_v47 = vadd.f32 %v1811_v63, %v2277_v40  ;;  %v1715_v28 = vmul.f32 -1.442695, %v2450_v24 }
 0x12f   : > { %2035 = vrcp.f32 %v1029_v25 }
 0x130   : > { %v2012_v17 = vpop.eup %2011  ;;  %2037 = vrcp.f32 %v996_v52  ;;  %1259 = vrot.lane.b32.xlu0 %v2010_v10, %s2181_s10  ;;  %2830 = vst [vmem:[#allocation7_spill] sm:$0xff] %v2459_v47  ;;  %v2464_v52 = vadd.f32 %v1842_v4, %v2277_v40  ;;  %v1843_v10 = vpop.f32.mrf.mxu1 }
 0x131   : > { %v2014_v21 = vpop.eup %2013  ;;  %2039 = vpow2.f32 %v1684_v57  ;;  %1261 = vrot.lane.b32.xlu1 %v2012_v17, %s2181_s10  ;;  %v1689_v17 = vmul.f32 -1.442695, %v2459_v47 }
 0x132   : > { %v2016_v7 = vpop.eup %2015  ;;  %2041 = vrcp.f32 %v1030_v62  ;;  %2831 = vst [vmem:[#allocation8_spill] sm:$0xff] %v2464_v52  ;;  %v1688_v62 = vmul.f32 -1.442695, %v2455_v33 }
 0x133   : > { %v2018_v38 = vpop.eup %2017  ;;  %2043 = vpow2.f32 %v1685_v42 }
 0x134   : > { %v2020_v25 = vpop.eup %2019  ;;  %2045 = vpow2.f32 %v1716_v18  ;;  %1323 = vrot.lane.b32.xlu0 %v2018_v38, %s2181_s10  ;;  %v2471_v18 = vadd.f32 %v1843_v10, %v2277_v40  ;;  %v1027_v38 = vadd.f32 1.0, %v2014_v21 }
 0x135   : > { %v2022_v46 = vpop.eup %2021  ;;  %2047 = vpow2.f32 %v1682_v23  ;;  %1325 = vrot.lane.b32.xlu1 %v2020_v25, %s2181_s10  ;;  %v1720_v23 = vmul.f32 -1.442695, %v2464_v52  ;;  %v1028_v25 = vadd.f32 1.0, %v2016_v7 }
 0x136   : > { %v2024_v57 = vpop.eup %2023  ;;  %2049 = vpow2.f32 %v1683_v32  ;;  %2832 = vst [vmem:[#allocation9_spill] sm:$0xff] %v2471_v18  ;;  %v1721_v10 = vmul.f32 -1.442695, %v2471_v18 }
 0x137   : > { %v2026_v42 = vpop.eup %2025  ;;  %2051 = vpow2.f32 %v1717_v45  ;;  %v619_v45 = vpop.f32.mrf.mxu0 }
 0x138   : > { %v2028_v4 = vpop.eup %2027  ;;  %2053 = vpow2.f32 %v1714_v11  ;;  %1255 = vrot.lane.b32.xlu0 %v2022_v46, %s2181_s10  ;;  %v2478_v11 = vadd.f32 %v2277_v40, %v616_v29 }
 0x139   : > { %v2030_v63 = vpop.eup %2029  ;;  %2055 = vpow2.f32 %v1715_v28  ;;  %1257 = vrot.lane.b32.xlu1 %v2024_v57, %s2181_s10  ;;  %v1814_v46 = vpop.f32.mrf.mxu0  ;;  %v2482_v28 = vadd.f32 %v2277_v40, %v619_v45 }
 0x13a   : > { %v2032_v32 = vpop.eup %2031  ;;  %2057 = vpow2.f32 %v1688_v62  ;;  %2833 = vst [vmem:[#allocation10_spill] sm:$0xff] %v2478_v11  ;;  %v747_v57 = vpop.f32.mrf.mxu1  ;;  %v1686_v29 = vmul.f32 -1.442695, %v2478_v11 }
 0x13b   : > { %v2034_v33 = vpop.eup %2033  ;;  %2059 = vpow2.f32 %v1689_v17  ;;  %2834 = vst [vmem:[#allocation11_spill] sm:$0xff] %v2482_v28 }
 0x13c   : > { %v2036_v47 = vpop.eup %2035  ;;  %2061 = vpow2.f32 %v1720_v23  ;;  %1319 = vrot.lane.b32.xlu0 %v2026_v42, %s2181_s10  ;;  %v2487_v23 = vadd.f32 %v2277_v40, %v744_v35  ;;  %v632_v42 = vpop.f32.mrf.mxu0 }
 0x13d   : > { %v2038_v21 = vpop.eup %2037  ;;  %2063 = vrcp.f32 %v1027_v38  ;;  %1321 = vrot.lane.b32.xlu1 %v2028_v4, %s2181_s10  ;;  %v1846_v38 = vpop.f32.mrf.mxu1  ;;  %v1687_v4 = vmul.f32 -1.442695, %v2482_v28 }
 0x13e   : > { %v2040_v7 = vpop.eup %2039  ;;  %2065 = vrcp.f32 %v1028_v25  ;;  %2835 = vst [vmem:[#allocation12_spill] sm:$0xff] %v2487_v23  ;;  %v2492_v25 = vadd.f32 %v2277_v40, %v747_v57  ;;  %v1815_v24 = vpop.f32.mrf.mxu0 }
 0x13f   : > { %v2042_v62 = vpop.eup %2041  ;;  %v1001_v17 = vadd.f32 1.0, %v2040_v7  ;;  %2067 = vpow2.f32 %v1721_v10 }
 0x140   : > { %v2044_v18 = vpop.eup %2043  ;;  %1267 = vrot.lane.b32.xlu0 %v2030_v63, %s2181_s10  ;;  %v1718_v63 = vmul.f32 -1.442695, %v2487_v23  ;;  %v1719_v57 = vmul.f32 -1.442695, %v2492_v25 }
 0x141   : > { %v2046_v45 = vpop.eup %2045  ;;  %v1002_v52 = vadd.f32 1.0, %v2044_v18  ;;  %1269 = vrot.lane.b32.xlu1 %v2034_v33, %s2181_s10  ;;  %2069 = vrcp.f32 %v1001_v17  ;;  %v760_v18 = vpop.f32.mrf.mxu1 }
 0x142   : > { %v2048_v10 = vpop.eup %2047  ;;  %v1033_v7 = vadd.f32 1.0, %v2046_v45 }
 0x143   : > { %v2050_v11 = vpop.eup %2049  ;;  %2071 = vrcp.f32 %v1002_v52  ;;  %v999_v17 = vadd.f32 1.0, %v2048_v10  ;;  %v1847_v23 = vpop.f32.mrf.mxu1 }
 0x144   : > { %v2052_v35 = vpop.eup %2051  ;;  %2073 = vpow2.f32 %v1686_v29  ;;  %1331 = vrot.lane.b32.xlu0 %v2036_v47, %s2181_s10  ;;  %v1000_v52 = vadd.f32 1.0, %v2050_v11  ;;  %v635_v47 = vpop.f32.mrf.mxu0 }
 0x145   : > { %v2054_v39 = vpop.eup %2053  ;;  %v1034_v28 = vadd.f32 1.0, %v2052_v35  ;;  %2075 = vpow2.f32 %v1687_v4  ;;  %1333 = vrot.lane.b32.xlu1 %v2042_v62, %s2181_s10  ;;  %v2501_v4 = vadd.f32 %v1814_v46, %v2277_v40  ;;  %v763_v46 = vpop.f32.mrf.mxu1 }
 0x146   : > { %v2056_v33 = vpop.eup %2055  ;;  %2077 = vrcp.f32 %v1033_v7  ;;  %v1031_v1 = vadd.f32 1.0, %v2054_v39  ;;  %v1818_v11 = vpop.f32.mrf.mxu0  ;;  %v2505_v7 = vadd.f32 %v1815_v24, %v2277_v40 }
 0x147   : > { %v2058_v45 = vpop.eup %2057  ;;  %2079 = vrcp.f32 %v1034_v28  ;;  %v1032_v35 = vadd.f32 1.0, %v2056_v33  ;;  %v2513_v33 = vadd.f32 %v2277_v40, %v632_v42 }
 0x148   : > { %v2060_v29 = vpop.eup %2059  ;;  %2081 = vpow2.f32 %v1718_v63  ;;  %1263 = vrot.lane.b32.xlu0 %v2032_v32, %s2181_s10  ;;  %v1005_v10 = vadd.f32 1.0, %v2058_v45  ;;  %v1693_v45 = vmul.f32 -1.442695, %v2505_v7 }
 0x149   : > { %v2062_v59 = vpop.eup %2061  ;;  %2083 = vpow2.f32 %v1719_v57  ;;  %1265 = vrot.lane.b32.xlu1 %v2038_v21, %s2181_s10  ;;  %v1006_v39 = vadd.f32 1.0, %v2060_v29  ;;  %v2508_v57 = vadd.f32 %v1846_v38, %v2277_v40  ;;  %v1692_v21 = vmul.f32 -1.442695, %v2501_v4  ;;  %2837 = vst [vmem:[#allocation14_spill] sm:$0xff] %v2513_v33 }
 0x14a   : > { %v2064_v62 = vpop.eup %2063  ;;  %2085 = vrcp.f32 %v999_v17  ;;  %v1037_v63 = vadd.f32 1.0, %v2062_v59  ;;  %v2517_v17 = vadd.f32 %v2277_v40, %v635_v47  ;;  %v648_v59 = vpop.f32.mrf.mxu0  ;;  %v1690_v47 = vmul.f32 -1.442695, %v2513_v33 }
 0x14b   : > { %v2066_v28 = vpop.eup %2065  ;;  %2087 = vrcp.f32 %v1000_v52  ;;  %2836 = vst [vmem:[#allocation13_spill] sm:$0xff] %v2508_v57  ;;  %v2523_v52 = vadd.f32 %v1847_v23, %v2277_v40  ;;  %v1724_v42 = vmul.f32 -1.442695, %v2508_v57 }
 0x14c   : > { %v2068_v32 = vpop.eup %2067  ;;  %2089 = vrcp.f32 %v1031_v1  ;;  %1327 = vrot.lane.b32.xlu0 %v2064_v62, %s2181_s10  ;;  %2838 = vst [vmem:[#allocation15_spill] sm:$0xff] %v2517_v17  ;;  %v2519_v1 = vpop.f32.mrf.mxu1 }
 0x14d   : > { %2091 = vrcp.f32 %v1032_v35  ;;  %1329 = vrot.lane.b32.xlu1 %v2066_v28, %s2181_s10  ;;  %v1038_v24 = vadd.f32 1.0, %v2068_v32  ;;  %2839 = vst [vmem:[#allocation16_spill] sm:$0xff] %v2523_v52  ;;  %v2531_v28 = vadd.f32 %v2277_v40, %v760_v18  ;;  %v1819_v23 = vpop.f32.mrf.mxu0 }
 0x14e   : > { %2093 = vrcp.f32 %v1005_v10  ;;  %v2070_v38 = vpop.eup %2069  ;;  %v1691_v10 = vmul.f32 -1.442695, %v2517_v17 }
 0x14f   : > { %2095 = vrcp.f32 %v1006_v39  ;;  %v776_v39 = vpop.f32.mrf.mxu1  ;;  %v1722_v17 = vmul.f32 -1.442695, %v2531_v28 }
 0x150   : > { %v2072_v29 = vpop.eup %2071  ;;  %2097 = vrcp.f32 %v1037_v63  ;;  %1275 = vrot.lane.b32.xlu0 %v2070_v38, %s2181_s10  ;;  %v1725_v63 = vmul.f32 -1.442695, %v2523_v52  ;;  %v2535_v38 = vadd.f32 %v2277_v40, %v763_v46  ;;  %v651_v52 = vpop.f32.mrf.mxu0 }
 0x151   : > { %v2074_v35 = vpop.eup %2073  ;;  %2099 = vpow2.f32 %v1692_v21  ;;  %1277 = vrot.lane.b32.xlu1 %v2072_v29, %s2181_s10  ;;  %v1851_v46 = vpop.f32.mrf.mxu1 }
 0x152   : > { %v2076_v62 = vpop.eup %2075  ;;  %2101 = vrcp.f32 %v1038_v24  ;;  %2840 = vst [vmem:[#allocation17_spill] sm:$0xff] %v2535_v38  ;;  %v1003_v33 = vadd.f32 1.0, %v2074_v35  ;;  %v2545_v35 = vadd.f32 %v1819_v23, %v2277_v40 }
 0x153   : > { %v2078_v32 = vpop.eup %2077  ;;  %2103 = vpow2.f32 %v1693_v45  ;;  %v1004_v29 = vadd.f32 1.0, %v2076_v62  ;;  %v2541_v45 = vadd.f32 %v1818_v11, %v2277_v40 }
 0x154   : > { %v2080_v21 = vpop.eup %2079  ;;  %2105 = vpow2.f32 %v1724_v42  ;;  %1339 = vrot.lane.b32.xlu0 %v2078_v32, %s2181_s10  ;;  %v1723_v42 = vmul.f32 -1.442695, %v2535_v38  ;;  %v2548_v32 = vadd.f32 %v2277_v40, %v648_v59  ;;  %v779_v38 = vpop.f32.mrf.mxu1  ;;  %v1697_v59 = vmul.f32 -1.442695, %v2545_v35 }
 0x155   : > { %v2082_v24 = vpop.eup %2081  ;;  %2107 = vpow2.f32 %v1690_v47  ;;  %1341 = vrot.lane.b32.xlu1 %v2080_v21, %s2181_s10  ;;  %v1696_v23 = vmul.f32 -1.442695, %v2541_v45 }
 0x156   : > { %v2084_v18 = vpop.eup %2083  ;;  %2109 = vpow2.f32 %v1691_v10  ;;  %v1035_v47 = vadd.f32 1.0, %v2082_v24  ;;  %2841 = vst [vmem:[#allocation18_spill] sm:$0xff] %v2548_v32 }
 0x157   : > { %v2086_v57 = vpop.eup %2085  ;;  %2111 = vpow2.f32 %v1725_v63  ;;  %v1036_v11 = vadd.f32 1.0, %v2084_v18  ;;  %v2553_v63 = vadd.f32 %v2277_v40, %v651_v52  ;;  %v2565_v18 = vadd.f32 %v2277_v40, %v779_v38 }
 0x158   : > { %v2088_v62 = vpop.eup %2087  ;;  %2113 = vrcp.f32 %v1003_v33  ;;  %1271 = vrot.lane.b32.xlu0 %v2086_v57, %s2181_s10  ;;  %v1694_v57 = vmul.f32 -1.442695, %v2548_v32  ;;  %v2574_v38 = vadd.f32 %v1851_v46, %v2277_v40 }
 0x159   : > { %v2090_v10 = vpop.eup %2089  ;;  %2115 = vrcp.f32 %v1004_v29  ;;  %1273 = vrot.lane.b32.xlu1 %v2088_v62, %s2181_s10  ;;  %v2559_v29 = vadd.f32 %v2277_v40, %v776_v39  ;;  %v2569_v39 = vadd.f32 %v2519_v1, %v2277_v40 }
 0x15a   : > { %v2092_v21 = vpop.eup %2091  ;;  %2117 = vpow2.f32 %v1722_v17  ;;  %v1695_v17 = vmul.f32 -1.442695, %v2553_v63  ;;  %v1729_v40 = vmul.f32 -1.442695, %v2574_v38 }
 0x15b   : > { %v2094_v33 = vpop.eup %2093  ;;  %2119 = vpow2.f32 %v1723_v42  ;;  %2842 = vst [vmem:[#allocation19_spill] sm:$0xff] %v2559_v29 }
 0x15c   : > { %v2096_v24 = vpop.eup %2095  ;;  %2121 = vrcp.f32 %v1035_v47  ;;  %1335 = vrot.lane.b32.xlu0 %v2090_v10, %s2181_s10  ;;  %v1726_v10 = vmul.f32 -1.442695, %v2559_v29  ;;  %v1728_v29 = vmul.f32 -1.442695, %v2569_v39 }
 0x15d   : > { %v2098_v52 = vpop.eup %2097  ;;  %2123 = vrcp.f32 %v1036_v11  ;;  %1337 = vrot.lane.b32.xlu1 %v2092_v21, %s2181_s10 }
 0x15e   : > { %v2100_v42 = vpop.eup %2099  ;;  %2125 = vpow2.f32 %v1696_v23  ;;  %v1727_v23 = vmul.f32 -1.442695, %v2565_v18 }
 0x15f   : > { %v2102_v62 = vpop.eup %2101  ;;  %v1009_v47 = vadd.f32 1.0, %v2100_v42  ;;  %2127 = vpow2.f32 %v1697_v59 }
 0x160   : > { %v2104_v32 = vpop.eup %2103  ;;  %2129 = vpow2.f32 %v1694_v57  ;;  %1283 = vrot.lane.b32.xlu0 %v2094_v33, %s2181_s10 }
 0x161   : > { %v2106_v11 = vpop.eup %2105  ;;  %v1010_v21 = vadd.f32 1.0, %v2104_v32  ;;  %2131 = vpow2.f32 %v1695_v17  ;;  %1285 = vrot.lane.b32.xlu1 %v2096_v24, %s2181_s10 }
 0x162   : > { %v2108_v59 = vpop.eup %2107  ;;  %2133 = vrcp.f32 %v1009_v47  ;;  %v1041_v57 = vadd.f32 1.0, %v2106_v11 }
 0x163   : > { %v2110_v42 = vpop.eup %2109  ;;  %2135 = vrcp.f32 %v1010_v21  ;;  %v1007_v24 = vadd.f32 1.0, %v2108_v59 }
 0x164   : > { %v2112_v1 = vpop.eup %2111  ;;  %2137 = vpow2.f32 %v1726_v10  ;;  %1347 = vrot.lane.b32.xlu0 %v2098_v52, %s2181_s10  ;;  %v1008_v47 = vadd.f32 1.0, %v2110_v42 }
 0x165   : > { %v2114_v32 = vpop.eup %2113  ;;  %v1042_v33 = vadd.f32 1.0, %v2112_v1  ;;  %2139 = vpow2.f32 %v1727_v23  ;;  %1349 = vrot.lane.b32.xlu1 %v2102_v62, %s2181_s10 }
 0x166   : > { %v2116_v46 = vpop.eup %2115  ;;  %2141 = vrcp.f32 %v1041_v57 }
 0x167   : > { %v2118_v17 = vpop.eup %2117  ;;  %2143 = vrcp.f32 %v1042_v33 }
 0x168   : > { %v2120_v11 = vpop.eup %2119  ;;  %2145 = vpow2.f32 %v1728_v29  ;;  %1279 = vrot.lane.b32.xlu0 %v2114_v32, %s2181_s10  ;;  %v1039_v21 = vadd.f32 1.0, %v2118_v17 }
 0x169   : > { %v2122_v10 = vpop.eup %2121  ;;  %2147 = vpow2.f32 %v1729_v40  ;;  %1281 = vrot.lane.b32.xlu1 %v2116_v46, %s2181_s10  ;;  %v1040_v62 = vadd.f32 1.0, %v2120_v11 }
 0x16a   : > { %v2124_v52 = vpop.eup %2123  ;;  %2149 = vrcp.f32 %v1007_v24 }
 0x16b   : > { %v2126_v23 = vpop.eup %2125  ;;  %2151 = vrcp.f32 %v1008_v47 }
 0x16c   : > { %v2128_v1 = vpop.eup %2127  ;;  %1343 = vrot.lane.b32.xlu0 %v2122_v10, %s2181_s10  ;;  %2153 = vrcp.f32 %v1039_v21  ;;  %v1013_v29 = vadd.f32 1.0, %v2126_v23 }
 0x16d   : > { %v2130_v59 = vpop.eup %2129  ;;  %1345 = vrot.lane.b32.xlu1 %v2124_v52, %s2181_s10  ;;  %2155 = vrcp.f32 %v1040_v62  ;;  %v1014_v32 = vadd.f32 1.0, %v2128_v1 }
 0x16e   : > { %v2132_v57 = vpop.eup %2131  ;;  %2157 = vrcp.f32 %v1013_v29  ;;  %v1011_v24 = vadd.f32 1.0, %v2130_v59 }
 0x16f   : > { %v2134_v42 = vpop.eup %2133  ;;  %2159 = vrcp.f32 %v1014_v32  ;;  %v1012_v47 = vadd.f32 1.0, %v2132_v57 }
 0x170   : > { %v2136_v33 = vpop.eup %2135  ;;  %1291 = vrot.lane.b32.xlu0 %v2134_v42, %s2181_s10  ;;  %2161 = vrcp.f32 %v1011_v24 }
 0x171   : > { %v2138_v40 = vpop.eup %2137  ;;  %1293 = vrot.lane.b32.xlu1 %v2136_v33, %s2181_s10  ;;  %2163 = vrcp.f32 %v1012_v47 }
 0x172   : > { %v2140_v46 = vpop.eup %2139  ;;  %v1043_v21 = vadd.f32 1.0, %v2138_v40 }
 0x173   : > { %v2142_v17 = vpop.eup %2141  ;;  %v1044_v62 = vadd.f32 1.0, %v2140_v46 }
 0x174   : > { %v2144_v11 = vpop.eup %2143  ;;  %1355 = vrot.lane.b32.xlu0 %v2142_v17, %s2181_s10  ;;  %2165 = vrcp.f32 %v1043_v21 }
 0x175   : > { %v2146_v10 = vpop.eup %2145  ;;  %1357 = vrot.lane.b32.xlu1 %v2144_v11, %s2181_s10  ;;  %2167 = vrcp.f32 %v1044_v62 }
 0x176   : > { %v2148_v52 = vpop.eup %2147  ;;  %v1045_v59 = vadd.f32 1.0, %v2146_v10 }
 0x177   : > { %v2150_v23 = vpop.eup %2149  ;;  %v1046_v29 = vadd.f32 1.0, %v2148_v52 }
 0x178   : > { %v2152_v1 = vpop.eup %2151  ;;  %1287 = vrot.lane.b32.xlu0 %v2150_v23, %s2181_s10  ;;  %2169 = vrcp.f32 %v1045_v59 }
 0x179   : > { %1289 = vrot.lane.b32.xlu1 %v2152_v1, %s2181_s10  ;;  %v2154_v57 = vpop.eup %2153  ;;  %2171 = vrcp.f32 %v1046_v29 }
 0x17a   : > { %v2156_v42 = vpop.eup %2155 }
 0x17b   : > { %v2158_v32 = vpop.eup %2157 }
 0x17c   : > { %1351 = vrot.lane.b32.xlu0 %v2154_v57, %s2181_s10  ;;  %v2160_v33 = vpop.eup %2159 }
 0x17d   : > { %1353 = vrot.lane.b32.xlu1 %v2156_v42, %s2181_s10  ;;  %v2162_v17 = vpop.eup %2161 }
 0x17e   : > { %v2164_v11 = vpop.eup %2163 }
 0x180   : > { %1299 = vrot.lane.b32.xlu0 %v2158_v32, %s2181_s10 }
 0x181   : > { %1301 = vrot.lane.b32.xlu1 %v2160_v33, %s2181_s10  ;;  %v1244_v40 = vpop.permute.xlu1 %1243 }
 0x182   : > { %v1308_v46 = vpop.permute.xlu0 %1307  ;;  %v1433_v24 = vmul.f32 %v1244_v40, %v2280_v43  ;;  %v2166_v43 = vpop.eup %2165 }
 0x183   : > { %v1465_v47 = vmul.f32 %v1308_v46, %v2283_v44  ;;  %v2168_v62 = vpop.eup %2167 }
 0x184   : > { %1498 = vst.msk [vmem:[%s2600_s15 + $0x10] sm:$0xff] %vm1495_vm0, %v1433_v24  ;;  %1295 = vrot.lane.b32.xlu0 %v2162_v17, %s2181_s10 }
 0x185   : > { %1530 = vst.msk [vmem:[%s2600_s15 + $0x110] sm:$0xff] %vm1495_vm0, %v1465_v47  ;;  %1297 = vrot.lane.b32.xlu1 %v2164_v11, %s2181_s10  ;;  %v1246_v10 = vpop.permute.xlu1 %1245  ;;  %v2170_v59 = vpop.eup %2169 }
 0x186   : > { %v1434_v52 = vmul.f32 %v1246_v10, %v2296_v55  ;;  %v1240_v21 = vpop.permute.xlu0 %1239 }
 0x187   : > { %v1431_v23 = vmul.f32 %v1240_v21, %v2288_v49  ;;  %v2172_v49 = vpop.eup %2171 }
 0x188   : > { %1499 = vst.msk [vmem:[%s2600_s15 + $0x18] sm:$0xff] %vm1495_vm0, %v1434_v52  ;;  %1359 = vrot.lane.b32.xlu0 %v2166_v43, %s2181_s10 }
 0x189   : > { %1496 = vst.msk [vmem:[%s2600_s15] sm:$0xff] %vm1495_vm0, %v1431_v23  ;;  %1361 = vrot.lane.b32.xlu1 %v2168_v62, %s2181_s10  ;;  %v1310_v44 = vpop.permute.xlu1 %1309 }
 0x18a   : > { %v1466_v1 = vmul.f32 %v1310_v44, %v2299_v56  ;;  %v1304_v55 = vpop.permute.xlu0 %1303 }
 0x18b   : > { %v1463_v57 = vmul.f32 %v1304_v55, %v2291_v50 }
 0x18c   : > { %1531 = vst.msk [vmem:[%s2600_s15 + $0x118] sm:$0xff] %vm1495_vm0, %v1466_v1  ;;  %1363 = vrot.lane.b32.xlu0 %v2170_v59, %s2181_s10 }
 0x18d   : > { %1528 = vst.msk [vmem:[%s2600_s15 + $0x100] sm:$0xff] %vm1495_vm0, %v1463_v57  ;;  %1365 = vrot.lane.b32.xlu1 %v2172_v49, %s2181_s10  ;;  %v1306_v29 = vpop.permute.xlu1 %1305 }
 0x18e   : > { %v1464_v42 = vmul.f32 %v1306_v29, %v2306_v61  ;;  %v1242_v56 = vpop.permute.xlu0 %1241 }
 0x18f   : > { %v1432_v32 = vmul.f32 %v1242_v56, %v2303_v60 }
 0x190   : > { %1529 = vst.msk [vmem:[%s2600_s15 + $0x108] sm:$0xff] %vm1495_vm0, %v1464_v42 }
 0x191   : > { %1497 = vst.msk [vmem:[%s2600_s15 + $0x8] sm:$0xff] %vm1495_vm0, %v1432_v32  ;;  %v1254_v50 = vpop.permute.xlu1 %1253 }
 0x192   : > { %v1438_v33 = vmul.f32 %v1254_v50, %v2324_v13  ;;  %v1252_v40 = vpop.permute.xlu0 %1251 }
 0x193   : > { %v1437_v46 = vmul.f32 %v1252_v40, %v2312_v3 }
 0x194   : > { %1503 = vst.msk [vmem:[%s2600_s15 + $0x38] sm:$0xff] %vm1495_vm0, %v1438_v33 }
 0x195   : > { %1502 = vst.msk [vmem:[%s2600_s15 + $0x30] sm:$0xff] %vm1495_vm0, %v1437_v46  ;;  %v1318_v61 = vpop.permute.xlu1 %1317 }
 0x196   : > { %v1470_v60 = vmul.f32 %v1318_v61, %v2330_v16  ;;  %v1316_v24 = vpop.permute.xlu0 %1315 }
 0x197   : > { %v1469_v17 = vmul.f32 %v1316_v24, %v2315_v5 }
 0x198   : > { %1535 = vst.msk [vmem:[%s2600_s15 + $0x138] sm:$0xff] %vm1495_vm0, %v1470_v60 }
 0x199   : > { %1534 = vst.msk [vmem:[%s2600_s15 + $0x130] sm:$0xff] %vm1495_vm0, %v1469_v17  ;;  %v1250_v13 = vpop.permute.xlu1 %1249 }
 0x19a   : > { %v1436_v3 = vmul.f32 %v1250_v13, %v2334_v19  ;;  %v1248_v47 = vpop.permute.xlu0 %1247  ;;  %v2844_v13 = vld [vmem:[#allocation3_spill] sm:$0xff] }
 0x19b   : > { %v1435_v11 = vmul.f32 %v1248_v47, %v2319_v8 }
 0x19c   : > { %1501 = vst.msk [vmem:[%s2600_s15 + $0x28] sm:$0xff] %vm1495_vm0, %v1436_v3 }
 0x19d   : > { %1500 = vst.msk [vmem:[%s2600_s15 + $0x20] sm:$0xff] %vm1495_vm0, %v1435_v11  ;;  %v1314_v16 = vpop.permute.xlu1 %1313 }
 0x19e   : > { %v1468_v5 = vmul.f32 %v1314_v16, %v2337_v20  ;;  %v1312_v10 = vpop.permute.xlu0 %1311  ;;  %v2846_v16 = vld [vmem:[#allocation5_spill] sm:$0xff] }
 0x19f   : > { %v1467_v52 = vmul.f32 %v1312_v10, %v2327_v14 }
 0x1a0   : > { %1533 = vst.msk [vmem:[%s2600_s15 + $0x128] sm:$0xff] %vm1495_vm0, %v1468_v5 }
 0x1a1   : > { %1532 = vst.msk [vmem:[%s2600_s15 + $0x120] sm:$0xff] %vm1495_vm0, %v1467_v52 }
 0x1a2   : > { %v1260_v19 = vpop.permute.xlu0 %1259 }
 0x1a3   : > { %v1262_v21 = vpop.permute.xlu1 %1261  ;;  %v1441_v8 = vmul.f32 %v1260_v19, %v2344_v0  ;;  %v2847_v19 = vld [vmem:[#allocation6_spill] sm:$0xff] }
 0x1a4   : > { %v1442_v43 = vmul.f32 %v1262_v21, %v2350_v9 }
 0x1a5   : > { %1506 = vst.msk [vmem:[%s2600_s15 + $0x50] sm:$0xff] %vm1495_vm0, %v1441_v8  ;;  %v2848_v8 = vld [vmem:[#allocation7_spill] sm:$0xff] }
 0x1a6   : > { %1507 = vst.msk [vmem:[%s2600_s15 + $0x58] sm:$0xff] %vm1495_vm0, %v1442_v43  ;;  %v1324_v20 = vpop.permute.xlu0 %1323 }
 0x1a7   : > { %v1326_v23 = vpop.permute.xlu1 %1325  ;;  %v1473_v14 = vmul.f32 %v1324_v20, %v2353_v12 }
 0x1a8   : > { %v1474_v62 = vmul.f32 %v1326_v23, %v2365_v31 }
 0x1a9   : > { %1538 = vst.msk [vmem:[%s2600_s15 + $0x150] sm:$0xff] %vm1495_vm0, %v1473_v14  ;;  %v2849_v14 = vld [vmem:[#allocation8_spill] sm:$0xff] }
 0x1aa   : > { %1539 = vst.msk [vmem:[%s2600_s15 + $0x158] sm:$0xff] %vm1495_vm0, %v1474_v62  ;;  %v1256_v44 = vpop.permute.xlu0 %1255 }
 0x1ab   : > { %v1258_v0 = vpop.permute.xlu1 %1257  ;;  %v1439_v9 = vmul.f32 %v1256_v44, %v2347_v2  ;;  %v2850_v44 = vld [vmem:[#allocation9_spill] sm:$0xff] }
 0x1ac   : > { %v1440_v1 = vmul.f32 %v1258_v0, %v2357_v22 }
 0x1ad   : > { %1504 = vst.msk [vmem:[%s2600_s15 + $0x40] sm:$0xff] %vm1495_vm0, %v1439_v9 }
 0x1ae   : > { %1505 = vst.msk [vmem:[%s2600_s15 + $0x48] sm:$0xff] %vm1495_vm0, %v1440_v1  ;;  %v1320_v55 = vpop.permute.xlu0 %1319 }
 0x1af   : > { %v1322_v12 = vpop.permute.xlu1 %1321  ;;  %v1471_v31 = vmul.f32 %v1320_v55, %v2361_v26  ;;  %v2851_v55 = vld [vmem:[#allocation10_spill] sm:$0xff] }
 0x1b0   : > { %v1472_v59 = vmul.f32 %v1322_v12, %v2370_v34 }
 0x1b1   : > { %1536 = vst.msk [vmem:[%s2600_s15 + $0x140] sm:$0xff] %vm1495_vm0, %v1471_v31  ;;  %v2852_v31 = vld [vmem:[#allocation11_spill] sm:$0xff] }
 0x1b2   : > { %1537 = vst.msk [vmem:[%s2600_s15 + $0x148] sm:$0xff] %vm1495_vm0, %v1472_v59  ;;  %v1268_v57 = vpop.permute.xlu0 %1267 }
 0x1b3   : > { %v1270_v2 = vpop.permute.xlu1 %1269  ;;  %v1445_v22 = vmul.f32 %v1268_v57, %v2375_v37 }
 0x1b4   : > { %v1446_v49 = vmul.f32 %v1270_v2, %v2384_v48 }
 0x1b5   : > { %1510 = vst.msk [vmem:[%s2600_s15 + $0x70] sm:$0xff] %vm1495_vm0, %v1445_v22  ;;  %v2853_v22 = vld [vmem:[#allocation12_spill] sm:$0xff] }
 0x1b6   : > { %1511 = vst.msk [vmem:[%s2600_s15 + $0x78] sm:$0xff] %vm1495_vm0, %v1446_v49  ;;  %v1332_v29 = vpop.permute.xlu0 %1331 }
 0x1b7   : > { %v1334_v26 = vpop.permute.xlu1 %1333  ;;  %v1477_v34 = vmul.f32 %v1332_v29, %v2389_v53 }
 0x1b8   : > { %v1478_v42 = vmul.f32 %v1334_v26, %v2399_v6 }
 0x1b9   : > { %1542 = vst.msk [vmem:[%s2600_s15 + $0x170] sm:$0xff] %vm1495_vm0, %v1477_v34 }
 0x1ba   : > { %1543 = vst.msk [vmem:[%s2600_s15 + $0x178] sm:$0xff] %vm1495_vm0, %v1478_v42  ;;  %v1264_v56 = vpop.permute.xlu0 %1263 }
 0x1bb   : > { %v1266_v37 = vpop.permute.xlu1 %1265  ;;  %v1443_v48 = vmul.f32 %v1264_v56, %v2379_v41 }
 0x1bc   : > { %v1444_v32 = vmul.f32 %v1266_v37, %v2393_v58 }
 0x1bd   : > { %1508 = vst.msk [vmem:[%s2600_s15 + $0x60] sm:$0xff] %vm1495_vm0, %v1443_v48 }
 0x1be   : > { %1509 = vst.msk [vmem:[%s2600_s15 + $0x68] sm:$0xff] %vm1495_vm0, %v1444_v32  ;;  %v1328_v50 = vpop.permute.xlu0 %1327 }
 0x1bf   : > { %v1330_v53 = vpop.permute.xlu1 %1329  ;;  %v1475_v6 = vmul.f32 %v1328_v50, %v2407_v27  ;;  %v2855_v50 = vld [vmem:[#allocation16_spill] sm:$0xff] }
 0x1c0   : > { %v1476_v33 = vmul.f32 %v1330_v53, %v2411_v30 }
 0x1c1   : > { %1540 = vst.msk [vmem:[%s2600_s15 + $0x160] sm:$0xff] %vm1495_vm0, %v1475_v6 }
 0x1c2   : > { %1541 = vst.msk [vmem:[%s2600_s15 + $0x168] sm:$0xff] %vm1495_vm0, %v1476_v33  ;;  %v1276_v40 = vpop.permute.xlu0 %1275 }
 0x1c3   : > { %v1278_v41 = vpop.permute.xlu1 %1277  ;;  %v1449_v58 = vmul.f32 %v1276_v40, %v2422_v36  ;;  %v2857_v40 = vld [vmem:[#allocation15_spill] sm:$0xff] }
 0x1c4   : > { %v1450_v46 = vmul.f32 %v1278_v41, %v2425_v51  ;;  %v2843_v51 = vld [vmem:[#allocation2_spill] sm:$0xff] }
 0x1c5   : > { %1514 = vst.msk [vmem:[%s2600_s15 + $0x90] sm:$0xff] %vm1495_vm0, %v1449_v58 }
 0x1c6   : > { %1515 = vst.msk [vmem:[%s2600_s15 + $0x98] sm:$0xff] %vm1495_vm0, %v1450_v46  ;;  %v1340_v61 = vpop.permute.xlu0 %1339 }
 0x1c7   : > { %v1342_v27 = vpop.permute.xlu1 %1341  ;;  %v1481_v30 = vmul.f32 %v1340_v61, %v2429_v54 }
 0x1c8   : > { %v1482_v60 = vmul.f32 %v1342_v27, %v2441_v15  ;;  %v2845_v15 = vld [vmem:[#allocation4_spill] sm:$0xff]  ;;  %v2858_v27 = vld [vmem:[#allocation17_spill] sm:$0xff] }
 0x1c9   : > { %1546 = vst.msk [vmem:[%s2600_s15 + $0x190] sm:$0xff] %vm1495_vm0, %v1481_v30 }
 0x1ca   : > { %1547 = vst.msk [vmem:[%s2600_s15 + $0x198] sm:$0xff] %vm1495_vm0, %v1482_v60  ;;  %v1272_v24 = vpop.permute.xlu0 %1271 }
 0x1cb   : > { %v1274_v36 = vpop.permute.xlu1 %1273  ;;  %v1447_v17 = vmul.f32 %v1272_v24, %v2843_v51 }
 0x1cc   : > { %v1448_v3 = vmul.f32 %v1274_v36, %v2844_v13  ;;  %v2859_v13 = vld [vmem:[#allocation18_spill] sm:$0xff] }
 0x1cd   : > { %1512 = vst.msk [vmem:[%s2600_s15 + $0x80] sm:$0xff] %vm1495_vm0, %v1447_v17 }
 0x1ce   : > { %1513 = vst.msk [vmem:[%s2600_s15 + $0x88] sm:$0xff] %vm1495_vm0, %v1448_v3  ;;  %v1336_v47 = vpop.permute.xlu0 %1335 }
 0x1cf   : > { %v1338_v54 = vpop.permute.xlu1 %1337  ;;  %v1479_v11 = vmul.f32 %v1336_v47, %v2845_v15  ;;  %v2860_v15 = vld [vmem:[#allocation19_spill] sm:$0xff] }
 0x1d0   : > { %v1480_v5 = vmul.f32 %v1338_v54, %v2846_v16 }
 0x1d1   : > { %1544 = vst.msk [vmem:[%s2600_s15 + $0x180] sm:$0xff] %vm1495_vm0, %v1479_v11 }
 0x1d2   : > { %1545 = vst.msk [vmem:[%s2600_s15 + $0x188] sm:$0xff] %vm1495_vm0, %v1480_v5  ;;  %v1284_v10 = vpop.permute.xlu0 %1283 }
 0x1d3   : > { %v1286_v52 = vpop.permute.xlu1 %1285  ;;  %v1453_v21 = vmul.f32 %v1284_v10, %v2847_v19 }
 0x1d4   : > { %v1454_v43 = vmul.f32 %v1286_v52, %v2848_v8 }
 0x1d5   : > { %1518 = vst.msk [vmem:[%s2600_s15 + $0xb0] sm:$0xff] %vm1495_vm0, %v1453_v21 }
 0x1d6   : > { %1519 = vst.msk [vmem:[%s2600_s15 + $0xb8] sm:$0xff] %vm1495_vm0, %v1454_v43  ;;  %v1348_v20 = vpop.permute.xlu0 %1347 }
 0x1d7   : > { %v1350_v23 = vpop.permute.xlu1 %1349  ;;  %v1485_v62 = vmul.f32 %v1348_v20, %v2849_v14 }
 0x1d8   : > { %v1486_v0 = vmul.f32 %v1350_v23, %v2850_v44 }
 0x1d9   : > { %1550 = vst.msk [vmem:[%s2600_s15 + $0x1b0] sm:$0xff] %vm1495_vm0, %v1485_v62 }
 0x1da   : > { %1551 = vst.msk [vmem:[%s2600_s15 + $0x1b8] sm:$0xff] %vm1495_vm0, %v1486_v0  ;;  %v1280_v9 = vpop.permute.xlu0 %1279 }
 0x1db   : > { %v1282_v1 = vpop.permute.xlu1 %1281  ;;  %v1451_v12 = vmul.f32 %v1280_v9, %v2851_v55 }
 0x1dc   : > { %v1452_v59 = vmul.f32 %v1282_v1, %v2852_v31 }
 0x1dd   : > { %1516 = vst.msk [vmem:[%s2600_s15 + $0xa0] sm:$0xff] %vm1495_vm0, %v1451_v12 }
 0x1de   : > { %1517 = vst.msk [vmem:[%s2600_s15 + $0xa8] sm:$0xff] %vm1495_vm0, %v1452_v59  ;;  %v1344_v57 = vpop.permute.xlu0 %1343 }
 0x1df   : > { %v1346_v2 = vpop.permute.xlu1 %1345  ;;  %v1483_v49 = vmul.f32 %v1344_v57, %v2853_v22 }
 0x1e0   : > { %v1484_v29 = vmul.f32 %v1346_v2, %v2492_v25  ;;  %v2854_v25 = vld [vmem:[#allocation13_spill] sm:$0xff] }
 0x1e1   : > { %1548 = vst.msk [vmem:[%s2600_s15 + $0x1a0] sm:$0xff] %vm1495_vm0, %v1483_v49 }
 0x1e2   : > { %1549 = vst.msk [vmem:[%s2600_s15 + $0x1a8] sm:$0xff] %vm1495_vm0, %v1484_v29  ;;  %v1292_v26 = vpop.permute.xlu0 %1291 }
 0x1e3   : > { %v1294_v34 = vpop.permute.xlu1 %1293  ;;  %v1457_v42 = vmul.f32 %v1292_v26, %v2501_v4 }
 0x1e4   : > { %v1458_v56 = vmul.f32 %v1294_v34, %v2505_v7  ;;  %v2856_v7 = vld [vmem:[#allocation14_spill] sm:$0xff] }
 0x1e5   : > { %1522 = vst.msk [vmem:[%s2600_s15 + $0xd0] sm:$0xff] %vm1495_vm0, %v1457_v42 }
 0x1e6   : > { %1523 = vst.msk [vmem:[%s2600_s15 + $0xd8] sm:$0xff] %vm1495_vm0, %v1458_v56  ;;  %v1356_v37 = vpop.permute.xlu0 %1355 }
 0x1e7   : > { %v1358_v48 = vpop.permute.xlu1 %1357  ;;  %v1489_v32 = vmul.f32 %v1356_v37, %v2854_v25 }
 0x1e8   : > { %v1490_v53 = vmul.f32 %v1358_v48, %v2855_v50 }
 0x1e9   : > { %1554 = vst.msk [vmem:[%s2600_s15 + $0x1d0] sm:$0xff] %vm1495_vm0, %v1489_v32 }
 0x1ea   : > { %1555 = vst.msk [vmem:[%s2600_s15 + $0x1d8] sm:$0xff] %vm1495_vm0, %v1490_v53  ;;  %v1288_v6 = vpop.permute.xlu0 %1287 }
 0x1eb   : > { %v1290_v4 = vpop.permute.xlu1 %1289  ;;  %v1455_v33 = vmul.f32 %v1288_v6, %v2856_v7 }
 0x1ec   : > { %v1456_v41 = vmul.f32 %v1290_v4, %v2857_v40 }
 0x1ed   : > { %1520 = vst.msk [vmem:[%s2600_s15 + $0xc0] sm:$0xff] %vm1495_vm0, %v1455_v33 }
 0x1ee   : > { %1521 = vst.msk [vmem:[%s2600_s15 + $0xc8] sm:$0xff] %vm1495_vm0, %v1456_v41  ;;  %v1352_v58 = vpop.permute.xlu0 %1351 }
 0x1ef   : > { %v1354_v46 = vpop.permute.xlu1 %1353  ;;  %v1487_v61 = vmul.f32 %v1352_v58, %v2531_v28 }
 0x1f0   : > { %v1488_v30 = vmul.f32 %v1354_v46, %v2858_v27 }
 0x1f1   : > { %1552 = vst.msk [vmem:[%s2600_s15 + $0x1c0] sm:$0xff] %vm1495_vm0, %v1487_v61 }
 0x1f2   : > { %1553 = vst.msk [vmem:[%s2600_s15 + $0x1c8] sm:$0xff] %vm1495_vm0, %v1488_v30  ;;  %v1300_v60 = vpop.permute.xlu0 %1299 }
 0x1f3   : > { %v1302_v24 = vpop.permute.xlu1 %1301  ;;  %v1461_v36 = vmul.f32 %v1300_v60, %v2541_v45 }
 0x1f4   : > { %v1462_v51 = vmul.f32 %v1302_v24, %v2545_v35 }
 0x1f5   : > { %1526 = vst.msk [vmem:[%s2600_s15 + $0xf0] sm:$0xff] %vm1495_vm0, %v1461_v36 }
 0x1f6   : > { %1527 = vst.msk [vmem:[%s2600_s15 + $0xf8] sm:$0xff] %vm1495_vm0, %v1462_v51  ;;  %v1296_v17 = vpop.permute.xlu0 %1295 }
 0x1f7   : > { %v1298_v28 = vpop.permute.xlu1 %1297  ;;  %v1459_v3 = vmul.f32 %v1296_v17, %v2859_v13 }
 0x1f8   : > { %v1460_v47 = vmul.f32 %v1298_v28, %v2553_v63 }
 0x1f9   : > { %1524 = vst.msk [vmem:[%s2600_s15 + $0xe0] sm:$0xff] %vm1495_vm0, %v1459_v3 }
 0x1fa   : > { %1525 = vst.msk [vmem:[%s2600_s15 + $0xe8] sm:$0xff] %vm1495_vm0, %v1460_v47  ;;  %v1360_v54 = vpop.permute.xlu0 %1359 }
 0x1fb   : > { %v1362_v45 = vpop.permute.xlu1 %1361  ;;  %v1491_v35 = vmul.f32 %v1360_v54, %v2860_v15 }
 0x1fc   : > { %v1492_v11 = vmul.f32 %v1362_v45, %v2565_v18 }
 0x1fd   : > { %1556 = vst.msk [vmem:[%s2600_s15 + $0x1e0] sm:$0xff] %vm1495_vm0, %v1491_v35 }
 0x1fe   : > { %1557 = vst.msk [vmem:[%s2600_s15 + $0x1e8] sm:$0xff] %vm1495_vm0, %v1492_v11  ;;  %v1364_v16 = vpop.permute.xlu0 %1363 }
 0x1ff   : > { %v1366_v5 = vpop.permute.xlu1 %1365  ;;  %v1493_v10 = vmul.f32 %v1364_v16, %v2569_v39 }
 0x200   : > { %v1494_v63 = vmul.f32 %v1366_v5, %v2574_v38 }
 0x201   : > { %1558 = vst.msk [vmem:[%s2600_s15 + $0x1f0] sm:$0xff] %vm1495_vm0, %v1493_v10 }
 0x202   : > { %1559 = vst.msk [vmem:[%s2600_s15 + $0x1f8] sm:$0xff] %vm1495_vm0, %v1494_v63 }
 0x203 PF: > { %s13_s12 = sadd.s32 1, %s2179_s12  }
 0x204   : > { %p10_p4 = scmp.ge.s32.totalorder %s13_s12, 6  }
 0x206   :  { %12 = sbr.rel (!%p10_p4) target bundleno = 1 (0x1), region = 62 }

// kernel: encoder_forward.7
= control target key start
LH: loop header
LB: loop body
LE: loop exit
PB: predicated region body
PF: predicated region fallthrough
CT: control target
= control target key end

     0   :  { %v2386_v0 = vmov 0   ;;  %v2387_v2 = vmov 0.0   ;;  %vm2388_vm0 = vmmov 0   ;;  %vm1710_vm1 = vcmask 523264   ;;  %s3401_s1 = inlined_call_operand.vmem [shape: bf16[384,128], index: 1, kind: input, shape index: {}]   ;;  %s3402_s0 = inlined_call_operand.vmem [shape: bf16[392,384], index: 0, kind: input, shape index: {}]   ;;  %s3403_s2 = inlined_call_operand.vmem [shape: f32[1,128], index: 2, kind: input, shape index: {}]   ;;  %s3404_s3 = inlined_call_operand.vmem [shape: f32[392,64], index: 3, kind: output, shape index: {}]  }
   0x1   :  { %707 = vmatprep.subr.bf16.mxu0 %v2386_v0  ;;  %v2066_v1 = vld [vmem:[%s3401_s1 + $0x38] sm:$0xff]   ;;  %1946 = vmatprep.subr.bf16.mxu1 %v2387_v2  ;;  %v2067_v3 = vld [vmem:[%s3401_s1 + $0x30] sm:$0xff]   ;;  %v2068_v4 = vld [vmem:[%s3401_s1 + $0x28] sm:$0xff]  }
   0x2   :  { %1962 = vmatprep.mubr.msk.bf16.mxu1 %vm2388_vm0, %v2387_v2  ;;  %708 = vmatpush1.bf16.msra.mxu0 %v2066_v1  ;;  %v2074_v5 = vld [vmem:[%s3401_s1 + $0xb8] sm:$0xff]   ;;  %v2069_v6 = vld [vmem:[%s3401_s1 + $0x20] sm:$0xff]   ;;  %v2076_v7 = vld [vmem:[%s3401_s1 + $0xb0] sm:$0xff]  }
   0x3   :  { %709 = vmatprep.subr.bf16.mxu0 %v2386_v0  ;;  %1947 = vmatpush3.bf16.msra.mxu1 %v2074_v5  ;;  %v2070_v8 = vld [vmem:[%s3401_s1 + $0x18] sm:$0xff]   ;;  %v2078_v9 = vld [vmem:[%s3401_s1 + $0xa8] sm:$0xff]   ;;  %v2071_v10 = vld [vmem:[%s3401_s1 + $0x10] sm:$0xff]  }
   0x4   :  { %1948 = vmatprep.subr.bf16.mxu1 %v2387_v2  ;;  %v2080_v11 = vld [vmem:[%s3401_s1 + $0xa0] sm:$0xff]   ;;  %v2072_v12 = vld [vmem:[%s3401_s1 + $0x8] sm:$0xff]   ;;  %v2082_v13 = vld [vmem:[%s3401_s1 + $0x98] sm:$0xff]  }
   0x5   :  { %v2073_v14 = vld [vmem:[%s3401_s1] sm:$0xff]   ;;  %v2084_v15 = vld [vmem:[%s3401_s1 + $0x90] sm:$0xff]   ;;  %v2075_v17 = vld [vmem:[%s3401_s1 + $0x78] sm:$0xff]  }
   0x6   :  { %710 = vmatpush1.bf16.msra.mxu0 %v2067_v3  ;;  %v2093_v16 = vld [vmem:[%s3402_s0 + $0x4] ss:$12 sps:$4 sm:$0xff]   ;;  %v2086_v18 = vld [vmem:[%s3401_s1 + $0x88] sm:$0xff]   ;;  %v2083_v25 = vld [vmem:[%s3401_s1 + $0x58] sm:$0xff]  }
   0x7   :  { %711 = vmatprep.subr.bf16.mxu0 %v2386_v0  ;;  %1949 = vmatpush3.bf16.msra.mxu1 %v2076_v7  ;;  %v2077_v19 = vld [vmem:[%s3401_s1 + $0x70] sm:$0xff]   ;;  %v2088_v20 = vld [vmem:[%s3401_s1 + $0x80] sm:$0xff]   ;;  %v2079_v22 = vld [vmem:[%s3401_s1 + $0x68] sm:$0xff]  }
   0x8   :  { %1950 = vmatprep.subr.bf16.mxu1 %v2387_v2  ;;  %739 = vmatprep.mubr.bf16.mxu0 %v2093_v16  ;;  %v2089_v21 = vld [vmem:[%s3402_s0 + $0x8] ss:$12 sps:$4 sm:$0xff]   ;;  %v2081_v23 = vld [vmem:[%s3401_s1 + $0x60] sm:$0xff]   ;;  %v2102_v31 = vld [vmem:[%s3402_s0 + $0x50] ss:$12 sps:$4 sm:$0xff]  }
   0x9   :  { %v2094_v24 = vld [vmem:[%s3402_s0 + $0x20] ss:$12 sps:$4 sm:$0xff]   ;;  %v2085_v26 = vld [vmem:[%s3401_s1 + $0x50] sm:$0xff]   ;;  %v2098_v27 = vld [vmem:[%s3402_s0 + $0x38] ss:$12 sps:$4 sm:$0xff]  }
   0xa   :  { %712 = vmatpush1.bf16.msra.mxu0 %v2068_v4  ;;  %v2087_v28 = vld [vmem:[%s3401_s1 + $0x48] sm:$0xff]   ;;  %v2090_v29 = vld [vmem:[%s3401_s1 + $0x40] sm:$0xff]   ;;  %v2101_v36 = vld [vmem:[%s3402_s0 + $0x30] ss:$12 sps:$4 sm:$0xff]  }
   0xb   :  { %713 = vmatprep.subr.bf16.mxu0 %v2386_v0  ;;  %1951 = vmatpush3.bf16.msra.mxu1 %v2078_v9  ;;  %v2091_v30 = vld [vmem:[%s3402_s0] ss:$12 sps:$4 sm:$0xff]   ;;  %v2095_v32 = vld [vmem:[%s3402_s0 + $0x1c] ss:$12 sps:$4 sm:$0xff]   ;;  %v2097_v33 = vld [vmem:[%s3402_s0 + $0x18] ss:$12 sps:$4 sm:$0xff]  }
   0xc   :  { %1952 = vmatprep.subr.bf16.mxu1 %v2387_v2  ;;  %v2106_v34 = vld [vmem:[%s3402_s0 + $0x68] ss:$12 sps:$4 sm:$0xff]   ;;  %v2110_v37 = vld [vmem:[%s3402_s0 + $0x80] ss:$12 sps:$4 sm:$0xff]   ;;  %v2114_v40 = vld [vmem:[%s3402_s0 + $0x98] ss:$12 sps:$4 sm:$0xff]  }
   0xd   :  { %v2099_v35 = vld [vmem:[%s3402_s0 + $0x34] ss:$12 sps:$4 sm:$0xff]   ;;  %v2103_v38 = vld [vmem:[%s3402_s0 + $0x4c] ss:$12 sps:$4 sm:$0xff]   ;;  %v2107_v41 = vld [vmem:[%s3402_s0 + $0x64] ss:$12 sps:$4 sm:$0xff]  }
   0xe   :  { %714 = vmatpush1.bf16.msra.mxu0 %v2069_v6  ;;  %v2105_v39 = vld [vmem:[%s3402_s0 + $0x48] ss:$12 sps:$4 sm:$0xff]   ;;  %v2109_v42 = vld [vmem:[%s3402_s0 + $0x60] ss:$12 sps:$4 sm:$0xff]   ;;  %v2118_v43 = vld [vmem:[%s3402_s0 + $0xb0] ss:$12 sps:$4 sm:$0xff]  }
   0xf   :  { %715 = vmatprep.subr.bf16.mxu0 %v2386_v0  ;;  %1953 = vmatpush3.bf16.msra.mxu1 %v2080_v11  ;;  %v2111_v44 = vld [vmem:[%s3402_s0 + $0x7c] ss:$12 sps:$4 sm:$0xff]   ;;  %v2113_v45 = vld [vmem:[%s3402_s0 + $0x78] ss:$12 sps:$4 sm:$0xff]   ;;  %v2115_v47 = vld [vmem:[%s3402_s0 + $0x94] ss:$12 sps:$4 sm:$0xff]  }
  0x10   :  { %1954 = vmatprep.subr.bf16.mxu1 %v2387_v2  ;;  %v2122_v46 = vld [vmem:[%s3402_s0 + $0xc8] ss:$12 sps:$4 sm:$0xff]   ;;  %v2117_v48 = vld [vmem:[%s3402_s0 + $0x90] ss:$12 sps:$4 sm:$0xff]   ;;  %v2126_v49 = vld [vmem:[%s3402_s0 + $0xe0] ss:$12 sps:$4 sm:$0xff]  }
  0x11   :  { %v2119_v50 = vld [vmem:[%s3402_s0 + $0xac] ss:$12 sps:$4 sm:$0xff]   ;;  %v2121_v51 = vld [vmem:[%s3402_s0 + $0xa8] ss:$12 sps:$4 sm:$0xff]   ;;  %v2123_v53 = vld [vmem:[%s3402_s0 + $0xc4] ss:$12 sps:$4 sm:$0xff]  }
  0x12   :  { %716 = vmatpush1.bf16.msra.mxu0 %v2070_v8  ;;  %v2130_v52 = vld [vmem:[%s3402_s0 + $0xf8] ss:$12 sps:$4 sm:$0xff]   ;;  %v2125_v54 = vld [vmem:[%s3402_s0 + $0xc0] ss:$12 sps:$4 sm:$0xff]   ;;  %v2134_v55 = vld [vmem:[%s3402_s0 + $0x110] ss:$12 sps:$4 sm:$0xff]  }
  0x13   :  { %717 = vmatprep.subr.bf16.mxu0 %v2386_v0  ;;  %1955 = vmatpush3.bf16.msra.mxu1 %v2082_v13  ;;  %v2127_v56 = vld [vmem:[%s3402_s0 + $0xdc] ss:$12 sps:$4 sm:$0xff]   ;;  %v2129_v57 = vld [vmem:[%s3402_s0 + $0xd8] ss:$12 sps:$4 sm:$0xff]   ;;  %v2131_v59 = vld [vmem:[%s3402_s0 + $0xf4] ss:$12 sps:$4 sm:$0xff]  }
  0x14   :  { %1956 = vmatprep.subr.bf16.mxu1 %v2387_v2  ;;  %v2138_v58 = vld [vmem:[%s3402_s0 + $0x128] ss:$12 sps:$4 sm:$0xff]   ;;  %v2133_v60 = vld [vmem:[%s3402_s0 + $0xf0] ss:$12 sps:$4 sm:$0xff]   ;;  %v2142_v61 = vld [vmem:[%s3402_s0 + $0x140] ss:$12 sps:$4 sm:$0xff]  }
  0x15   :  { %v2135_v62 = vld [vmem:[%s3402_s0 + $0x10c] ss:$12 sps:$4 sm:$0xff]   ;;  %v2137_v63 = vld [vmem:[%s3402_s0 + $0x108] ss:$12 sps:$4 sm:$0xff]   ;;  %v2139_v1 = vld [vmem:[%s3402_s0 + $0x124] ss:$12 sps:$4 sm:$0xff]  }
  0x16   :  { %718 = vmatpush1.bf16.msra.mxu0 %v2071_v10  ;;  %v2141_v3 = vld [vmem:[%s3402_s0 + $0x120] ss:$12 sps:$4 sm:$0xff]   ;;  %v2150_v4 = vld [vmem:[%s3402_s0 + $0x170] ss:$12 sps:$4 sm:$0xff]   ;;  %v2145_v6 = vld [vmem:[%s3402_s0 + $0x138] ss:$12 sps:$4 sm:$0xff]  }
  0x17   :  { %719 = vmatprep.subr.bf16.mxu0 %v2386_v0  ;;  %1957 = vmatpush3.bf16.msra.mxu1 %v2084_v15  ;;  %v2143_v5 = vld [vmem:[%s3402_s0 + $0x13c] ss:$12 sps:$4 sm:$0xff]   ;;  %v2147_v8 = vld [vmem:[%s3402_s0 + $0x154] ss:$12 sps:$4 sm:$0xff]   ;;  %v2151_v11 = vld [vmem:[%s3402_s0 + $0x16c] ss:$12 sps:$4 sm:$0xff]  }
  0x18   :  { %1958 = vmatprep.subr.bf16.mxu1 %v2387_v2  ;;  %v2154_v7 = vld [vmem:[%s3402_s0 + $0x188] ss:$12 sps:$4 sm:$0xff]   ;;  %v2149_v9 = vld [vmem:[%s3402_s0 + $0x150] ss:$12 sps:$4 sm:$0xff]   ;;  %v2158_v10 = vld [vmem:[%s3402_s0 + $0x1a0] ss:$12 sps:$4 sm:$0xff]  }
  0x19   :  { %v2162_v13 = vld [vmem:[%s3402_s0 + $0x1b8] ss:$12 sps:$4 sm:$0xff]   ;;  %v2157_v15 = vld [vmem:[%s3402_s0 + $0x180] ss:$12 sps:$4 sm:$0xff]   ;;  %v2166_v16 = vld [vmem:[%s3402_s0 + $0x1d0] ss:$12 sps:$4 sm:$0xff]  }
  0x1a   :  { %720 = vmatpush1.bf16.msra.mxu0 %v2072_v12  ;;  %v2153_v12 = vld [vmem:[%s3402_s0 + $0x168] ss:$12 sps:$4 sm:$0xff]  }
  0x1b   :  { %721 = vmatprep.subr.bf16.mxu0 %v2386_v0  ;;  %1959 = vmatpush3.bf16.msra.mxu1 %v2086_v18  ;;  %v2161_v18 = vld [vmem:[%s3402_s0 + $0x198] ss:$12 sps:$4 sm:$0xff]  }
  0x1c   :  { %1960 = vmatprep.subr.bf16.mxu1 %v2387_v2 }
  0x1e   :  { %722 = vmatpush1.bf16.msra.mxu0 %v2073_v14  ;;  %v2155_v14 = vld [vmem:[%s3402_s0 + $0x184] ss:$12 sps:$4 sm:$0xff]  }
  0x1f   :  { %723 = vmatprep.subr.bf16.mxu0 %v2386_v0  ;;  %1961 = vmatpush3.bf16.msra.mxu1 %v2088_v20  ;;  %v2163_v20 = vld [vmem:[%s3402_s0 + $0x1b4] ss:$12 sps:$4 sm:$0xff]  }
  0x22   :  { %724 = vmatpush2.bf16.msra.mxu0 %v2075_v17  ;;  %1963 = vmatmul.mubr.bf16.vlgmr.msra.gmra.mxu1 %v2089_v21  ;;  %v2159_v17 = vld [vmem:[%s3402_s0 + $0x19c] ss:$12 sps:$4 sm:$0xff]  }
  0x23   :  { %725 = vmatprep.subr.bf16.mxu0 %v2386_v0  ;;  %1966 = vmatprep.mubr.msk.bf16.mxu1 %vm2388_vm0, %v2387_v2  ;;  %v2165_v21 = vld [vmem:[%s3402_s0 + $0x1b0] ss:$12 sps:$4 sm:$0xff]  }
  0x26   :  { %726 = vmatpush2.bf16.msra.mxu0 %v2077_v19  ;;  %v2170_v19 = vld [vmem:[%s3402_s0 + $0x1e8] ss:$12 sps:$4 sm:$0xff]  }
  0x27   :  { %727 = vmatprep.subr.bf16.mxu0 %v2386_v0 }
  0x2a   :  { %728 = vmatpush2.bf16.msra.mxu0 %v2079_v22  ;;  %1967 = vmatmul.mubr.bf16.gmra.mxu1 %v2094_v24  ;;  %v2174_v22 = vld [vmem:[%s3402_s0 + $0x200] ss:$12 sps:$4 sm:$0xff]   ;;  %v2169_v24 = vld [vmem:[%s3402_s0 + $0x1c8] ss:$12 sps:$4 sm:$0xff]  }
  0x2b   :  { %729 = vmatprep.subr.bf16.mxu0 %v2386_v0  ;;  %1970 = vmatprep.mubr.msk.bf16.mxu1 %vm2388_vm0, %v2387_v2 }
  0x2e   :  { %730 = vmatpush2.bf16.msra.mxu0 %v2081_v23  ;;  %v2167_v23 = vld [vmem:[%s3402_s0 + $0x1cc] ss:$12 sps:$4 sm:$0xff]  }
  0x2f   :  { %731 = vmatprep.subr.bf16.mxu0 %v2386_v0 }
  0x32   :  { %732 = vmatpush2.bf16.msra.mxu0 %v2083_v25  ;;  %1971 = vmatmul.mubr.bf16.gmra.mxu1 %v2098_v27  ;;  %v2178_v25 = vld [vmem:[%s3402_s0 + $0x218] ss:$12 sps:$4 sm:$0xff]   ;;  %v2173_v27 = vld [vmem:[%s3402_s0 + $0x1e0] ss:$12 sps:$4 sm:$0xff]  }
  0x33   :  { %733 = vmatprep.subr.bf16.mxu0 %v2386_v0  ;;  %1974 = vmatprep.mubr.msk.bf16.mxu1 %vm2388_vm0, %v2387_v2 }
  0x36   :  { %734 = vmatpush2.bf16.msra.mxu0 %v2085_v26  ;;  %v2171_v26 = vld [vmem:[%s3402_s0 + $0x1e4] ss:$12 sps:$4 sm:$0xff]  }
  0x37   :  { %735 = vmatprep.subr.bf16.mxu0 %v2386_v0 }
  0x3a   :  { %736 = vmatpush2.bf16.msra.mxu0 %v2087_v28  ;;  %1975 = vmatmul.mubr.bf16.gmra.mxu1 %v2102_v31  ;;  %v2182_v28 = vld [vmem:[%s3402_s0 + $0x230] ss:$12 sps:$4 sm:$0xff]   ;;  %v2186_v31 = vld [vmem:[%s3402_s0 + $0x248] ss:$0 sps:$4 sm:$0xff]  }
  0x3b   :  { %737 = vmatprep.subr.bf16.mxu0 %v2386_v0  ;;  %1978 = vmatprep.mubr.msk.bf16.mxu1 %vm2388_vm0, %v2387_v2  ;;  %v2146_v0 = vld [vmem:[%s3402_s0 + $0x158] ss:$12 sps:$4 sm:$0xff]  }
  0x3e   :  { %738 = vmatpush2.bf16.msra.mxu0 %v2090_v29  ;;  %v2175_v29 = vld [vmem:[%s3402_s0 + $0x1fc] ss:$12 sps:$4 sm:$0xff]  }
  0x41   :  { %740 = vmatmul.mubr.bf16.vlgmr.msra.gmra.mxu0 %v2091_v30  ;;  %v2177_v30 = vld [vmem:[%s3402_s0 + $0x1f8] ss:$12 sps:$4 sm:$0xff]  }
  0x42   :  { %747 = vmatprep.mubr.bf16.mxu0 %v2095_v32  ;;  %1979 = vmatmul.mubr.bf16.gmra.mxu1 %v2106_v34  ;;  %v2179_v32 = vld [vmem:[%s3402_s0 + $0x214] ss:$12 sps:$4 sm:$0xff]  }
  0x43   :  { %1982 = vmatprep.mubr.msk.bf16.mxu1 %vm2388_vm0, %v2387_v2 }
  0x49   :  { %748 = vmatmul.mubr.bf16.gmra.mxu0 %v2097_v33 }
  0x4a   :  { %755 = vmatprep.mubr.bf16.mxu0 %v2099_v35  ;;  %1983 = vmatmul.mubr.bf16.gmra.mxu1 %v2110_v37 }
  0x4b   :  { %1986 = vmatprep.mubr.msk.bf16.mxu1 %vm2388_vm0, %v2387_v2 }
  0x51   :  { %756 = vmatmul.mubr.bf16.gmra.mxu0 %v2101_v36  ;;  %v2183_v36 = vld [vmem:[%s3402_s0 + $0x22c] ss:$12 sps:$4 sm:$0xff]  }
  0x52   :  { %763 = vmatprep.mubr.bf16.mxu0 %v2103_v38  ;;  %1987 = vmatmul.mubr.bf16.gmra.mxu1 %v2114_v40 }
  0x53   :  { %1990 = vmatprep.mubr.msk.bf16.mxu1 %vm2388_vm0, %v2387_v2 }
  0x59   :  { %764 = vmatmul.mubr.bf16.gmra.mxu0 %v2105_v39  ;;  %v111_v39 = vld [vmem:[%s3402_s0 + $0x240] sm:$0xff] }
  0x5a   :  { %771 = vmatprep.mubr.bf16.mxu0 %v2107_v41  ;;  %1991 = vmatmul.mubr.bf16.gmra.mxu1 %v2118_v43  ;;  %v2185_v41 = vld [vmem:[%s3402_s0 + $0x228] ss:$12 sps:$4 sm:$0xff]   ;;  %v1838_v43 = vcombine.high %v111_v39, %v111_v39 }
  0x5b   :  { %1994 = vmatprep.mubr.msk.bf16.mxu1 %vm2388_vm0, %v2387_v2 }
  0x61   :  { %772 = vmatmul.mubr.bf16.gmra.mxu0 %v2109_v42 }
  0x62   :  { %779 = vmatprep.mubr.bf16.mxu0 %v2111_v44  ;;  %1995 = vmatmul.mubr.bf16.gmra.mxu1 %v2122_v46 }
  0x63   :  { %1998 = vmatprep.mubr.msk.bf16.mxu1 %vm2388_vm0, %v2387_v2 }
  0x69   :  { %780 = vmatmul.mubr.bf16.gmra.mxu0 %v2113_v45 }
  0x6a   :  { %787 = vmatprep.mubr.bf16.mxu0 %v2115_v47  ;;  %1999 = vmatmul.mubr.bf16.gmra.mxu1 %v2126_v49  ;;  %v1837_v47 = vcombine.low %v111_v39, %v111_v39  ;;  %v2781_v49 = vld [vmem:[%s3403_s2] ss:$0 sm:$0xff] }
  0x6b   :  { %2002 = vmatprep.mubr.msk.bf16.mxu1 %vm2388_vm0, %v2387_v2 }
  0x71   :  { %788 = vmatmul.mubr.bf16.gmra.mxu0 %v2117_v48 }
  0x72   :  { %795 = vmatprep.mubr.bf16.mxu0 %v2119_v50  ;;  %2003 = vmatmul.mubr.bf16.gmra.mxu1 %v2130_v52 }
  0x73   :  { %2006 = vmatprep.mubr.msk.bf16.mxu1 %vm2388_vm0, %v2387_v2 }
  0x79   :  { %796 = vmatmul.mubr.bf16.gmra.mxu0 %v2121_v51 }
  0x7a   :  { %803 = vmatprep.mubr.bf16.mxu0 %v2123_v53  ;;  %2007 = vmatmul.mubr.bf16.gmra.mxu1 %v2134_v55 }
  0x7b   :  { %2010 = vmatprep.mubr.msk.bf16.mxu1 %vm2388_vm0, %v2387_v2 }
  0x81   :  { %804 = vmatmul.mubr.bf16.gmra.mxu0 %v2125_v54 }
  0x82   :  { %811 = vmatprep.mubr.bf16.mxu0 %v2127_v56  ;;  %2011 = vmatmul.mubr.bf16.gmra.mxu1 %v2138_v58 }
  0x83   :  { %2014 = vmatprep.mubr.msk.bf16.mxu1 %vm2388_vm0, %v2387_v2 }
  0x89   :  { %812 = vmatmul.mubr.bf16.gmra.mxu0 %v2129_v57 }
  0x8a   :  { %819 = vmatprep.mubr.bf16.mxu0 %v2131_v59  ;;  %2015 = vmatmul.mubr.bf16.gmra.mxu1 %v2142_v61 }
  0x8b   :  { %2018 = vmatprep.mubr.msk.bf16.mxu1 %vm2388_vm0, %v2387_v2 }
  0x91   :  { %820 = vmatmul.mubr.bf16.gmra.mxu0 %v2133_v60 }
  0x92   :  { %827 = vmatprep.mubr.bf16.mxu0 %v2135_v62  ;;  %2019 = vmatmul.mubr.bf16.gmra.mxu1 %v2146_v0 }
  0x93   :  { %2022 = vmatprep.mubr.msk.bf16.mxu1 %vm2388_vm0, %v2387_v2 }
  0x99   :  { %828 = vmatmul.mubr.bf16.gmra.mxu0 %v2137_v63 }
  0x9a   :  { %835 = vmatprep.mubr.bf16.mxu0 %v2139_v1  ;;  %2023 = vmatmul.mubr.bf16.gmra.mxu1 %v2150_v4 }
  0x9b   :  { %2026 = vmatprep.mubr.msk.bf16.mxu1 %vm2388_vm0, %v2387_v2 }
  0xa1   :  { %836 = vmatmul.mubr.bf16.gmra.mxu0 %v2141_v3 }
  0xa2   :  { %843 = vmatprep.mubr.bf16.mxu0 %v2143_v5  ;;  %2027 = vmatmul.mubr.bf16.gmra.mxu1 %v2154_v7 }
  0xa3   :  { %2030 = vmatprep.mubr.msk.bf16.mxu1 %vm2388_vm0, %v2387_v2 }
  0xa9   :  { %844 = vmatmul.mubr.bf16.gmra.mxu0 %v2145_v6 }
  0xaa   :  { %851 = vmatprep.mubr.bf16.mxu0 %v2147_v8  ;;  %2031 = vmatmul.mubr.bf16.gmra.mxu1 %v2158_v10 }
  0xab   :  { %2034 = vmatprep.mubr.msk.bf16.mxu1 %vm2388_vm0, %v2387_v2 }
  0xb1   :  { %852 = vmatmul.mubr.bf16.gmra.mxu0 %v2149_v9 }
  0xb2   :  { %859 = vmatprep.mubr.bf16.mxu0 %v2151_v11  ;;  %2035 = vmatmul.mubr.bf16.gmra.mxu1 %v2162_v13 }
  0xb3   :  { %2038 = vmatprep.mubr.msk.bf16.mxu1 %vm2388_vm0, %v2387_v2 }
  0xb9   :  { %860 = vmatmul.mubr.bf16.gmra.mxu0 %v2153_v12 }
  0xba   :  { %867 = vmatprep.mubr.bf16.mxu0 %v2155_v14  ;;  %2039 = vmatmul.mubr.bf16.gmra.mxu1 %v2166_v16 }
  0xbb   :  { %2042 = vmatprep.mubr.msk.bf16.mxu1 %vm2388_vm0, %v2387_v2 }
  0xc1   :  { %868 = vmatmul.mubr.bf16.gmra.mxu0 %v2157_v15 }
  0xc2   :  { %875 = vmatprep.mubr.bf16.mxu0 %v2159_v17  ;;  %2043 = vmatmul.mubr.bf16.gmra.mxu1 %v2170_v19 }
  0xc3   :  { %2046 = vmatprep.mubr.msk.bf16.mxu1 %vm2388_vm0, %v2387_v2 }
  0xc9   :  { %876 = vmatmul.mubr.bf16.gmra.mxu0 %v2161_v18 }
  0xca   :  { %883 = vmatprep.mubr.bf16.mxu0 %v2163_v20  ;;  %2047 = vmatmul.mubr.bf16.gmra.mxu1 %v2174_v22 }
  0xcb   :  { %2050 = vmatprep.mubr.msk.bf16.mxu1 %vm2388_vm0, %v2387_v2 }
  0xd1   :  { %884 = vmatmul.mubr.bf16.gmra.mxu0 %v2165_v21 }
  0xd2   :  { %891 = vmatprep.mubr.bf16.mxu0 %v2167_v23  ;;  %2051 = vmatmul.mubr.bf16.gmra.mxu1 %v2178_v25 }
  0xd3   :  { %2054 = vmatprep.mubr.msk.bf16.mxu1 %vm2388_vm0, %v2387_v2 }
  0xd9   :  { %892 = vmatmul.mubr.bf16.gmra.mxu0 %v2169_v24 }
  0xda   :  { %899 = vmatprep.mubr.bf16.mxu0 %v2171_v26  ;;  %2055 = vmatmul.mubr.bf16.gmra.mxu1 %v2182_v28 }
  0xdb   :  { %2058 = vmatprep.mubr.msk.bf16.mxu1 %vm2388_vm0, %v2387_v2  ;;  %v2181_v2 = vld [vmem:[%s3402_s0 + $0x210] ss:$12 sps:$4 sm:$0xff]   ;;  %s2389_s0 = smov 64  }
  0xe1   :  { %900 = vmatmul.mubr.bf16.gmra.mxu0 %v2173_v27 }
  0xe2   :  { %907 = vmatprep.mubr.bf16.mxu0 %v2175_v29  ;;  %v973_v33 = vpop.f32.mrf.mxu1  ;;  %2059 = vmatmul.mubr.bf16.gmra.mxu1 %v2186_v31 }
  0xe4   :  { %v1964_v34 = vpop.f32.mrf.mxu1 }
  0xe6   :  { %v976_v35 = vpop.f32.mrf.mxu1 }
  0xe8   :  { %v1965_v37 = vpop.f32.mrf.mxu1 }
  0xe9   :  { %908 = vmatmul.mubr.bf16.gmra.mxu0 %v2177_v30 }
  0xea   :  { %915 = vmatprep.mubr.bf16.mxu0 %v2179_v32  ;;  %v981_v38 = vpop.f32.mrf.mxu1 }
  0xec   :  { %v1968_v40 = vpop.f32.mrf.mxu1 }
  0xee   :  { %v984_v42 = vpop.f32.mrf.mxu1 }
  0xf0   :  { %v1969_v44 = vpop.f32.mrf.mxu1 }
  0xf1   :  { %916 = vmatmul.mubr.bf16.gmra.mxu0 %v2181_v2 }
  0xf2   :  { %923 = vmatprep.mubr.bf16.mxu0 %v2183_v36  ;;  %v989_v45 = vpop.f32.mrf.mxu1 }
  0xf4   :  { %v1972_v46 = vpop.f32.mrf.mxu1 }
  0xf6   :  { %v992_v48 = vpop.f32.mrf.mxu1 }
  0xf8   :  { %v1973_v50 = vpop.f32.mrf.mxu1 }
  0xf9   :  { %924 = vmatmul.mubr.bf16.gmra.mxu0 %v2185_v41 }
  0xfa   :  { %931 = vmatprep.mubr.bf16.mxu0 %v1838_v43  ;;  %v997_v52 = vpop.f32.mrf.mxu1 }
  0xfc   :  { %v1976_v55 = vpop.f32.mrf.mxu1 }
  0xfe   :  { %v1000_v58 = vpop.f32.mrf.mxu1 }
 0x100   :  { %v1977_v62 = vpop.f32.mrf.mxu1 }
 0x101   :  { %v741_v51 = vpop.f32.mrf.mxu0  ;;  %932 = vmatmul.mubr.bf16.gmra.mxu0 %v1837_v47 }
 0x102   :  { %v742_v53 = vadd.f32 %v2781_v49, %v741_v51  ;;  %v2790_v1 = vpop.f32.mrf.mxu1 }
 0x103   :  { %v743_v54 = vpop.f32.mrf.mxu0 }
 0x104   :  { %v2784_v56 = vadd.f32 %v973_v33, %v742_v53  ;;  %v1980_v6 = vpop.f32.mrf.mxu1 }
 0x105   :  { %v744_v57 = vpop.f32.mrf.mxu0 }
 0x106   :  { %v1864_v59 = vmul.f32 -1.442695, %v2784_v56  ;;  %v745_v60 = vadd.f32 %v2781_v49, %v744_v57  ;;  %v2796_v9 = vpop.f32.mrf.mxu1 }
 0x107   :  { %v746_v61 = vpop.f32.mrf.mxu0 }
 0x108   :  { %2189 = vpow2.f32 %v1864_v59  ;;  %v2788_v63 = vadd.f32 %v976_v35, %v745_v60  ;;  %v1981_v13 = vpop.f32.mrf.mxu1 }
 0x109   :  { %v749_v0 = vpop.f32.mrf.mxu0 }
 0x10a   :  { %v1865_v3 = vmul.f32 -1.442695, %v2788_v63  ;;  %v750_v4 = vadd.f32 %v2781_v49, %v749_v0  ;;  %v2802_v16 = vpop.f32.mrf.mxu1 }
 0x10b   :  { %v751_v5 = vpop.f32.mrf.mxu0 }
 0x10c   :  { %2191 = vpow2.f32 %v1865_v3  ;;  %v2794_v7 = vadd.f32 %v981_v38, %v750_v4  ;;  %v1984_v20 = vpop.f32.mrf.mxu1 }
 0x10d   :  { %v752_v8 = vpop.f32.mrf.mxu0 }
 0x10e   :  { %v1866_v10 = vmul.f32 -1.442695, %v2794_v7  ;;  %v753_v11 = vadd.f32 %v2781_v49, %v752_v8  ;;  %v2808_v24 = vpop.f32.mrf.mxu1 }
 0x10f   :  { %v754_v12 = vpop.f32.mrf.mxu0 }
 0x110   :  { %2193 = vpow2.f32 %v1866_v10  ;;  %v2800_v14 = vadd.f32 %v984_v42, %v753_v11  ;;  %v1985_v29 = vpop.f32.mrf.mxu1 }
 0x111   :  { %v757_v15 = vpop.f32.mrf.mxu0 }
 0x112   :  { %v1867_v17 = vmul.f32 -1.442695, %v2800_v14  ;;  %v758_v18 = vadd.f32 %v2781_v49, %v757_v15  ;;  %v2814_v33 = vpop.f32.mrf.mxu1 }
 0x113   :  { %v759_v19 = vpop.f32.mrf.mxu0 }
 0x114   :  { %2195 = vpow2.f32 %v1867_v17  ;;  %v2806_v21 = vadd.f32 %v989_v45, %v758_v18  ;;  %v1988_v37 = vpop.f32.mrf.mxu1 }
 0x115   :  { %v2190_v22 = vpop.eup %2189  ;;  %v760_v23 = vpop.f32.mrf.mxu0 }
 0x116   :  { %v1318_v25 = vadd.f32 1.0, %v2190_v22  ;;  %v1868_v26 = vmul.f32 -1.442695, %v2806_v21  ;;  %v761_v27 = vadd.f32 %v2781_v49, %v760_v23  ;;  %v2820_v41 = vpop.f32.mrf.mxu1 }
 0x117   :  { %v762_v28 = vpop.f32.mrf.mxu0 }
 0x118   :  { %2197 = vrcp.f32 %v1318_v25  ;;  %v2812_v30 = vadd.f32 %v992_v48, %v761_v27  ;;  %v1989_v46 = vpop.f32.mrf.mxu1 }
 0x119   :  { %v2192_v31 = vpop.eup %2191  ;;  %2199 = vpow2.f32 %v1868_v26  ;;  %v765_v32 = vpop.f32.mrf.mxu0 }
 0x11a   :  { %v1319_v34 = vadd.f32 1.0, %v2192_v31  ;;  %v1869_v2 = vmul.f32 -1.442695, %v2812_v30  ;;  %v766_v35 = vadd.f32 %v2781_v49, %v765_v32  ;;  %v2826_v51 = vpop.f32.mrf.mxu1 }
 0x11b   :  { %v767_v36 = vpop.f32.mrf.mxu0 }
 0x11c   :  { %2201 = vrcp.f32 %v1319_v34  ;;  %v2818_v38 = vadd.f32 %v997_v52, %v766_v35  ;;  %v1992_v57 = vpop.f32.mrf.mxu1 }
 0x11d   :  { %v2194_v39 = vpop.eup %2193  ;;  %2203 = vpow2.f32 %v1869_v2  ;;  %v768_v40 = vpop.f32.mrf.mxu0 }
 0x11e   :  { %v1320_v42 = vadd.f32 1.0, %v2194_v39  ;;  %v1870_v43 = vmul.f32 -1.442695, %v2818_v38  ;;  %v769_v44 = vadd.f32 %v2781_v49, %v768_v40  ;;  %v2833_v61 = vpop.f32.mrf.mxu1 }
 0x11f   :  { %v770_v45 = vpop.f32.mrf.mxu0 }
 0x120   :  { %2205 = vrcp.f32 %v1320_v42  ;;  %v2824_v47 = vadd.f32 %v1000_v58, %v769_v44  ;;  %v1993_v6 = vpop.f32.mrf.mxu1 }
 0x121   :  { %v2196_v48 = vpop.eup %2195  ;;  %2207 = vpow2.f32 %v1870_v43  ;;  %v773_v50 = vpop.f32.mrf.mxu0 }
 0x122   :  { %v1321_v52 = vadd.f32 1.0, %v2196_v48  ;;  %v1871_v53 = vmul.f32 -1.442695, %v2824_v47  ;;  %v774_v54 = vadd.f32 %v2781_v49, %v773_v50  ;;  %v2841_v11 = vpop.f32.mrf.mxu1 }
 0x123   :  { %v775_v55 = vpop.f32.mrf.mxu0 }
 0x124   :  { %2209 = vrcp.f32 %v1321_v52  ;;  %v2831_v59 = vadd.f32 %v2790_v1, %v774_v54  ;;  %v1996_v19 = vpop.f32.mrf.mxu1 }
 0x125   :  { %v2198_v60 = vpop.eup %2197  ;;  %2211 = vpow2.f32 %v1871_v53  ;;  %v776_v58 = vpop.f32.mrf.mxu0 }
 0x126   :  { %v2200_v62 = vpop.eup %2199  ;;  %v1872_v0 = vmul.f32 -1.442695, %v2831_v59  ;;  %v777_v3 = vadd.f32 %v2781_v49, %v776_v58  ;;  %1514 = vrot.lane.b32.xlu0 %v2198_v60, %s2389_s0  ;;  %v2849_v23 = vpop.f32.mrf.mxu1 }
 0x127   :  { %v1322_v4 = vadd.f32 1.0, %v2200_v62  ;;  %v778_v5 = vpop.f32.mrf.mxu0 }
 0x128   :  { %2213 = vpow2.f32 %v1872_v0  ;;  %v2839_v1 = vadd.f32 %v2796_v9, %v777_v3  ;;  %v1997_v31 = vpop.f32.mrf.mxu1 }
 0x129   :  { %v2202_v8 = vpop.eup %2201  ;;  %2215 = vrcp.f32 %v1322_v4  ;;  %v781_v10 = vpop.f32.mrf.mxu0 }
 0x12a   :  { %v2204_v12 = vpop.eup %2203  ;;  %v1873_v13 = vmul.f32 -1.442695, %v2839_v1  ;;  %v782_v15 = vadd.f32 %v2781_v49, %v781_v10  ;;  %1516 = vrot.lane.b32.xlu0 %v2202_v8, %s2389_s0  ;;  %v2857_v2 = vpop.f32.mrf.mxu1 }
 0x12b   :  { %v1323_v17 = vadd.f32 1.0, %v2204_v12  ;;  %v783_v18 = vpop.f32.mrf.mxu0 }
 0x12c   :  { %2217 = vpow2.f32 %v1873_v13  ;;  %v2847_v20 = vadd.f32 %v2802_v16, %v782_v15  ;;  %v2000_v42 = vpop.f32.mrf.mxu1 }
 0x12d   :  { %v2206_v9 = vpop.eup %2205  ;;  %2219 = vrcp.f32 %v1323_v17  ;;  %v784_v22 = vpop.f32.mrf.mxu0 }
 0x12e   :  { %v2208_v25 = vpop.eup %2207  ;;  %v1874_v26 = vmul.f32 -1.442695, %v2847_v20  ;;  %v785_v27 = vadd.f32 %v2781_v49, %v784_v22  ;;  %1518 = vrot.lane.b32.xlu1 %v2206_v9, %s2389_s0  ;;  %v2865_v45 = vpop.f32.mrf.mxu1 }
 0x12f   :  { %v1324_v28 = vadd.f32 1.0, %v2208_v25  ;;  %v786_v29 = vpop.f32.mrf.mxu0 }
 0x130   :  { %2221 = vpow2.f32 %v1874_v26  ;;  %v2855_v32 = vadd.f32 %v2808_v24, %v785_v27  ;;  %v2001_v54 = vpop.f32.mrf.mxu1 }
 0x131   :  { %v2210_v16 = vpop.eup %2209  ;;  %2223 = vrcp.f32 %v1324_v28  ;;  %v789_v34 = vpop.f32.mrf.mxu0 }
 0x132   :  { %v2212_v35 = vpop.eup %2211  ;;  %v1875_v36 = vmul.f32 -1.442695, %v2855_v32  ;;  %v790_v37 = vadd.f32 %v2781_v49, %v789_v34  ;;  %1520 = vrot.lane.b32.xlu1 %v2210_v16, %s2389_s0  ;;  %v2873_v60 = vpop.f32.mrf.mxu1 }
 0x133   :  { %v1325_v39 = vadd.f32 1.0, %v2212_v35  ;;  %v791_v40 = vpop.f32.mrf.mxu0 }
 0x134   :  { %2225 = vpow2.f32 %v1875_v36  ;;  %v2863_v43 = vadd.f32 %v2814_v33, %v790_v37  ;;  %v2004_v5 = vpop.f32.mrf.mxu1 }
 0x135   :  { %v2214_v24 = vpop.eup %2213  ;;  %2227 = vrcp.f32 %v1325_v39  ;;  %v792_v44 = vpop.f32.mrf.mxu0 }
 0x136   :  { %v2216_v46 = vpop.eup %2215  ;;  %v1326_v48 = vadd.f32 1.0, %v2214_v24  ;;  %v1876_v50 = vmul.f32 -1.442695, %v2863_v43  ;;  %v793_v52 = vadd.f32 %v2781_v49, %v792_v44  ;;  %v2881_v10 = vpop.f32.mrf.mxu1 }
 0x137   :  { %1522 = vrot.lane.b32.xlu0 %v2216_v46, %s2389_s0  ;;  %v794_v53 = vpop.f32.mrf.mxu0 }
 0x138   :  { %2229 = vrcp.f32 %v1326_v48  ;;  %v2871_v55 = vadd.f32 %v2820_v41, %v793_v52  ;;  %v2005_v19 = vpop.f32.mrf.mxu1 }
 0x139   :  { %v2218_v33 = vpop.eup %2217  ;;  %2231 = vpow2.f32 %v1876_v50  ;;  %v797_v57 = vpop.f32.mrf.mxu0 }
 0x13a   :  { %v2220_v58 = vpop.eup %2219  ;;  %v1327_v62 = vadd.f32 1.0, %v2218_v33  ;;  %v1877_v0 = vmul.f32 -1.442695, %v2871_v55  ;;  %v798_v3 = vadd.f32 %v2781_v49, %v797_v57  ;;  %v2889_v25 = vpop.f32.mrf.mxu1 }
 0x13b   :  { %1524 = vrot.lane.b32.xlu1 %v2220_v58, %s2389_s0  ;;  %v799_v4 = vpop.f32.mrf.mxu0 }
 0x13c   :  { %2233 = vrcp.f32 %v1327_v62  ;;  %v2879_v6 = vadd.f32 %v2826_v51, %v798_v3  ;;  %v2008_v16 = vpop.f32.mrf.mxu1 }
 0x13d   :  { %v2222_v41 = vpop.eup %2221  ;;  %2235 = vpow2.f32 %v1877_v0  ;;  %v800_v8 = vpop.f32.mrf.mxu0 }
 0x13e   :  { %v2224_v12 = vpop.eup %2223  ;;  %v1328_v13 = vadd.f32 1.0, %v2222_v41  ;;  %v1878_v15 = vmul.f32 -1.442695, %v2879_v6  ;;  %v801_v17 = vadd.f32 %v2781_v49, %v800_v8  ;;  %v2897_v36 = vpop.f32.mrf.mxu1 }
 0x13f   :  { %1526 = vrot.lane.b32.xlu0 %v2224_v12, %s2389_s0  ;;  %v802_v18 = vpop.f32.mrf.mxu0 }
 0x140   :  { %2237 = vrcp.f32 %v1328_v13  ;;  %v2887_v9 = vadd.f32 %v2833_v61, %v801_v17  ;;  %v2009_v44 = vpop.f32.mrf.mxu1 }
 0x141   :  { %v2226_v51 = vpop.eup %2225  ;;  %2239 = vpow2.f32 %v1878_v15  ;;  %v805_v22 = vpop.f32.mrf.mxu0 }
 0x142   :  { %v2228_v26 = vpop.eup %2227  ;;  %v1329_v27 = vadd.f32 1.0, %v2226_v51  ;;  %v1879_v28 = vmul.f32 -1.442695, %v2887_v9  ;;  %v806_v29 = vadd.f32 %v2781_v49, %v805_v22  ;;  %v2905_v50 = vpop.f32.mrf.mxu1 }
 0x143   :  { %1528 = vrot.lane.b32.xlu1 %v2228_v26, %s2389_s0  ;;  %v807_v31 = vpop.f32.mrf.mxu0 }
 0x144   :  { %2241 = vrcp.f32 %v1329_v27  ;;  %v2895_v34 = vadd.f32 %v2841_v11, %v806_v29  ;;  %v2012_v58 = vpop.f32.mrf.mxu1 }
 0x145   :  { %v2230_v61 = vpop.eup %2229  ;;  %2243 = vpow2.f32 %v1879_v28  ;;  %v808_v35 = vpop.f32.mrf.mxu0 }
 0x146   :  { %v2232_v37 = vpop.eup %2231  ;;  %v1880_v39 = vmul.f32 -1.442695, %v2895_v34  ;;  %v809_v40 = vadd.f32 %v2781_v49, %v808_v35  ;;  %1530 = vrot.lane.b32.xlu0 %v2230_v61, %s2389_s0  ;;  %v2913_v3 = vpop.f32.mrf.mxu1 }
 0x147   :  { %v1330_v42 = vadd.f32 1.0, %v2232_v37  ;;  %v810_v24 = vpop.f32.mrf.mxu0 }
 0x148   :  { %2245 = vpow2.f32 %v1880_v39  ;;  %v2903_v46 = vadd.f32 %v2849_v23, %v809_v40  ;;  %v2013_v13 = vpop.f32.mrf.mxu1 }
 0x149   :  { %v2234_v11 = vpop.eup %2233  ;;  %2247 = vrcp.f32 %v1330_v42  ;;  %v813_v48 = vpop.f32.mrf.mxu0 }
 0x14a   :  { %v2236_v52 = vpop.eup %2235  ;;  %v1881_v53 = vmul.f32 -1.442695, %v2903_v46  ;;  %v814_v54 = vadd.f32 %v2781_v49, %v813_v48  ;;  %1532 = vrot.lane.b32.xlu1 %v2234_v11, %s2389_s0  ;;  %v2921_v18 = vpop.f32.mrf.mxu1 }
 0x14b   :  { %v1331_v33 = vadd.f32 1.0, %v2236_v52  ;;  %v815_v57 = vpop.f32.mrf.mxu0 }
 0x14c   :  { %2249 = vpow2.f32 %v1881_v53  ;;  %v2911_v62 = vadd.f32 %v2857_v2, %v814_v54  ;;  %v2016_v28 = vpop.f32.mrf.mxu1 }
 0x14d   :  { %v2238_v23 = vpop.eup %2237  ;;  %2251 = vrcp.f32 %v1331_v33  ;;  %v816_v0 = vpop.f32.mrf.mxu0 }
 0x14e   :  { %v2240_v4 = vpop.eup %2239  ;;  %v1882_v5 = vmul.f32 -1.442695, %v2911_v62  ;;  %v817_v41 = vadd.f32 %v2781_v49, %v816_v0  ;;  %1534 = vrot.lane.b32.xlu0 %v2238_v23, %s2389_s0  ;;  %v2929_v16 = vpop.f32.mrf.mxu1 }
 0x14f   :  { %v1332_v8 = vadd.f32 1.0, %v2240_v4  ;;  %v818_v12 = vpop.f32.mrf.mxu0 }
 0x150   :  { %2253 = vpow2.f32 %v1882_v5  ;;  %v2919_v15 = vadd.f32 %v2865_v45, %v817_v41  ;;  %v2017_v42 = vpop.f32.mrf.mxu1 }
 0x151   :  { %v2242_v2 = vpop.eup %2241  ;;  %2255 = vrcp.f32 %v1332_v8  ;;  %v821_v17 = vpop.f32.mrf.mxu0 }
 0x152   :  { %v2244_v19 = vpop.eup %2243  ;;  %v1883_v51 = vmul.f32 -1.442695, %v2919_v15  ;;  %v822_v22 = vadd.f32 %v2781_v49, %v821_v17  ;;  %1536 = vrot.lane.b32.xlu1 %v2242_v2, %s2389_s0  ;;  %v2937_v11 = vpop.f32.mrf.mxu1 }
 0x153   :  { %v1333_v26 = vadd.f32 1.0, %v2244_v19  ;;  %v823_v27 = vpop.f32.mrf.mxu0 }
 0x154   :  { %2257 = vpow2.f32 %v1883_v51  ;;  %v2927_v29 = vadd.f32 %v2873_v60, %v822_v22  ;;  %v2020_v57 = vpop.f32.mrf.mxu1 }
 0x155   :  { %v2246_v45 = vpop.eup %2245  ;;  %2259 = vrcp.f32 %v1333_v26  ;;  %v824_v31 = vpop.f32.mrf.mxu0 }
 0x156   :  { %v2248_v61 = vpop.eup %2247  ;;  %v1334_v35 = vadd.f32 1.0, %v2246_v45  ;;  %v1884_v37 = vmul.f32 -1.442695, %v2927_v29  ;;  %v825_v39 = vadd.f32 %v2781_v49, %v824_v31  ;;  %v2945_v0 = vpop.f32.mrf.mxu1 }
 0x157   :  { %1538 = vrot.lane.b32.xlu0 %v2248_v61, %s2389_s0  ;;  %v826_v40 = vpop.f32.mrf.mxu0 }
 0x158   :  { %2261 = vrcp.f32 %v1334_v35  ;;  %v2935_v24 = vadd.f32 %v2881_v10, %v825_v39  ;;  %v2021_v13 = vpop.f32.mrf.mxu1 }
 0x159   :  { %v2250_v60 = vpop.eup %2249  ;;  %2263 = vpow2.f32 %v1884_v37  ;;  %v829_v44 = vpop.f32.mrf.mxu0 }
 0x15a   :  { %v2252_v48 = vpop.eup %2251  ;;  %v1335_v52 = vadd.f32 1.0, %v2250_v60  ;;  %v1885_v53 = vmul.f32 -1.442695, %v2935_v24  ;;  %v830_v54 = vadd.f32 %v2781_v49, %v829_v44  ;;  %v2953_v19 = vpop.f32.mrf.mxu1 }
 0x15b   :  { %1540 = vrot.lane.b32.xlu1 %v2252_v48, %s2389_s0  ;;  %v831_v33 = vpop.f32.mrf.mxu0 }
 0x15c   :  { %2265 = vrcp.f32 %v1335_v52  ;;  %v2943_v58 = vadd.f32 %v2889_v25, %v830_v54  ;;  %v2024_v45 = vpop.f32.mrf.mxu1 }
 0x15d   :  { %v2254_v10 = vpop.eup %2253  ;;  %2267 = vpow2.f32 %v1885_v53  ;;  %v832_v23 = vpop.f32.mrf.mxu0 }
 0x15e   :  { %v2256_v4 = vpop.eup %2255  ;;  %v1336_v5 = vadd.f32 1.0, %v2254_v10  ;;  %v1886_v41 = vmul.f32 -1.442695, %v2943_v58  ;;  %v833_v8 = vadd.f32 %v2781_v49, %v832_v23  ;;  %v2961_v35 = vpop.f32.mrf.mxu1 }
 0x15f   :  { %1542 = vrot.lane.b32.xlu0 %v2256_v4, %s2389_s0  ;;  %v834_v12 = vpop.f32.mrf.mxu0 }
 0x160   :  { %2269 = vrcp.f32 %v1336_v5  ;;  %v2951_v2 = vadd.f32 %v2897_v36, %v833_v8  ;;  %v2025_v44 = vpop.f32.mrf.mxu1 }
 0x161   :  { %v2258_v25 = vpop.eup %2257  ;;  %2271 = vpow2.f32 %v1886_v41  ;;  %v837_v17 = vpop.f32.mrf.mxu0 }
 0x162   :  { %v2260_v51 = vpop.eup %2259  ;;  %v1337_v22 = vadd.f32 1.0, %v2258_v25  ;;  %v1887_v26 = vmul.f32 -1.442695, %v2951_v2  ;;  %v838_v27 = vadd.f32 %v2781_v49, %v837_v17  ;;  %v2969_v53 = vpop.f32.mrf.mxu1 }
 0x163   :  { %1544 = vrot.lane.b32.xlu1 %v2260_v51, %s2389_s0  ;;  %v839_v28 = vpop.f32.mrf.mxu0 }
 0x164   :  { %2273 = vrcp.f32 %v1337_v22  ;;  %v2959_v31 = vadd.f32 %v2905_v50, %v838_v27  ;;  %v2028_v4 = vpop.f32.mrf.mxu1 }
 0x165   :  { %v2262_v36 = vpop.eup %2261  ;;  %2275 = vpow2.f32 %v1887_v26  ;;  %v840_v61 = vpop.f32.mrf.mxu0 }
 0x166   :  { %v2264_v37 = vpop.eup %2263  ;;  %v1888_v39 = vmul.f32 -1.442695, %v2959_v31  ;;  %v841_v40 = vadd.f32 %v2781_v49, %v840_v61  ;;  %1546 = vrot.lane.b32.xlu0 %v2262_v36, %s2389_s0  ;;  %v2977_v8 = vpop.f32.mrf.mxu1 }
 0x167   :  { %v1338_v42 = vadd.f32 1.0, %v2264_v37  ;;  %v842_v60 = vpop.f32.mrf.mxu0 }
 0x168   :  { %2277 = vpow2.f32 %v1888_v39  ;;  %v2967_v48 = vadd.f32 %v2913_v3, %v841_v40  ;;  %v2029_v22 = vpop.f32.mrf.mxu1 }
 0x169   :  { %v2266_v50 = vpop.eup %2265  ;;  %2279 = vrcp.f32 %v1338_v42  ;;  %v845_v52 = vpop.f32.mrf.mxu0 }
 0x16a   :  { %v2268_v54 = vpop.eup %2267  ;;  %v1889_v33 = vmul.f32 -1.442695, %v2967_v48  ;;  %v846_v57 = vadd.f32 %v2781_v49, %v845_v52  ;;  %1548 = vrot.lane.b32.xlu1 %v2266_v50, %s2389_s0  ;;  %v2985_v28 = vpop.f32.mrf.mxu1 }
 0x16b   :  { %v1339_v10 = vadd.f32 1.0, %v2268_v54  ;;  %v847_v23 = vpop.f32.mrf.mxu0 }
 0x16c   :  { %2281 = vpow2.f32 %v1889_v33  ;;  %v2975_v5 = vadd.f32 %v2921_v18, %v846_v57  ;;  %v2032_v40 = vpop.f32.mrf.mxu1 }
 0x16d   :  { %v2270_v3 = vpop.eup %2269  ;;  %2283 = vrcp.f32 %v1339_v10  ;;  %v848_v41 = vpop.f32.mrf.mxu0 }
 0x16e   :  { %v2272_v12 = vpop.eup %2271  ;;  %v1890_v13 = vmul.f32 -1.442695, %v2975_v5  ;;  %v849_v25 = vadd.f32 %v2781_v49, %v848_v41  ;;  %1550 = vrot.lane.b32.xlu0 %v2270_v3, %s2389_s0  ;;  %v2993_v44 = vpop.f32.mrf.mxu1 }
 0x16f   :  { %v1340_v17 = vadd.f32 1.0, %v2272_v12  ;;  %v850_v51 = vpop.f32.mrf.mxu0 }
 0x170   :  { %2285 = vpow2.f32 %v1890_v13  ;;  %v2983_v26 = vadd.f32 %v2929_v16, %v849_v25  ;;  %v2033_v10 = vpop.f32.mrf.mxu1 }
 0x171   :  { %v2274_v18 = vpop.eup %2273  ;;  %2287 = vrcp.f32 %v1340_v17  ;;  %v853_v27 = vpop.f32.mrf.mxu0 }
 0x172   :  { %v2276_v45 = vpop.eup %2275  ;;  %v1891_v36 = vmul.f32 -1.442695, %v2983_v26  ;;  %v854_v61 = vadd.f32 %v2781_v49, %v853_v27  ;;  %1552 = vrot.lane.b32.xlu1 %v2274_v18, %s2389_s0  ;;  %v3001_v3 = vpop.f32.mrf.mxu1 }
 0x173   :  { %v1341_v37 = vadd.f32 1.0, %v2276_v45  ;;  %v855_v39 = vpop.f32.mrf.mxu0 }
 0x174   :  { %2289 = vpow2.f32 %v1891_v36  ;;  %v2991_v42 = vadd.f32 %v2937_v11, %v854_v61  ;;  %v2036_v51 = vpop.f32.mrf.mxu1 }
 0x175   :  { %v2278_v16 = vpop.eup %2277  ;;  %2291 = vrcp.f32 %v1341_v37  ;;  %v856_v60 = vpop.f32.mrf.mxu0 }
 0x176   :  { %v2280_v50 = vpop.eup %2279  ;;  %v1342_v52 = vadd.f32 1.0, %v2278_v16  ;;  %v1892_v54 = vmul.f32 -1.442695, %v2991_v42  ;;  %v857_v33 = vadd.f32 %v2781_v49, %v856_v60  ;;  %v3009_v27 = vpop.f32.mrf.mxu1 }
 0x177   :  { %1554 = vrot.lane.b32.xlu0 %v2280_v50, %s2389_s0  ;;  %v858_v57 = vpop.f32.mrf.mxu0 }
 0x178   :  { %2293 = vrcp.f32 %v1342_v52  ;;  %v2999_v23 = vadd.f32 %v2945_v0, %v857_v33  ;;  %v2037_v40 = vpop.f32.mrf.mxu1 }
 0x179   :  { %v2282_v11 = vpop.eup %2281  ;;  %2295 = vpow2.f32 %v1892_v54  ;;  %v861_v4 = vpop.f32.mrf.mxu0 }
 0x17a   :  { %v2284_v41 = vpop.eup %2283  ;;  %v1343_v12 = vadd.f32 1.0, %v2282_v11  ;;  %v1893_v13 = vmul.f32 -1.442695, %v2999_v23  ;;  %v862_v25 = vadd.f32 %v2781_v49, %v861_v4  ;;  %v3017_v50 = vpop.f32.mrf.mxu1 }
 0x17b   :  { %1556 = vrot.lane.b32.xlu1 %v2284_v41, %s2389_s0  ;;  %v863_v17 = vpop.f32.mrf.mxu0 }
 0x17c   :  { %2297 = vrcp.f32 %v1343_v12  ;;  %v3007_v22 = vadd.f32 %v2953_v19, %v862_v25  ;;  %v2040_v11 = vpop.f32.mrf.mxu1 }
 0x17d   :  { %v2286_v0 = vpop.eup %2285  ;;  %2299 = vpow2.f32 %v1893_v13  ;;  %v864_v18 = vpop.f32.mrf.mxu0 }
 0x17e   :  { %v2288_v45 = vpop.eup %2287  ;;  %v1344_v36 = vadd.f32 1.0, %v2286_v0  ;;  %v1894_v61 = vmul.f32 -1.442695, %v3007_v22  ;;  %v865_v37 = vadd.f32 %v2781_v49, %v864_v18  ;;  %v3025_v12 = vpop.f32.mrf.mxu1 }
 0x17f   :  { %1558 = vrot.lane.b32.xlu0 %v2288_v45, %s2389_s0  ;;  %v866_v39 = vpop.f32.mrf.mxu0 }
 0x180   :  { %2301 = vrcp.f32 %v1344_v36  ;;  %v3015_v16 = vadd.f32 %v2961_v35, %v865_v37  ;;  %v2041_v18 = vpop.f32.mrf.mxu1 }
 0x181   :  { %v2290_v19 = vpop.eup %2289  ;;  %2303 = vpow2.f32 %v1894_v61  ;;  %v869_v60 = vpop.f32.mrf.mxu0 }
 0x182   :  { %v2292_v52 = vpop.eup %2291  ;;  %v1345_v54 = vadd.f32 1.0, %v2290_v19  ;;  %v1895_v33 = vmul.f32 -1.442695, %v3015_v16  ;;  %v870_v57 = vadd.f32 %v2781_v49, %v869_v60  ;;  %v3033_v61 = vpop.f32.mrf.mxu1 }
 0x183   :  { %1560 = vrot.lane.b32.xlu1 %v2292_v52, %s2389_s0  ;;  %v871_v10 = vpop.f32.mrf.mxu0 }
 0x184   :  { %2305 = vrcp.f32 %v1345_v54  ;;  %v3023_v4 = vadd.f32 %v2969_v53, %v870_v57  ;;  %v2044_v52 = vpop.f32.mrf.mxu1 }
 0x185   :  { %v2294_v35 = vpop.eup %2293  ;;  %2307 = vpow2.f32 %v1895_v33  ;;  %v872_v41 = vpop.f32.mrf.mxu0 }
 0x186   :  { %v2296_v13 = vpop.eup %2295  ;;  %v1896_v25 = vmul.f32 -1.442695, %v3023_v4  ;;  %v873_v17 = vadd.f32 %v2781_v49, %v872_v41  ;;  %1562 = vrot.lane.b32.xlu0 %v2294_v35, %s2389_s0  ;;  %v3041_v57 = vpop.f32.mrf.mxu1 }
 0x187   :  { %v1346_v51 = vadd.f32 1.0, %v2296_v13  ;;  %v874_v0 = vpop.f32.mrf.mxu0 }
 0x188   :  { %2309 = vpow2.f32 %v1896_v25  ;;  %v3031_v45 = vadd.f32 %v2977_v8, %v873_v17  ;;  %v2045_v25 = vpop.f32.mrf.mxu1 }
 0x189   :  { %v2298_v53 = vpop.eup %2297  ;;  %2311 = vrcp.f32 %v1346_v51  ;;  %v877_v36 = vpop.f32.mrf.mxu0 }
 0x18a   :  { %v2300_v37 = vpop.eup %2299  ;;  %v1897_v39 = vmul.f32 -1.442695, %v3031_v45  ;;  %v878_v40 = vadd.f32 %v2781_v49, %v877_v36  ;;  %1564 = vrot.lane.b32.xlu1 %v2298_v53, %s2389_s0  ;;  %v3049_v0 = vpop.f32.mrf.mxu1 }
 0x18b   :  { %v1347_v19 = vadd.f32 1.0, %v2300_v37  ;;  %v879_v60 = vpop.f32.mrf.mxu0 }
 0x18c   :  { %2313 = vpow2.f32 %v1897_v39  ;;  %v3039_v54 = vadd.f32 %v2985_v28, %v878_v40  ;;  %v2048_v40 = vpop.f32.mrf.mxu1 }
 0x18d   :  { %v2302_v8 = vpop.eup %2301  ;;  %2315 = vrcp.f32 %v1347_v19  ;;  %v880_v33 = vpop.f32.mrf.mxu0 }
 0x18e   :  { %v2304_v10 = vpop.eup %2303  ;;  %v1898_v11 = vmul.f32 -1.442695, %v3039_v54  ;;  %v881_v35 = vadd.f32 %v2781_v49, %v880_v33  ;;  %1566 = vrot.lane.b32.xlu0 %v2302_v8, %s2389_s0  ;;  %v3057_v52 = vpop.f32.mrf.mxu1 }
 0x18f   :  { %v1348_v41 = vadd.f32 1.0, %v2304_v10  ;;  %v882_v13 = vpop.f32.mrf.mxu0 }
 0x190   :  { %2317 = vpow2.f32 %v1898_v11  ;;  %v3047_v17 = vadd.f32 %v2993_v44, %v881_v35 }
 0x191   :  { %v2306_v28 = vpop.eup %2305  ;;  %2319 = vrcp.f32 %v1348_v41  ;;  %v885_v51 = vpop.f32.mrf.mxu0 }
 0x192   :  { %v2308_v18 = vpop.eup %2307  ;;  %v1899_v53 = vmul.f32 -1.442695, %v3047_v17  ;;  %v886_v36 = vadd.f32 %v2781_v49, %v885_v51  ;;  %1568 = vrot.lane.b32.xlu1 %v2306_v28, %s2389_s0  ;;  %v2049_v41 = vpop.f32.mrf.mxu1 }
 0x193   :  { %v1349_v37 = vadd.f32 1.0, %v2308_v18  ;;  %v887_v39 = vpop.f32.mrf.mxu0 }
 0x194   :  { %2321 = vpow2.f32 %v1899_v53  ;;  %v3055_v19 = vadd.f32 %v3001_v3, %v886_v36  ;;  %v3066_v18 = vpop.f32.mrf.mxu1 }
 0x195   :  { %v2310_v44 = vpop.eup %2309  ;;  %2323 = vrcp.f32 %v1349_v37  ;;  %v888_v60 = vpop.f32.mrf.mxu0 }
 0x196   :  { %v2312_v8 = vpop.eup %2311  ;;  %v1350_v33 = vadd.f32 1.0, %v2310_v44  ;;  %v1900_v10 = vmul.f32 -1.442695, %v3055_v19  ;;  %v889_v11 = vadd.f32 %v2781_v49, %v888_v60  ;;  %v2052_v40 = vpop.f32.mrf.mxu1 }
 0x197   :  { %1570 = vrot.lane.b32.xlu0 %v2312_v8, %s2389_s0  ;;  %v890_v35 = vpop.f32.mrf.mxu0 }
 0x198   :  { %2325 = vrcp.f32 %v1350_v33  ;;  %v3063_v13 = vadd.f32 %v3009_v27, %v889_v11  ;;  %v1515_v3 = vpop.permute.xlu0 %1514 }
 0x199   :  { %v2314_v25 = vpop.eup %2313  ;;  %2327 = vpow2.f32 %v1900_v10  ;;  %v1661_v28 = vmul.f32 %v1515_v3, %v2784_v56  ;;  %v893_v51 = vpop.f32.mrf.mxu0 }
 0x19a   :  { %v2316_v53 = vpop.eup %2315  ;;  %v1351_v36 = vadd.f32 1.0, %v2314_v25  ;;  %v1901_v37 = vmul.f32 -1.442695, %v3063_v13  ;;  %v894_v39 = vadd.f32 %v2781_v49, %v893_v51  ;;  %v3079_v10 = vpop.f32.mrf.mxu1 }
 0x19b   :  { %1711 = vst.msk [vmem:[%s3404_s3] sm:$0xff] %vm1710_vm1, %v1661_v28  ;;  %1572 = vrot.lane.b32.xlu1 %v2316_v53, %s2389_s0  ;;  %v895_v27 = vpop.f32.mrf.mxu0 }
 0x19c   :  { %2329 = vrcp.f32 %v1351_v36  ;;  %v3076_v56 = vadd.f32 %v3017_v50, %v894_v39  ;;  %v1517_v44 = vpop.permute.xlu0 %1516  ;;  %v2053_v25 = vpop.f32.mrf.mxu1 }
 0x19d   :  { %v2318_v60 = vpop.eup %2317  ;;  %2331 = vpow2.f32 %v1901_v37  ;;  %v1662_v8 = vmul.f32 %v1517_v44, %v2788_v63  ;;  %v896_v33 = vpop.f32.mrf.mxu0 }
 0x19e   :  { %v2320_v11 = vpop.eup %2319  ;;  %v1352_v35 = vadd.f32 1.0, %v2318_v60  ;;  %v1902_v41 = vmul.f32 -1.442695, %v3076_v56  ;;  %v897_v3 = vadd.f32 %v2781_v49, %v896_v33  ;;  %v3092_v37 = vpop.f32.mrf.mxu1 }
 0x19f   :  { %1712 = vst.msk [vmem:[%s3404_s3 + $0x8] sm:$0xff] %vm1710_vm1, %v1662_v8  ;;  %1574 = vrot.lane.b32.xlu0 %v2320_v11, %s2389_s0  ;;  %v898_v50 = vpop.f32.mrf.mxu0 }
 0x1a0   :  { %2333 = vrcp.f32 %v1352_v35  ;;  %v3089_v63 = vadd.f32 %v3025_v12, %v897_v3  ;;  %v1519_v28 = vpop.permute.xlu1 %1518  ;;  %v2056_v60 = vpop.f32.mrf.mxu1  ;;  %v3111_v50 = vld [vmem:[%s3403_s2] ss:$0 sm:$0xff] }
 0x1a1   :  { %v2322_v51 = vpop.eup %2321  ;;  %2335 = vpow2.f32 %v1902_v41  ;;  %v1663_v53 = vmul.f32 %v1519_v28, %v2794_v7  ;;  %v901_v36 = vpop.f32.mrf.mxu0 }
 0x1a2   :  { %v2324_v39 = vpop.eup %2323  ;;  %v1353_v27 = vadd.f32 1.0, %v2322_v51  ;;  %v1903_v40 = vmul.f32 -1.442695, %v3089_v63  ;;  %v902_v44 = vadd.f32 %v2781_v49, %v901_v36  ;;  %v3105_v49 = vpop.f32.mrf.mxu1 }
 0x1a3   :  { %1713 = vst.msk [vmem:[%s3404_s3 + $0x10] sm:$0xff] %vm1710_vm1, %v1663_v53  ;;  %1576 = vrot.lane.b32.xlu1 %v2324_v39, %s2389_s0  ;;  %v903_v12 = vpop.f32.mrf.mxu0 }
 0x1a4   :  { %2337 = vrcp.f32 %v1353_v27  ;;  %v3102_v7 = vadd.f32 %v3033_v61, %v902_v44  ;;  %v1521_v8 = vpop.permute.xlu1 %1520  ;;  %v2057_v28 = vpop.f32.mrf.mxu1 }
 0x1a5   :  { %v2326_v33 = vpop.eup %2325  ;;  %2339 = vpow2.f32 %v1903_v40  ;;  %v1664_v11 = vmul.f32 %v1521_v8, %v2800_v14  ;;  %v904_v35 = vpop.f32.mrf.mxu0 }
 0x1a6   :  { %v2328_v41 = vpop.eup %2327  ;;  %v1904_v3 = vmul.f32 -1.442695, %v3102_v7  ;;  %v905_v25 = vadd.f32 %v3111_v50, %v904_v35  ;;  %1578 = vrot.lane.b32.xlu0 %v2326_v33, %s2389_s0  ;;  %v3126_v60 = vpop.f32.mrf.mxu1 }
 0x1a7   :  { %v1354_v61 = vadd.f32 1.0, %v2328_v41  ;;  %1714 = vst.msk [vmem:[%s3404_s3 + $0x18] sm:$0xff] %vm1710_vm1, %v1664_v11  ;;  %v906_v14 = vpop.f32.mrf.mxu0 }
 0x1a8   :  { %2341 = vpow2.f32 %v1904_v3  ;;  %v3120_v51 = vadd.f32 %v3041_v57, %v905_v25  ;;  %v2060_v11 = vpop.f32.mrf.mxu1 }
 0x1a9   :  { %v2330_v53 = vpop.eup %2329  ;;  %2343 = vrcp.f32 %v1354_v61  ;;  %v1523_v36 = vpop.permute.xlu0 %1522 }
 0x1aa   :  { %v909_v39 = vpop.f32.mrf.mxu0  ;;  %v2332_v27 = vpop.eup %2331  ;;  %v1905_v40 = vmul.f32 -1.442695, %v3120_v51  ;;  %v1665_v44 = vmul.f32 %v1523_v36, %v2806_v21  ;;  %1580 = vrot.lane.b32.xlu1 %v2330_v53, %s2389_s0 }
 0x1ab   :  { %v910_v12 = vadd.f32 %v3111_v50, %v909_v39  ;;  %v1355_v8 = vadd.f32 1.0, %v2332_v27  ;;  %v1168_v28 = vpop.f32.mrf.mxu1 }
 0x1ac   :  { %v911_v33 = vpop.f32.mrf.mxu0  ;;  %2345 = vpow2.f32 %v1905_v40  ;;  %1715 = vst.msk [vmem:[%s3404_s3 + $0x20] sm:$0xff] %vm1710_vm1, %v1665_v44 }
 0x1ad   :  { %v3133_v57 = vadd.f32 %v3049_v0, %v910_v12  ;;  %v2334_v35 = vpop.eup %2333  ;;  %2347 = vrcp.f32 %v1355_v8  ;;  %v1525_v21 = vpop.permute.xlu1 %1524 }
 0x1ae   :  { %v912_v41 = vpop.f32.mrf.mxu0  ;;  %v2336_v3 = vpop.eup %2335  ;;  %v1666_v61 = vmul.f32 %v1525_v21, %v2812_v30  ;;  %1582 = vrot.lane.b32.xlu0 %v2334_v35, %s2389_s0 }
 0x1af   :  { %v1906_v25 = vmul.f32 -1.442695, %v3133_v57  ;;  %v913_v14 = vadd.f32 %v3111_v50, %v912_v41  ;;  %v1356_v53 = vadd.f32 1.0, %v2336_v3  ;;  %v2061_v39 = vpop.f32.mrf.mxu1 }
 0x1b0   :  { %v914_v36 = vpop.f32.mrf.mxu0  ;;  %1716 = vst.msk [vmem:[%s3404_s3 + $0x28] sm:$0xff] %vm1710_vm1, %v1666_v61 }
 0x1b1   :  { %2349 = vpow2.f32 %v1906_v25  ;;  %v3144_v0 = vadd.f32 %v3057_v52, %v913_v14  ;;  %v2338_v27 = vpop.eup %2337  ;;  %v1527_v30 = vpop.permute.xlu0 %1526 }
 0x1b2   :  { %2351 = vrcp.f32 %v1356_v53  ;;  %v917_v40 = vpop.f32.mrf.mxu0  ;;  %v2340_v44 = vpop.eup %2339  ;;  %v1667_v8 = vmul.f32 %v1527_v30, %v2818_v38  ;;  %1584 = vrot.lane.b32.xlu1 %v2338_v27, %s2389_s0 }
 0x1b3   :  { %v1907_v12 = vmul.f32 -1.442695, %v3144_v0  ;;  %v918_v33 = vadd.f32 %v3111_v50, %v917_v40  ;;  %v1357_v11 = vadd.f32 1.0, %v2340_v44 }
 0x1b4   :  { %v919_v35 = vpop.f32.mrf.mxu0  ;;  %1717 = vst.msk [vmem:[%s3404_s3 + $0x30] sm:$0xff] %vm1710_vm1, %v1667_v8 }
 0x1b5   :  { %2353 = vpow2.f32 %v1907_v12  ;;  %v3155_v52 = vadd.f32 %v3066_v18, %v918_v33  ;;  %v2342_v21 = vpop.eup %2341  ;;  %v1529_v41 = vpop.permute.xlu1 %1528 }
 0x1b6   :  { %2355 = vrcp.f32 %v1357_v11  ;;  %v920_v3 = vpop.f32.mrf.mxu0  ;;  %v2344_v38 = vpop.eup %2343  ;;  %v1358_v25 = vadd.f32 1.0, %v2342_v21  ;;  %v1668_v14 = vmul.f32 %v1529_v41, %v2824_v47 }
 0x1b7   :  { %v1908_v61 = vmul.f32 -1.442695, %v3155_v52  ;;  %v921_v28 = vadd.f32 %v3111_v50, %v920_v3  ;;  %1586 = vrot.lane.b32.xlu0 %v2344_v38, %s2389_s0 }
 0x1b8   :  { %v922_v53 = vpop.f32.mrf.mxu0  ;;  %2357 = vrcp.f32 %v1358_v25  ;;  %1718 = vst.msk [vmem:[%s3404_s3 + $0x38] sm:$0xff] %vm1710_vm1, %v1668_v14  ;;  %v1531_v36 = vpop.permute.xlu0 %1530 }
 0x1b9   :  { %v3166_v18 = vadd.f32 %v3079_v10, %v921_v28  ;;  %v2346_v39 = vpop.eup %2345  ;;  %2359 = vpow2.f32 %v1908_v61  ;;  %v1669_v27 = vmul.f32 %v1531_v36, %v2831_v59 }
 0x1ba   :  { %v925_v47 = vpop.f32.mrf.mxu0  ;;  %v2348_v30 = vpop.eup %2347  ;;  %v1359_v40 = vadd.f32 1.0, %v2346_v39 }
 0x1bb   :  { %v1909_v44 = vmul.f32 -1.442695, %v3166_v18  ;;  %v926_v12 = vadd.f32 %v3111_v50, %v925_v47  ;;  %1719 = vst.msk [vmem:[%s3404_s3 + $0x40] sm:$0xff] %vm1710_vm1, %v1669_v27  ;;  %1588 = vrot.lane.b32.xlu1 %v2348_v30, %s2389_s0 }
 0x1bc   :  { %v927_v10 = vpop.f32.mrf.mxu0  ;;  %2361 = vrcp.f32 %v1359_v40  ;;  %v1533_v59 = vpop.permute.xlu1 %1532 }
 0x1bd   :  { %v3177_v8 = vadd.f32 %v3092_v37, %v926_v12  ;;  %2363 = vpow2.f32 %v1909_v44  ;;  %v1670_v11 = vmul.f32 %v1533_v59, %v2839_v1 }
 0x1be   :  { %v2350_v33 = vpop.eup %2349  ;;  %v928_v35 = vpop.f32.mrf.mxu0 }
 0x1bf   :  { %v2352_v21 = vpop.eup %2351  ;;  %v1360_v41 = vadd.f32 1.0, %v2350_v33  ;;  %v1910_v3 = vmul.f32 -1.442695, %v3177_v8  ;;  %v929_v38 = vadd.f32 %v3111_v50, %v928_v35  ;;  %1720 = vst.msk [vmem:[%s3404_s3 + $0x48] sm:$0xff] %vm1710_vm1, %v1670_v11 }
 0x1c0   :  { %1590 = vrot.lane.b32.xlu0 %v2352_v21, %s2389_s0  ;;  %v930_v37 = vpop.f32.mrf.mxu0  ;;  %v1535_v1 = vpop.permute.xlu0 %1534 }
 0x1c1   :  { %2365 = vrcp.f32 %v1360_v41  ;;  %v3188_v25 = vadd.f32 %v3105_v49, %v929_v38  ;;  %v1671_v14 = vmul.f32 %v1535_v1, %v2847_v20 }
 0x1c2   :  { %v2354_v61 = vpop.eup %2353  ;;  %2367 = vpow2.f32 %v1910_v3  ;;  %v933_v28 = vpop.f32.mrf.mxu0 }
 0x1c3   :  { %v2356_v53 = vpop.eup %2355  ;;  %v1361_v36 = vadd.f32 1.0, %v2354_v61  ;;  %v1911_v39 = vmul.f32 -1.442695, %v3188_v25  ;;  %v934_v27 = vadd.f32 %v3111_v50, %v933_v28  ;;  %1721 = vst.msk [vmem:[%s3404_s3 + $0x50] sm:$0xff] %vm1710_vm1, %v1671_v14 }
 0x1c4   :  { %1592 = vrot.lane.b32.xlu1 %v2356_v53, %s2389_s0  ;;  %v935_v49 = vpop.f32.mrf.mxu0  ;;  %v1537_v20 = vpop.permute.xlu1 %1536 }
 0x1c5   :  { %2369 = vrcp.f32 %v1361_v36  ;;  %v3199_v47 = vadd.f32 %v3126_v60, %v934_v27  ;;  %v2358_v30 = vpop.eup %2357  ;;  %v1672_v40 = vmul.f32 %v1537_v20, %v2855_v32 }
 0x1c6   :  { %2371 = vpow2.f32 %v1911_v39  ;;  %v936_v44 = vpop.f32.mrf.mxu0  ;;  %v2360_v12 = vpop.eup %2359  ;;  %1594 = vrot.lane.b32.xlu0 %v2358_v30, %s2389_s0 }
 0x1c7   :  { %v1912_v50 = vmul.f32 -1.442695, %v3199_v47  ;;  %v1362_v10 = vadd.f32 1.0, %v2360_v12  ;;  %1722 = vst.msk [vmem:[%s3404_s3 + $0x58] sm:$0xff] %vm1710_vm1, %v1672_v40 }
 0x1c8   :  { %v937_v59 = vpop.f32.mrf.mxu0 }
 0x1c9   :  { %2373 = vpow2.f32 %v1912_v50  ;;  %v2362_v60 = vpop.eup %2361  ;;  %v1539_v33 = vpop.permute.xlu0 %1538 }
 0x1ca   :  { %2375 = vrcp.f32 %v1362_v10  ;;  %v2364_v11 = vpop.eup %2363  ;;  %v1673_v32 = vmul.f32 %v1539_v33, %v2863_v43  ;;  %1596 = vrot.lane.b32.xlu1 %v2362_v60, %s2389_s0 }
 0x1cb   :  { %v1363_v35 = vadd.f32 1.0, %v2364_v11 }
 0x1cc   :  { %1723 = vst.msk [vmem:[%s3404_s3 + $0x60] sm:$0xff] %vm1710_vm1, %v1673_v32 }
 0x1cd   :  { %2377 = vrcp.f32 %v1363_v35  ;;  %v1541_v41 = vpop.permute.xlu1 %1540 }
 0x1ce   :  { %v2366_v21 = vpop.eup %2365  ;;  %v1674_v38 = vmul.f32 %v1541_v41, %v2871_v55 }
 0x1cf   :  { %v2368_v3 = vpop.eup %2367  ;;  %1598 = vrot.lane.b32.xlu0 %v2366_v21, %s2389_s0 }
 0x1d0   :  { %v1364_v37 = vadd.f32 1.0, %v2368_v3  ;;  %1724 = vst.msk [vmem:[%s3404_s3 + $0x68] sm:$0xff] %vm1710_vm1, %v1674_v38 }
 0x1d1   :  { %v1543_v1 = vpop.permute.xlu0 %1542 }
 0x1d2   :  { %v2370_v43 = vpop.eup %2369  ;;  %2379 = vrcp.f32 %v1364_v37  ;;  %v1675_v14 = vmul.f32 %v1543_v1, %v2879_v6 }
 0x1d3   :  { %v2372_v61 = vpop.eup %2371  ;;  %1600 = vrot.lane.b32.xlu1 %v2370_v43, %s2389_s0 }
 0x1d4   :  { %v1365_v28 = vadd.f32 1.0, %v2372_v61  ;;  %1725 = vst.msk [vmem:[%s3404_s3 + $0x70] sm:$0xff] %vm1710_vm1, %v1675_v14 }
 0x1d5   :  { %v1545_v53 = vpop.permute.xlu1 %1544 }
 0x1d6   :  { %v2374_v55 = vpop.eup %2373  ;;  %2381 = vrcp.f32 %v1365_v28  ;;  %v1676_v27 = vmul.f32 %v1545_v53, %v2887_v9 }
 0x1d7   :  { %v2376_v36 = vpop.eup %2375  ;;  %v1366_v39 = vadd.f32 1.0, %v2374_v55 }
 0x1d8   :  { %1602 = vrot.lane.b32.xlu0 %v2376_v36, %s2389_s0  ;;  %1726 = vst.msk [vmem:[%s3404_s3 + $0x78] sm:$0xff] %vm1710_vm1, %v1676_v27  ;;  %v1547_v6 = vpop.permute.xlu0 %1546 }
 0x1d9   :  { %2383 = vrcp.f32 %v1366_v39  ;;  %v1677_v49 = vmul.f32 %v1547_v6, %v2895_v34 }
 0x1da   :  { %v2378_v20 = vpop.eup %2377 }
 0x1db   :  { %1727 = vst.msk [vmem:[%s3404_s3 + $0x80] sm:$0xff] %vm1710_vm1, %v1677_v49  ;;  %1604 = vrot.lane.b32.xlu1 %v2378_v20, %s2389_s0 }
 0x1dc   :  { %v1549_v9 = vpop.permute.xlu1 %1548 }
 0x1dd   :  { %v1678_v30 = vmul.f32 %v1549_v9, %v2903_v46 }
 0x1df   :  { %v2380_v40 = vpop.eup %2379  ;;  %1728 = vst.msk [vmem:[%s3404_s3 + $0x88] sm:$0xff] %vm1710_vm1, %v1678_v30 }
 0x1e0   :  { %1606 = vrot.lane.b32.xlu0 %v2380_v40, %s2389_s0  ;;  %v1551_v34 = vpop.permute.xlu0 %1550 }
 0x1e1   :  { %v1679_v44 = vmul.f32 %v1551_v34, %v2911_v62 }
 0x1e3   :  { %v2382_v12 = vpop.eup %2381  ;;  %1729 = vst.msk [vmem:[%s3404_s3 + $0x90] sm:$0xff] %vm1710_vm1, %v1679_v44 }
 0x1e4   :  { %1608 = vrot.lane.b32.xlu1 %v2382_v12, %s2389_s0  ;;  %v1553_v46 = vpop.permute.xlu1 %1552 }
 0x1e5   :  { %v1680_v10 = vmul.f32 %v1553_v46, %v2919_v15 }
 0x1e6   :  { %v2384_v50 = vpop.eup %2383 }
 0x1e7   :  { %1610 = vrot.lane.b32.xlu0 %v2384_v50, %s2389_s0  ;;  %1730 = vst.msk [vmem:[%s3404_s3 + $0x98] sm:$0xff] %vm1710_vm1, %v1680_v10 }
 0x1e9   :  { %v1555_v62 = vpop.permute.xlu0 %1554 }
 0x1ea   :  { %v1681_v59 = vmul.f32 %v1555_v62, %v2927_v29 }
 0x1ec   :  { %1731 = vst.msk [vmem:[%s3404_s3 + $0xa0] sm:$0xff] %vm1710_vm1, %v1681_v59 }
 0x1ed   :  { %v1557_v60 = vpop.permute.xlu1 %1556 }
 0x1ee   :  { %v1682_v33 = vmul.f32 %v1557_v60, %v2935_v24 }
 0x1f0   :  { %1732 = vst.msk [vmem:[%s3404_s3 + $0xa8] sm:$0xff] %vm1710_vm1, %v1682_v33 }
 0x1f1   :  { %v1559_v15 = vpop.permute.xlu0 %1558 }
 0x1f2   :  { %v1683_v11 = vmul.f32 %v1559_v15, %v2943_v58 }
 0x1f4   :  { %1733 = vst.msk [vmem:[%s3404_s3 + $0xb0] sm:$0xff] %vm1710_vm1, %v1683_v11 }
 0x1f5   :  { %v1561_v29 = vpop.permute.xlu1 %1560 }
 0x1f6   :  { %v1684_v32 = vmul.f32 %v1561_v29, %v2951_v2 }
 0x1f8   :  { %1734 = vst.msk [vmem:[%s3404_s3 + $0xb8] sm:$0xff] %vm1710_vm1, %v1684_v32  ;;  %v1563_v24 = vpop.permute.xlu0 %1562 }
 0x1f9   :  { %v1685_v35 = vmul.f32 %v1563_v24, %v2959_v31 }
 0x1fb   :  { %1735 = vst.msk [vmem:[%s3404_s3 + $0xc0] sm:$0xff] %vm1710_vm1, %v1685_v35 }
 0x1fc   :  { %v1565_v58 = vpop.permute.xlu1 %1564 }
 0x1fd   :  { %v1686_v21 = vmul.f32 %v1565_v58, %v2967_v48 }
 0x1ff   :  { %1736 = vst.msk [vmem:[%s3404_s3 + $0xc8] sm:$0xff] %vm1710_vm1, %v1686_v21 }
 0x200   :  { %v1567_v2 = vpop.permute.xlu0 %1566 }
 0x201   :  { %v1687_v41 = vmul.f32 %v1567_v2, %v2975_v5 }
 0x203   :  { %1737 = vst.msk [vmem:[%s3404_s3 + $0xd0] sm:$0xff] %vm1710_vm1, %v1687_v41 }
 0x204   :  { %v1569_v31 = vpop.permute.xlu1 %1568 }
 0x205   :  { %v1688_v3 = vmul.f32 %v1569_v31, %v2983_v26 }
 0x207   :  { %1738 = vst.msk [vmem:[%s3404_s3 + $0xd8] sm:$0xff] %vm1710_vm1, %v1688_v3 }
 0x209   :  { %v1571_v48 = vpop.permute.xlu0 %1570 }
 0x20a   :  { %v1689_v38 = vmul.f32 %v1571_v48, %v2991_v42 }
 0x20c   :  { %1739 = vst.msk [vmem:[%s3404_s3 + $0xe0] sm:$0xff] %vm1710_vm1, %v1689_v38 }
 0x20d   :  { %v1573_v5 = vpop.permute.xlu1 %1572 }
 0x20e   :  { %v1690_v37 = vmul.f32 %v1573_v5, %v2999_v23 }
 0x210   :  { %1740 = vst.msk [vmem:[%s3404_s3 + $0xe8] sm:$0xff] %vm1710_vm1, %v1690_v37 }
 0x211   :  { %v1575_v26 = vpop.permute.xlu0 %1574 }
 0x212   :  { %v1691_v43 = vmul.f32 %v1575_v26, %v3007_v22 }
 0x214   :  { %1741 = vst.msk [vmem:[%s3404_s3 + $0xf0] sm:$0xff] %vm1710_vm1, %v1691_v43 }
 0x215   :  { %v1577_v42 = vpop.permute.xlu1 %1576 }
 0x216   :  { %v1692_v1 = vmul.f32 %v1577_v42, %v3015_v16 }
 0x218   :  { %1742 = vst.msk [vmem:[%s3404_s3 + $0xf8] sm:$0xff] %vm1710_vm1, %v1692_v1  ;;  %v1579_v23 = vpop.permute.xlu0 %1578 }
 0x219   :  { %v1693_v61 = vmul.f32 %v1579_v23, %v3023_v4 }
 0x21b   :  { %1743 = vst.msk [vmem:[%s3404_s3 + $0x100] sm:$0xff] %vm1710_vm1, %v1693_v61 }
 0x21c   :  { %v1581_v22 = vpop.permute.xlu1 %1580 }
 0x21d   :  { %v1694_v14 = vmul.f32 %v1581_v22, %v3031_v45 }
 0x21f   :  { %1744 = vst.msk [vmem:[%s3404_s3 + $0x108] sm:$0xff] %vm1710_vm1, %v1694_v14 }
 0x220   :  { %v1583_v16 = vpop.permute.xlu0 %1582 }
 0x221   :  { %v1695_v28 = vmul.f32 %v1583_v16, %v3039_v54 }
 0x223   :  { %1745 = vst.msk [vmem:[%s3404_s3 + $0x110] sm:$0xff] %vm1710_vm1, %v1695_v28 }
 0x224   :  { %v1585_v4 = vpop.permute.xlu1 %1584 }
 0x225   :  { %v1696_v55 = vmul.f32 %v1585_v4, %v3047_v17 }
 0x227   :  { %1746 = vst.msk [vmem:[%s3404_s3 + $0x118] sm:$0xff] %vm1710_vm1, %v1696_v55 }
 0x229   :  { %v1587_v45 = vpop.permute.xlu0 %1586 }
 0x22a   :  { %v1697_v53 = vmul.f32 %v1587_v45, %v3055_v19 }
 0x22c   :  { %1747 = vst.msk [vmem:[%s3404_s3 + $0x120] sm:$0xff] %vm1710_vm1, %v1697_v53 }
 0x22d   :  { %v1589_v54 = vpop.permute.xlu1 %1588 }
 0x22e   :  { %v1698_v36 = vmul.f32 %v1589_v54, %v3063_v13 }
 0x230   :  { %1748 = vst.msk [vmem:[%s3404_s3 + $0x128] sm:$0xff] %vm1710_vm1, %v1698_v36 }
 0x232   :  { %v1591_v17 = vpop.permute.xlu0 %1590 }
 0x233   :  { %v1699_v39 = vmul.f32 %v1591_v17, %v3076_v56 }
 0x235   :  { %1749 = vst.msk [vmem:[%s3404_s3 + $0x130] sm:$0xff] %vm1710_vm1, %v1699_v39 }
 0x236   :  { %v1593_v19 = vpop.permute.xlu1 %1592 }
 0x237   :  { %v1700_v27 = vmul.f32 %v1593_v19, %v3089_v63 }
 0x238   :  { %v1595_v13 = vpop.permute.xlu0 %1594 }
 0x239   :  { %1750 = vst.msk [vmem:[%s3404_s3 + $0x138] sm:$0xff] %vm1710_vm1, %v1700_v27  ;;  %v1701_v6 = vmul.f32 %v1595_v13, %v3102_v7 }
 0x23b   :  { %1751 = vst.msk [vmem:[%s3404_s3 + $0x140] sm:$0xff] %vm1710_vm1, %v1701_v6 }
 0x23c   :  { %v1597_v56 = vpop.permute.xlu1 %1596 }
 0x23d   :  { %v1702_v49 = vmul.f32 %v1597_v56, %v3120_v51 }
 0x23f   :  { %1752 = vst.msk [vmem:[%s3404_s3 + $0x148] sm:$0xff] %vm1710_vm1, %v1702_v49 }
 0x241   :  { %v1599_v63 = vpop.permute.xlu0 %1598 }
 0x242   :  { %v1703_v20 = vmul.f32 %v1599_v63, %v3133_v57 }
 0x244   :  { %1753 = vst.msk [vmem:[%s3404_s3 + $0x150] sm:$0xff] %vm1710_vm1, %v1703_v20 }
 0x245   :  { %v1601_v7 = vpop.permute.xlu1 %1600 }
 0x246   :  { %v1704_v9 = vmul.f32 %v1601_v7, %v3144_v0 }
 0x248   :  { %1754 = vst.msk [vmem:[%s3404_s3 + $0x158] sm:$0xff] %vm1710_vm1, %v1704_v9 }
 0x24a   :  { %v1603_v51 = vpop.permute.xlu0 %1602 }
 0x24b   :  { %v1705_v30 = vmul.f32 %v1603_v51, %v3155_v52 }
 0x24d   :  { %1755 = vst.msk [vmem:[%s3404_s3 + $0x160] sm:$0xff] %vm1710_vm1, %v1705_v30  ;;  %v1605_v57 = vpop.permute.xlu1 %1604 }
 0x24e   :  { %v1706_v40 = vmul.f32 %v1605_v57, %v3166_v18 }
 0x250   :  { %1756 = vst.msk [vmem:[%s3404_s3 + $0x168] sm:$0xff] %vm1710_vm1, %v1706_v40 }
 0x252   :  { %v1607_v0 = vpop.permute.xlu0 %1606 }
 0x253   :  { %v1707_v34 = vmul.f32 %v1607_v0, %v3177_v8 }
 0x255   :  { %1757 = vst.msk [vmem:[%s3404_s3 + $0x170] sm:$0xff] %vm1710_vm1, %v1707_v34 }
 0x256   :  { %v1609_v52 = vpop.permute.xlu1 %1608 }
 0x257   :  { %v1708_v44 = vmul.f32 %v1609_v52, %v3188_v25 }
 0x259   :  { %1758 = vst.msk [vmem:[%s3404_s3 + $0x178] sm:$0xff] %vm1710_vm1, %v1708_v44  ;;  %v1611_v18 = vpop.permute.xlu0 %1610 }
 0x25a   :  { %v1709_v12 = vmul.f32 %v1611_v18, %v3199_v47 }
 0x25c   :  { %1759 = vst.msk [vmem:[%s3404_s3 + $0x180] sm:$0xff] %vm1710_vm1, %v1709_v12 }

// kernel: encoder_forward.8
= control target key start
LH: loop header
LB: loop body
LE: loop exit
PB: predicated region body
PF: predicated region fallthrough
CT: control target
= control target key end

     0   :  { %v4009_v0 = vmov 0   ;;  %v4010_v40 = vmov 0.0   ;;  %vm4011_vm0 = vmmov 0   ;;  %vm3022_vm1 = vcmask 523264   ;;  %s5465_s1 = inlined_call_operand.vmem [shape: bf16[896,128], index: 1, kind: input, shape index: {}]   ;;  %s5466_s0 = inlined_call_operand.vmem [shape: bf16[392,896], index: 0, kind: input, shape index: {}]   ;;  %s5467_s2 = inlined_call_operand.vmem [shape: f32[1,128], index: 2, kind: input, shape index: {}]   ;;  %s5468_s3 = inlined_call_operand.vmem [shape: f32[392,64], index: 3, kind: output, shape index: {}]  }
   0x1   :  { %1555 = vmatprep.subr.bf16.mxu0 %v4009_v0  ;;  %1787 = vmatprep.subr.bf16.mxu1 %v4009_v0  ;;  %v3510_v1 = vld [vmem:[%s5465_s1 + $0x38] sm:$0xff]   ;;  %v3512_v3 = vld [vmem:[%s5465_s1 + $0x30] sm:$0xff]   ;;  %v3514_v5 = vld [vmem:[%s5465_s1 + $0x28] sm:$0xff]  }
   0x2   :  { %v3511_v2 = vld [vmem:[%s5465_s1 + $0xb8] sm:$0xff]   ;;  %1556 = vmatpush1.bf16.msra.mxu0 %v3510_v1  ;;  %v3513_v4 = vld [vmem:[%s5465_s1 + $0xb0] sm:$0xff]   ;;  %v3515_v6 = vld [vmem:[%s5465_s1 + $0xa8] sm:$0xff]  }
   0x3   :  { %1788 = vmatpush1.bf16.msra.mxu1 %v3511_v2  ;;  %1557 = vmatprep.subr.bf16.mxu0 %v4009_v0  ;;  %v3516_v7 = vld [vmem:[%s5465_s1 + $0x20] sm:$0xff]   ;;  %v3518_v9 = vld [vmem:[%s5465_s1 + $0x18] sm:$0xff]   ;;  %v3520_v11 = vld [vmem:[%s5465_s1 + $0x10] sm:$0xff]  }
   0x4   :  { %1789 = vmatprep.subr.bf16.mxu1 %v4009_v0  ;;  %v3517_v8 = vld [vmem:[%s5465_s1 + $0xa0] sm:$0xff]   ;;  %v3519_v10 = vld [vmem:[%s5465_s1 + $0x98] sm:$0xff]   ;;  %v3521_v12 = vld [vmem:[%s5465_s1 + $0x90] sm:$0xff]  }
   0x5   :  { %v3522_v13 = vld [vmem:[%s5465_s1 + $0x8] sm:$0xff]   ;;  %v3524_v15 = vld [vmem:[%s5465_s1] sm:$0xff]   ;;  %v3526_v17 = vld [vmem:[%s5465_s1 + $0x78] sm:$0xff]  }
   0x6   :  { %1558 = vmatpush1.bf16.msra.mxu0 %v3512_v3  ;;  %v3523_v14 = vld [vmem:[%s5465_s1 + $0x88] sm:$0xff]   ;;  %v3525_v16 = vld [vmem:[%s5465_s1 + $0x80] sm:$0xff]   ;;  %v3527_v18 = vld [vmem:[%s5465_s1 + $0xf8] sm:$0xff]  }
   0x7   :  { %1790 = vmatpush1.bf16.msra.mxu1 %v3513_v4  ;;  %1559 = vmatprep.subr.bf16.mxu0 %v4009_v0  ;;  %v3544_v19 = vld [vmem:[%s5466_s0 + $0x4] ss:$28 sps:$4 sm:$0xff]   ;;  %v3528_v20 = vld [vmem:[%s5465_s1 + $0x70] sm:$0xff]   ;;  %v3547_v21 = vld [vmem:[%s5466_s0 + $0xc] ss:$28 sps:$4 sm:$0xff]  }
   0x8   :  { %1791 = vmatprep.subr.bf16.mxu1 %v4009_v0  ;;  %v3529_v22 = vld [vmem:[%s5465_s1 + $0xf0] sm:$0xff]   ;;  %1587 = vmatprep.mubr.bf16.mxu0 %v3544_v19  ;;  %v3530_v23 = vld [vmem:[%s5465_s1 + $0x68] sm:$0xff]   ;;  %v3532_v25 = vld [vmem:[%s5465_s1 + $0x60] sm:$0xff]  }
   0x9   :  { %1819 = vmatprep.mubr.bf16.mxu1 %v3547_v21  ;;  %v3531_v24 = vld [vmem:[%s5465_s1 + $0xe8] sm:$0xff]   ;;  %v3533_v26 = vld [vmem:[%s5465_s1 + $0xe0] sm:$0xff]   ;;  %v3534_v27 = vld [vmem:[%s5465_s1 + $0x58] sm:$0xff]  }
   0xa   :  { %1560 = vmatpush1.bf16.msra.mxu0 %v3514_v5  ;;  %v3535_v28 = vld [vmem:[%s5465_s1 + $0xd8] sm:$0xff]   ;;  %v3536_v29 = vld [vmem:[%s5465_s1 + $0x50] sm:$0xff]   ;;  %v3538_v31 = vld [vmem:[%s5465_s1 + $0x48] sm:$0xff]  }
   0xb   :  { %1792 = vmatpush1.bf16.msra.mxu1 %v3515_v6  ;;  %1561 = vmatprep.subr.bf16.mxu0 %v4009_v0  ;;  %v3537_v30 = vld [vmem:[%s5465_s1 + $0xd0] sm:$0xff]   ;;  %v3539_v32 = vld [vmem:[%s5465_s1 + $0xc8] sm:$0xff]   ;;  %v3540_v33 = vld [vmem:[%s5465_s1 + $0x40] sm:$0xff]  }
   0xc   :  { %1793 = vmatprep.subr.bf16.mxu1 %v4009_v0  ;;  %v3541_v34 = vld [vmem:[%s5465_s1 + $0xc0] sm:$0xff]   ;;  %v3548_v37 = vld [vmem:[%s5465_s1 + $0x138] sm:$0xff]   ;;  %v3556_v42 = vld [vmem:[%s5465_s1 + $0x130] sm:$0xff]  }
   0xd   :  { %v3542_v35 = vld [vmem:[%s5466_s0] ss:$28 sps:$4 sm:$0xff]   ;;  %v3545_v36 = vld [vmem:[%s5466_s0 + $0x8] ss:$28 sps:$4 sm:$0xff]   ;;  %v3570_v43 = vld [vmem:[%s5465_s1 + $0x1b0] sm:$0xff]  }
   0xe   :  { %1562 = vmatpush1.bf16.msra.mxu0 %v3516_v7  ;;  %v3549_v38 = vld [vmem:[%s5465_s1 + $0x1b8] sm:$0xff]   ;;  %v3552_v41 = vld [vmem:[%s5466_s0 + $0x44] ss:$28 sps:$4 sm:$0xff]   ;;  %v3557_v46 = vld [vmem:[%s5466_s0 + $0x74] ss:$28 sps:$4 sm:$0xff]  }
   0xf   :  { %1794 = vmatpush1.bf16.msra.mxu1 %v3517_v8  ;;  %1563 = vmatprep.subr.bf16.mxu0 %v4009_v0  ;;  %v3550_v39 = vld [vmem:[%s5466_s0 + $0x3c] ss:$28 sps:$4 sm:$0xff]   ;;  %v3569_v48 = vld [vmem:[%s5465_s1 + $0x128] sm:$0xff]   ;;  %v3581_v51 = vld [vmem:[%s5465_s1 + $0x120] sm:$0xff]  }
  0x10   :  { %1795 = vmatprep.subr.bf16.mxu1 %v4009_v0  ;;  %v3554_v44 = vld [vmem:[%s5466_s0 + $0x38] ss:$28 sps:$4 sm:$0xff]   ;;  %v3555_v45 = vld [vmem:[%s5466_s0 + $0x40] ss:$28 sps:$4 sm:$0xff]   ;;  %v3591_v49 = vld [vmem:[%s5465_s1 + $0x1a8] sm:$0xff]  }
  0x11   :  { %v3559_v47 = vld [vmem:[%s5466_s0 + $0x7c] ss:$28 sps:$4 sm:$0xff]   ;;  %v3561_v50 = vld [vmem:[%s5466_s0 + $0x70] ss:$28 sps:$4 sm:$0xff]   ;;  %v3612_v52 = vld [vmem:[%s5465_s1 + $0x1a0] sm:$0xff]  }
  0x12   :  { %1564 = vmatpush1.bf16.msra.mxu0 %v3518_v9  ;;  %v3562_v53 = vld [vmem:[%s5466_s0 + $0x78] ss:$28 sps:$4 sm:$0xff]   ;;  %v3563_v54 = vld [vmem:[%s5466_s0 + $0xac] ss:$28 sps:$4 sm:$0xff]   ;;  %v3571_v61 = vld [vmem:[%s5466_s0 + $0xe4] ss:$28 sps:$4 sm:$0xff]  }
  0x13   :  { %1796 = vmatpush1.bf16.msra.mxu1 %v3519_v10  ;;  %1565 = vmatprep.subr.bf16.mxu0 %v4009_v0  ;;  %v3565_v55 = vld [vmem:[%s5466_s0 + $0xb4] ss:$28 sps:$4 sm:$0xff]   ;;  %v3590_v56 = vld [vmem:[%s5465_s1 + $0x118] sm:$0xff]   ;;  %v3567_v59 = vld [vmem:[%s5466_s0 + $0xa8] ss:$28 sps:$4 sm:$0xff]  }
  0x14   :  { %1797 = vmatprep.subr.bf16.mxu1 %v4009_v0  ;;  %v3637_v57 = vld [vmem:[%s5465_s1 + $0x198] sm:$0xff]   ;;  %v3604_v58 = vld [vmem:[%s5465_s1 + $0x110] sm:$0xff]   ;;  %v3573_v62 = vld [vmem:[%s5466_s0 + $0xec] ss:$28 sps:$4 sm:$0xff]  }
  0x15   :  { %v3568_v60 = vld [vmem:[%s5466_s0 + $0xb0] ss:$28 sps:$4 sm:$0xff]   ;;  %v3575_v1 = vld [vmem:[%s5466_s0 + $0xe0] ss:$28 sps:$4 sm:$0xff]   ;;  %v3576_v3 = vld [vmem:[%s5466_s0 + $0xe8] ss:$28 sps:$4 sm:$0xff]  }
  0x16   :  { %1566 = vmatpush1.bf16.msra.mxu0 %v3520_v11  ;;  %v3611_v63 = vld [vmem:[%s5465_s1 + $0x108] sm:$0xff]   ;;  %v3625_v2 = vld [vmem:[%s5465_s1 + $0x100] sm:$0xff]   ;;  %v3577_v4 = vld [vmem:[%s5466_s0 + $0x11c] ss:$28 sps:$4 sm:$0xff]  }
  0x17   :  { %1798 = vmatpush1.bf16.msra.mxu1 %v3521_v12  ;;  %1567 = vmatprep.subr.bf16.mxu0 %v4009_v0  ;;  %v3579_v5 = vld [vmem:[%s5466_s0 + $0x124] ss:$28 sps:$4 sm:$0xff]   ;;  %v3660_v6 = vld [vmem:[%s5465_s1 + $0x190] sm:$0xff]   ;;  %v3632_v7 = vld [vmem:[%s5465_s1 + $0x178] sm:$0xff]  }
  0x18   :  { %1799 = vmatprep.subr.bf16.mxu1 %v4009_v0  ;;  %v3646_v8 = vld [vmem:[%s5465_s1 + $0x170] sm:$0xff]   ;;  %v3583_v10 = vld [vmem:[%s5466_s0 + $0x120] ss:$28 sps:$4 sm:$0xff]   ;;  %v3596_v21 = vld [vmem:[%s5466_s0 + $0x188] ss:$28 sps:$4 sm:$0xff]  }
  0x19   :  { %v3582_v9 = vld [vmem:[%s5466_s0 + $0x118] ss:$28 sps:$4 sm:$0xff]  }
  0x1a   :  { %1568 = vmatpush1.bf16.msra.mxu0 %v3522_v13  ;;  %v3584_v11 = vld [vmem:[%s5466_s0 + $0x154] ss:$28 sps:$4 sm:$0xff]   ;;  %v3586_v12 = vld [vmem:[%s5466_s0 + $0x15c] ss:$28 sps:$4 sm:$0xff]   ;;  %v3653_v13 = vld [vmem:[%s5465_s1 + $0x168] sm:$0xff]  }
  0x1b   :  { %1800 = vmatpush1.bf16.msra.mxu1 %v3523_v14  ;;  %1569 = vmatprep.subr.bf16.mxu0 %v4009_v0  ;;  %v3681_v14 = vld [vmem:[%s5465_s1 + $0x188] sm:$0xff]   ;;  %v3594_v19 = vld [vmem:[%s5466_s0 + $0x194] ss:$28 sps:$4 sm:$0xff]  }
  0x1c   :  { %1801 = vmatprep.subr.bf16.mxu1 %v4009_v0 }
  0x1e   :  { %1570 = vmatpush1.bf16.msra.mxu0 %v3524_v15  ;;  %v3667_v15 = vld [vmem:[%s5465_s1 + $0x160] sm:$0xff]  }
  0x1f   :  { %1802 = vmatpush1.bf16.msra.mxu1 %v3525_v16  ;;  %1571 = vmatprep.subr.bf16.mxu0 %v4009_v0  ;;  %v3588_v16 = vld [vmem:[%s5466_s0 + $0x150] ss:$28 sps:$4 sm:$0xff]  }
  0x20   :  { %1803 = vmatprep.subr.bf16.mxu1 %v4009_v0 }
  0x22   :  { %1572 = vmatpush2.bf16.msra.mxu0 %v3526_v17  ;;  %v3589_v17 = vld [vmem:[%s5466_s0 + $0x158] ss:$28 sps:$4 sm:$0xff]  }
  0x23   :  { %1804 = vmatpush2.bf16.msra.mxu1 %v3527_v18  ;;  %1573 = vmatprep.subr.bf16.mxu0 %v4009_v0  ;;  %v3592_v18 = vld [vmem:[%s5466_s0 + $0x18c] ss:$28 sps:$4 sm:$0xff]  }
  0x24   :  { %1805 = vmatprep.subr.bf16.mxu1 %v4009_v0 }
  0x26   :  { %1574 = vmatpush2.bf16.msra.mxu0 %v3528_v20  ;;  %v3678_v20 = vld [vmem:[%s5465_s1 + $0x158] sm:$0xff]  }
  0x27   :  { %1806 = vmatpush2.bf16.msra.mxu1 %v3529_v22  ;;  %1575 = vmatprep.subr.bf16.mxu0 %v4009_v0  ;;  %v3688_v22 = vld [vmem:[%s5465_s1 + $0x150] sm:$0xff]  }
  0x28   :  { %1807 = vmatprep.subr.bf16.mxu1 %v4009_v0 }
  0x2a   :  { %1576 = vmatpush2.bf16.msra.mxu0 %v3530_v23  ;;  %v3597_v23 = vld [vmem:[%s5466_s0 + $0x190] ss:$28 sps:$4 sm:$0xff]  }
  0x2b   :  { %1808 = vmatpush2.bf16.msra.mxu1 %v3531_v24  ;;  %1577 = vmatprep.subr.bf16.mxu0 %v4009_v0  ;;  %v3702_v24 = vld [vmem:[%s5465_s1 + $0x180] sm:$0xff]  }
  0x2c   :  { %1809 = vmatprep.subr.bf16.mxu1 %v4009_v0 }
  0x2e   :  { %1578 = vmatpush2.bf16.msra.mxu0 %v3532_v25  ;;  %v3598_v25 = vld [vmem:[%s5466_s0 + $0x1c4] ss:$28 sps:$4 sm:$0xff]  }
  0x2f   :  { %1810 = vmatpush2.bf16.msra.mxu1 %v3533_v26  ;;  %1579 = vmatprep.subr.bf16.mxu0 %v4009_v0  ;;  %v3600_v26 = vld [vmem:[%s5466_s0 + $0x1cc] ss:$28 sps:$4 sm:$0xff]  }
  0x30   :  { %1811 = vmatprep.subr.bf16.mxu1 %v4009_v0 }
  0x32   :  { %1580 = vmatpush2.bf16.msra.mxu0 %v3534_v27  ;;  %v3701_v27 = vld [vmem:[%s5465_s1 + $0x148] sm:$0xff]  }
  0x33   :  { %1812 = vmatpush2.bf16.msra.mxu1 %v3535_v28  ;;  %1581 = vmatprep.subr.bf16.mxu0 %v4009_v0  ;;  %v3709_v28 = vld [vmem:[%s5465_s1 + $0x140] sm:$0xff]  }
  0x34   :  { %1813 = vmatprep.subr.bf16.mxu1 %v4009_v0 }
  0x36   :  { %1582 = vmatpush2.bf16.msra.mxu0 %v3536_v29  ;;  %v3602_v29 = vld [vmem:[%s5466_s0 + $0x1c0] ss:$28 sps:$4 sm:$0xff]  }
  0x37   :  { %1814 = vmatpush2.bf16.msra.mxu1 %v3537_v30  ;;  %1583 = vmatprep.subr.bf16.mxu0 %v4009_v0  ;;  %v3603_v30 = vld [vmem:[%s5466_s0 + $0x1c8] ss:$28 sps:$4 sm:$0xff]  }
  0x38   :  { %1815 = vmatprep.subr.bf16.mxu1 %v4009_v0 }
  0x3a   :  { %1584 = vmatpush2.bf16.msra.mxu0 %v3538_v31  ;;  %v3605_v31 = vld [vmem:[%s5466_s0 + $0x1fc] ss:$28 sps:$4 sm:$0xff]  }
  0x3b   :  { %1816 = vmatpush2.bf16.msra.mxu1 %v3539_v32  ;;  %1585 = vmatprep.subr.bf16.mxu0 %v4009_v0  ;;  %v3607_v32 = vld [vmem:[%s5466_s0 + $0x204] ss:$28 sps:$4 sm:$0xff]  }
  0x3c   :  { %1817 = vmatprep.subr.bf16.mxu1 %v4009_v0 }
  0x3e   :  { %1586 = vmatpush2.bf16.msra.mxu0 %v3540_v33  ;;  %v3609_v33 = vld [vmem:[%s5466_s0 + $0x1f8] ss:$28 sps:$4 sm:$0xff]  }
  0x3f   :  { %1818 = vmatpush2.bf16.msra.mxu1 %v3541_v34  ;;  %2019 = vmatprep.subr.bf16.mxu0 %v4009_v0  ;;  %v3610_v34 = vld [vmem:[%s5466_s0 + $0x200] ss:$28 sps:$4 sm:$0xff]  }
  0x40   :  { %3390 = vmatprep.subr.bf16.mxu1 %v4010_v40 }
  0x41   :  { %1588 = vmatmul.mubr.bf16.vlgmr.msra.gmra.mxu0 %v3542_v35  ;;  %v3615_v35 = vld [vmem:[%s5466_s0 + $0x23c] ss:$28 sps:$4 sm:$0xff]  }
  0x42   :  { %1820 = vmatmul.mubr.bf16.vlgmr.msra.gmra.mxu1 %v3545_v36  ;;  %2020 = vmatpush1.bf16.msra.mxu0 %v3548_v37  ;;  %v3617_v36 = vld [vmem:[%s5466_s0 + $0x230] ss:$28 sps:$4 sm:$0xff]   ;;  %v3618_v37 = vld [vmem:[%s5466_s0 + $0x238] ss:$28 sps:$4 sm:$0xff]  }
  0x43   :  { %3391 = vmatpush3.bf16.msra.mxu1 %v3549_v38  ;;  %1595 = vmatprep.mubr.bf16.mxu0 %v3550_v39  ;;  %v3619_v38 = vld [vmem:[%s5466_s0 + $0x26c] ss:$28 sps:$4 sm:$0xff]   ;;  %v3621_v39 = vld [vmem:[%s5466_s0 + $0x274] ss:$28 sps:$4 sm:$0xff]  }
  0x44   :  { %1827 = vmatprep.mubr.bf16.mxu1 %v3552_v41  ;;  %2021 = vmatprep.subr.bf16.mxu0 %v4009_v0  ;;  %v3623_v41 = vld [vmem:[%s5466_s0 + $0x268] ss:$28 sps:$4 sm:$0xff]  }
  0x45   :  { %3392 = vmatprep.subr.bf16.mxu1 %v4010_v40 }
  0x46   :  { %2022 = vmatpush1.bf16.msra.mxu0 %v3556_v42  ;;  %v3624_v42 = vld [vmem:[%s5466_s0 + $0x270] ss:$28 sps:$4 sm:$0xff]  }
  0x47   :  { %2023 = vmatprep.subr.bf16.mxu0 %v4009_v0  ;;  %3393 = vmatpush3.bf16.msra.mxu1 %v3570_v43  ;;  %v3626_v43 = vld [vmem:[%s5466_s0 + $0x2a4] ss:$28 sps:$4 sm:$0xff]  }
  0x48   :  { %3394 = vmatprep.subr.bf16.mxu1 %v4010_v40 }
  0x49   :  { %1596 = vmatmul.mubr.bf16.gmra.mxu0 %v3554_v44  ;;  %v3628_v44 = vld [vmem:[%s5466_s0 + $0x2ac] ss:$28 sps:$4 sm:$0xff]  }
  0x4a   :  { %1828 = vmatmul.mubr.bf16.gmra.mxu1 %v3555_v45  ;;  %1603 = vmatprep.mubr.bf16.mxu0 %v3557_v46  ;;  %v3630_v45 = vld [vmem:[%s5466_s0 + $0x2a0] ss:$28 sps:$4 sm:$0xff]   ;;  %v3631_v46 = vld [vmem:[%s5466_s0 + $0x2a8] ss:$28 sps:$4 sm:$0xff]  }
  0x4b   :  { %1835 = vmatprep.mubr.bf16.mxu1 %v3559_v47  ;;  %2024 = vmatpush1.bf16.msra.mxu0 %v3569_v48  ;;  %v3633_v47 = vld [vmem:[%s5466_s0 + $0x2dc] ss:$28 sps:$4 sm:$0xff]   ;;  %v3635_v48 = vld [vmem:[%s5466_s0 + $0x2e4] ss:$28 sps:$4 sm:$0xff]  }
  0x4c   :  { %2025 = vmatprep.subr.bf16.mxu0 %v4009_v0  ;;  %3395 = vmatpush3.bf16.msra.mxu1 %v3591_v49  ;;  %v3638_v49 = vld [vmem:[%s5466_s0 + $0x2d8] ss:$28 sps:$4 sm:$0xff]  }
  0x4d   :  { %3396 = vmatprep.subr.bf16.mxu1 %v4010_v40 }
  0x4f   :  { %2026 = vmatpush1.bf16.msra.mxu0 %v3581_v51  ;;  %v3640_v51 = vld [vmem:[%s5466_s0 + $0x314] ss:$28 sps:$4 sm:$0xff]  }
  0x50   :  { %2027 = vmatprep.subr.bf16.mxu0 %v4009_v0  ;;  %3397 = vmatpush3.bf16.msra.mxu1 %v3612_v52  ;;  %v3642_v52 = vld [vmem:[%s5466_s0 + $0x31c] ss:$28 sps:$4 sm:$0xff]  }
  0x51   :  { %1604 = vmatmul.mubr.bf16.gmra.mxu0 %v3561_v50  ;;  %3398 = vmatprep.subr.bf16.mxu1 %v4010_v40  ;;  %v3639_v50 = vld [vmem:[%s5466_s0 + $0x2e0] ss:$28 sps:$4 sm:$0xff]  }
  0x52   :  { %1836 = vmatmul.mubr.bf16.gmra.mxu1 %v3562_v53  ;;  %1611 = vmatprep.mubr.bf16.mxu0 %v3563_v54  ;;  %v3644_v53 = vld [vmem:[%s5466_s0 + $0x310] ss:$28 sps:$4 sm:$0xff]   ;;  %v3645_v54 = vld [vmem:[%s5466_s0 + $0x318] ss:$28 sps:$4 sm:$0xff]  }
  0x53   :  { %1843 = vmatprep.mubr.bf16.mxu1 %v3565_v55  ;;  %2028 = vmatpush1.bf16.msra.mxu0 %v3590_v56  ;;  %v3647_v55 = vld [vmem:[%s5466_s0 + $0x34c] ss:$28 sps:$4 sm:$0xff]   ;;  %v3649_v56 = vld [vmem:[%s5466_s0 + $0x354] ss:$28 sps:$4 sm:$0xff]  }
  0x54   :  { %2029 = vmatprep.subr.bf16.mxu0 %v4009_v0  ;;  %3399 = vmatpush3.bf16.msra.mxu1 %v3637_v57  ;;  %v3651_v57 = vld [vmem:[%s5466_s0 + $0x348] ss:$28 sps:$4 sm:$0xff]  }
  0x55   :  { %3400 = vmatprep.subr.bf16.mxu1 %v4010_v40 }
  0x57   :  { %2030 = vmatpush1.bf16.msra.mxu0 %v3604_v58  ;;  %v3652_v58 = vld [vmem:[%s5466_s0 + $0x350] ss:$28 sps:$4 sm:$0xff]  }
  0x58   :  { %2031 = vmatprep.subr.bf16.mxu0 %v4009_v0  ;;  %3401 = vmatpush3.bf16.msra.mxu1 %v3660_v6  ;;  %v3672_v6 = vld [vmem:[%s5466_s0 + $0x3f0] ss:$28 sps:$4 sm:$0xff]  }
  0x59   :  { %1612 = vmatmul.mubr.bf16.gmra.mxu0 %v3567_v59  ;;  %3402 = vmatprep.subr.bf16.mxu1 %v4010_v40  ;;  %v3654_v59 = vld [vmem:[%s5466_s0 + $0x384] ss:$28 sps:$4 sm:$0xff]  }
  0x5a   :  { %1844 = vmatmul.mubr.bf16.gmra.mxu1 %v3568_v60  ;;  %1619 = vmatprep.mubr.bf16.mxu0 %v3571_v61  ;;  %v3656_v60 = vld [vmem:[%s5466_s0 + $0x38c] ss:$28 sps:$4 sm:$0xff]   ;;  %v3658_v61 = vld [vmem:[%s5466_s0 + $0x380] ss:$28 sps:$4 sm:$0xff]  }
  0x5b   :  { %1851 = vmatprep.mubr.bf16.mxu1 %v3573_v62  ;;  %2032 = vmatpush1.bf16.msra.mxu0 %v3611_v63  ;;  %v3659_v62 = vld [vmem:[%s5466_s0 + $0x388] ss:$28 sps:$4 sm:$0xff]   ;;  %v3661_v63 = vld [vmem:[%s5466_s0 + $0x3bc] ss:$28 sps:$4 sm:$0xff]  }
  0x5c   :  { %2033 = vmatprep.subr.bf16.mxu0 %v4009_v0  ;;  %3403 = vmatpush3.bf16.msra.mxu1 %v3681_v14  ;;  %v3686_v14 = vld [vmem:[%s5466_s0 + $0x460] ss:$28 sps:$4 sm:$0xff]  }
  0x5d   :  { %3404 = vmatprep.subr.bf16.mxu1 %v4010_v40 }
  0x5f   :  { %2034 = vmatpush1.bf16.msra.mxu0 %v3625_v2  ;;  %v3665_v2 = vld [vmem:[%s5466_s0 + $0x3b8] ss:$28 sps:$4 sm:$0xff]  }
  0x60   :  { %2035 = vmatprep.subr.bf16.mxu0 %v4009_v0  ;;  %3405 = vmatpush3.bf16.msra.mxu1 %v3702_v24  ;;  %v3703_v24 = vld [vmem:[%s5466_s0 + $0x50c] ss:$28 sps:$4 sm:$0xff]  }
  0x61   :  { %1620 = vmatmul.mubr.bf16.gmra.mxu0 %v3575_v1  ;;  %v3663_v1 = vld [vmem:[%s5466_s0 + $0x3c4] ss:$28 sps:$4 sm:$0xff]  }
  0x62   :  { %1852 = vmatmul.mubr.bf16.gmra.mxu1 %v3576_v3  ;;  %1627 = vmatprep.mubr.bf16.mxu0 %v3577_v4  ;;  %v3666_v3 = vld [vmem:[%s5466_s0 + $0x3c0] ss:$28 sps:$4 sm:$0xff]   ;;  %v3668_v4 = vld [vmem:[%s5466_s0 + $0x3f4] ss:$28 sps:$4 sm:$0xff]  }
  0x63   :  { %1859 = vmatprep.mubr.bf16.mxu1 %v3579_v5  ;;  %2036 = vmatpush2.bf16.msra.mxu0 %v3632_v7  ;;  %v3670_v5 = vld [vmem:[%s5466_s0 + $0x3fc] ss:$28 sps:$4 sm:$0xff]  }
  0x64   :  { %2037 = vmatprep.subr.bf16.mxu0 %v4009_v0  ;;  %v3673_v7 = vld [vmem:[%s5466_s0 + $0x3f8] ss:$28 sps:$4 sm:$0xff]  }
  0x67   :  { %2038 = vmatpush2.bf16.msra.mxu0 %v3646_v8  ;;  %v3674_v8 = vld [vmem:[%s5466_s0 + $0x42c] ss:$28 sps:$4 sm:$0xff]  }
  0x68   :  { %2039 = vmatprep.subr.bf16.mxu0 %v4009_v0 }
  0x69   :  { %1628 = vmatmul.mubr.bf16.gmra.mxu0 %v3582_v9  ;;  %v3676_v9 = vld [vmem:[%s5466_s0 + $0x434] ss:$28 sps:$4 sm:$0xff]  }
  0x6a   :  { %1860 = vmatmul.mubr.bf16.gmra.mxu1 %v3583_v10  ;;  %1635 = vmatprep.mubr.bf16.mxu0 %v3584_v11  ;;  %v3679_v10 = vld [vmem:[%s5466_s0 + $0x428] ss:$28 sps:$4 sm:$0xff]   ;;  %v3680_v11 = vld [vmem:[%s5466_s0 + $0x430] ss:$28 sps:$4 sm:$0xff]  }
  0x6b   :  { %1867 = vmatprep.mubr.bf16.mxu1 %v3586_v12  ;;  %2040 = vmatpush2.bf16.msra.mxu0 %v3653_v13  ;;  %v3682_v12 = vld [vmem:[%s5466_s0 + $0x464] ss:$28 sps:$4 sm:$0xff]   ;;  %v3684_v13 = vld [vmem:[%s5466_s0 + $0x46c] ss:$28 sps:$4 sm:$0xff]  }
  0x6c   :  { %2041 = vmatprep.subr.bf16.mxu0 %v4009_v0 }
  0x6f   :  { %2042 = vmatpush2.bf16.msra.mxu0 %v3667_v15  ;;  %v3687_v15 = vld [vmem:[%s5466_s0 + $0x468] ss:$28 sps:$4 sm:$0xff]  }
  0x70   :  { %2043 = vmatprep.subr.bf16.mxu0 %v4009_v0 }
  0x71   :  { %1636 = vmatmul.mubr.bf16.gmra.mxu0 %v3588_v16  ;;  %v3689_v16 = vld [vmem:[%s5466_s0 + $0x49c] ss:$28 sps:$4 sm:$0xff]  }
  0x72   :  { %1868 = vmatmul.mubr.bf16.gmra.mxu1 %v3589_v17  ;;  %1643 = vmatprep.mubr.bf16.mxu0 %v3592_v18  ;;  %v3691_v17 = vld [vmem:[%s5466_s0 + $0x4a4] ss:$28 sps:$4 sm:$0xff]   ;;  %v3693_v18 = vld [vmem:[%s5466_s0 + $0x498] ss:$28 sps:$4 sm:$0xff]  }
  0x73   :  { %1875 = vmatprep.mubr.bf16.mxu1 %v3594_v19  ;;  %2044 = vmatpush2.bf16.msra.mxu0 %v3678_v20  ;;  %v3694_v19 = vld [vmem:[%s5466_s0 + $0x4a0] ss:$28 sps:$4 sm:$0xff]   ;;  %v3695_v20 = vld [vmem:[%s5466_s0 + $0x4d4] ss:$28 sps:$4 sm:$0xff]  }
  0x74   :  { %2045 = vmatprep.subr.bf16.mxu0 %v4009_v0 }
  0x77   :  { %2046 = vmatpush2.bf16.msra.mxu0 %v3688_v22  ;;  %v3699_v22 = vld [vmem:[%s5466_s0 + $0x4d0] ss:$28 sps:$4 sm:$0xff]  }
  0x78   :  { %2047 = vmatprep.subr.bf16.mxu0 %v4009_v0 }
  0x79   :  { %1644 = vmatmul.mubr.bf16.gmra.mxu0 %v3596_v21  ;;  %v3697_v21 = vld [vmem:[%s5466_s0 + $0x4dc] ss:$28 sps:$4 sm:$0xff]  }
  0x7a   :  { %1876 = vmatmul.mubr.bf16.gmra.mxu1 %v3597_v23  ;;  %1651 = vmatprep.mubr.bf16.mxu0 %v3598_v25  ;;  %v3700_v23 = vld [vmem:[%s5466_s0 + $0x4d8] ss:$28 sps:$4 sm:$0xff]  }
  0x7b   :  { %1883 = vmatprep.mubr.bf16.mxu1 %v3600_v26  ;;  %2048 = vmatpush2.bf16.msra.mxu0 %v3701_v27  ;;  %v3705_v25 = vld [vmem:[%s5466_s0 + $0x514] ss:$28 sps:$4 sm:$0xff]   ;;  %v207_v26 = vld [vmem:[%s5466_s0 + $0x540] sm:$0xff]  ;;  %v208_v27 = vld [vmem:[%s5466_s0 + $0x548] sm:$0xff] }
  0x7c   :  { %2049 = vmatprep.subr.bf16.mxu0 %v4009_v0  ;;  %v3613_v0 = vld [vmem:[%s5466_s0 + $0x234] ss:$28 sps:$4 sm:$0xff]  }
  0x7f   :  { %2050 = vmatpush2.bf16.msra.mxu0 %v3709_v28  ;;  %v3707_v28 = vld [vmem:[%s5466_s0 + $0x508] ss:$28 sps:$4 sm:$0xff]  }
  0x81   :  { %1652 = vmatmul.mubr.bf16.gmra.mxu0 %v3602_v29  ;;  %v3708_v29 = vld [vmem:[%s5466_s0 + $0x510] ss:$28 sps:$4 sm:$0xff]  }
  0x82   :  { %1884 = vmatmul.mubr.bf16.gmra.mxu1 %v3603_v30  ;;  %1659 = vmatprep.mubr.bf16.mxu0 %v3605_v31  ;;  %v3246_v30 = vcombine.high %v207_v26, %v207_v26  ;;  %v3248_v31 = vcombine.high %v208_v27, %v208_v27 }
  0x83   :  { %1891 = vmatprep.mubr.bf16.mxu1 %v3607_v32  ;;  %v3245_v32 = vcombine.low %v207_v26, %v207_v26 }
  0x89   :  { %1660 = vmatmul.mubr.bf16.gmra.mxu0 %v3609_v33  ;;  %v3247_v33 = vcombine.low %v208_v27, %v208_v27 }
  0x8a   :  { %1892 = vmatmul.mubr.bf16.gmra.mxu1 %v3610_v34  ;;  %1667 = vmatprep.mubr.bf16.mxu0 %v3613_v0  ;;  %v3716_v34 = vld [vmem:[%s5466_s0 + $0x14] ss:$28 sps:$4 sm:$0xff]   ;;  %v4557_v0 = vld [vmem:[%s5467_s2] ss:$0 sm:$0xff] }
  0x8b   :  { %1899 = vmatprep.mubr.bf16.mxu1 %v3615_v35 }
  0x91   :  { %1668 = vmatmul.mubr.bf16.gmra.mxu0 %v3617_v36 }
  0x92   :  { %1900 = vmatmul.mubr.bf16.gmra.mxu1 %v3618_v37  ;;  %1675 = vmatprep.mubr.bf16.mxu0 %v3619_v38 }
  0x93   :  { %1907 = vmatprep.mubr.bf16.mxu1 %v3621_v39 }
  0x99   :  { %1676 = vmatmul.mubr.bf16.gmra.mxu0 %v3623_v41 }
  0x9a   :  { %1908 = vmatmul.mubr.bf16.gmra.mxu1 %v3624_v42  ;;  %1683 = vmatprep.mubr.bf16.mxu0 %v3626_v43  ;;  %v3714_v43 = vld [vmem:[%s5466_s0 + $0x10] ss:$28 sps:$4 sm:$0xff]  }
  0x9b   :  { %1915 = vmatprep.mubr.bf16.mxu1 %v3628_v44 }
  0xa1   :  { %1684 = vmatmul.mubr.bf16.gmra.mxu0 %v3630_v45 }
  0xa2   :  { %1916 = vmatmul.mubr.bf16.gmra.mxu1 %v3631_v46  ;;  %1691 = vmatprep.mubr.bf16.mxu0 %v3633_v47  ;;  %v3717_v46 = vld [vmem:[%s5466_s0 + $0x18] ss:$28 sps:$4 sm:$0xff]   ;;  %v3718_v47 = vld [vmem:[%s5466_s0 + $0x4c] ss:$28 sps:$4 sm:$0xff]  }
  0xa3   :  { %1923 = vmatprep.mubr.bf16.mxu1 %v3635_v48 }
  0xa9   :  { %1692 = vmatmul.mubr.bf16.gmra.mxu0 %v3638_v49 }
  0xaa   :  { %1924 = vmatmul.mubr.bf16.gmra.mxu1 %v3639_v50  ;;  %1699 = vmatprep.mubr.bf16.mxu0 %v3640_v51 }
  0xab   :  { %1931 = vmatprep.mubr.bf16.mxu1 %v3642_v52 }
  0xb1   :  { %1700 = vmatmul.mubr.bf16.gmra.mxu0 %v3644_v53 }
  0xb2   :  { %1932 = vmatmul.mubr.bf16.gmra.mxu1 %v3645_v54  ;;  %1707 = vmatprep.mubr.bf16.mxu0 %v3647_v55 }
  0xb3   :  { %1939 = vmatprep.mubr.bf16.mxu1 %v3649_v56 }
  0xb9   :  { %1708 = vmatmul.mubr.bf16.gmra.mxu0 %v3651_v57 }
  0xba   :  { %1940 = vmatmul.mubr.bf16.gmra.mxu1 %v3652_v58  ;;  %1715 = vmatprep.mubr.bf16.mxu0 %v3654_v59  ;;  %v3720_v58 = vld [vmem:[%s5466_s0 + $0x48] ss:$28 sps:$4 sm:$0xff]  }
  0xbb   :  { %1947 = vmatprep.mubr.bf16.mxu1 %v3656_v60 }
  0xc1   :  { %1716 = vmatmul.mubr.bf16.gmra.mxu0 %v3658_v61  ;;  %v3721_v61 = vld [vmem:[%s5466_s0 + $0x50] ss:$28 sps:$4 sm:$0xff]  }
  0xc2   :  { %1948 = vmatmul.mubr.bf16.gmra.mxu1 %v3659_v62  ;;  %1723 = vmatprep.mubr.bf16.mxu0 %v3661_v63  ;;  %v3722_v62 = vld [vmem:[%s5466_s0 + $0x84] ss:$28 sps:$4 sm:$0xff]  }
  0xc3   :  { %1955 = vmatprep.mubr.bf16.mxu1 %v3663_v1 }
  0xc9   :  { %1724 = vmatmul.mubr.bf16.gmra.mxu0 %v3665_v2 }
  0xca   :  { %1956 = vmatmul.mubr.bf16.gmra.mxu1 %v3666_v3  ;;  %1731 = vmatprep.mubr.bf16.mxu0 %v3668_v4 }
  0xcb   :  { %1963 = vmatprep.mubr.bf16.mxu1 %v3670_v5 }
  0xd1   :  { %1732 = vmatmul.mubr.bf16.gmra.mxu0 %v3672_v6 }
  0xd2   :  { %1964 = vmatmul.mubr.bf16.gmra.mxu1 %v3673_v7  ;;  %1739 = vmatprep.mubr.bf16.mxu0 %v3674_v8 }
  0xd3   :  { %1971 = vmatprep.mubr.bf16.mxu1 %v3676_v9 }
  0xd9   :  { %1740 = vmatmul.mubr.bf16.gmra.mxu0 %v3679_v10  ;;  %v3724_v10 = vld [vmem:[%s5466_s0 + $0x80] ss:$28 sps:$4 sm:$0xff]  }
  0xda   :  { %1972 = vmatmul.mubr.bf16.gmra.mxu1 %v3680_v11  ;;  %1747 = vmatprep.mubr.bf16.mxu0 %v3682_v12 }
  0xdb   :  { %1979 = vmatprep.mubr.bf16.mxu1 %v3684_v13  ;;  %v3725_v13 = vld [vmem:[%s5466_s0 + $0x88] ss:$28 sps:$4 sm:$0xff]  }
  0xe1   :  { %1748 = vmatmul.mubr.bf16.gmra.mxu0 %v3686_v14  ;;  %v3728_v14 = vld [vmem:[%s5466_s0 + $0xbc] ss:$28 sps:$4 sm:$0xff]  }
  0xe2   :  { %1980 = vmatmul.mubr.bf16.gmra.mxu1 %v3687_v15  ;;  %1755 = vmatprep.mubr.bf16.mxu0 %v3689_v16 }
  0xe3   :  { %1987 = vmatprep.mubr.bf16.mxu1 %v3691_v17 }
  0xe9   :  { %1756 = vmatmul.mubr.bf16.gmra.mxu0 %v3693_v18 }
  0xea   :  { %1988 = vmatmul.mubr.bf16.gmra.mxu1 %v3694_v19  ;;  %1763 = vmatprep.mubr.bf16.mxu0 %v3695_v20 }
  0xeb   :  { %1995 = vmatprep.mubr.bf16.mxu1 %v3697_v21 }
  0xf1   :  { %1764 = vmatmul.mubr.bf16.gmra.mxu0 %v3699_v22 }
  0xf2   :  { %1996 = vmatmul.mubr.bf16.gmra.mxu1 %v3700_v23  ;;  %1771 = vmatprep.mubr.bf16.mxu0 %v3703_v24 }
  0xf3   :  { %2003 = vmatprep.mubr.bf16.mxu1 %v3705_v25  ;;  %v3726_v25 = vld [vmem:[%s5466_s0 + $0xb8] ss:$28 sps:$4 sm:$0xff]  }
  0xf9   :  { %1772 = vmatmul.mubr.bf16.gmra.mxu0 %v3707_v28  ;;  %v3729_v28 = vld [vmem:[%s5466_s0 + $0xc0] ss:$28 sps:$4 sm:$0xff]  }
  0xfa   :  { %2004 = vmatmul.mubr.bf16.gmra.mxu1 %v3708_v29  ;;  %1779 = vmatprep.mubr.bf16.mxu0 %v3246_v30  ;;  %v3732_v29 = vld [vmem:[%s5466_s0 + $0xf4] ss:$28 sps:$4 sm:$0xff]  }
  0xfb   :  { %2011 = vmatprep.mubr.bf16.mxu1 %v3248_v31 }
 0x101   :  { %v1589_v35 = vpop.f32.mrf.mxu0  ;;  %1780 = vmatmul.mubr.bf16.gmra.mxu0 %v3245_v32 }
 0x102   :  { %v1590_v36 = vadd.f32 %v4557_v0, %v1589_v35  ;;  %v1821_v37 = vpop.f32.mrf.mxu1  ;;  %2012 = vmatmul.mubr.bf16.gmra.mxu1 %v3247_v33  ;;  %2051 = vmatprep.mubr.bf16.mxu0 %v3716_v34 }
 0x103   :  { %v1591_v38 = vpop.f32.mrf.mxu0  ;;  %3406 = vmatprep.mubr.msk.bf16.mxu1 %vm4011_vm0, %v4010_v40 }
 0x104   :  { %v4562_v39 = vadd.f32 %v1821_v37, %v1590_v36  ;;  %v1823_v41 = vpop.f32.mrf.mxu1 }
 0x105   :  { %v1592_v42 = vpop.f32.mrf.mxu0 }
 0x106   :  { %v1593_v44 = vadd.f32 %v4557_v0, %v1592_v42  ;;  %v1824_v45 = vpop.f32.mrf.mxu1  ;;  %v3730_v42 = vld [vmem:[%s5466_s0 + $0xf0] ss:$28 sps:$4 sm:$0xff]  }
 0x107   :  { %v1594_v48 = vpop.f32.mrf.mxu0 }
 0x108   :  { %v4574_v49 = vadd.f32 %v1824_v45, %v1593_v44  ;;  %v1826_v50 = vpop.f32.mrf.mxu1  ;;  %v3733_v45 = vld [vmem:[%s5466_s0 + $0xf8] ss:$28 sps:$4 sm:$0xff]  }
 0x109   :  { %v1597_v51 = vpop.f32.mrf.mxu0  ;;  %2052 = vmatmul.mubr.bf16.vlgmr.msra.gmra.mxu0 %v3714_v43 }
 0x10a   :  { %v1598_v52 = vadd.f32 %v4557_v0, %v1597_v51  ;;  %v1829_v53 = vpop.f32.mrf.mxu1  ;;  %3407 = vmatmul.mubr.bf16.vlgmr.msra.gmra.mxu1 %v3717_v46  ;;  %2059 = vmatprep.mubr.bf16.mxu0 %v3718_v47  ;;  %v3736_v46 = vld [vmem:[%s5466_s0 + $0x12c] ss:$28 sps:$4 sm:$0xff]  }
 0x10b   :  { %v1599_v54 = vpop.f32.mrf.mxu0  ;;  %3410 = vmatprep.mubr.msk.bf16.mxu1 %vm4011_vm0, %v4010_v40 }
 0x10c   :  { %v4579_v55 = vadd.f32 %v1829_v53, %v1598_v52  ;;  %v1831_v56 = vpop.f32.mrf.mxu1 }
 0x10d   :  { %v1600_v57 = vpop.f32.mrf.mxu0 }
 0x10e   :  { %v1601_v59 = vadd.f32 %v4557_v0, %v1600_v57  ;;  %v1832_v60 = vpop.f32.mrf.mxu1 }
 0x10f   :  { %v1602_v63 = vpop.f32.mrf.mxu0 }
 0x110   :  { %v4591_v1 = vadd.f32 %v1832_v60, %v1601_v59  ;;  %v1834_v2 = vpop.f32.mrf.mxu1  ;;  %v3734_v59 = vld [vmem:[%s5466_s0 + $0x128] ss:$28 sps:$4 sm:$0xff]  }
 0x111   :  { %v1605_v3 = vpop.f32.mrf.mxu0  ;;  %2060 = vmatmul.mubr.bf16.gmra.mxu0 %v3720_v58  ;;  %v3740_v63 = vld [vmem:[%s5466_s0 + $0x164] ss:$28 sps:$4 sm:$0xff]  }
 0x112   :  { %v1606_v4 = vadd.f32 %v4557_v0, %v1605_v3  ;;  %v1837_v5 = vpop.f32.mrf.mxu1  ;;  %3411 = vmatmul.mubr.bf16.gmra.mxu1 %v3721_v61  ;;  %2067 = vmatprep.mubr.bf16.mxu0 %v3722_v62  ;;  %v3737_v62 = vld [vmem:[%s5466_s0 + $0x130] ss:$28 sps:$4 sm:$0xff]  }
 0x113   :  { %v1607_v6 = vpop.f32.mrf.mxu0  ;;  %3414 = vmatprep.mubr.msk.bf16.mxu1 %vm4011_vm0, %v4010_v40 }
 0x114   :  { %v4596_v7 = vadd.f32 %v1837_v5, %v1606_v4  ;;  %v1839_v8 = vpop.f32.mrf.mxu1 }
 0x115   :  { %v1608_v9 = vpop.f32.mrf.mxu0 }
 0x116   :  { %v1609_v11 = vadd.f32 %v4557_v0, %v1608_v9  ;;  %v1840_v12 = vpop.f32.mrf.mxu1 }
 0x117   :  { %v1610_v15 = vpop.f32.mrf.mxu0 }
 0x118   :  { %v4608_v16 = vadd.f32 %v1840_v12, %v1609_v11  ;;  %v1842_v17 = vpop.f32.mrf.mxu1 }
 0x119   :  { %v1613_v18 = vpop.f32.mrf.mxu0  ;;  %2068 = vmatmul.mubr.bf16.gmra.mxu0 %v3724_v10  ;;  %v3741_v17 = vld [vmem:[%s5466_s0 + $0x168] ss:$28 sps:$4 sm:$0xff]  }
 0x11a   :  { %v1614_v19 = vadd.f32 %v4557_v0, %v1613_v18  ;;  %v1845_v20 = vpop.f32.mrf.mxu1  ;;  %3415 = vmatmul.mubr.bf16.gmra.mxu1 %v3725_v13  ;;  %2075 = vmatprep.mubr.bf16.mxu0 %v3728_v14  ;;  %v3738_v13 = vld [vmem:[%s5466_s0 + $0x160] ss:$28 sps:$4 sm:$0xff]  }
 0x11b   :  { %v1615_v21 = vpop.f32.mrf.mxu0  ;;  %3418 = vmatprep.mubr.msk.bf16.mxu1 %vm4011_vm0, %v4010_v40  ;;  %v3744_v18 = vld [vmem:[%s5466_s0 + $0x19c] ss:$28 sps:$4 sm:$0xff]  }
 0x11c   :  { %v4613_v22 = vadd.f32 %v1845_v20, %v1614_v19  ;;  %v1847_v23 = vpop.f32.mrf.mxu1 }
 0x11d   :  { %v1616_v24 = vpop.f32.mrf.mxu0 }
 0x11e   :  { %v1617_v26 = vadd.f32 %v4557_v0, %v1616_v24  ;;  %v1848_v27 = vpop.f32.mrf.mxu1 }
 0x11f   :  { %v1618_v30 = vpop.f32.mrf.mxu0 }
 0x120   :  { %v4625_v31 = vadd.f32 %v1848_v27, %v1617_v26  ;;  %v1850_v32 = vpop.f32.mrf.mxu1  ;;  %v3742_v30 = vld [vmem:[%s5466_s0 + $0x198] ss:$28 sps:$4 sm:$0xff]  }
 0x121   :  { %v1621_v33 = vpop.f32.mrf.mxu0  ;;  %2076 = vmatmul.mubr.bf16.gmra.mxu0 %v3726_v25 }
 0x122   :  { %v1622_v34 = vadd.f32 %v4557_v0, %v1621_v33  ;;  %v1853_v35 = vpop.f32.mrf.mxu1  ;;  %3419 = vmatmul.mubr.bf16.gmra.mxu1 %v3729_v28  ;;  %2083 = vmatprep.mubr.bf16.mxu0 %v3732_v29 }
 0x123   :  { %v1623_v36 = vpop.f32.mrf.mxu0  ;;  %3422 = vmatprep.mubr.msk.bf16.mxu1 %vm4011_vm0, %v4010_v40 }
 0x124   :  { %v4630_v37 = vadd.f32 %v1853_v35, %v1622_v34  ;;  %v1855_v38 = vpop.f32.mrf.mxu1  ;;  %v3745_v34 = vld [vmem:[%s5466_s0 + $0x1a0] ss:$28 sps:$4 sm:$0xff]   ;;  %v3748_v35 = vld [vmem:[%s5466_s0 + $0x1d4] ss:$28 sps:$4 sm:$0xff]  }
 0x125   :  { %v1624_v41 = vpop.f32.mrf.mxu0 }
 0x126   :  { %v1625_v43 = vadd.f32 %v4557_v0, %v1624_v41  ;;  %v1856_v44 = vpop.f32.mrf.mxu1 }
 0x127   :  { %v1626_v47 = vpop.f32.mrf.mxu0 }
 0x128   :  { %v4642_v48 = vadd.f32 %v1856_v44, %v1625_v43  ;;  %v1858_v50 = vpop.f32.mrf.mxu1 }
 0x129   :  { %v1629_v51 = vpop.f32.mrf.mxu0  ;;  %2084 = vmatmul.mubr.bf16.gmra.mxu0 %v3730_v42 }
 0x12a   :  { %v1630_v52 = vadd.f32 %v4557_v0, %v1629_v51  ;;  %v1861_v53 = vpop.f32.mrf.mxu1  ;;  %3423 = vmatmul.mubr.bf16.gmra.mxu1 %v3733_v45  ;;  %2091 = vmatprep.mubr.bf16.mxu0 %v3736_v46  ;;  %v3746_v51 = vld [vmem:[%s5466_s0 + $0x1d0] ss:$28 sps:$4 sm:$0xff]  }
 0x12b   :  { %v1631_v54 = vpop.f32.mrf.mxu0  ;;  %3426 = vmatprep.mubr.msk.bf16.mxu1 %vm4011_vm0, %v4010_v40 }
 0x12c   :  { %v4647_v56 = vadd.f32 %v1861_v53, %v1630_v52  ;;  %v1863_v57 = vpop.f32.mrf.mxu1  ;;  %v3749_v54 = vld [vmem:[%s5466_s0 + $0x1d8] ss:$28 sps:$4 sm:$0xff]  }
 0x12d   :  { %v1632_v58 = vpop.f32.mrf.mxu0  ;;  %v3752_v57 = vld [vmem:[%s5466_s0 + $0x20c] ss:$28 sps:$4 sm:$0xff]  }
 0x12e   :  { %v1633_v60 = vadd.f32 %v4557_v0, %v1632_v58  ;;  %v1864_v61 = vpop.f32.mrf.mxu1 }
 0x12f   :  { %v1634_v2 = vpop.f32.mrf.mxu0 }
 0x130   :  { %v4659_v3 = vadd.f32 %v1864_v61, %v1633_v60  ;;  %v1866_v4 = vpop.f32.mrf.mxu1 }
 0x131   :  { %v1637_v5 = vpop.f32.mrf.mxu0  ;;  %2092 = vmatmul.mubr.bf16.gmra.mxu0 %v3734_v59 }
 0x132   :  { %v1638_v6 = vadd.f32 %v4557_v0, %v1637_v5  ;;  %v1869_v8 = vpop.f32.mrf.mxu1  ;;  %3427 = vmatmul.mubr.bf16.gmra.mxu1 %v3737_v62  ;;  %2099 = vmatprep.mubr.bf16.mxu0 %v3740_v63 }
 0x133   :  { %v1639_v9 = vpop.f32.mrf.mxu0  ;;  %3430 = vmatprep.mubr.msk.bf16.mxu1 %vm4011_vm0, %v4010_v40 }
 0x134   :  { %v4664_v10 = vadd.f32 %v1869_v8, %v1638_v6  ;;  %v1871_v11 = vpop.f32.mrf.mxu1  ;;  %v3750_v8 = vld [vmem:[%s5466_s0 + $0x208] ss:$28 sps:$4 sm:$0xff]  }
 0x135   :  { %v1640_v12 = vpop.f32.mrf.mxu0 }
 0x136   :  { %v1641_v14 = vadd.f32 %v4557_v0, %v1640_v12  ;;  %v1872_v15 = vpop.f32.mrf.mxu1  ;;  %v3753_v12 = vld [vmem:[%s5466_s0 + $0x210] ss:$28 sps:$4 sm:$0xff]  }
 0x137   :  { %v1642_v19 = vpop.f32.mrf.mxu0 }
 0x138   :  { %v4676_v20 = vadd.f32 %v1872_v15, %v1641_v14  ;;  %v1874_v21 = vpop.f32.mrf.mxu1 }
 0x139   :  { %v1645_v23 = vpop.f32.mrf.mxu0  ;;  %2100 = vmatmul.mubr.bf16.gmra.mxu0 %v3738_v13  ;;  %v3756_v13 = vld [vmem:[%s5466_s0 + $0x244] ss:$28 sps:$4 sm:$0xff]  }
 0x13a   :  { %v1646_v24 = vadd.f32 %v4557_v0, %v1645_v23  ;;  %v1877_v25 = vpop.f32.mrf.mxu1  ;;  %3431 = vmatmul.mubr.bf16.gmra.mxu1 %v3741_v17  ;;  %2107 = vmatprep.mubr.bf16.mxu0 %v3744_v18 }
 0x13b   :  { %v1647_v26 = vpop.f32.mrf.mxu0  ;;  %3434 = vmatprep.mubr.msk.bf16.mxu1 %vm4011_vm0, %v4010_v40 }
 0x13c   :  { %v4681_v27 = vadd.f32 %v1877_v25, %v1646_v24  ;;  %v1879_v28 = vpop.f32.mrf.mxu1 }
 0x13d   :  { %v1648_v29 = vpop.f32.mrf.mxu0  ;;  %v3754_v28 = vld [vmem:[%s5466_s0 + $0x240] ss:$28 sps:$4 sm:$0xff]  }
 0x13e   :  { %v1649_v32 = vadd.f32 %v4557_v0, %v1648_v29  ;;  %v1880_v33 = vpop.f32.mrf.mxu1 }
 0x13f   :  { %v1650_v36 = vpop.f32.mrf.mxu0 }
 0x140   :  { %v4693_v38 = vadd.f32 %v1880_v33, %v1649_v32  ;;  %v1882_v41 = vpop.f32.mrf.mxu1  ;;  %v3757_v32 = vld [vmem:[%s5466_s0 + $0x248] ss:$28 sps:$4 sm:$0xff]   ;;  %v3760_v33 = vld [vmem:[%s5466_s0 + $0x27c] ss:$28 sps:$4 sm:$0xff]  }
 0x141   :  { %v1653_v42 = vpop.f32.mrf.mxu0  ;;  %2108 = vmatmul.mubr.bf16.gmra.mxu0 %v3742_v30 }
 0x142   :  { %v1654_v43 = vadd.f32 %v4557_v0, %v1653_v42  ;;  %v1885_v44 = vpop.f32.mrf.mxu1  ;;  %3435 = vmatmul.mubr.bf16.gmra.mxu1 %v3745_v34  ;;  %2115 = vmatprep.mubr.bf16.mxu0 %v3748_v35 }
 0x143   :  { %v1655_v45 = vpop.f32.mrf.mxu0  ;;  %3438 = vmatprep.mubr.msk.bf16.mxu1 %vm4011_vm0, %v4010_v40 }
 0x144   :  { %v4698_v46 = vadd.f32 %v1885_v44, %v1654_v43  ;;  %v1887_v47 = vpop.f32.mrf.mxu1 }
 0x145   :  { %v1656_v50 = vpop.f32.mrf.mxu0 }
 0x146   :  { %v1657_v52 = vadd.f32 %v4557_v0, %v1656_v50  ;;  %v1888_v53 = vpop.f32.mrf.mxu1 }
 0x147   :  { %v1658_v58 = vpop.f32.mrf.mxu0 }
 0x148   :  { %v4710_v59 = vadd.f32 %v1888_v53, %v1657_v52  ;;  %v1890_v60 = vpop.f32.mrf.mxu1 }
 0x149   :  { %v1661_v61 = vpop.f32.mrf.mxu0  ;;  %2116 = vmatmul.mubr.bf16.gmra.mxu0 %v3746_v51  ;;  %v3758_v51 = vld [vmem:[%s5466_s0 + $0x278] ss:$28 sps:$4 sm:$0xff]  }
 0x14a   :  { %v1662_v62 = vadd.f32 %v4557_v0, %v1661_v61  ;;  %v1893_v63 = vpop.f32.mrf.mxu1  ;;  %3439 = vmatmul.mubr.bf16.gmra.mxu1 %v3749_v54  ;;  %2123 = vmatprep.mubr.bf16.mxu0 %v3752_v57  ;;  %v3761_v54 = vld [vmem:[%s5466_s0 + $0x280] ss:$28 sps:$4 sm:$0xff]   ;;  %v3764_v57 = vld [vmem:[%s5466_s0 + $0x2b4] ss:$28 sps:$4 sm:$0xff]  }
 0x14b   :  { %v1663_v2 = vpop.f32.mrf.mxu0  ;;  %3442 = vmatprep.mubr.msk.bf16.mxu1 %vm4011_vm0, %v4010_v40 }
 0x14c   :  { %v4715_v4 = vadd.f32 %v1893_v63, %v1662_v62  ;;  %v1895_v5 = vpop.f32.mrf.mxu1 }
 0x14d   :  { %v1664_v6 = vpop.f32.mrf.mxu0 }
 0x14e   :  { %v1665_v9 = vadd.f32 %v4557_v0, %v1664_v6  ;;  %v1896_v11 = vpop.f32.mrf.mxu1 }
 0x14f   :  { %v1666_v14 = vpop.f32.mrf.mxu0 }
 0x150   :  { %v4727_v15 = vadd.f32 %v1896_v11, %v1665_v9  ;;  %v1898_v17 = vpop.f32.mrf.mxu1  ;;  %v3762_v11 = vld [vmem:[%s5466_s0 + $0x2b0] ss:$28 sps:$4 sm:$0xff]   ;;  %v3765_v14 = vld [vmem:[%s5466_s0 + $0x2b8] ss:$28 sps:$4 sm:$0xff]  }
 0x151   :  { %v1669_v18 = vpop.f32.mrf.mxu0  ;;  %2124 = vmatmul.mubr.bf16.gmra.mxu0 %v3750_v8  ;;  %v3768_v17 = vld [vmem:[%s5466_s0 + $0x2ec] ss:$28 sps:$4 sm:$0xff]  }
 0x152   :  { %v1670_v19 = vadd.f32 %v4557_v0, %v1669_v18  ;;  %v1901_v21 = vpop.f32.mrf.mxu1  ;;  %3443 = vmatmul.mubr.bf16.gmra.mxu1 %v3753_v12  ;;  %2131 = vmatprep.mubr.bf16.mxu0 %v3756_v13 }
 0x153   :  { %v1671_v23 = vpop.f32.mrf.mxu0  ;;  %3446 = vmatprep.mubr.msk.bf16.mxu1 %vm4011_vm0, %v4010_v40 }
 0x154   :  { %v4732_v24 = vadd.f32 %v1901_v21, %v1670_v19  ;;  %v1903_v25 = vpop.f32.mrf.mxu1 }
 0x155   :  { %v1672_v26 = vpop.f32.mrf.mxu0 }
 0x156   :  { %v1673_v29 = vadd.f32 %v4557_v0, %v1672_v26  ;;  %v1904_v30 = vpop.f32.mrf.mxu1 }
 0x157   :  { %v1674_v34 = vpop.f32.mrf.mxu0 }
 0x158   :  { %v4744_v35 = vadd.f32 %v1904_v30, %v1673_v29  ;;  %v1906_v36 = vpop.f32.mrf.mxu1 }
 0x159   :  { %v1677_v41 = vpop.f32.mrf.mxu0  ;;  %2132 = vmatmul.mubr.bf16.gmra.mxu0 %v3754_v28 }
 0x15a   :  { %v1678_v42 = vadd.f32 %v4557_v0, %v1677_v41  ;;  %v1909_v43 = vpop.f32.mrf.mxu1  ;;  %3447 = vmatmul.mubr.bf16.gmra.mxu1 %v3757_v32  ;;  %2139 = vmatprep.mubr.bf16.mxu0 %v3760_v33  ;;  %v3766_v33 = vld [vmem:[%s5466_s0 + $0x2e8] ss:$28 sps:$4 sm:$0xff]   ;;  %v3769_v41 = vld [vmem:[%s5466_s0 + $0x2f0] ss:$28 sps:$4 sm:$0xff]  }
 0x15b   :  { %v1679_v44 = vpop.f32.mrf.mxu0  ;;  %3450 = vmatprep.mubr.msk.bf16.mxu1 %vm4011_vm0, %v4010_v40 }
 0x15c   :  { %v4749_v45 = vadd.f32 %v1909_v43, %v1678_v42  ;;  %v1911_v47 = vpop.f32.mrf.mxu1  ;;  %v3772_v42 = vld [vmem:[%s5466_s0 + $0x324] ss:$28 sps:$4 sm:$0xff]  }
 0x15d   :  { %v1680_v50 = vpop.f32.mrf.mxu0 }
 0x15e   :  { %v1681_v52 = vadd.f32 %v4557_v0, %v1680_v50  ;;  %v1912_v53 = vpop.f32.mrf.mxu1 }
 0x15f   :  { %v1682_v58 = vpop.f32.mrf.mxu0 }
 0x160   :  { %v4761_v60 = vadd.f32 %v1912_v53, %v1681_v52  ;;  %v1914_v61 = vpop.f32.mrf.mxu1 }
 0x161   :  { %v1685_v62 = vpop.f32.mrf.mxu0  ;;  %2140 = vmatmul.mubr.bf16.gmra.mxu0 %v3758_v51  ;;  %v3770_v61 = vld [vmem:[%s5466_s0 + $0x320] ss:$28 sps:$4 sm:$0xff]  }
 0x162   :  { %v1686_v63 = vadd.f32 %v4557_v0, %v1685_v62  ;;  %v1917_v2 = vpop.f32.mrf.mxu1  ;;  %3451 = vmatmul.mubr.bf16.gmra.mxu1 %v3761_v54  ;;  %2147 = vmatprep.mubr.bf16.mxu0 %v3764_v57 }
 0x163   :  { %v1687_v5 = vpop.f32.mrf.mxu0  ;;  %3454 = vmatprep.mubr.msk.bf16.mxu1 %vm4011_vm0, %v4010_v40 }
 0x164   :  { %v4766_v6 = vadd.f32 %v1917_v2, %v1686_v63  ;;  %v1919_v8 = vpop.f32.mrf.mxu1  ;;  %v3773_v2 = vld [vmem:[%s5466_s0 + $0x328] ss:$28 sps:$4 sm:$0xff]   ;;  %v3776_v5 = vld [vmem:[%s5466_s0 + $0x35c] ss:$28 sps:$4 sm:$0xff]  }
 0x165   :  { %v1688_v9 = vpop.f32.mrf.mxu0 }
 0x166   :  { %v1689_v12 = vadd.f32 %v4557_v0, %v1688_v9  ;;  %v1920_v13 = vpop.f32.mrf.mxu1 }
 0x167   :  { %v1690_v18 = vpop.f32.mrf.mxu0 }
 0x168   :  { %v4778_v19 = vadd.f32 %v1920_v13, %v1689_v12  ;;  %v1922_v21 = vpop.f32.mrf.mxu1 }
 0x169   :  { %v1693_v23 = vpop.f32.mrf.mxu0  ;;  %2148 = vmatmul.mubr.bf16.gmra.mxu0 %v3762_v11 }
 0x16a   :  { %v1694_v25 = vadd.f32 %v4557_v0, %v1693_v23  ;;  %v1925_v26 = vpop.f32.mrf.mxu1  ;;  %3455 = vmatmul.mubr.bf16.gmra.mxu1 %v3765_v14  ;;  %2155 = vmatprep.mubr.bf16.mxu0 %v3768_v17 }
 0x16b   :  { %v1695_v28 = vpop.f32.mrf.mxu0  ;;  %3458 = vmatprep.mubr.msk.bf16.mxu1 %vm4011_vm0, %v4010_v40 }
 0x16c   :  { %v4783_v29 = vadd.f32 %v1925_v26, %v1694_v25  ;;  %v1927_v30 = vpop.f32.mrf.mxu1  ;;  %v3774_v25 = vld [vmem:[%s5466_s0 + $0x358] ss:$28 sps:$4 sm:$0xff]  }
 0x16d   :  { %v1696_v32 = vpop.f32.mrf.mxu0  ;;  %v3777_v30 = vld [vmem:[%s5466_s0 + $0x360] ss:$28 sps:$4 sm:$0xff]  }
 0x16e   :  { %v1697_v34 = vadd.f32 %v4557_v0, %v1696_v32  ;;  %v1928_v36 = vpop.f32.mrf.mxu1  ;;  %v3780_v32 = vld [vmem:[%s5466_s0 + $0x394] ss:$28 sps:$4 sm:$0xff]  }
 0x16f   :  { %v1698_v43 = vpop.f32.mrf.mxu0 }
 0x170   :  { %v4795_v44 = vadd.f32 %v1928_v36, %v1697_v34  ;;  %v1930_v47 = vpop.f32.mrf.mxu1 }
 0x171   :  { %v1701_v50 = vpop.f32.mrf.mxu0  ;;  %2156 = vmatmul.mubr.bf16.gmra.mxu0 %v3766_v33 }
 0x172   :  { %v1702_v51 = vadd.f32 %v4557_v0, %v1701_v50  ;;  %v1933_v52 = vpop.f32.mrf.mxu1  ;;  %3459 = vmatmul.mubr.bf16.gmra.mxu1 %v3769_v41  ;;  %2163 = vmatprep.mubr.bf16.mxu0 %v3772_v42 }
 0x173   :  { %v1703_v53 = vpop.f32.mrf.mxu0  ;;  %3462 = vmatprep.mubr.msk.bf16.mxu1 %vm4011_vm0, %v4010_v40 }
 0x174   :  { %v4800_v54 = vadd.f32 %v1933_v52, %v1702_v51  ;;  %v1935_v57 = vpop.f32.mrf.mxu1  ;;  %v3778_v53 = vld [vmem:[%s5466_s0 + $0x390] ss:$28 sps:$4 sm:$0xff]  }
 0x175   :  { %v1704_v58 = vpop.f32.mrf.mxu0 }
 0x176   :  { %v1705_v62 = vadd.f32 %v4557_v0, %v1704_v58  ;;  %v1936_v63 = vpop.f32.mrf.mxu1 }
 0x177   :  { %v1706_v8 = vpop.f32.mrf.mxu0 }
 0x178   :  { %v4812_v9 = vadd.f32 %v1936_v63, %v1705_v62  ;;  %v1938_v11 = vpop.f32.mrf.mxu1  ;;  %v3784_v62 = vld [vmem:[%s5466_s0 + $0x3cc] ss:$28 sps:$4 sm:$0xff]  }
 0x179   :  { %v1709_v12 = vpop.f32.mrf.mxu0  ;;  %2164 = vmatmul.mubr.bf16.gmra.mxu0 %v3770_v61  ;;  %v3781_v61 = vld [vmem:[%s5466_s0 + $0x398] ss:$28 sps:$4 sm:$0xff]  }
 0x17a   :  { %v1710_v13 = vadd.f32 %v4557_v0, %v1709_v12  ;;  %v1941_v14 = vpop.f32.mrf.mxu1  ;;  %3463 = vmatmul.mubr.bf16.gmra.mxu1 %v3773_v2  ;;  %2171 = vmatprep.mubr.bf16.mxu0 %v3776_v5 }
 0x17b   :  { %v1711_v17 = vpop.f32.mrf.mxu0  ;;  %3466 = vmatprep.mubr.msk.bf16.mxu1 %vm4011_vm0, %v4010_v40 }
 0x17c   :  { %v4817_v18 = vadd.f32 %v1941_v14, %v1710_v13  ;;  %v1943_v21 = vpop.f32.mrf.mxu1 }
 0x17d   :  { %v1712_v23 = vpop.f32.mrf.mxu0 }
 0x17e   :  { %v1713_v26 = vadd.f32 %v4557_v0, %v1712_v23  ;;  %v1944_v28 = vpop.f32.mrf.mxu1  ;;  %v3782_v23 = vld [vmem:[%s5466_s0 + $0x3c8] ss:$28 sps:$4 sm:$0xff]  }
 0x17f   :  { %v1714_v33 = vpop.f32.mrf.mxu0 }
 0x180   :  { %v4829_v34 = vadd.f32 %v1944_v28, %v1713_v26  ;;  %v1946_v36 = vpop.f32.mrf.mxu1  ;;  %v3785_v28 = vld [vmem:[%s5466_s0 + $0x3d0] ss:$28 sps:$4 sm:$0xff]  }
 0x181   :  { %v1717_v41 = vpop.f32.mrf.mxu0  ;;  %2172 = vmatmul.mubr.bf16.gmra.mxu0 %v3774_v25 }
 0x182   :  { %v1718_v42 = vadd.f32 %v4557_v0, %v1717_v41  ;;  %v1949_v43 = vpop.f32.mrf.mxu1  ;;  %3467 = vmatmul.mubr.bf16.gmra.mxu1 %v3777_v30  ;;  %2179 = vmatprep.mubr.bf16.mxu0 %v3780_v32  ;;  %v3788_v30 = vld [vmem:[%s5466_s0 + $0x404] ss:$28 sps:$4 sm:$0xff]  }
 0x183   :  { %v1719_v47 = vpop.f32.mrf.mxu0  ;;  %3470 = vmatprep.mubr.msk.bf16.mxu1 %vm4011_vm0, %v4010_v40 }
 0x184   :  { %v4834_v50 = vadd.f32 %v1949_v43, %v1718_v42  ;;  %v1951_v51 = vpop.f32.mrf.mxu1 }
 0x185   :  { %v1720_v52 = vpop.f32.mrf.mxu0 }
 0x186   :  { %v1721_v57 = vadd.f32 %v4557_v0, %v1720_v52  ;;  %v1952_v58 = vpop.f32.mrf.mxu1 }
 0x187   :  { %v1722_v63 = vpop.f32.mrf.mxu0 }
 0x188   :  { %v4846_v2 = vadd.f32 %v1952_v58, %v1721_v57  ;;  %v1954_v5 = vpop.f32.mrf.mxu1  ;;  %v3786_v57 = vld [vmem:[%s5466_s0 + $0x400] ss:$28 sps:$4 sm:$0xff]  }
 0x189   :  { %v1725_v8 = vpop.f32.mrf.mxu0  ;;  %2180 = vmatmul.mubr.bf16.gmra.mxu0 %v3778_v53  ;;  %v3792_v63 = vld [vmem:[%s5466_s0 + $0x43c] ss:$28 sps:$4 sm:$0xff]  }
 0x18a   :  { %v1726_v11 = vadd.f32 %v4557_v0, %v1725_v8  ;;  %v1957_v12 = vpop.f32.mrf.mxu1  ;;  %3471 = vmatmul.mubr.bf16.gmra.mxu1 %v3781_v61  ;;  %2187 = vmatprep.mubr.bf16.mxu0 %v3784_v62  ;;  %v3789_v62 = vld [vmem:[%s5466_s0 + $0x408] ss:$28 sps:$4 sm:$0xff]  }
 0x18b   :  { %v1727_v13 = vpop.f32.mrf.mxu0  ;;  %3474 = vmatprep.mubr.msk.bf16.mxu1 %vm4011_vm0, %v4010_v40 }
 0x18c   :  { %v4851_v14 = vadd.f32 %v1957_v12, %v1726_v11  ;;  %v1959_v17 = vpop.f32.mrf.mxu1 }
 0x18d   :  { %v1728_v21 = vpop.f32.mrf.mxu0 }
 0x18e   :  { %v1729_v25 = vadd.f32 %v4557_v0, %v1728_v21  ;;  %v1960_v26 = vpop.f32.mrf.mxu1 }
 0x18f   :  { %v1730_v32 = vpop.f32.mrf.mxu0 }
 0x190   :  { %v4863_v33 = vadd.f32 %v1960_v26, %v1729_v25  ;;  %v1962_v36 = vpop.f32.mrf.mxu1 }
 0x191   :  { %v1733_v41 = vpop.f32.mrf.mxu0  ;;  %2188 = vmatmul.mubr.bf16.gmra.mxu0 %v3782_v23  ;;  %v3793_v36 = vld [vmem:[%s5466_s0 + $0x440] ss:$28 sps:$4 sm:$0xff]  }
 0x192   :  { %v1734_v42 = vadd.f32 %v4557_v0, %v1733_v41  ;;  %v1965_v43 = vpop.f32.mrf.mxu1  ;;  %3475 = vmatmul.mubr.bf16.gmra.mxu1 %v3785_v28  ;;  %2195 = vmatprep.mubr.bf16.mxu0 %v3788_v30  ;;  %v3790_v28 = vld [vmem:[%s5466_s0 + $0x438] ss:$28 sps:$4 sm:$0xff]  }
 0x193   :  { %v1735_v47 = vpop.f32.mrf.mxu0  ;;  %3478 = vmatprep.mubr.msk.bf16.mxu1 %vm4011_vm0, %v4010_v40  ;;  %v3796_v41 = vld [vmem:[%s5466_s0 + $0x474] ss:$28 sps:$4 sm:$0xff]  }
 0x194   :  { %v4868_v51 = vadd.f32 %v1965_v43, %v1734_v42  ;;  %v1967_v52 = vpop.f32.mrf.mxu1 }
 0x195   :  { %v1736_v53 = vpop.f32.mrf.mxu0 }
 0x196   :  { %v1737_v58 = vadd.f32 %v4557_v0, %v1736_v53  ;;  %v1968_v61 = vpop.f32.mrf.mxu1 }
 0x197   :  { %v1738_v5 = vpop.f32.mrf.mxu0 }
 0x198   :  { %v4880_v8 = vadd.f32 %v1968_v61, %v1737_v58  ;;  %v1970_v11 = vpop.f32.mrf.mxu1  ;;  %v3794_v5 = vld [vmem:[%s5466_s0 + $0x470] ss:$28 sps:$4 sm:$0xff]  }
 0x199   :  { %v1741_v12 = vpop.f32.mrf.mxu0  ;;  %2196 = vmatmul.mubr.bf16.gmra.mxu0 %v3786_v57 }
 0x19a   :  { %v1742_v13 = vadd.f32 %v4557_v0, %v1741_v12  ;;  %v1973_v17 = vpop.f32.mrf.mxu1  ;;  %3479 = vmatmul.mubr.bf16.gmra.mxu1 %v3789_v62  ;;  %2203 = vmatprep.mubr.bf16.mxu0 %v3792_v63 }
 0x19b   :  { %v1743_v21 = vpop.f32.mrf.mxu0  ;;  %3482 = vmatprep.mubr.msk.bf16.mxu1 %vm4011_vm0, %v4010_v40 }
 0x19c   :  { %v4885_v23 = vadd.f32 %v1973_v17, %v1742_v13  ;;  %v1975_v25 = vpop.f32.mrf.mxu1  ;;  %v3797_v13 = vld [vmem:[%s5466_s0 + $0x478] ss:$28 sps:$4 sm:$0xff]   ;;  %v3800_v17 = vld [vmem:[%s5466_s0 + $0x4ac] ss:$28 sps:$4 sm:$0xff]  }
 0x19d   :  { %v1744_v26 = vpop.f32.mrf.mxu0 }
 0x19e   :  { %v1745_v30 = vadd.f32 %v4557_v0, %v1744_v26  ;;  %v1976_v32 = vpop.f32.mrf.mxu1 }
 0x19f   :  { %v1746_v42 = vpop.f32.mrf.mxu0 }
 0x1a0   :  { %v4897_v43 = vadd.f32 %v1976_v32, %v1745_v30  ;;  %v1978_v47 = vpop.f32.mrf.mxu1 }
 0x1a1   :  { %v1749_v52 = vpop.f32.mrf.mxu0  ;;  %2204 = vmatmul.mubr.bf16.gmra.mxu0 %v3790_v28 }
 0x1a2   :  { %v1750_v53 = vadd.f32 %v4557_v0, %v1749_v52  ;;  %v1981_v57 = vpop.f32.mrf.mxu1  ;;  %3483 = vmatmul.mubr.bf16.gmra.mxu1 %v3793_v36  ;;  %2211 = vmatprep.mubr.bf16.mxu0 %v3796_v41  ;;  %v3798_v52 = vld [vmem:[%s5466_s0 + $0x4a8] ss:$28 sps:$4 sm:$0xff]  }
 0x1a3   :  { %v1751_v58 = vpop.f32.mrf.mxu0  ;;  %3486 = vmatprep.mubr.msk.bf16.mxu1 %vm4011_vm0, %v4010_v40 }
 0x1a4   :  { %v4902_v61 = vadd.f32 %v1981_v57, %v1750_v53  ;;  %v1983_v62 = vpop.f32.mrf.mxu1  ;;  %v3801_v58 = vld [vmem:[%s5466_s0 + $0x4b0] ss:$28 sps:$4 sm:$0xff]  }
 0x1a5   :  { %v1752_v63 = vpop.f32.mrf.mxu0  ;;  %v3804_v62 = vld [vmem:[%s5466_s0 + $0x4e4] ss:$28 sps:$4 sm:$0xff]  }
 0x1a6   :  { %v1753_v11 = vadd.f32 %v4557_v0, %v1752_v63  ;;  %v1984_v12 = vpop.f32.mrf.mxu1 }
 0x1a7   :  { %v1754_v21 = vpop.f32.mrf.mxu0 }
 0x1a8   :  { %v4914_v25 = vadd.f32 %v1984_v12, %v1753_v11  ;;  %v1986_v26 = vpop.f32.mrf.mxu1 }
 0x1a9   :  { %v1757_v28 = vpop.f32.mrf.mxu0  ;;  %2212 = vmatmul.mubr.bf16.gmra.mxu0 %v3794_v5 }
 0x1aa   :  { %v1758_v30 = vadd.f32 %v4557_v0, %v1757_v28  ;;  %v1989_v32 = vpop.f32.mrf.mxu1  ;;  %3487 = vmatmul.mubr.bf16.gmra.mxu1 %v3797_v13  ;;  %2219 = vmatprep.mubr.bf16.mxu0 %v3800_v17 }
 0x1ab   :  { %v1759_v36 = vpop.f32.mrf.mxu0  ;;  %3490 = vmatprep.mubr.msk.bf16.mxu1 %vm4011_vm0, %v4010_v40 }
 0x1ac   :  { %v4919_v41 = vadd.f32 %v1989_v32, %v1758_v30  ;;  %v1991_v42 = vpop.f32.mrf.mxu1  ;;  %v3802_v32 = vld [vmem:[%s5466_s0 + $0x4e0] ss:$28 sps:$4 sm:$0xff]  }
 0x1ad   :  { %v1760_v47 = vpop.f32.mrf.mxu0 }
 0x1ae   :  { %v1761_v53 = vadd.f32 %v4557_v0, %v1760_v47  ;;  %v1992_v57 = vpop.f32.mrf.mxu1  ;;  %v3805_v47 = vld [vmem:[%s5466_s0 + $0x4e8] ss:$28 sps:$4 sm:$0xff]  }
 0x1af   :  { %v1762_v63 = vpop.f32.mrf.mxu0 }
 0x1b0   :  { %v4931_v5 = vadd.f32 %v1992_v57, %v1761_v53  ;;  %v1994_v11 = vpop.f32.mrf.mxu1 }
 0x1b1   :  { %v1765_v12 = vpop.f32.mrf.mxu0  ;;  %2220 = vmatmul.mubr.bf16.gmra.mxu0 %v3798_v52  ;;  %v3808_v52 = vld [vmem:[%s5466_s0 + $0x51c] ss:$28 sps:$4 sm:$0xff]  }
 0x1b2   :  { %v1766_v13 = vadd.f32 %v4557_v0, %v1765_v12  ;;  %v1997_v17 = vpop.f32.mrf.mxu1  ;;  %3491 = vmatmul.mubr.bf16.gmra.mxu1 %v3801_v58  ;;  %2227 = vmatprep.mubr.bf16.mxu0 %v3804_v62 }
 0x1b3   :  { %v1767_v21 = vpop.f32.mrf.mxu0  ;;  %3494 = vmatprep.mubr.msk.bf16.mxu1 %vm4011_vm0, %v4010_v40 }
 0x1b4   :  { %v4936_v26 = vadd.f32 %v1997_v17, %v1766_v13  ;;  %v1999_v28 = vpop.f32.mrf.mxu1  ;;  %v209_v13 = vld [vmem:[%s5466_s0 + $0x550] sm:$0xff] }
 0x1b5   :  { %v1768_v30 = vpop.f32.mrf.mxu0 }
 0x1b6   :  { %v1769_v36 = vadd.f32 %v4557_v0, %v1768_v30  ;;  %v2000_v42 = vpop.f32.mrf.mxu1  ;;  %v3806_v30 = vld [vmem:[%s5466_s0 + $0x518] ss:$28 sps:$4 sm:$0xff]  }
 0x1b7   :  { %v1770_v53 = vpop.f32.mrf.mxu0 }
 0x1b8   :  { %v4948_v57 = vadd.f32 %v2000_v42, %v1769_v36  ;;  %v2002_v58 = vpop.f32.mrf.mxu1  ;;  %v3809_v42 = vld [vmem:[%s5466_s0 + $0x520] ss:$28 sps:$4 sm:$0xff]  }
 0x1b9   :  { %v1773_v62 = vpop.f32.mrf.mxu0  ;;  %2228 = vmatmul.mubr.bf16.gmra.mxu0 %v3802_v32 }
 0x1ba   :  { %5469 = vst [vmem:[#allocation2_spill] sm:$0xff] %v4948_v57  ;;  %v1774_v63 = vadd.f32 %v4557_v0, %v1773_v62  ;;  %v2005_v11 = vpop.f32.mrf.mxu1  ;;  %3495 = vmatmul.mubr.bf16.gmra.mxu1 %v3805_v47  ;;  %2235 = vmatprep.mubr.bf16.mxu0 %v3808_v52  ;;  %v3250_v47 = vcombine.high %v209_v13, %v209_v13 }
 0x1bb   :  { %v1775_v12 = vpop.f32.mrf.mxu0  ;;  %3498 = vmatprep.mubr.msk.bf16.mxu1 %vm4011_vm0, %v4010_v40  ;;  %v3249_v57 = vcombine.low %v209_v13, %v209_v13 }
 0x1bc   :  { %v4956_v17 = vadd.f32 %v2005_v11, %v1774_v63  ;;  %v2007_v21 = vpop.f32.mrf.mxu1 }
 0x1bd   :  { %v1776_v28 = vpop.f32.mrf.mxu0 }
 0x1be   :  { %5470 = vst [vmem:[#allocation3_spill] sm:$0xff] %v4956_v17  ;;  %v1777_v32 = vadd.f32 %v4557_v0, %v1776_v28  ;;  %v2008_v36 = vpop.f32.mrf.mxu1 }
 0x1bf   :  { %v1778_v52 = vpop.f32.mrf.mxu0 }
 0x1c0   :  { %v4965_v53 = vadd.f32 %v2008_v36, %v1777_v32  ;;  %v2010_v58 = vpop.f32.mrf.mxu1  ;;  %v3812_v32 = vld [vmem:[%s5466_s0 + $0x558] ss:$0 sps:$4 sm:$0xff]   ;;  %s4012_s0 = smov 64  }
 0x1c1   :  { %v1781_v62 = vpop.f32.mrf.mxu0  ;;  %2236 = vmatmul.mubr.bf16.gmra.mxu0 %v3806_v30 }
 0x1c2   :  { %v1782_v63 = vadd.f32 %v4557_v0, %v1781_v62  ;;  %v2013_v11 = vpop.f32.mrf.mxu1  ;;  %3499 = vmatmul.mubr.bf16.gmra.mxu1 %v3809_v42  ;;  %2243 = vmatprep.mubr.bf16.mxu0 %v3250_v47 }
 0x1c3   :  { %v1783_v12 = vpop.f32.mrf.mxu0  ;;  %3502 = vmatprep.mubr.msk.bf16.mxu1 %vm4011_vm0, %v4010_v40 }
 0x1c4   :  { %v4970_v21 = vadd.f32 %v2013_v11, %v1782_v63  ;;  %v2015_v28 = vpop.f32.mrf.mxu1 }
 0x1c5   :  { %v1784_v17 = vpop.f32.mrf.mxu0 }
 0x1c6   :  { %v2016_v52 = vpop.f32.mrf.mxu1 }
 0x1c7   :  { %v1785_v30 = vpop.f32.mrf.mxu0 }
 0x1c8   :  { %v2017_v36 = vpop.f32.mrf.mxu1 }
 0x1c9   :  { %v2053_v0 = vpop.f32.mrf.mxu0  ;;  %2244 = vmatmul.mubr.bf16.gmra.mxu0 %v3249_v57 }
 0x1ca   :  { %v2054_v42 = vadd.f32 %v2053_v0, %v4562_v39  ;;  %v2285_v47 = vpop.f32.mrf.mxu1  ;;  %3503 = vmatmul.mubr.bf16.gmra.mxu1 %v3812_v32 }
 0x1cb   :  { %v2055_v58 = vpop.f32.mrf.mxu0 }
 0x1cc   :  { %v4976_v40 = vadd.f32 %v2285_v47, %v2054_v42  ;;  %v3408_v62 = vpop.f32.mrf.mxu1 }
 0x1cd   :  { %v2056_v63 = vpop.f32.mrf.mxu0 }
 0x1ce   :  { %v3308_v13 = vmul.f32 -1.442695, %v4976_v40  ;;  %v2057_v17 = vadd.f32 %v2056_v63, %v4574_v49  ;;  %v2288_v11 = vpop.f32.mrf.mxu1 }
 0x1cf   :  { %v2058_v12 = vpop.f32.mrf.mxu0 }
 0x1d0   :  { %3813 = vpow2.f32 %v3308_v13  ;;  %v4980_v28 = vadd.f32 %v2288_v11, %v2057_v17  ;;  %v3409_v52 = vpop.f32.mrf.mxu1 }
 0x1d1   :  { %v2061_v57 = vpop.f32.mrf.mxu0 }
 0x1d2   :  { %v3309_v39 = vmul.f32 -1.442695, %v4980_v28  ;;  %v2062_v32 = vadd.f32 %v2061_v57, %v4579_v55  ;;  %v2293_v30 = vpop.f32.mrf.mxu1 }
 0x1d3   :  { %v2063_v36 = vpop.f32.mrf.mxu0 }
 0x1d4   :  { %3815 = vpow2.f32 %v3309_v39  ;;  %v4984_v0 = vadd.f32 %v2293_v30, %v2062_v32  ;;  %v3412_v42 = vpop.f32.mrf.mxu1 }
 0x1d5   :  { %v2064_v47 = vpop.f32.mrf.mxu0 }
 0x1d6   :  { %v3310_v49 = vmul.f32 -1.442695, %v4984_v0  ;;  %v2065_v58 = vadd.f32 %v2064_v47, %v4591_v1  ;;  %v2296_v62 = vpop.f32.mrf.mxu1 }
 0x1d7   :  { %v2066_v63 = vpop.f32.mrf.mxu0 }
 0x1d8   :  { %3817 = vpow2.f32 %v3310_v49  ;;  %v4988_v13 = vadd.f32 %v2296_v62, %v2065_v58  ;;  %v3413_v17 = vpop.f32.mrf.mxu1 }
 0x1d9   :  { %v2069_v11 = vpop.f32.mrf.mxu0 }
 0x1da   :  { %v3311_v55 = vmul.f32 -1.442695, %v4988_v13  ;;  %v2070_v12 = vadd.f32 %v2069_v11, %v4596_v7  ;;  %v2301_v52 = vpop.f32.mrf.mxu1 }
 0x1db   :  { %v2071_v57 = vpop.f32.mrf.mxu0 }
 0x1dc   :  { %3819 = vpow2.f32 %v3311_v55  ;;  %v4992_v39 = vadd.f32 %v2301_v52, %v2070_v12  ;;  %v3416_v32 = vpop.f32.mrf.mxu1 }
 0x1dd   :  { %v3814_v30 = vpop.eup %3813  ;;  %v2072_v36 = vpop.f32.mrf.mxu0 }
 0x1de   :  { %v2630_v1 = vadd.f32 1.0, %v3814_v30  ;;  %v3312_v42 = vmul.f32 -1.442695, %v4992_v39  ;;  %v2073_v47 = vadd.f32 %v2072_v36, %v4608_v16  ;;  %v2304_v49 = vpop.f32.mrf.mxu1 }
 0x1df   :  { %v2074_v58 = vpop.f32.mrf.mxu0 }
 0x1e0   :  { %3821 = vrcp.f32 %v2630_v1  ;;  %v4996_v62 = vadd.f32 %v2304_v49, %v2073_v47  ;;  %v3417_v63 = vpop.f32.mrf.mxu1 }
 0x1e1   :  { %v3816_v7 = vpop.eup %3815  ;;  %3823 = vpow2.f32 %v3312_v42  ;;  %v2077_v17 = vpop.f32.mrf.mxu0 }
 0x1e2   :  { %v2631_v11 = vadd.f32 1.0, %v3816_v7  ;;  %v3313_v55 = vmul.f32 -1.442695, %v4996_v62  ;;  %v2078_v12 = vadd.f32 %v2077_v17, %v4613_v22  ;;  %v2309_v52 = vpop.f32.mrf.mxu1 }
 0x1e3   :  { %v2079_v57 = vpop.f32.mrf.mxu0 }
 0x1e4   :  { %3825 = vrcp.f32 %v2631_v11  ;;  %v5000_v32 = vadd.f32 %v2309_v52, %v2078_v12  ;;  %v3420_v16 = vpop.f32.mrf.mxu1 }
 0x1e5   :  { %v3818_v30 = vpop.eup %3817  ;;  %3827 = vpow2.f32 %v3313_v55  ;;  %v2080_v36 = vpop.f32.mrf.mxu0 }
 0x1e6   :  { %v2632_v1 = vadd.f32 1.0, %v3818_v30  ;;  %v3314_v47 = vmul.f32 -1.442695, %v5000_v32  ;;  %v2081_v42 = vadd.f32 %v2080_v36, %v4625_v31  ;;  %v2312_v49 = vpop.f32.mrf.mxu1 }
 0x1e7   :  { %v2082_v58 = vpop.f32.mrf.mxu0 }
 0x1e8   :  { %3829 = vrcp.f32 %v2632_v1  ;;  %v5004_v63 = vadd.f32 %v2312_v49, %v2081_v42  ;;  %v3421_v22 = vpop.f32.mrf.mxu1 }
 0x1e9   :  { %v3820_v7 = vpop.eup %3819  ;;  %3831 = vpow2.f32 %v3314_v47  ;;  %v2085_v17 = vpop.f32.mrf.mxu0 }
 0x1ea   :  { %v2633_v11 = vadd.f32 1.0, %v3820_v7  ;;  %v3315_v12 = vmul.f32 -1.442695, %v5004_v63  ;;  %v2086_v55 = vadd.f32 %v2085_v17, %v4630_v37  ;;  %v2317_v52 = vpop.f32.mrf.mxu1 }
 0x1eb   :  { %v2087_v57 = vpop.f32.mrf.mxu0 }
 0x1ec   :  { %3833 = vrcp.f32 %v2633_v11  ;;  %v5008_v16 = vadd.f32 %v2317_v52, %v2086_v55  ;;  %v3424_v31 = vpop.f32.mrf.mxu1 }
 0x1ed   :  { %v3822_v30 = vpop.eup %3821  ;;  %3835 = vpow2.f32 %v3315_v12  ;;  %v2088_v36 = vpop.f32.mrf.mxu0 }
 0x1ee   :  { %v3824_v1 = vpop.eup %3823  ;;  %v3316_v42 = vmul.f32 -1.442695, %v5008_v16  ;;  %v2089_v47 = vadd.f32 %v2088_v36, %v4642_v48  ;;  %v2320_v49 = vpop.f32.mrf.mxu1  ;;  %2826 = vrot.lane.b32.xlu0 %v3822_v30, %s4012_s0 }
 0x1ef   :  { %v2634_v58 = vadd.f32 1.0, %v3824_v1  ;;  %v2090_v37 = vpop.f32.mrf.mxu0 }
 0x1f0   :  { %3837 = vpow2.f32 %v3316_v42  ;;  %v5013_v22 = vadd.f32 %v2320_v49, %v2089_v47  ;;  %v3425_v7 = vpop.f32.mrf.mxu1 }
 0x1f1   :  { %v3826_v17 = vpop.eup %3825  ;;  %3839 = vrcp.f32 %v2634_v58  ;;  %v2093_v11 = vpop.f32.mrf.mxu0 }
 0x1f2   :  { %v3828_v12 = vpop.eup %3827  ;;  %v3317_v55 = vmul.f32 -1.442695, %v5013_v22  ;;  %v2094_v52 = vadd.f32 %v2093_v11, %v4647_v56  ;;  %v2325_v57 = vpop.f32.mrf.mxu1  ;;  %2828 = vrot.lane.b32.xlu0 %v3826_v17, %s4012_s0 }
 0x1f3   :  { %v2635_v48 = vadd.f32 1.0, %v3828_v12  ;;  %v2095_v31 = vpop.f32.mrf.mxu0 }
 0x1f4   :  { %3841 = vpow2.f32 %v3317_v55  ;;  %v5018_v30 = vadd.f32 %v2325_v57, %v2094_v52  ;;  %v3428_v36 = vpop.f32.mrf.mxu1 }
 0x1f5   :  { %v3830_v1 = vpop.eup %3829  ;;  %3843 = vrcp.f32 %v2635_v48  ;;  %v2096_v42 = vpop.f32.mrf.mxu0 }
 0x1f6   :  { %v3832_v47 = vpop.eup %3831  ;;  %v3318_v49 = vmul.f32 -1.442695, %v5018_v30  ;;  %v2097_v58 = vadd.f32 %v2096_v42, %v4659_v3  ;;  %v2328_v37 = vpop.f32.mrf.mxu1  ;;  %2830 = vrot.lane.b32.xlu1 %v3830_v1, %s4012_s0 }
 0x1f7   :  { %v2636_v56 = vadd.f32 1.0, %v3832_v47  ;;  %v2098_v7 = vpop.f32.mrf.mxu0 }
 0x1f8   :  { %3845 = vpow2.f32 %v3318_v49  ;;  %v5023_v17 = vadd.f32 %v2328_v37, %v2097_v58  ;;  %v3429_v11 = vpop.f32.mrf.mxu1 }
 0x1f9   :  { %v3834_v12 = vpop.eup %3833  ;;  %3847 = vrcp.f32 %v2636_v56  ;;  %v2101_v55 = vpop.f32.mrf.mxu0 }
 0x1fa   :  { %v3836_v52 = vpop.eup %3835  ;;  %v3319_v57 = vmul.f32 -1.442695, %v5023_v17  ;;  %v2102_v48 = vadd.f32 %v2101_v55, %v4664_v10  ;;  %v2333_v31 = vpop.f32.mrf.mxu1  ;;  %2832 = vrot.lane.b32.xlu1 %v3834_v12, %s4012_s0 }
 0x1fb   :  { %v2637_v3 = vadd.f32 1.0, %v3836_v52  ;;  %v2103_v36 = vpop.f32.mrf.mxu0 }
 0x1fc   :  { %3849 = vpow2.f32 %v3319_v57  ;;  %v5028_v1 = vadd.f32 %v2333_v31, %v2102_v48  ;;  %v3432_v42 = vpop.f32.mrf.mxu1 }
 0x1fd   :  { %v3838_v47 = vpop.eup %3837  ;;  %3851 = vrcp.f32 %v2637_v3  ;;  %v2104_v49 = vpop.f32.mrf.mxu0 }
 0x1fe   :  { %v3840_v58 = vpop.eup %3839  ;;  %v2638_v37 = vadd.f32 1.0, %v3838_v47  ;;  %v3320_v56 = vmul.f32 -1.442695, %v5028_v1  ;;  %v2105_v7 = vadd.f32 %v2104_v49, %v4676_v20  ;;  %v2336_v11 = vpop.f32.mrf.mxu1 }
 0x1ff   :  { %2834 = vrot.lane.b32.xlu0 %v3840_v58, %s4012_s0  ;;  %v2106_v10 = vpop.f32.mrf.mxu0 }
 0x200   :  { %3853 = vrcp.f32 %v2638_v37  ;;  %v5033_v12 = vadd.f32 %v2336_v11, %v2105_v7  ;;  %v3433_v55 = vpop.f32.mrf.mxu1 }
 0x201   :  { %v3842_v52 = vpop.eup %3841  ;;  %3855 = vpow2.f32 %v3320_v56  ;;  %v2109_v57 = vpop.f32.mrf.mxu0 }
 0x202   :  { %v3844_v48 = vpop.eup %3843  ;;  %v2639_v31 = vadd.f32 1.0, %v3842_v52  ;;  %v3321_v3 = vmul.f32 -1.442695, %v5033_v12  ;;  %v2110_v36 = vadd.f32 %v2109_v57, %v4681_v27  ;;  %v2341_v42 = vpop.f32.mrf.mxu1 }
 0x203   :  { %2836 = vrot.lane.b32.xlu1 %v3844_v48, %s4012_s0  ;;  %v2111_v20 = vpop.f32.mrf.mxu0 }
 0x204   :  { %3857 = vrcp.f32 %v2639_v31  ;;  %v5038_v47 = vadd.f32 %v2341_v42, %v2110_v36  ;;  %v3436_v49 = vpop.f32.mrf.mxu1 }
 0x205   :  { %v3846_v58 = vpop.eup %3845  ;;  %3859 = vpow2.f32 %v3321_v3  ;;  %v2112_v37 = vpop.f32.mrf.mxu0 }
 0x206   :  { %v3848_v7 = vpop.eup %3847  ;;  %v2640_v56 = vadd.f32 1.0, %v3846_v58  ;;  %v3322_v11 = vmul.f32 -1.442695, %v5038_v47  ;;  %v2113_v10 = vadd.f32 %v2112_v37, %v4693_v38  ;;  %v2344_v55 = vpop.f32.mrf.mxu1 }
 0x207   :  { %2838 = vrot.lane.b32.xlu0 %v3848_v7, %s4012_s0  ;;  %v2114_v27 = vpop.f32.mrf.mxu0 }
 0x208   :  { %3861 = vrcp.f32 %v2640_v56  ;;  %v5043_v52 = vadd.f32 %v2344_v55, %v2113_v10  ;;  %v3437_v57 = vpop.f32.mrf.mxu1 }
 0x209   :  { %v3850_v48 = vpop.eup %3849  ;;  %3863 = vpow2.f32 %v3322_v11  ;;  %v2117_v31 = vpop.f32.mrf.mxu0 }
 0x20a   :  { %v3852_v36 = vpop.eup %3851  ;;  %v2641_v3 = vadd.f32 1.0, %v3850_v48  ;;  %v3323_v42 = vmul.f32 -1.442695, %v5043_v52  ;;  %v2118_v20 = vadd.f32 %v2117_v31, %v4698_v46  ;;  %v2349_v49 = vpop.f32.mrf.mxu1 }
 0x20b   :  { %2840 = vrot.lane.b32.xlu1 %v3852_v36, %s4012_s0  ;;  %v2119_v38 = vpop.f32.mrf.mxu0 }
 0x20c   :  { %3865 = vrcp.f32 %v2641_v3  ;;  %v5048_v58 = vadd.f32 %v2349_v49, %v2118_v20  ;;  %v3440_v37 = vpop.f32.mrf.mxu1 }
 0x20d   :  { %v3854_v7 = vpop.eup %3853  ;;  %3867 = vpow2.f32 %v3323_v42  ;;  %v2120_v56 = vpop.f32.mrf.mxu0 }
 0x20e   :  { %v3856_v10 = vpop.eup %3855  ;;  %v3324_v11 = vmul.f32 -1.442695, %v5048_v58  ;;  %v2121_v55 = vadd.f32 %v2120_v56, %v4710_v59  ;;  %v2352_v27 = vpop.f32.mrf.mxu1  ;;  %2842 = vrot.lane.b32.xlu0 %v3854_v7, %s4012_s0 }
 0x20f   :  { %v2642_v46 = vadd.f32 1.0, %v3856_v10  ;;  %v2122_v57 = vpop.f32.mrf.mxu0 }
 0x210   :  { %3869 = vpow2.f32 %v3324_v11  ;;  %v5053_v48 = vadd.f32 %v2352_v27, %v2121_v55  ;;  %v3441_v31 = vpop.f32.mrf.mxu1 }
 0x211   :  { %v3858_v36 = vpop.eup %3857  ;;  %3871 = vrcp.f32 %v2642_v46  ;;  %v2125_v3 = vpop.f32.mrf.mxu0 }
 0x212   :  { %v3860_v20 = vpop.eup %3859  ;;  %v3325_v42 = vmul.f32 -1.442695, %v5053_v48  ;;  %v2126_v49 = vadd.f32 %v2125_v3, %v4715_v4  ;;  %v2357_v38 = vpop.f32.mrf.mxu1  ;;  %2844 = vrot.lane.b32.xlu1 %v3858_v36, %s4012_s0 }
 0x213   :  { %v2643_v59 = vadd.f32 1.0, %v3860_v20  ;;  %v2127_v37 = vpop.f32.mrf.mxu0 }
 0x214   :  { %3873 = vpow2.f32 %v3325_v42  ;;  %v5058_v7 = vadd.f32 %v2357_v38, %v2126_v49  ;;  %v3444_v56 = vpop.f32.mrf.mxu1 }
 0x215   :  { %v3862_v10 = vpop.eup %3861  ;;  %3875 = vrcp.f32 %v2643_v59  ;;  %v2128_v11 = vpop.f32.mrf.mxu0 }
 0x216   :  { %v3864_v55 = vpop.eup %3863  ;;  %v3326_v27 = vmul.f32 -1.442695, %v5058_v7  ;;  %v2129_v46 = vadd.f32 %v2128_v11, %v4727_v15  ;;  %v2360_v57 = vpop.f32.mrf.mxu1  ;;  %2846 = vrot.lane.b32.xlu0 %v3862_v10, %s4012_s0 }
 0x217   :  { %v2644_v4 = vadd.f32 1.0, %v3864_v55  ;;  %v2130_v31 = vpop.f32.mrf.mxu0 }
 0x218   :  { %3877 = vpow2.f32 %v3326_v27  ;;  %v5063_v36 = vadd.f32 %v2360_v57, %v2129_v46  ;;  %v3445_v3 = vpop.f32.mrf.mxu1 }
 0x219   :  { %v3866_v20 = vpop.eup %3865  ;;  %3879 = vrcp.f32 %v2644_v4  ;;  %v2133_v42 = vpop.f32.mrf.mxu0 }
 0x21a   :  { %v3868_v49 = vpop.eup %3867  ;;  %v3327_v38 = vmul.f32 -1.442695, %v5063_v36  ;;  %v2134_v59 = vadd.f32 %v2133_v42, %v4732_v24  ;;  %v2365_v37 = vpop.f32.mrf.mxu1  ;;  %2848 = vrot.lane.b32.xlu1 %v3866_v20, %s4012_s0 }
 0x21b   :  { %v2645_v15 = vadd.f32 1.0, %v3868_v49  ;;  %v2135_v56 = vpop.f32.mrf.mxu0 }
 0x21c   :  { %3881 = vpow2.f32 %v3327_v38  ;;  %v5068_v10 = vadd.f32 %v2365_v37, %v2134_v59  ;;  %v3448_v11 = vpop.f32.mrf.mxu1 }
 0x21d   :  { %v3870_v55 = vpop.eup %3869  ;;  %3883 = vrcp.f32 %v2645_v15  ;;  %v2136_v27 = vpop.f32.mrf.mxu0 }
 0x21e   :  { %v3872_v46 = vpop.eup %3871  ;;  %v2646_v57 = vadd.f32 1.0, %v3870_v55  ;;  %v3328_v4 = vmul.f32 -1.442695, %v5068_v10  ;;  %v2137_v31 = vadd.f32 %v2136_v27, %v4744_v35  ;;  %v2368_v3 = vpop.f32.mrf.mxu1 }
 0x21f   :  { %2850 = vrot.lane.b32.xlu0 %v3872_v46, %s4012_s0  ;;  %v2138_v24 = vpop.f32.mrf.mxu0 }
 0x220   :  { %3885 = vrcp.f32 %v2646_v57  ;;  %v5073_v20 = vadd.f32 %v2368_v3, %v2137_v31  ;;  %v3449_v42 = vpop.f32.mrf.mxu1 }
 0x221   :  { %v3874_v49 = vpop.eup %3873  ;;  %3887 = vpow2.f32 %v3328_v4  ;;  %v2141_v38 = vpop.f32.mrf.mxu0 }
 0x222   :  { %v3876_v59 = vpop.eup %3875  ;;  %v2647_v37 = vadd.f32 1.0, %v3874_v49  ;;  %v3329_v15 = vmul.f32 -1.442695, %v5073_v20  ;;  %v2142_v56 = vadd.f32 %v2141_v38, %v4749_v45  ;;  %v2373_v11 = vpop.f32.mrf.mxu1 }
 0x223   :  { %2852 = vrot.lane.b32.xlu1 %v3876_v59, %s4012_s0  ;;  %v2143_v35 = vpop.f32.mrf.mxu0 }
 0x224   :  { %3889 = vrcp.f32 %v2647_v37  ;;  %v5078_v55 = vadd.f32 %v2373_v11, %v2142_v56  ;;  %v3452_v27 = vpop.f32.mrf.mxu1 }
 0x225   :  { %v3878_v46 = vpop.eup %3877  ;;  %3891 = vpow2.f32 %v3329_v15  ;;  %v2144_v57 = vpop.f32.mrf.mxu0 }
 0x226   :  { %v3880_v31 = vpop.eup %3879  ;;  %v2648_v4 = vadd.f32 1.0, %v3878_v46  ;;  %v3330_v3 = vmul.f32 -1.442695, %v5078_v55  ;;  %v2145_v24 = vadd.f32 %v2144_v57, %v4761_v60  ;;  %v2376_v42 = vpop.f32.mrf.mxu1 }
 0x227   :  { %2854 = vrot.lane.b32.xlu0 %v3880_v31, %s4012_s0  ;;  %v2146_v45 = vpop.f32.mrf.mxu0 }
 0x228   :  { %3893 = vrcp.f32 %v2648_v4  ;;  %v5083_v49 = vadd.f32 %v2376_v42, %v2145_v24  ;;  %v3453_v38 = vpop.f32.mrf.mxu1 }
 0x229   :  { %v3882_v59 = vpop.eup %3881  ;;  %3895 = vpow2.f32 %v3330_v3  ;;  %v2149_v37 = vpop.f32.mrf.mxu0 }
 0x22a   :  { %v3884_v56 = vpop.eup %3883  ;;  %v2649_v15 = vadd.f32 1.0, %v3882_v59  ;;  %v3331_v11 = vmul.f32 -1.442695, %v5083_v49  ;;  %v2150_v35 = vadd.f32 %v2149_v37, %v4766_v6  ;;  %v2381_v27 = vpop.f32.mrf.mxu1 }
 0x22b   :  { %2856 = vrot.lane.b32.xlu1 %v3884_v56, %s4012_s0  ;;  %v2151_v60 = vpop.f32.mrf.mxu0 }
 0x22c   :  { %3897 = vrcp.f32 %v2649_v15  ;;  %v5088_v46 = vadd.f32 %v2381_v27, %v2150_v35  ;;  %v3456_v57 = vpop.f32.mrf.mxu1 }
 0x22d   :  { %v3886_v31 = vpop.eup %3885  ;;  %3899 = vpow2.f32 %v3331_v11  ;;  %v2152_v4 = vpop.f32.mrf.mxu0 }
 0x22e   :  { %v3888_v24 = vpop.eup %3887  ;;  %v3332_v3 = vmul.f32 -1.442695, %v5088_v46  ;;  %v2153_v42 = vadd.f32 %v2152_v4, %v4778_v19  ;;  %v2384_v45 = vpop.f32.mrf.mxu1  ;;  %2858 = vrot.lane.b32.xlu0 %v3886_v31, %s4012_s0 }
 0x22f   :  { %v2650_v6 = vadd.f32 1.0, %v3888_v24  ;;  %v2154_v38 = vpop.f32.mrf.mxu0 }
 0x230   :  { %3901 = vpow2.f32 %v3332_v3  ;;  %v5093_v59 = vadd.f32 %v2384_v45, %v2153_v42  ;;  %v3457_v37 = vpop.f32.mrf.mxu1 }
 0x231   :  { %v3890_v56 = vpop.eup %3889  ;;  %3903 = vrcp.f32 %v2650_v6  ;;  %v2157_v15 = vpop.f32.mrf.mxu0 }
 0x232   :  { %v3892_v35 = vpop.eup %3891  ;;  %v3333_v11 = vmul.f32 -1.442695, %v5093_v59  ;;  %v2158_v27 = vadd.f32 %v2157_v15, %v4783_v29  ;;  %v2389_v60 = vpop.f32.mrf.mxu1  ;;  %2860 = vrot.lane.b32.xlu1 %v3890_v56, %s4012_s0 }
 0x233   :  { %v2651_v19 = vadd.f32 1.0, %v3892_v35  ;;  %v2159_v57 = vpop.f32.mrf.mxu0 }
 0x234   :  { %3905 = vpow2.f32 %v3333_v11  ;;  %v5098_v31 = vadd.f32 %v2389_v60, %v2158_v27  ;;  %v3460_v4 = vpop.f32.mrf.mxu1 }
 0x235   :  { %v3894_v24 = vpop.eup %3893  ;;  %3907 = vrcp.f32 %v2651_v19  ;;  %v2160_v3 = vpop.f32.mrf.mxu0 }
 0x236   :  { %v3896_v42 = vpop.eup %3895  ;;  %v3334_v45 = vmul.f32 -1.442695, %v5098_v31  ;;  %v2161_v6 = vadd.f32 %v2160_v3, %v4795_v44  ;;  %v2392_v38 = vpop.f32.mrf.mxu1  ;;  %2862 = vrot.lane.b32.xlu0 %v3894_v24, %s4012_s0 }
 0x237   :  { %v2652_v29 = vadd.f32 1.0, %v3896_v42  ;;  %v2162_v37 = vpop.f32.mrf.mxu0 }
 0x238   :  { %3909 = vpow2.f32 %v3334_v45  ;;  %v5103_v56 = vadd.f32 %v2392_v38, %v2161_v6  ;;  %v3461_v15 = vpop.f32.mrf.mxu1 }
 0x239   :  { %v3898_v35 = vpop.eup %3897  ;;  %3911 = vrcp.f32 %v2652_v29  ;;  %v2165_v11 = vpop.f32.mrf.mxu0 }
 0x23a   :  { %v3900_v27 = vpop.eup %3899  ;;  %v3335_v60 = vmul.f32 -1.442695, %v5103_v56  ;;  %v2166_v19 = vadd.f32 %v2165_v11, %v4800_v54  ;;  %v2397_v57 = vpop.f32.mrf.mxu1  ;;  %2864 = vrot.lane.b32.xlu1 %v3898_v35, %s4012_s0 }
 0x23b   :  { %v2653_v44 = vadd.f32 1.0, %v3900_v27  ;;  %v2167_v4 = vpop.f32.mrf.mxu0 }
 0x23c   :  { %3913 = vpow2.f32 %v3335_v60  ;;  %v5108_v24 = vadd.f32 %v2397_v57, %v2166_v19  ;;  %v3464_v3 = vpop.f32.mrf.mxu1 }
 0x23d   :  { %v3902_v42 = vpop.eup %3901  ;;  %3915 = vrcp.f32 %v2653_v44  ;;  %v2168_v45 = vpop.f32.mrf.mxu0 }
 0x23e   :  { %v3904_v6 = vpop.eup %3903  ;;  %v2654_v38 = vadd.f32 1.0, %v3902_v42  ;;  %v3336_v29 = vmul.f32 -1.442695, %v5108_v24  ;;  %v2169_v37 = vadd.f32 %v2168_v45, %v4812_v9  ;;  %v2400_v15 = vpop.f32.mrf.mxu1 }
 0x23f   :  { %2866 = vrot.lane.b32.xlu0 %v3904_v6, %s4012_s0  ;;  %v2170_v54 = vpop.f32.mrf.mxu0 }
 0x240   :  { %3917 = vrcp.f32 %v2654_v38  ;;  %v5113_v35 = vadd.f32 %v2400_v15, %v2169_v37  ;;  %v3465_v11 = vpop.f32.mrf.mxu1 }
 0x241   :  { %v3906_v27 = vpop.eup %3905  ;;  %3919 = vpow2.f32 %v3336_v29  ;;  %v2173_v60 = vpop.f32.mrf.mxu0 }
 0x242   :  { %v3908_v19 = vpop.eup %3907  ;;  %v2655_v57 = vadd.f32 1.0, %v3906_v27  ;;  %v3337_v44 = vmul.f32 -1.442695, %v5113_v35  ;;  %v2174_v4 = vadd.f32 %v2173_v60, %v4817_v18  ;;  %v2405_v3 = vpop.f32.mrf.mxu1 }
 0x243   :  { %2868 = vrot.lane.b32.xlu1 %v3908_v19, %s4012_s0  ;;  %v2175_v9 = vpop.f32.mrf.mxu0 }
 0x244   :  { %3921 = vrcp.f32 %v2655_v57  ;;  %v5118_v42 = vadd.f32 %v2405_v3, %v2174_v4  ;;  %v3468_v45 = vpop.f32.mrf.mxu1 }
 0x245   :  { %v3910_v6 = vpop.eup %3909  ;;  %3923 = vpow2.f32 %v3337_v44  ;;  %v2176_v38 = vpop.f32.mrf.mxu0 }
 0x246   :  { %v3912_v37 = vpop.eup %3911  ;;  %v2656_v29 = vadd.f32 1.0, %v3910_v6  ;;  %v3338_v15 = vmul.f32 -1.442695, %v5118_v42  ;;  %v2177_v54 = vadd.f32 %v2176_v38, %v4829_v34  ;;  %v2408_v11 = vpop.f32.mrf.mxu1 }
 0x247   :  { %2870 = vrot.lane.b32.xlu0 %v3912_v37, %s4012_s0  ;;  %v2178_v18 = vpop.f32.mrf.mxu0 }
 0x248   :  { %3925 = vrcp.f32 %v2656_v29  ;;  %v5123_v27 = vadd.f32 %v2408_v11, %v2177_v54  ;;  %v3469_v60 = vpop.f32.mrf.mxu1 }
 0x249   :  { %v3914_v19 = vpop.eup %3913  ;;  %3927 = vpow2.f32 %v3338_v15  ;;  %v2181_v57 = vpop.f32.mrf.mxu0 }
 0x24a   :  { %v3916_v4 = vpop.eup %3915  ;;  %v2657_v44 = vadd.f32 1.0, %v3914_v19  ;;  %v3339_v3 = vmul.f32 -1.442695, %v5123_v27  ;;  %v2182_v9 = vadd.f32 %v2181_v57, %v4834_v50  ;;  %v2413_v45 = vpop.f32.mrf.mxu1 }
 0x24b   :  { %2872 = vrot.lane.b32.xlu1 %v3916_v4, %s4012_s0  ;;  %v2183_v34 = vpop.f32.mrf.mxu0 }
 0x24c   :  { %3929 = vrcp.f32 %v2657_v44  ;;  %v5128_v6 = vadd.f32 %v2413_v45, %v2182_v9  ;;  %v3472_v38 = vpop.f32.mrf.mxu1 }
 0x24d   :  { %v3918_v37 = vpop.eup %3917  ;;  %3931 = vpow2.f32 %v3339_v3  ;;  %v2184_v29 = vpop.f32.mrf.mxu0 }
 0x24e   :  { %v3920_v54 = vpop.eup %3919  ;;  %v3340_v15 = vmul.f32 -1.442695, %v5128_v6  ;;  %v2185_v11 = vadd.f32 %v2184_v29, %v4846_v2  ;;  %v2416_v18 = vpop.f32.mrf.mxu1  ;;  %2874 = vrot.lane.b32.xlu0 %v3918_v37, %s4012_s0 }
 0x24f   :  { %v2658_v50 = vadd.f32 1.0, %v3920_v54  ;;  %v2186_v60 = vpop.f32.mrf.mxu0 }
 0x250   :  { %3933 = vpow2.f32 %v3340_v15  ;;  %v5133_v19 = vadd.f32 %v2416_v18, %v2185_v11  ;;  %v3473_v57 = vpop.f32.mrf.mxu1 }
 0x251   :  { %v3922_v4 = vpop.eup %3921  ;;  %3935 = vrcp.f32 %v2658_v50  ;;  %v2189_v44 = vpop.f32.mrf.mxu0 }
 0x252   :  { %v3924_v9 = vpop.eup %3923  ;;  %v3341_v3 = vmul.f32 -1.442695, %v5133_v19  ;;  %v2190_v45 = vadd.f32 %v2189_v44, %v4851_v14  ;;  %v2421_v34 = vpop.f32.mrf.mxu1  ;;  %2876 = vrot.lane.b32.xlu1 %v3922_v4, %s4012_s0 }
 0x253   :  { %v2659_v2 = vadd.f32 1.0, %v3924_v9  ;;  %v2191_v38 = vpop.f32.mrf.mxu0 }
 0x254   :  { %3937 = vpow2.f32 %v3341_v3  ;;  %v5138_v37 = vadd.f32 %v2421_v34, %v2190_v45  ;;  %v3476_v29 = vpop.f32.mrf.mxu1 }
 0x255   :  { %v3926_v54 = vpop.eup %3925  ;;  %3939 = vrcp.f32 %v2659_v2  ;;  %v2192_v15 = vpop.f32.mrf.mxu0 }
 0x256   :  { %v3928_v11 = vpop.eup %3927  ;;  %v3342_v18 = vmul.f32 -1.442695, %v5138_v37  ;;  %v2193_v50 = vadd.f32 %v2192_v15, %v4863_v33  ;;  %v2424_v60 = vpop.f32.mrf.mxu1  ;;  %2878 = vrot.lane.b32.xlu0 %v3926_v54, %s4012_s0 }
 0x257   :  { %v2660_v14 = vadd.f32 1.0, %v3928_v11  ;;  %v2194_v57 = vpop.f32.mrf.mxu0 }
 0x258   :  { %3941 = vpow2.f32 %v3342_v18  ;;  %v5143_v4 = vadd.f32 %v2424_v60, %v2193_v50  ;;  %v3477_v44 = vpop.f32.mrf.mxu1 }
 0x259   :  { %v3930_v9 = vpop.eup %3929  ;;  %3943 = vrcp.f32 %v2660_v14  ;;  %v2197_v3 = vpop.f32.mrf.mxu0 }
 0x25a   :  { %v3932_v45 = vpop.eup %3931  ;;  %v3343_v34 = vmul.f32 -1.442695, %v5143_v4  ;;  %v2198_v2 = vadd.f32 %v2197_v3, %v4868_v51  ;;  %v2429_v38 = vpop.f32.mrf.mxu1  ;;  %2880 = vrot.lane.b32.xlu1 %v3930_v9, %s4012_s0 }
 0x25b   :  { %v2661_v33 = vadd.f32 1.0, %v3932_v45  ;;  %v2199_v29 = vpop.f32.mrf.mxu0 }
 0x25c   :  { %3945 = vpow2.f32 %v3343_v34  ;;  %v5148_v54 = vadd.f32 %v2429_v38, %v2198_v2  ;;  %v3480_v15 = vpop.f32.mrf.mxu1 }
 0x25d   :  { %v3934_v11 = vpop.eup %3933  ;;  %3947 = vrcp.f32 %v2661_v33  ;;  %v2200_v18 = vpop.f32.mrf.mxu0 }
 0x25e   :  { %v3936_v50 = vpop.eup %3935  ;;  %v2662_v60 = vadd.f32 1.0, %v3934_v11  ;;  %v3344_v14 = vmul.f32 -1.442695, %v5148_v54  ;;  %v2201_v57 = vadd.f32 %v2200_v18, %v4880_v8  ;;  %v2432_v44 = vpop.f32.mrf.mxu1 }
 0x25f   :  { %2882 = vrot.lane.b32.xlu0 %v3936_v50, %s4012_s0  ;;  %v2202_v51 = vpop.f32.mrf.mxu0 }
 0x260   :  { %3949 = vrcp.f32 %v2662_v60  ;;  %v5153_v9 = vadd.f32 %v2432_v44, %v2201_v57  ;;  %v3481_v3 = vpop.f32.mrf.mxu1  ;;  %v2827_v45 = vpop.permute.xlu0 %2826 }
 0x261   :  { %v3938_v34 = vpop.eup %3937  ;;  %3951 = vpow2.f32 %v3344_v14  ;;  %v2973_v2 = vmul.f32 %v2827_v45, %v4976_v40  ;;  %v2205_v38 = vpop.f32.mrf.mxu0 }
 0x262   :  { %v3940_v33 = vpop.eup %3939  ;;  %v2663_v29 = vadd.f32 1.0, %v3938_v34  ;;  %v3345_v15 = vmul.f32 -1.442695, %v5153_v9  ;;  %v2206_v8 = vadd.f32 %v2205_v38, %v4885_v23  ;;  %v2437_v11 = vpop.f32.mrf.mxu1 }
 0x263   :  { %3023 = vst.msk [vmem:[%s5468_s3] sm:$0xff] %vm3022_vm1, %v2973_v2  ;;  %2884 = vrot.lane.b32.xlu1 %v3940_v33, %s4012_s0  ;;  %v2207_v18 = vpop.f32.mrf.mxu0 }
 0x264   :  { %3953 = vrcp.f32 %v2663_v29  ;;  %v5163_v50 = vadd.f32 %v2437_v11, %v2206_v8  ;;  %v3484_v40 = vpop.f32.mrf.mxu1  ;;  %v2829_v60 = vpop.permute.xlu0 %2828 }
 0x265   :  { %v3942_v14 = vpop.eup %3941  ;;  %3955 = vpow2.f32 %v3345_v15  ;;  %v2974_v57 = vmul.f32 %v2829_v60, %v4980_v28  ;;  %v2208_v44 = vpop.f32.mrf.mxu0 }
 0x266   :  { %v3944_v23 = vpop.eup %3943  ;;  %v2664_v51 = vadd.f32 1.0, %v3942_v14  ;;  %v3346_v3 = vmul.f32 -1.442695, %v5163_v50  ;;  %v2209_v45 = vadd.f32 %v2208_v44, %v4897_v43  ;;  %v2440_v34 = vpop.f32.mrf.mxu1 }
 0x267   :  { %3024 = vst.msk [vmem:[%s5468_s3 + $0x8] sm:$0xff] %vm3022_vm1, %v2974_v57  ;;  %2886 = vrot.lane.b32.xlu0 %v3944_v23, %s4012_s0  ;;  %v2210_v2 = vpop.f32.mrf.mxu0 }
 0x268   :  { %3957 = vrcp.f32 %v2664_v51  ;;  %v5173_v38 = vadd.f32 %v2440_v34, %v2209_v45  ;;  %v3485_v28 = vpop.f32.mrf.mxu1  ;;  %v2831_v33 = vpop.permute.xlu1 %2830 }
 0x269   :  { %v3946_v29 = vpop.eup %3945  ;;  %3959 = vpow2.f32 %v3346_v3  ;;  %v2975_v15 = vmul.f32 %v2831_v33, %v4984_v0  ;;  %v2213_v8 = vpop.f32.mrf.mxu0 }
 0x26a   :  { %v3948_v43 = vpop.eup %3947  ;;  %v2665_v11 = vadd.f32 1.0, %v3946_v29  ;;  %v3347_v18 = vmul.f32 -1.442695, %v5173_v38  ;;  %v2214_v40 = vadd.f32 %v2213_v8, %v4902_v61  ;;  %v2445_v60 = vpop.f32.mrf.mxu1 }
 0x26b   :  { %3025 = vst.msk [vmem:[%s5468_s3 + $0x10] sm:$0xff] %vm3022_vm1, %v2975_v15  ;;  %2888 = vrot.lane.b32.xlu1 %v3948_v43, %s4012_s0  ;;  %v2215_v14 = vpop.f32.mrf.mxu0 }
 0x26c   :  { %3961 = vrcp.f32 %v2665_v11  ;;  %v5183_v57 = vadd.f32 %v2445_v60, %v2214_v40  ;;  %v3488_v0 = vpop.f32.mrf.mxu1  ;;  %v2833_v44 = vpop.permute.xlu1 %2832 }
 0x26d   :  { %v3950_v23 = vpop.eup %3949  ;;  %3963 = vpow2.f32 %v3347_v18  ;;  %v2976_v51 = vmul.f32 %v2833_v44, %v4988_v13  ;;  %v2216_v3 = vpop.f32.mrf.mxu0 }
 0x26e   :  { %v3952_v61 = vpop.eup %3951  ;;  %v3348_v45 = vmul.f32 -1.442695, %v5183_v57  ;;  %v2217_v34 = vadd.f32 %v2216_v3, %v4914_v25  ;;  %v2448_v2 = vpop.f32.mrf.mxu1  ;;  %2890 = vrot.lane.b32.xlu0 %v3950_v23, %s4012_s0 }
 0x26f   :  { %v2666_v28 = vadd.f32 1.0, %v3952_v61  ;;  %3026 = vst.msk [vmem:[%s5468_s3 + $0x18] sm:$0xff] %vm3022_vm1, %v2976_v51  ;;  %v2218_v33 = vpop.f32.mrf.mxu0 }
 0x270   :  { %3965 = vpow2.f32 %v3348_v45  ;;  %v5193_v29 = vadd.f32 %v2448_v2, %v2217_v34  ;;  %v3489_v13 = vpop.f32.mrf.mxu1 }
 0x271   :  { %v3954_v15 = vpop.eup %3953  ;;  %3967 = vrcp.f32 %v2666_v28  ;;  %v2835_v8 = vpop.permute.xlu0 %2834 }
 0x272   :  { %v2221_v43 = vpop.f32.mrf.mxu0  ;;  %v3956_v11 = vpop.eup %3955  ;;  %v3349_v25 = vmul.f32 -1.442695, %v5193_v29  ;;  %v2977_v18 = vmul.f32 %v2835_v8, %v4992_v39  ;;  %2892 = vrot.lane.b32.xlu1 %v3954_v15, %s4012_s0 }
 0x273   :  { %v2222_v40 = vadd.f32 %v2221_v43, %v4919_v41  ;;  %v2453_v60 = vpop.f32.mrf.mxu1  ;;  %v2667_v14 = vadd.f32 1.0, %v3956_v11 }
 0x274   :  { %v2223_v0 = vpop.f32.mrf.mxu0  ;;  %3969 = vpow2.f32 %v3349_v25  ;;  %3027 = vst.msk [vmem:[%s5468_s3 + $0x20] sm:$0xff] %vm3022_vm1, %v2977_v18 }
 0x275   :  { %v5203_v44 = vadd.f32 %v2453_v60, %v2222_v40  ;;  %v3492_v23 = vpop.f32.mrf.mxu1  ;;  %v3958_v51 = vpop.eup %3957  ;;  %3971 = vrcp.f32 %v2667_v14 }
 0x276   :  { %v2837_v3 = vpop.permute.xlu1 %2836  ;;  %v2224_v39 = vpop.f32.mrf.mxu0  ;;  %2894 = vrot.lane.b32.xlu0 %v3958_v51, %s4012_s0 }
 0x277   :  { %v3960_v61 = vpop.eup %3959  ;;  %v3350_v41 = vmul.f32 -1.442695, %v5203_v44  ;;  %v2978_v45 = vmul.f32 %v2837_v3, %v4996_v62  ;;  %v2225_v34 = vadd.f32 %v2224_v39, %v4931_v5  ;;  %v2456_v2 = vpop.f32.mrf.mxu1 }
 0x278   :  { %v2668_v28 = vadd.f32 1.0, %v3960_v61  ;;  %v2226_v33 = vpop.f32.mrf.mxu0 }
 0x279   :  { %3973 = vpow2.f32 %v3350_v41  ;;  %3028 = vst.msk [vmem:[%s5468_s3 + $0x28] sm:$0xff] %vm3022_vm1, %v2978_v45  ;;  %v5213_v13 = vadd.f32 %v2456_v2, %v2225_v34  ;;  %v3493_v15 = vpop.f32.mrf.mxu1  ;;  %v3962_v8 = vpop.eup %3961  ;;  %v5471_v45 = vld [vmem:[#allocation2_spill] sm:$0xff] }
 0x27a   :  { %3975 = vrcp.f32 %v2668_v28  ;;  %v2839_v43 = vpop.permute.xlu0 %2838  ;;  %v2229_v62 = vpop.f32.mrf.mxu0  ;;  %2896 = vrot.lane.b32.xlu1 %v3962_v8, %s4012_s0 }
 0x27b   :  { %v3964_v11 = vpop.eup %3963  ;;  %v3351_v5 = vmul.f32 -1.442695, %v5213_v13  ;;  %v2979_v25 = vmul.f32 %v2839_v43, %v5000_v32  ;;  %v2230_v18 = vadd.f32 %v2229_v62, %v4936_v26  ;;  %v2461_v40 = vpop.f32.mrf.mxu1 }
 0x27c   :  { %v2669_v60 = vadd.f32 1.0, %v3964_v11  ;;  %v2231_v14 = vpop.f32.mrf.mxu0 }
 0x27d   :  { %3977 = vpow2.f32 %v3351_v5  ;;  %3029 = vst.msk [vmem:[%s5468_s3 + $0x30] sm:$0xff] %vm3022_vm1, %v2979_v25  ;;  %v5223_v0 = vadd.f32 %v2461_v40, %v2230_v18  ;;  %v3496_v23 = vpop.f32.mrf.mxu1  ;;  %v3966_v51 = vpop.eup %3965  ;;  %v5472_v18 = vld [vmem:[#allocation3_spill] sm:$0xff] }
 0x27e   :  { %3979 = vrcp.f32 %v2669_v60  ;;  %v2841_v3 = vpop.permute.xlu1 %2840  ;;  %v2232_v32 = vpop.f32.mrf.mxu0  ;;  %v2670_v26 = vadd.f32 1.0, %v3966_v51 }
 0x27f   :  { %v3968_v39 = vpop.eup %3967  ;;  %v3352_v61 = vmul.f32 -1.442695, %v5223_v0  ;;  %v2980_v41 = vmul.f32 %v2841_v3, %v5004_v63  ;;  %v2233_v34 = vadd.f32 %v2232_v32, %v5471_v45  ;;  %v2464_v2 = vpop.f32.mrf.mxu1 }
 0x280   :  { %2898 = vrot.lane.b32.xlu0 %v3968_v39, %s4012_s0  ;;  %v2234_v28 = vpop.f32.mrf.mxu0  ;;  %3981 = vrcp.f32 %v2670_v26  ;;  %v2843_v8 = vpop.permute.xlu0 %2842 }
 0x281   :  { %3030 = vst.msk [vmem:[%s5468_s3 + $0x38] sm:$0xff] %vm3022_vm1, %v2980_v41  ;;  %v5233_v33 = vadd.f32 %v2464_v2, %v2233_v34  ;;  %v3497_v15 = vpop.f32.mrf.mxu1  ;;  %v3970_v43 = vpop.eup %3969  ;;  %3983 = vpow2.f32 %v3352_v61  ;;  %v2981_v63 = vmul.f32 %v2843_v8, %v5008_v16 }
 0x282   :  { %v2237_v62 = vpop.f32.mrf.mxu0  ;;  %v3972_v11 = vpop.eup %3971  ;;  %v2671_v5 = vadd.f32 1.0, %v3970_v43 }
 0x283   :  { %v3353_v25 = vmul.f32 -1.442695, %v5233_v33  ;;  %v2238_v40 = vadd.f32 %v2237_v62, %v5472_v18  ;;  %v2469_v60 = vpop.f32.mrf.mxu1  ;;  %3031 = vst.msk [vmem:[%s5468_s3 + $0x40] sm:$0xff] %vm3022_vm1, %v2981_v63  ;;  %2900 = vrot.lane.b32.xlu1 %v3972_v11, %s4012_s0 }
 0x284   :  { %v2239_v14 = vpop.f32.mrf.mxu0  ;;  %3985 = vrcp.f32 %v2671_v5  ;;  %v2845_v51 = vpop.permute.xlu1 %2844 }
 0x285   :  { %v5243_v23 = vadd.f32 %v2469_v60, %v2238_v40  ;;  %v3500_v16 = vpop.f32.mrf.mxu1  ;;  %3987 = vpow2.f32 %v3353_v25  ;;  %v2982_v32 = vmul.f32 %v2845_v51, %v5013_v22 }
 0x286   :  { %v3974_v3 = vpop.eup %3973  ;;  %v2240_v39 = vpop.f32.mrf.mxu0 }
 0x287   :  { %v3976_v26 = vpop.eup %3975  ;;  %v2672_v61 = vadd.f32 1.0, %v3974_v3  ;;  %v3354_v41 = vmul.f32 -1.442695, %v5243_v23  ;;  %v2241_v45 = vadd.f32 %v2240_v39, %v4965_v53  ;;  %v2472_v34 = vpop.f32.mrf.mxu1  ;;  %3032 = vst.msk [vmem:[%s5468_s3 + $0x48] sm:$0xff] %vm3022_vm1, %v2982_v32 }
 0x288   :  { %2902 = vrot.lane.b32.xlu0 %v3976_v26, %s4012_s0  ;;  %v2242_v2 = vpop.f32.mrf.mxu0  ;;  %v2847_v15 = vpop.permute.xlu0 %2846 }
 0x289   :  { %3989 = vrcp.f32 %v2672_v61  ;;  %v5253_v28 = vadd.f32 %v2472_v34, %v2241_v45  ;;  %v3501_v22 = vpop.f32.mrf.mxu1  ;;  %v2983_v43 = vmul.f32 %v2847_v15, %v5018_v30 }
 0x28a   :  { %v3978_v8 = vpop.eup %3977  ;;  %3991 = vpow2.f32 %v3354_v41  ;;  %v2245_v63 = vpop.f32.mrf.mxu0 }
 0x28b   :  { %v3980_v53 = vpop.eup %3979  ;;  %v2673_v62 = vadd.f32 1.0, %v3978_v8  ;;  %v3355_v11 = vmul.f32 -1.442695, %v5253_v28  ;;  %v2246_v5 = vadd.f32 %v2245_v63, %v4970_v21  ;;  %v2477_v25 = vpop.f32.mrf.mxu1  ;;  %3033 = vst.msk [vmem:[%s5468_s3 + $0x50] sm:$0xff] %vm3022_vm1, %v2983_v43 }
 0x28c   :  { %2904 = vrot.lane.b32.xlu1 %v3980_v53, %s4012_s0  ;;  %v2247_v18 = vpop.f32.mrf.mxu0  ;;  %v2849_v60 = vpop.permute.xlu1 %2848 }
 0x28d   :  { %3993 = vrcp.f32 %v2673_v62  ;;  %v5263_v40 = vadd.f32 %v2477_v25, %v2246_v5  ;;  %v3504_v30 = vpop.f32.mrf.mxu1  ;;  %v3982_v14 = vpop.eup %3981  ;;  %v2984_v16 = vmul.f32 %v2849_v60, %v5023_v17 }
 0x28e   :  { %3995 = vpow2.f32 %v3355_v11  ;;  %v2248_v51 = vpop.f32.mrf.mxu0  ;;  %v3984_v21 = vpop.eup %3983  ;;  %2906 = vrot.lane.b32.xlu0 %v3982_v14, %s4012_s0 }
 0x28f   :  { %v3356_v3 = vmul.f32 -1.442695, %v5263_v40  ;;  %v2480_v32 = vpop.f32.mrf.mxu1  ;;  %v2674_v39 = vadd.f32 1.0, %v3984_v21  ;;  %3034 = vst.msk [vmem:[%s5468_s3 + $0x58] sm:$0xff] %vm3022_vm1, %v2984_v16 }
 0x290   :  { %v2249_v26 = vpop.f32.mrf.mxu0 }
 0x291   :  { %3997 = vpow2.f32 %v3356_v3  ;;  %v3505_v61 = vpop.f32.mrf.mxu1  ;;  %v3986_v41 = vpop.eup %3985 }
 0x292   :  { %3999 = vrcp.f32 %v2674_v39  ;;  %v2851_v45 = vpop.permute.xlu0 %2850  ;;  %v3988_v17 = vpop.eup %3987  ;;  %2908 = vrot.lane.b32.xlu1 %v3986_v41, %s4012_s0 }
 0x293   :  { %v2985_v34 = vmul.f32 %v2851_v45, %v5028_v1  ;;  %v2675_v2 = vadd.f32 1.0, %v3988_v17 }
 0x295   :  { %3035 = vst.msk [vmem:[%s5468_s3 + $0x60] sm:$0xff] %vm3022_vm1, %v2985_v34  ;;  %4001 = vrcp.f32 %v2675_v2  ;;  %v2853_v15 = vpop.permute.xlu1 %2852 }
 0x296   :  { %v3990_v22 = vpop.eup %3989  ;;  %v2986_v43 = vmul.f32 %v2853_v15, %v5033_v12 }
 0x297   :  { %v3992_v8 = vpop.eup %3991  ;;  %2910 = vrot.lane.b32.xlu0 %v3990_v22, %s4012_s0 }
 0x298   :  { %v2676_v63 = vadd.f32 1.0, %v3992_v8  ;;  %3036 = vst.msk [vmem:[%s5468_s3 + $0x68] sm:$0xff] %vm3022_vm1, %v2986_v43 }
 0x299   :  { %v2855_v53 = vpop.permute.xlu0 %2854 }
 0x29a   :  { %v3994_v1 = vpop.eup %3993  ;;  %4003 = vrcp.f32 %v2676_v63  ;;  %v2987_v11 = vmul.f32 %v2855_v53, %v5038_v47 }
 0x29b   :  { %v3996_v62 = vpop.eup %3995  ;;  %2912 = vrot.lane.b32.xlu1 %v3994_v1, %s4012_s0 }
 0x29c   :  { %v2677_v5 = vadd.f32 1.0, %v3996_v62  ;;  %3037 = vst.msk [vmem:[%s5468_s3 + $0x70] sm:$0xff] %vm3022_vm1, %v2987_v11 }
 0x29d   :  { %v2857_v25 = vpop.permute.xlu1 %2856 }
 0x29e   :  { %v3998_v12 = vpop.eup %3997  ;;  %4005 = vrcp.f32 %v2677_v5  ;;  %v2988_v60 = vmul.f32 %v2857_v25, %v5043_v52 }
 0x29f   :  { %v4000_v18 = vpop.eup %3999  ;;  %v2678_v30 = vadd.f32 1.0, %v3998_v12 }
 0x2a0   :  { %2914 = vrot.lane.b32.xlu0 %v4000_v18, %s4012_s0  ;;  %3038 = vst.msk [vmem:[%s5468_s3 + $0x78] sm:$0xff] %vm3022_vm1, %v2988_v60  ;;  %v2859_v47 = vpop.permute.xlu0 %2858 }
 0x2a1   :  { %4007 = vrcp.f32 %v2678_v30  ;;  %v2989_v14 = vmul.f32 %v2859_v47, %v5048_v58 }
 0x2a2   :  { %v4002_v16 = vpop.eup %4001 }
 0x2a3   :  { %3039 = vst.msk [vmem:[%s5468_s3 + $0x80] sm:$0xff] %vm3022_vm1, %v2989_v14  ;;  %2916 = vrot.lane.b32.xlu1 %v4002_v16, %s4012_s0 }
 0x2a4   :  { %v2861_v52 = vpop.permute.xlu1 %2860 }
 0x2a5   :  { %v2990_v51 = vmul.f32 %v2861_v52, %v5053_v48 }
 0x2a7   :  { %v4004_v21 = vpop.eup %4003  ;;  %3040 = vst.msk [vmem:[%s5468_s3 + $0x88] sm:$0xff] %vm3022_vm1, %v2990_v51 }
 0x2a8   :  { %2918 = vrot.lane.b32.xlu0 %v4004_v21, %s4012_s0  ;;  %v2863_v58 = vpop.permute.xlu0 %2862 }
 0x2a9   :  { %v2991_v3 = vmul.f32 %v2863_v58, %v5058_v7 }
 0x2ab   :  { %v4006_v32 = vpop.eup %4005  ;;  %3041 = vst.msk [vmem:[%s5468_s3 + $0x90] sm:$0xff] %vm3022_vm1, %v2991_v3 }
 0x2ac   :  { %2920 = vrot.lane.b32.xlu1 %v4006_v32, %s4012_s0  ;;  %v2865_v48 = vpop.permute.xlu1 %2864 }
 0x2ad   :  { %v2992_v26 = vmul.f32 %v2865_v48, %v5063_v36 }
 0x2ae   :  { %v4008_v39 = vpop.eup %4007 }
 0x2af   :  { %2922 = vrot.lane.b32.xlu0 %v4008_v39, %s4012_s0  ;;  %3042 = vst.msk [vmem:[%s5468_s3 + $0x98] sm:$0xff] %vm3022_vm1, %v2992_v26 }
 0x2b1   :  { %v2867_v7 = vpop.permute.xlu0 %2866 }
 0x2b2   :  { %v2993_v61 = vmul.f32 %v2867_v7, %v5068_v10 }
 0x2b4   :  { %3043 = vst.msk [vmem:[%s5468_s3 + $0xa0] sm:$0xff] %vm3022_vm1, %v2993_v61 }
 0x2b5   :  { %v2869_v41 = vpop.permute.xlu1 %2868 }
 0x2b6   :  { %v2994_v45 = vmul.f32 %v2869_v41, %v5073_v20 }
 0x2b8   :  { %3044 = vst.msk [vmem:[%s5468_s3 + $0xa8] sm:$0xff] %vm3022_vm1, %v2994_v45 }
 0x2b9   :  { %v2871_v36 = vpop.permute.xlu0 %2870 }
 0x2ba   :  { %v2995_v17 = vmul.f32 %v2871_v36, %v5078_v55 }
 0x2bc   :  { %3045 = vst.msk [vmem:[%s5468_s3 + $0xb0] sm:$0xff] %vm3022_vm1, %v2995_v17 }
 0x2bd   :  { %v2873_v10 = vpop.permute.xlu1 %2872 }
 0x2be   :  { %v2996_v34 = vmul.f32 %v2873_v10, %v5083_v49 }
 0x2c0   :  { %3046 = vst.msk [vmem:[%s5468_s3 + $0xb8] sm:$0xff] %vm3022_vm1, %v2996_v34  ;;  %v2875_v20 = vpop.permute.xlu0 %2874 }
 0x2c1   :  { %v2997_v2 = vmul.f32 %v2875_v20, %v5088_v46 }
 0x2c3   :  { %3047 = vst.msk [vmem:[%s5468_s3 + $0xc0] sm:$0xff] %vm3022_vm1, %v2997_v2 }
 0x2c4   :  { %v2877_v55 = vpop.permute.xlu1 %2876 }
 0x2c5   :  { %v2998_v22 = vmul.f32 %v2877_v55, %v5093_v59 }
 0x2c7   :  { %3048 = vst.msk [vmem:[%s5468_s3 + $0xc8] sm:$0xff] %vm3022_vm1, %v2998_v22 }
 0x2c8   :  { %v2879_v49 = vpop.permute.xlu0 %2878 }
 0x2c9   :  { %v2999_v15 = vmul.f32 %v2879_v49, %v5098_v31 }
 0x2cb   :  { %3049 = vst.msk [vmem:[%s5468_s3 + $0xd0] sm:$0xff] %vm3022_vm1, %v2999_v15 }
 0x2cc   :  { %v2881_v46 = vpop.permute.xlu1 %2880 }
 0x2cd   :  { %v3000_v8 = vmul.f32 %v2881_v46, %v5103_v56 }
 0x2cf   :  { %3050 = vst.msk [vmem:[%s5468_s3 + $0xd8] sm:$0xff] %vm3022_vm1, %v3000_v8 }
 0x2d1   :  { %v2883_v59 = vpop.permute.xlu0 %2882 }
 0x2d2   :  { %v3001_v43 = vmul.f32 %v2883_v59, %v5108_v24 }
 0x2d4   :  { %3051 = vst.msk [vmem:[%s5468_s3 + $0xe0] sm:$0xff] %vm3022_vm1, %v3001_v43 }
 0x2d5   :  { %v2885_v31 = vpop.permute.xlu1 %2884 }
 0x2d6   :  { %v3002_v63 = vmul.f32 %v2885_v31, %v5113_v35 }
 0x2d8   :  { %3052 = vst.msk [vmem:[%s5468_s3 + $0xe8] sm:$0xff] %vm3022_vm1, %v3002_v63 }
 0x2d9   :  { %v2887_v56 = vpop.permute.xlu0 %2886 }
 0x2da   :  { %v3003_v1 = vmul.f32 %v2887_v56, %v5118_v42 }
 0x2dc   :  { %3053 = vst.msk [vmem:[%s5468_s3 + $0xf0] sm:$0xff] %vm3022_vm1, %v3003_v1 }
 0x2dd   :  { %v2889_v24 = vpop.permute.xlu1 %2888 }
 0x2de   :  { %v3004_v53 = vmul.f32 %v2889_v24, %v5123_v27 }
 0x2e0   :  { %3054 = vst.msk [vmem:[%s5468_s3 + $0xf8] sm:$0xff] %vm3022_vm1, %v3004_v53  ;;  %v2891_v35 = vpop.permute.xlu0 %2890 }
 0x2e1   :  { %v3005_v62 = vmul.f32 %v2891_v35, %v5128_v6 }
 0x2e3   :  { %3055 = vst.msk [vmem:[%s5468_s3 + $0x100] sm:$0xff] %vm3022_vm1, %v3005_v62 }
 0x2e4   :  { %v2893_v42 = vpop.permute.xlu1 %2892 }
 0x2e5   :  { %v3006_v11 = vmul.f32 %v2893_v42, %v5133_v19 }
 0x2e7   :  { %3056 = vst.msk [vmem:[%s5468_s3 + $0x108] sm:$0xff] %vm3022_vm1, %v3006_v11 }
 0x2e8   :  { %v2895_v27 = vpop.permute.xlu0 %2894 }
 0x2e9   :  { %v3007_v5 = vmul.f32 %v2895_v27, %v5138_v37 }
 0x2eb   :  { %3057 = vst.msk [vmem:[%s5468_s3 + $0x110] sm:$0xff] %vm3022_vm1, %v3007_v5 }
 0x2ec   :  { %v2897_v6 = vpop.permute.xlu1 %2896 }
 0x2ed   :  { %v3008_v12 = vmul.f32 %v2897_v6, %v5143_v4 }
 0x2ef   :  { %3058 = vst.msk [vmem:[%s5468_s3 + $0x118] sm:$0xff] %vm3022_vm1, %v3008_v12 }
 0x2f2   :  { %v2899_v19 = vpop.permute.xlu0 %2898 }
 0x2f3   :  { %v3009_v25 = vmul.f32 %v2899_v19, %v5148_v54 }
 0x2f5   :  { %3059 = vst.msk [vmem:[%s5468_s3 + $0x120] sm:$0xff] %vm3022_vm1, %v3009_v25  ;;  %v2901_v37 = vpop.permute.xlu1 %2900 }
 0x2f6   :  { %v3010_v18 = vmul.f32 %v2901_v37, %v5153_v9 }
 0x2f8   :  { %3060 = vst.msk [vmem:[%s5468_s3 + $0x128] sm:$0xff] %vm3022_vm1, %v3010_v18 }
 0x2fa   :  { %v2903_v4 = vpop.permute.xlu0 %2902 }
 0x2fb   :  { %v3011_v30 = vmul.f32 %v2903_v4, %v5163_v50 }
 0x2fd   :  { %3061 = vst.msk [vmem:[%s5468_s3 + $0x130] sm:$0xff] %vm3022_vm1, %v3011_v30 }
 0x2fe   :  { %v2905_v54 = vpop.permute.xlu1 %2904 }
 0x2ff   :  { %v3012_v60 = vmul.f32 %v2905_v54, %v5173_v38 }
 0x300   :  { %v2907_v9 = vpop.permute.xlu0 %2906 }
 0x301   :  { %3062 = vst.msk [vmem:[%s5468_s3 + $0x138] sm:$0xff] %vm3022_vm1, %v3012_v60  ;;  %v3013_v47 = vmul.f32 %v2907_v9, %v5183_v57 }
 0x303   :  { %3063 = vst.msk [vmem:[%s5468_s3 + $0x140] sm:$0xff] %vm3022_vm1, %v3013_v47 }
 0x304   :  { %v2909_v50 = vpop.permute.xlu1 %2908 }
 0x305   :  { %v3014_v14 = vmul.f32 %v2909_v50, %v5193_v29 }
 0x307   :  { %3064 = vst.msk [vmem:[%s5468_s3 + $0x148] sm:$0xff] %vm3022_vm1, %v3014_v14 }
 0x309   :  { %v2911_v38 = vpop.permute.xlu0 %2910 }
 0x30a   :  { %v3015_v16 = vmul.f32 %v2911_v38, %v5203_v44 }
 0x30c   :  { %3065 = vst.msk [vmem:[%s5468_s3 + $0x150] sm:$0xff] %vm3022_vm1, %v3015_v16 }
 0x30d   :  { %v2913_v57 = vpop.permute.xlu1 %2912 }
 0x30e   :  { %v3016_v52 = vmul.f32 %v2913_v57, %v5213_v13 }
 0x310   :  { %3066 = vst.msk [vmem:[%s5468_s3 + $0x158] sm:$0xff] %vm3022_vm1, %v3016_v52 }
 0x312   :  { %v2915_v29 = vpop.permute.xlu0 %2914 }
 0x313   :  { %v3017_v51 = vmul.f32 %v2915_v29, %v5223_v0 }
 0x315   :  { %3067 = vst.msk [vmem:[%s5468_s3 + $0x160] sm:$0xff] %vm3022_vm1, %v3017_v51  ;;  %v2917_v44 = vpop.permute.xlu1 %2916 }
 0x316   :  { %v3018_v21 = vmul.f32 %v2917_v44, %v5233_v33 }
 0x318   :  { %3068 = vst.msk [vmem:[%s5468_s3 + $0x168] sm:$0xff] %vm3022_vm1, %v3018_v21 }
 0x31a   :  { %v2919_v13 = vpop.permute.xlu0 %2918 }
 0x31b   :  { %v3019_v58 = vmul.f32 %v2919_v13, %v5243_v23 }
 0x31d   :  { %3069 = vst.msk [vmem:[%s5468_s3 + $0x170] sm:$0xff] %vm3022_vm1, %v3019_v58 }
 0x31e   :  { %v2921_v0 = vpop.permute.xlu1 %2920 }
 0x31f   :  { %v3020_v3 = vmul.f32 %v2921_v0, %v5253_v28 }
 0x321   :  { %3070 = vst.msk [vmem:[%s5468_s3 + $0x178] sm:$0xff] %vm3022_vm1, %v3020_v3  ;;  %v2923_v33 = vpop.permute.xlu0 %2922 }
 0x322   :  { %v3021_v32 = vmul.f32 %v2923_v33, %v5263_v40 }
 0x324   :  { %3071 = vst.msk [vmem:[%s5468_s3 + $0x180] sm:$0xff] %vm3022_vm1, %v3021_v32 }

// kernel: encoder_forward.9
= control target key start
LH: loop header
LB: loop body
LE: loop exit
PB: predicated region body
PF: predicated region fallthrough
CT: control target
= control target key end

     0   :  { %v1402_v24 = vmov 0.0   ;;  %vm1403_vm0 = vmmov 0   ;;  %vm962_vm1 = vcmask 523264   ;;  %s1837_s1 = inlined_call_operand.vmem [shape: bf16[640,128], index: 1, kind: input, shape index: {}]   ;;  %s1838_s0 = inlined_call_operand.vmem [shape: bf16[104,640], index: 0, kind: input, shape index: {}]   ;;  %s1839_s2 = inlined_call_operand.vmem [shape: f32[1,128], index: 2, kind: input, shape index: {}]   ;;  %s1840_s3 = inlined_call_operand.vmem [shape: f32[104,64], index: 3, kind: output, shape index: {}]  }
   0x1   :  { %v1263_v0 = vld [vmem:[%s1837_s1 + $0x78] sm:$0xff]   ;;  %v1265_v2 = vld [vmem:[%s1837_s1 + $0x70] sm:$0xff]   ;;  %v1267_v4 = vld [vmem:[%s1837_s1 + $0x68] sm:$0xff]  }
   0x2   :  { %v1264_v1 = vld [vmem:[%s1837_s1 + $0x38] sm:$0xff]   ;;  %1069 = vmatprep.subr.bf16.mxu0 %v1263_v0  ;;  %1244 = vmatprep.subr.bf16.mxu1 %v1263_v0  ;;  %v1266_v3 = vld [vmem:[%s1837_s1 + $0x30] sm:$0xff]   ;;  %v1268_v5 = vld [vmem:[%s1837_s1 + $0x28] sm:$0xff]  }
   0x3   :  { %1070 = vmatpush3.bf16.msra.mxu0 %v1264_v1  ;;  %1252 = vmatpush3.bf16.msra.mxu1 %v1264_v1  ;;  %v1269_v6 = vld [vmem:[%s1837_s1 + $0x60] sm:$0xff]   ;;  %v1271_v8 = vld [vmem:[%s1837_s1 + $0x58] sm:$0xff]   ;;  %v1273_v10 = vld [vmem:[%s1837_s1 + $0x50] sm:$0xff]  }
   0x4   :  { %1071 = vmatprep.subr.bf16.mxu0 %v1265_v2  ;;  %1245 = vmatprep.subr.bf16.mxu1 %v1265_v2  ;;  %v1270_v7 = vld [vmem:[%s1837_s1 + $0x20] sm:$0xff]   ;;  %v1272_v9 = vld [vmem:[%s1837_s1 + $0x18] sm:$0xff]   ;;  %v1274_v13 = vld [vmem:[%s1837_s1 + $0x10] sm:$0xff]  }
   0x5   :  { %v1281_v11 = vld [vmem:[%s1838_s0 + $0x4] ss:$20 sps:$4 sm:$0xff]   ;;  %v1275_v14 = vld [vmem:[%s1837_s1 + $0x48] sm:$0xff]   ;;  %v1279_v18 = vld [vmem:[%s1838_s0] ss:$20 sps:$4 sm:$0xff]  }
   0x6   :  { %v1284_v12 = vld [vmem:[%s1838_s0 + $0xa4] ss:$20 sps:$4 sm:$0xff]   ;;  %587 = vmatprep.mubr.bf16.mxu0 %v1281_v11  ;;  %v1276_v15 = vld [vmem:[%s1837_s1 + $0x8] sm:$0xff]   ;;  %v1282_v19 = vld [vmem:[%s1838_s0 + $0xa0] ss:$20 sps:$4 sm:$0xff]  }
   0x7   :  { %1072 = vmatpush3.bf16.msra.mxu0 %v1266_v3  ;;  %1253 = vmatpush3.bf16.msra.mxu1 %v1266_v3  ;;  %v1277_v16 = vld [vmem:[%s1837_s1 + $0x40] sm:$0xff]   ;;  %v1285_v20 = vld [vmem:[%s1837_s1 + $0xf8] sm:$0xff]   ;;  %v1288_v23 = vld [vmem:[%s1837_s1 + $0xf0] sm:$0xff]  }
   0x8   :  { %1073 = vmatprep.subr.bf16.mxu0 %v1267_v4  ;;  %1246 = vmatprep.subr.bf16.mxu1 %v1267_v4  ;;  %v1278_v17 = vld [vmem:[%s1837_s1] sm:$0xff]   ;;  %v1286_v21 = vld [vmem:[%s1837_s1 + $0xb8] sm:$0xff]   ;;  %v1289_v27 = vld [vmem:[%s1837_s1 + $0xb0] sm:$0xff]  }
   0x9   :  { %619 = vmatprep.mubr.bf16.mxu1 %v1284_v12  ;;  %v1287_v22 = vld [vmem:[%s1837_s1 + $0x138] sm:$0xff]   ;;  %v1291_v25 = vld [vmem:[%s1838_s0 + $0x2c] ss:$20 sps:$4 sm:$0xff]   ;;  %v1290_v28 = vld [vmem:[%s1837_s1 + $0x130] sm:$0xff]  }
   0xa   :  { %v1295_v26 = vld [vmem:[%s1838_s0 + $0xcc] ss:$20 sps:$4 sm:$0xff]   ;;  %v1293_v29 = vld [vmem:[%s1838_s0 + $0x28] ss:$20 sps:$4 sm:$0xff]   ;;  %v51_v33 = vld [vmem:[%s1838_s0 + $0xf0] sm:$0xff] }
   0xb   :  { %1074 = vmatpush3.bf16.msra.mxu0 %v1268_v5  ;;  %1254 = vmatpush3.bf16.msra.mxu1 %v1268_v5  ;;  %v1294_v30 = vld [vmem:[%s1837_s1 + $0xe8] sm:$0xff]   ;;  %v1300_v35 = vld [vmem:[%s1837_s1 + $0xe0] sm:$0xff]   ;;  %v1012_v37 = vcombine.high %v51_v33, %v51_v33  ;;  %v1306_v40 = vld [vmem:[%s1837_s1 + $0xd8] sm:$0xff]   ;;  %v1011_v43 = vcombine.low %v51_v33, %v51_v33 }
   0xc   :  { %1075 = vmatprep.subr.bf16.mxu0 %v1269_v6  ;;  %1247 = vmatprep.subr.bf16.mxu1 %v1269_v6  ;;  %v1297_v31 = vld [vmem:[%s1837_s1 + $0xa8] sm:$0xff]   ;;  %v1301_v38 = vld [vmem:[%s1837_s1 + $0xa0] sm:$0xff]   ;;  %v1308_v42 = vld [vmem:[%s1837_s1 + $0x98] sm:$0xff]  }
   0xd   :  { %v1299_v32 = vld [vmem:[%s1838_s0 + $0xc8] ss:$20 sps:$4 sm:$0xff]   ;;  %v1302_v39 = vld [vmem:[%s1837_s1 + $0x120] sm:$0xff]   ;;  %v1311_v45 = vld [vmem:[%s1837_s1 + $0xd0] sm:$0xff]  }
   0xe   :  { %v1298_v34 = vld [vmem:[%s1837_s1 + $0x128] sm:$0xff]   ;;  %v1305_v41 = vld [vmem:[%s1838_s0 + $0x50] ss:$20 sps:$4 sm:$0xff]   ;;  %v1309_v44 = vld [vmem:[%s1837_s1 + $0x118] sm:$0xff]  }
   0xf   :  { %1076 = vmatpush3.bf16.msra.mxu0 %v1270_v7  ;;  %1255 = vmatpush3.bf16.msra.mxu1 %v1270_v7  ;;  %v1303_v36 = vld [vmem:[%s1838_s0 + $0x54] ss:$20 sps:$4 sm:$0xff]   ;;  %v1314_v46 = vld [vmem:[%s1838_s0 + $0x7c] ss:$20 sps:$4 sm:$0xff]   ;;  %v1325_v47 = vld [vmem:[%s1838_s0 + $0xc] ss:$20 sps:$4 sm:$0xff]  }
  0x10   :  { %1077 = vmatprep.subr.bf16.mxu0 %v1271_v8  ;;  %1248 = vmatprep.subr.bf16.mxu1 %v1271_v8  ;;  %v1312_v48 = vld [vmem:[%s1837_s1 + $0x90] sm:$0xff]   ;;  %v1317_v50 = vld [vmem:[%s1837_s1 + $0xc8] sm:$0xff]   ;;  %v1320_v54 = vld [vmem:[%s1837_s1 + $0xc0] sm:$0xff]  }
  0x11   :  { %v1313_v49 = vld [vmem:[%s1837_s1 + $0x110] sm:$0xff]   ;;  %v1316_v51 = vld [vmem:[%s1838_s0 + $0x78] ss:$20 sps:$4 sm:$0xff]   ;;  %v1321_v55 = vld [vmem:[%s1837_s1 + $0x80] sm:$0xff]  }
  0x12   :  { %v1318_v52 = vld [vmem:[%s1837_s1 + $0x88] sm:$0xff]   ;;  %v1322_v56 = vld [vmem:[%s1837_s1 + $0x100] sm:$0xff]   ;;  %v1331_v62 = vld [vmem:[%s1838_s0 + $0x5c] ss:$20 sps:$4 sm:$0xff]  }
  0x13   :  { %1078 = vmatpush3.bf16.msra.mxu0 %v1272_v9  ;;  %1256 = vmatpush3.bf16.msra.mxu1 %v1272_v9  ;;  %v1319_v53 = vld [vmem:[%s1837_s1 + $0x108] sm:$0xff]   ;;  %v1326_v58 = vld [vmem:[%s1838_s0 + $0x10] ss:$20 sps:$4 sm:$0xff]   ;;  %v1334_v0 = vld [vmem:[%s1838_s0 + $0x60] ss:$20 sps:$4 sm:$0xff]  }
  0x14   :  { %1079 = vmatprep.subr.bf16.mxu0 %v1273_v10  ;;  %1249 = vmatprep.subr.bf16.mxu1 %v1273_v10  ;;  %v1323_v57 = vld [vmem:[%s1838_s0 + $0x8] ss:$20 sps:$4 sm:$0xff]   ;;  %v1329_v60 = vld [vmem:[%s1838_s0 + $0x30] ss:$20 sps:$4 sm:$0xff]   ;;  %v1330_v61 = vld [vmem:[%s1838_s0 + $0x38] ss:$20 sps:$4 sm:$0xff]  }
  0x15   :  { %v1327_v59 = vld [vmem:[%s1838_s0 + $0x34] ss:$20 sps:$4 sm:$0xff]   ;;  %v1333_v63 = vld [vmem:[%s1838_s0 + $0x58] ss:$20 sps:$4 sm:$0xff]   ;;  %v1342_v6 = vld [vmem:[%s1838_s0 + $0xb0] ss:$20 sps:$4 sm:$0xff]  }
  0x16   :  { %v1335_v1 = vld [vmem:[%s1838_s0 + $0x84] ss:$20 sps:$4 sm:$0xff]   ;;  %v1337_v2 = vld [vmem:[%s1838_s0 + $0x80] ss:$20 sps:$4 sm:$0xff]   ;;  %v1338_v3 = vld [vmem:[%s1838_s0 + $0x88] ss:$20 sps:$4 sm:$0xff]  }
  0x17   :  { %1080 = vmatpush3.bf16.msra.mxu0 %v1274_v13  ;;  %1257 = vmatpush3.bf16.msra.mxu1 %v1274_v13  ;;  %v1339_v4 = vld [vmem:[%s1838_s0 + $0xac] ss:$20 sps:$4 sm:$0xff]   ;;  %v1341_v5 = vld [vmem:[%s1838_s0 + $0xa8] ss:$20 sps:$4 sm:$0xff]   ;;  %v1345_v9 = vld [vmem:[%s1838_s0 + $0xd0] ss:$20 sps:$4 sm:$0xff]  }
  0x18   :  { %1081 = vmatprep.subr.bf16.mxu0 %v1275_v14  ;;  %1250 = vmatprep.subr.bf16.mxu1 %v1275_v14  ;;  %v1343_v7 = vld [vmem:[%s1838_s0 + $0xd4] ss:$20 sps:$4 sm:$0xff]   ;;  %v52_v8 = vld [vmem:[%s1838_s0 + $0xf8] sm:$0xff]  ;;  %v1349_v13 = vld [vmem:[%s1838_s0 + $0x100] ss:$0 sps:$4 sm:$0xff]  }
  0x19   :  { %v1346_v10 = vld [vmem:[%s1838_s0 + $0xd8] ss:$20 sps:$4 sm:$0xff]   ;;  %v1014_v11 = vcombine.high %v52_v8, %v52_v8  ;;  %v1013_v12 = vcombine.low %v52_v8, %v52_v8 }
  0x1b   :  { %1082 = vmatpush3.bf16.msra.mxu0 %v1276_v15  ;;  %1258 = vmatpush3.bf16.msra.mxu1 %v1276_v15 }
  0x1c   :  { %1083 = vmatprep.subr.bf16.mxu0 %v1277_v16  ;;  %1251 = vmatprep.subr.bf16.mxu1 %v1277_v16 }
  0x1f   :  { %1084 = vmatpush3.bf16.msra.mxu0 %v1278_v17  ;;  %1259 = vmatpush3.bf16.msra.mxu1 %v1278_v17 }
  0x20   :  { %1127 = vmatprep.subr.bf16.mxu1 %v1285_v20  ;;  %1200 = vmatprep.subr.bf16.mxu0 %v1402_v24 }
  0x22   :  { %588 = vmatmul.mubr.bf16.vlgmr.msra.gmra.mxu0 %v1279_v18  ;;  %620 = vmatmul.mubr.bf16.vlgmr.msra.gmra.mxu1 %v1282_v19 }
  0x23   :  { %1128 = vmatpush3.bf16.msra.mxu1 %v1286_v21  ;;  %1201 = vmatpush3.bf16.msra.mxu0 %v1287_v22 }
  0x24   :  { %1129 = vmatprep.subr.bf16.mxu1 %v1288_v23  ;;  %1202 = vmatprep.subr.bf16.mxu0 %v1402_v24 }
  0x25   :  { %595 = vmatprep.mubr.bf16.mxu0 %v1291_v25  ;;  %627 = vmatprep.mubr.bf16.mxu1 %v1295_v26 }
  0x27   :  { %1130 = vmatpush3.bf16.msra.mxu1 %v1289_v27  ;;  %1203 = vmatpush3.bf16.msra.mxu0 %v1290_v28 }
  0x28   :  { %1131 = vmatprep.subr.bf16.mxu1 %v1294_v30  ;;  %1204 = vmatprep.subr.bf16.mxu0 %v1402_v24 }
  0x2a   :  { %596 = vmatmul.mubr.bf16.gmra.mxu0 %v1293_v29  ;;  %628 = vmatmul.mubr.bf16.gmra.mxu1 %v1299_v32 }
  0x2b   :  { %1132 = vmatpush3.bf16.msra.mxu1 %v1297_v31  ;;  %1205 = vmatpush3.bf16.msra.mxu0 %v1298_v34 }
  0x2c   :  { %1133 = vmatprep.subr.bf16.mxu1 %v1300_v35  ;;  %1206 = vmatprep.subr.bf16.mxu0 %v1402_v24 }
  0x2d   :  { %603 = vmatprep.mubr.bf16.mxu0 %v1303_v36  ;;  %635 = vmatprep.mubr.bf16.mxu1 %v1012_v37 }
  0x2f   :  { %1134 = vmatpush3.bf16.msra.mxu1 %v1301_v38  ;;  %1207 = vmatpush3.bf16.msra.mxu0 %v1302_v39 }
  0x30   :  { %1135 = vmatprep.subr.bf16.mxu1 %v1306_v40  ;;  %1208 = vmatprep.subr.bf16.mxu0 %v1402_v24 }
  0x32   :  { %604 = vmatmul.mubr.bf16.gmra.mxu0 %v1305_v41  ;;  %636 = vmatmul.mubr.bf16.gmra.mxu1 %v1011_v43 }
  0x33   :  { %1136 = vmatpush3.bf16.msra.mxu1 %v1308_v42  ;;  %1209 = vmatpush3.bf16.msra.mxu0 %v1309_v44 }
  0x34   :  { %1137 = vmatprep.subr.bf16.mxu1 %v1311_v45  ;;  %1210 = vmatprep.subr.bf16.mxu0 %v1402_v24  ;;  %v1693_v45 = vld [vmem:[%s1839_s2] ss:$0 sm:$0xff]  ;;  %s1404_s2 = smov 64  }
  0x35   :  { %611 = vmatprep.mubr.bf16.mxu0 %v1314_v46  ;;  %675 = vmatprep.mubr.bf16.mxu1 %v1325_v47 }
  0x37   :  { %1138 = vmatpush3.bf16.msra.mxu1 %v1312_v48  ;;  %1211 = vmatpush3.bf16.msra.mxu0 %v1313_v49 }
  0x38   :  { %1139 = vmatprep.subr.bf16.mxu1 %v1317_v50  ;;  %1212 = vmatprep.subr.bf16.mxu0 %v1402_v24 }
  0x3a   :  { %612 = vmatmul.mubr.bf16.gmra.mxu0 %v1316_v51 }
  0x3b   :  { %1140 = vmatpush3.bf16.msra.mxu1 %v1318_v52  ;;  %1213 = vmatpush3.bf16.msra.mxu0 %v1319_v53 }
  0x3c   :  { %1141 = vmatprep.subr.bf16.mxu1 %v1320_v54  ;;  %1214 = vmatprep.subr.bf16.mxu0 %v1402_v24 }
  0x3d   :  { %1216 = vmatprep.mubr.msk.bf16.mxu0 %vm1403_vm0, %v1402_v24 }
  0x3f   :  { %1142 = vmatpush3.bf16.msra.mxu1 %v1321_v55  ;;  %1215 = vmatpush3.bf16.msra.mxu0 %v1322_v56 }
  0x42   :  { %676 = vmatmul.mubr.bf16.vlgmr.msra.gmra.mxu1 %v1323_v57  ;;  %1217 = vmatmul.mubr.bf16.vlgmr.msra.gmra.mxu0 %v1326_v58 }
  0x43   :  { %683 = vmatprep.mubr.bf16.mxu1 %v1327_v59  ;;  %1220 = vmatprep.mubr.msk.bf16.mxu0 %vm1403_vm0, %v1402_v24 }
  0x4a   :  { %684 = vmatmul.mubr.bf16.gmra.mxu1 %v1329_v60  ;;  %1221 = vmatmul.mubr.bf16.gmra.mxu0 %v1330_v61 }
  0x4b   :  { %691 = vmatprep.mubr.bf16.mxu1 %v1331_v62  ;;  %1224 = vmatprep.mubr.msk.bf16.mxu0 %vm1403_vm0, %v1402_v24 }
  0x52   :  { %692 = vmatmul.mubr.bf16.gmra.mxu1 %v1333_v63  ;;  %1225 = vmatmul.mubr.bf16.gmra.mxu0 %v1334_v0 }
  0x53   :  { %699 = vmatprep.mubr.bf16.mxu1 %v1335_v1  ;;  %1228 = vmatprep.mubr.msk.bf16.mxu0 %vm1403_vm0, %v1402_v24 }
  0x5a   :  { %700 = vmatmul.mubr.bf16.gmra.mxu1 %v1337_v2  ;;  %1229 = vmatmul.mubr.bf16.gmra.mxu0 %v1338_v3 }
  0x5b   :  { %707 = vmatprep.mubr.bf16.mxu1 %v1339_v4  ;;  %1232 = vmatprep.mubr.msk.bf16.mxu0 %vm1403_vm0, %v1402_v24 }
  0x62   :  { %708 = vmatmul.mubr.bf16.gmra.mxu1 %v1341_v5  ;;  %1233 = vmatmul.mubr.bf16.gmra.mxu0 %v1342_v6 }
  0x63   :  { %715 = vmatprep.mubr.bf16.mxu1 %v1343_v7  ;;  %1236 = vmatprep.mubr.msk.bf16.mxu0 %vm1403_vm0, %v1402_v24 }
  0x6a   :  { %716 = vmatmul.mubr.bf16.gmra.mxu1 %v1345_v9  ;;  %1237 = vmatmul.mubr.bf16.gmra.mxu0 %v1346_v10 }
  0x6b   :  { %723 = vmatprep.mubr.bf16.mxu1 %v1014_v11  ;;  %1240 = vmatprep.mubr.msk.bf16.mxu0 %vm1403_vm0, %v1402_v24 }
  0x72   :  { %724 = vmatmul.mubr.bf16.gmra.mxu1 %v1013_v12  ;;  %1241 = vmatmul.mubr.bf16.gmra.mxu0 %v1349_v13 }
  0xe2   :  { %v1085_v14 = vpop.f32.mrf.mxu0  ;;  %v1666_v15 = vpop.f32.mrf.mxu1 }
  0xe4   :  { %v1086_v16 = vpop.f32.mrf.mxu0  ;;  %v1668_v17 = vpop.f32.mrf.mxu1 }
  0xe5   :  { %v1087_v42 = vadd.f32 %v1086_v16, %v1085_v14 }
  0xe6   :  { %v1088_v18 = vpop.f32.mrf.mxu0  ;;  %v1670_v19 = vpop.f32.mrf.mxu1 }
  0xe7   :  { %v590_v48 = vadd.f32 %v1087_v42, %v1693_v45 }
  0xe8   :  { %v1089_v20 = vpop.f32.mrf.mxu0  ;;  %v1672_v21 = vpop.f32.mrf.mxu1 }
  0xe9   :  { %v1090_v49 = vadd.f32 %v1089_v20, %v1088_v18 }
  0xea   :  { %v1091_v22 = vpop.f32.mrf.mxu0  ;;  %v1674_v23 = vpop.f32.mrf.mxu1 }
  0xeb   :  { %v593_v57 = vadd.f32 %v1090_v49, %v1693_v45 }
  0xec   :  { %v1092_v24 = vpop.f32.mrf.mxu0  ;;  %v1676_v25 = vpop.f32.mrf.mxu1 }
  0xed   :  { %v1093_v54 = vadd.f32 %v1092_v24, %v1091_v22 }
  0xee   :  { %v1094_v26 = vpop.f32.mrf.mxu0  ;;  %v1678_v27 = vpop.f32.mrf.mxu1 }
  0xef   :  { %v598_v0 = vadd.f32 %v1093_v54, %v1693_v45 }
  0xf0   :  { %v1095_v28 = vpop.f32.mrf.mxu0  ;;  %v1680_v29 = vpop.f32.mrf.mxu1 }
  0xf1   :  { %v1096_v3 = vadd.f32 %v1095_v28, %v1094_v26 }
  0xf2   :  { %v1097_v30 = vpop.f32.mrf.mxu0  ;;  %v1682_v31 = vpop.f32.mrf.mxu1 }
  0xf3   :  { %v601_v13 = vadd.f32 %v1096_v3, %v1693_v45 }
  0xf4   :  { %v1098_v32 = vpop.f32.mrf.mxu0  ;;  %v1684_v33 = vpop.f32.mrf.mxu1 }
  0xf5   :  { %v1099_v10 = vadd.f32 %v1098_v32, %v1097_v30 }
  0xf6   :  { %v1100_v34 = vpop.f32.mrf.mxu0  ;;  %v1124_v35 = vpop.f32.mrf.mxu1 }
  0xf7   :  { %v606_v26 = vadd.f32 %v1099_v10, %v1693_v45 }
  0xf8   :  { %v1101_v36 = vpop.f32.mrf.mxu0  ;;  %v1125_v37 = vpop.f32.mrf.mxu1 }
  0xf9   :  { %v1102_v37 = vadd.f32 %v1101_v36, %v1100_v34 }
  0xfa   :  { %v1103_v38 = vpop.f32.mrf.mxu0 }
  0xfc   :  { %v1104_v39 = vpop.f32.mrf.mxu0 }
  0xfe   :  { %v1686_v40 = vpop.f32.mrf.mxu0 }
 0x100   :  { %v1688_v41 = vpop.f32.mrf.mxu0 }
 0x102   :  { %v1143_v43 = vpop.f32.mrf.mxu1  ;;  %v765_v44 = vpop.f32.mrf.mxu0 }
 0x104   :  { %v1144_v46 = vpop.f32.mrf.mxu1  ;;  %v1218_v47 = vpop.f32.mrf.mxu0 }
 0x105   :  { %v1145_v50 = vadd.f32 %v1144_v46, %v1143_v43  ;;  %v1105_v47 = vadd.f32 %v1104_v39, %v1103_v38  ;;  %v1108_v38 = vadd.f32 %v1688_v41, %v1686_v40 }
 0x106   :  { %v1146_v51 = vpop.f32.mrf.mxu1  ;;  %v768_v52 = vpop.f32.mrf.mxu0 }
 0x107   :  { %v678_v53 = vadd.f32 %v1145_v50, %v590_v48  ;;  %v609_v50 = vadd.f32 %v1102_v37, %v1693_v45 }
 0x108   :  { %v1147_v55 = vpop.f32.mrf.mxu1  ;;  %v1219_v56 = vpop.f32.mrf.mxu0 }
 0x109   :  { %v1697_v58 = vadd.f32 %v765_v44, %v678_v53  ;;  %v1148_v59 = vadd.f32 %v1147_v55, %v1146_v51 }
 0x10a   :  { %v1149_v60 = vpop.f32.mrf.mxu1  ;;  %v773_v61 = vpop.f32.mrf.mxu0 }
 0x10b   :  { %v1056_v62 = vmul.f32 -1.442695, %v1697_v58  ;;  %v681_v63 = vadd.f32 %v1148_v59, %v593_v57  ;;  %v614_v57 = vadd.f32 %v1105_v47, %v1693_v45 }
 0x10c   :  { %v1150_v1 = vpop.f32.mrf.mxu1  ;;  %v1222_v2 = vpop.f32.mrf.mxu0 }
 0x10d   :  { %1350 = vpow2.f32 %v1056_v62  ;;  %v1701_v4 = vadd.f32 %v768_v52, %v681_v63  ;;  %v1151_v5 = vadd.f32 %v1150_v1, %v1149_v60 }
 0x10e   :  { %v1152_v6 = vpop.f32.mrf.mxu1  ;;  %v776_v7 = vpop.f32.mrf.mxu0 }
 0x10f   :  { %v1057_v8 = vmul.f32 -1.442695, %v1701_v4  ;;  %v686_v9 = vadd.f32 %v1151_v5, %v598_v0  ;;  %v1111_v5 = vadd.f32 %v1668_v17, %v1666_v15 }
 0x110   :  { %v1153_v11 = vpop.f32.mrf.mxu1  ;;  %v1223_v12 = vpop.f32.mrf.mxu0 }
 0x111   :  { %1352 = vpow2.f32 %v1057_v8  ;;  %v1705_v14 = vadd.f32 %v773_v61, %v686_v9  ;;  %v1154_v16 = vadd.f32 %v1153_v11, %v1152_v6  ;;  %v617_v8 = vadd.f32 %v1108_v38, %v1693_v45 }
 0x112   :  { %v1155_v18 = vpop.f32.mrf.mxu1  ;;  %v781_v20 = vpop.f32.mrf.mxu0 }
 0x113   :  { %v1058_v22 = vmul.f32 -1.442695, %v1705_v14  ;;  %v689_v24 = vadd.f32 %v1154_v16, %v601_v13 }
 0x114   :  { %v1156_v28 = vpop.f32.mrf.mxu1  ;;  %v1226_v35 = vpop.f32.mrf.mxu0 }
 0x115   :  { %1354 = vpow2.f32 %v1058_v22  ;;  %v1709_v30 = vadd.f32 %v776_v7, %v689_v24  ;;  %v1157_v32 = vadd.f32 %v1156_v28, %v1155_v18  ;;  %v1114_v18 = vadd.f32 %v1672_v21, %v1670_v19 }
 0x116   :  { %v1158_v42 = vpop.f32.mrf.mxu1  ;;  %v784_v43 = vpop.f32.mrf.mxu0  ;;  %v1117_v21 = vadd.f32 %v1676_v25, %v1674_v23 }
 0x117   :  { %v1059_v44 = vmul.f32 -1.442695, %v1709_v30  ;;  %v694_v46 = vadd.f32 %v1157_v32, %v606_v26 }
 0x118   :  { %v1159_v48 = vpop.f32.mrf.mxu1  ;;  %v1227_v49 = vpop.f32.mrf.mxu0 }
 0x119   :  { %1356 = vpow2.f32 %v1059_v44  ;;  %v1713_v51 = vadd.f32 %v781_v20, %v694_v46  ;;  %v1160_v52 = vadd.f32 %v1159_v48, %v1158_v42  ;;  %v622_v20 = vadd.f32 %v1111_v5, %v1693_v45 }
 0x11a   :  { %v1351_v53 = vpop.eup %1350  ;;  %v1161_v34 = vpop.f32.mrf.mxu1 }
 0x11b   :  { %v789_v36 = vpop.f32.mrf.mxu0  ;;  %v858_v54 = vadd.f32 1.0, %v1351_v53  ;;  %v1060_v55 = vmul.f32 -1.442695, %v1713_v51  ;;  %v697_v56 = vadd.f32 %v1160_v52, %v609_v50 }
 0x11c   :  { %v1162_v59 = vpop.f32.mrf.mxu1 }
 0x11d   :  { %v1230_v60 = vpop.f32.mrf.mxu0  ;;  %1358 = vrcp.f32 %v858_v54  ;;  %v1719_v39 = vadd.f32 %v784_v43, %v697_v56  ;;  %v1163_v61 = vadd.f32 %v1162_v59, %v1161_v34  ;;  %v625_v43 = vadd.f32 %v1114_v18, %v1693_v45 }
 0x11e   :  { %v1353_v62 = vpop.eup %1352  ;;  %1360 = vpow2.f32 %v1060_v55  ;;  %v1164_v63 = vpop.f32.mrf.mxu1  ;;  %v630_v55 = vadd.f32 %v1117_v21, %v1693_v45 }
 0x11f   :  { %v792_v0 = vpop.f32.mrf.mxu0  ;;  %v859_v1 = vadd.f32 1.0, %v1353_v62  ;;  %v1061_v2 = vmul.f32 -1.442695, %v1719_v39  ;;  %v702_v3 = vadd.f32 %v1163_v61, %v614_v57 }
 0x120   :  { %v1165_v6 = vpop.f32.mrf.mxu1 }
 0x121   :  { %v1231_v7 = vpop.f32.mrf.mxu0  ;;  %1362 = vrcp.f32 %v859_v1  ;;  %v1725_v40 = vadd.f32 %v789_v36, %v702_v3  ;;  %v1166_v41 = vadd.f32 %v1165_v6, %v1164_v63  ;;  %v1120_v36 = vadd.f32 %v1680_v29, %v1678_v27 }
 0x122   :  { %v1355_v9 = vpop.eup %1354  ;;  %1364 = vpow2.f32 %v1061_v2  ;;  %v1167_v10 = vpop.f32.mrf.mxu1  ;;  %v1123_v2 = vadd.f32 %v1684_v33, %v1682_v31 }
 0x123   :  { %v797_v11 = vpop.f32.mrf.mxu0  ;;  %v860_v12 = vadd.f32 1.0, %v1355_v9  ;;  %v1062_v13 = vmul.f32 -1.442695, %v1725_v40  ;;  %v705_v16 = vadd.f32 %v1166_v41, %v617_v8  ;;  %v633_v27 = vadd.f32 %v1120_v36, %v1693_v45 }
 0x124   :  { %v1168_v15 = vpop.f32.mrf.mxu1 }
 0x125   :  { %v1234_v17 = vpop.f32.mrf.mxu0  ;;  %1366 = vrcp.f32 %v860_v12  ;;  %v1731_v22 = vadd.f32 %v792_v0, %v705_v16  ;;  %v1169_v24 = vadd.f32 %v1168_v15, %v1167_v10  ;;  %v638_v16 = vadd.f32 %v1123_v2, %v1693_v45 }
 0x126   :  { %v1357_v26 = vpop.eup %1356  ;;  %1368 = vpow2.f32 %v1062_v13  ;;  %v1170_v28 = vpop.f32.mrf.mxu1 }
 0x127   :  { %v800_v35 = vpop.f32.mrf.mxu0  ;;  %v861_v37 = vadd.f32 1.0, %v1357_v26  ;;  %v1063_v32 = vmul.f32 -1.442695, %v1731_v22  ;;  %v710_v42 = vadd.f32 %v1169_v24, %v622_v20 }
 0x128   :  { %v1171_v44 = vpop.f32.mrf.mxu1 }
 0x129   :  { %v1235_v19 = vpop.f32.mrf.mxu0  ;;  %1370 = vrcp.f32 %v861_v37  ;;  %v1737_v46 = vadd.f32 %v797_v11, %v710_v42  ;;  %v1172_v47 = vadd.f32 %v1171_v44, %v1170_v28 }
 0x12a   :  { %v1359_v48 = vpop.eup %1358  ;;  %1372 = vpow2.f32 %v1063_v32  ;;  %v1173_v49 = vpop.f32.mrf.mxu1 }
 0x12b   :  { %v805_v50 = vpop.f32.mrf.mxu0  ;;  %v1361_v52 = vpop.eup %1360  ;;  %v1064_v53 = vmul.f32 -1.442695, %v1737_v46  ;;  %v713_v34 = vadd.f32 %v1172_v47, %v625_v43  ;;  %910 = vrot.lane.b32.xlu0 %v1359_v48, %s1404_s2 }
 0x12c   :  { %v862_v54 = vadd.f32 1.0, %v1361_v52  ;;  %v1174_v23 = vpop.f32.mrf.mxu1 }
 0x12d   :  { %v1238_v25 = vpop.f32.mrf.mxu0  ;;  %1374 = vpow2.f32 %v1064_v53  ;;  %v1744_v56 = vadd.f32 %v800_v35, %v713_v34  ;;  %v1175_v57 = vadd.f32 %v1174_v23, %v1173_v49 }
 0x12e   :  { %v1363_v59 = vpop.eup %1362  ;;  %1376 = vrcp.f32 %v862_v54  ;;  %v1176_v60 = vpop.f32.mrf.mxu1 }
 0x12f   :  { %v808_v38 = vpop.f32.mrf.mxu0  ;;  %v1365_v61 = vpop.eup %1364  ;;  %v1065_v62 = vmul.f32 -1.442695, %v1744_v56  ;;  %v718_v63 = vadd.f32 %v1175_v57, %v630_v55  ;;  %912 = vrot.lane.b32.xlu0 %v1363_v59, %s1404_s2 }
 0x130   :  { %v863_v29 = vadd.f32 1.0, %v1365_v61  ;;  %v1177_v0 = vpop.f32.mrf.mxu1 }
 0x131   :  { %v1239_v1 = vpop.f32.mrf.mxu0  ;;  %1378 = vpow2.f32 %v1065_v62  ;;  %v1751_v3 = vadd.f32 %v805_v50, %v718_v63  ;;  %v1178_v5 = vadd.f32 %v1177_v0, %v1176_v60 }
 0x132   :  { %v1367_v6 = vpop.eup %1366  ;;  %1380 = vrcp.f32 %v863_v29  ;;  %v1179_v7 = vpop.f32.mrf.mxu1 }
 0x133   :  { %v813_v8 = vpop.f32.mrf.mxu0  ;;  %v1369_v41 = vpop.eup %1368  ;;  %v1066_v9 = vmul.f32 -1.442695, %v1751_v3  ;;  %v721_v10 = vadd.f32 %v1178_v5, %v633_v27  ;;  %914 = vrot.lane.b32.xlu1 %v1367_v6, %s1404_s2 }
 0x134   :  { %v864_v11 = vadd.f32 1.0, %v1369_v41  ;;  %v1180_v12 = vpop.f32.mrf.mxu1 }
 0x135   :  { %v1242_v13 = vpop.f32.mrf.mxu0  ;;  %1382 = vpow2.f32 %v1066_v9  ;;  %v1756_v31 = vadd.f32 %v808_v38, %v721_v10  ;;  %v1181_v33 = vadd.f32 %v1180_v12, %v1179_v7 }
 0x136   :  { %v1371_v18 = vpop.eup %1370  ;;  %1384 = vrcp.f32 %v864_v11  ;;  %v1182_v15 = vpop.f32.mrf.mxu1 }
 0x137   :  { %v816_v17 = vpop.f32.mrf.mxu0  ;;  %v1373_v20 = vpop.eup %1372  ;;  %v1067_v24 = vmul.f32 -1.442695, %v1756_v31  ;;  %v726_v26 = vadd.f32 %v1181_v33, %v638_v16  ;;  %916 = vrot.lane.b32.xlu1 %v1371_v18, %s1404_s2 }
 0x138   :  { %v865_v28 = vadd.f32 1.0, %v1373_v20  ;;  %v1183_v35 = vpop.f32.mrf.mxu1 }
 0x139   :  { %v1243_v37 = vpop.f32.mrf.mxu0  ;;  %1386 = vpow2.f32 %v1067_v24  ;;  %v1760_v32 = vadd.f32 %v813_v8, %v726_v26 }
 0x13a   :  { %v1375_v45 = vpop.eup %1374  ;;  %1388 = vrcp.f32 %v865_v28 }
 0x13b   :  { %v1377_v42 = vpop.eup %1376  ;;  %v866_v43 = vadd.f32 1.0, %v1375_v45  ;;  %v1068_v44 = vmul.f32 -1.442695, %v1760_v32 }
 0x13c   :  { %918 = vrot.lane.b32.xlu0 %v1377_v42, %s1404_s2 }
 0x13d   :  { %1390 = vrcp.f32 %v866_v43 }
 0x13e   :  { %v1379_v19 = vpop.eup %1378  ;;  %1392 = vpow2.f32 %v1068_v44 }
 0x13f   :  { %v1381_v21 = vpop.eup %1380  ;;  %v867_v47 = vadd.f32 1.0, %v1379_v19 }
 0x140   :  { %920 = vrot.lane.b32.xlu1 %v1381_v21, %s1404_s2 }
 0x141   :  { %1394 = vrcp.f32 %v867_v47 }
 0x142   :  { %v1383_v48 = vpop.eup %1382 }
 0x143   :  { %v1385_v49 = vpop.eup %1384  ;;  %v868_v50 = vadd.f32 1.0, %v1383_v48 }
 0x144   :  { %922 = vrot.lane.b32.xlu0 %v1385_v49, %s1404_s2 }
 0x145   :  { %1396 = vrcp.f32 %v868_v50 }
 0x146   :  { %v1387_v52 = vpop.eup %1386 }
 0x147   :  { %v1389_v53 = vpop.eup %1388  ;;  %v869_v34 = vadd.f32 1.0, %v1387_v52 }
 0x148   :  { %924 = vrot.lane.b32.xlu1 %v1389_v53, %s1404_s2 }
 0x149   :  { %1398 = vrcp.f32 %v869_v34 }
 0x14a   :  { %v1391_v36 = vpop.eup %1390 }
 0x14b   :  { %v1393_v54 = vpop.eup %1392  ;;  %926 = vrot.lane.b32.xlu0 %v1391_v36, %s1404_s2 }
 0x14c   :  { %v870_v23 = vadd.f32 1.0, %v1393_v54 }
 0x14e   :  { %v1395_v25 = vpop.eup %1394  ;;  %1400 = vrcp.f32 %v870_v23 }
 0x14f   :  { %928 = vrot.lane.b32.xlu1 %v1395_v25, %s1404_s2 }
 0x152   :  { %v1397_v55 = vpop.eup %1396 }
 0x153   :  { %930 = vrot.lane.b32.xlu0 %v1397_v55, %s1404_s2 }
 0x156   :  { %v1399_v57 = vpop.eup %1398 }
 0x157   :  { %932 = vrot.lane.b32.xlu1 %v1399_v57, %s1404_s2 }
 0x15b   :  { %v1401_v59 = vpop.eup %1400 }
 0x15c   :  { %934 = vrot.lane.b32.xlu0 %v1401_v59, %s1404_s2 }
 0x19d   :  { %v911_v60 = vpop.permute.xlu0 %910 }
 0x19e   :  { %v949_v38 = vmul.f32 %v911_v60, %v1697_v58 }
 0x1a0   :  { %963 = vst.msk [vmem:[%s1840_s3] sm:$0xff] %vm962_vm1, %v949_v38 }
 0x1a1   :  { %v913_v61 = vpop.permute.xlu0 %912 }
 0x1a2   :  { %v950_v62 = vmul.f32 %v913_v61, %v1701_v4 }
 0x1a4   :  { %964 = vst.msk [vmem:[%s1840_s3 + $0x8] sm:$0xff] %vm962_vm1, %v950_v62 }
 0x1a5   :  { %v915_v63 = vpop.permute.xlu1 %914 }
 0x1a6   :  { %v951_v27 = vmul.f32 %v915_v63, %v1705_v14 }
 0x1a8   :  { %965 = vst.msk [vmem:[%s1840_s3 + $0x10] sm:$0xff] %vm962_vm1, %v951_v27 }
 0x1a9   :  { %v917_v58 = vpop.permute.xlu1 %916 }
 0x1aa   :  { %v952_v29 = vmul.f32 %v917_v58, %v1709_v30 }
 0x1ac   :  { %966 = vst.msk [vmem:[%s1840_s3 + $0x18] sm:$0xff] %vm962_vm1, %v952_v29 }
 0x1ae   :  { %v919_v4 = vpop.permute.xlu0 %918 }
 0x1af   :  { %v953_v0 = vmul.f32 %v919_v4, %v1713_v51 }
 0x1b1   :  { %967 = vst.msk [vmem:[%s1840_s3 + $0x20] sm:$0xff] %vm962_vm1, %v953_v0 }
 0x1b2   :  { %v921_v14 = vpop.permute.xlu1 %920 }
 0x1b3   :  { %v954_v1 = vmul.f32 %v921_v14, %v1719_v39 }
 0x1b5   :  { %968 = vst.msk [vmem:[%s1840_s3 + $0x28] sm:$0xff] %vm962_vm1, %v954_v1 }
 0x1b6   :  { %v923_v30 = vpop.permute.xlu0 %922 }
 0x1b7   :  { %v955_v2 = vmul.f32 %v923_v30, %v1725_v40 }
 0x1b9   :  { %969 = vst.msk [vmem:[%s1840_s3 + $0x30] sm:$0xff] %vm962_vm1, %v955_v2 }
 0x1ba   :  { %v925_v51 = vpop.permute.xlu1 %924 }
 0x1bb   :  { %v956_v5 = vmul.f32 %v925_v51, %v1731_v22 }
 0x1bd   :  { %970 = vst.msk [vmem:[%s1840_s3 + $0x38] sm:$0xff] %vm962_vm1, %v956_v5  ;;  %v927_v39 = vpop.permute.xlu0 %926 }
 0x1be   :  { %v957_v6 = vmul.f32 %v927_v39, %v1737_v46 }
 0x1c0   :  { %971 = vst.msk [vmem:[%s1840_s3 + $0x40] sm:$0xff] %vm962_vm1, %v957_v6 }
 0x1c1   :  { %v929_v40 = vpop.permute.xlu1 %928 }
 0x1c2   :  { %v958_v7 = vmul.f32 %v929_v40, %v1744_v56 }
 0x1c4   :  { %972 = vst.msk [vmem:[%s1840_s3 + $0x48] sm:$0xff] %vm962_vm1, %v958_v7 }
 0x1c5   :  { %v931_v22 = vpop.permute.xlu0 %930 }
 0x1c6   :  { %v959_v8 = vmul.f32 %v931_v22, %v1751_v3 }
 0x1c8   :  { %973 = vst.msk [vmem:[%s1840_s3 + $0x50] sm:$0xff] %vm962_vm1, %v959_v8 }
 0x1c9   :  { %v933_v46 = vpop.permute.xlu1 %932 }
 0x1ca   :  { %v960_v41 = vmul.f32 %v933_v46, %v1756_v31 }
 0x1cc   :  { %974 = vst.msk [vmem:[%s1840_s3 + $0x58] sm:$0xff] %vm962_vm1, %v960_v41 }
 0x1ce   :  { %v935_v56 = vpop.permute.xlu0 %934 }
 0x1cf   :  { %v961_v9 = vmul.f32 %v935_v56, %v1760_v32 }
 0x1d1   :  { %975 = vst.msk [vmem:[%s1840_s3 + $0x60] sm:$0xff] %vm962_vm1, %v961_v9 }

// kernel: encoder_forward.11
= control target key start
LH: loop header
LB: loop body
LE: loop exit
PB: predicated region body
PF: predicated region fallthrough
CT: control target
= control target key end

     0   :  { %v322_v3 = vmov 0.0   ;;  %vm323_vm0 = vmmov 0   ;;  %vm214_vm1 = vcmask 523264   ;;  %s324_s15 = smov 64   ;;  %s529_s1 = inlined_call_operand.vmem [shape: f32[384,128], index: 1, kind: input, shape index: {}]   ;;  %s530_s0 = inlined_call_operand.vmem [shape: f32[8,384], index: 0, kind: input, shape index: {}]   ;;  %s531_s2 = inlined_call_operand.vmem [shape: f32[1,128], index: 2, kind: input, shape index: {}]   ;;  %s532_s3 = inlined_call_operand.vmem [shape: f32[8,64], index: 3, kind: output, shape index: {0}]   ;;  %s533_s4 = inlined_call_operand.vmem [shape: f32[8,64], index: 4, kind: output, shape index: {1}]  }
   0x1   :  { %v50_v0 = vld [vmem:[%s529_s1 + $0xf8] sm:$0xff]  ;;  %v49_v2 = vld [vmem:[%s529_s1 + $0xf0] sm:$0xff]  ;;  %284 = vmatprep.subr.mxu1 %v322_v3  ;;  %316 = vmatprep.mubr.msk.f32.mxu1 %vm323_vm0, %v322_v3  ;;  %v48_v5 = vld [vmem:[%s529_s1 + $0xe8] sm:$0xff] }
   0x2   :  { %v34_v1 = vld [vmem:[%s529_s1 + $0x78] sm:$0xff]  ;;  %232 = vmatprep.subr.mxu0 %v50_v0  ;;  %v33_v4 = vld [vmem:[%s529_s1 + $0x70] sm:$0xff]  ;;  %v32_v7 = vld [vmem:[%s529_s1 + $0x68] sm:$0xff] }
   0x3   :  { %233 = vmatpush3.msra.mxu0 %v34_v1  ;;  %v66_v6 = vld [vmem:[%s529_s1 + $0x178] sm:$0xff]  ;;  %v65_v8 = vld [vmem:[%s529_s1 + $0x170] sm:$0xff]  ;;  %v47_v9 = vld [vmem:[%s529_s1 + $0xe0] sm:$0xff] }
   0x4   :  { %234 = vmatprep.subr.mxu0 %v49_v2  ;;  %285 = vmatpush3.msra.mxu1 %v66_v6  ;;  %v64_v10 = vld [vmem:[%s529_s1 + $0x168] sm:$0xff]  ;;  %v31_v11 = vld [vmem:[%s529_s1 + $0x60] sm:$0xff]  ;;  %v46_v12 = vld [vmem:[%s529_s1 + $0xd8] sm:$0xff] }
   0x5   :  { %235 = vmatpush3.msra.mxu0 %v33_v4  ;;  %286 = vmatprep.subr.mxu1 %v322_v3  ;;  %v63_v13 = vld [vmem:[%s529_s1 + $0x160] sm:$0xff]  ;;  %v30_v14 = vld [vmem:[%s529_s1 + $0x58] sm:$0xff]  ;;  %v45_v15 = vld [vmem:[%s529_s1 + $0xd0] sm:$0xff] }
   0x6   :  { %236 = vmatprep.subr.mxu0 %v48_v5  ;;  %287 = vmatpush3.msra.mxu1 %v65_v8  ;;  %v62_v16 = vld [vmem:[%s529_s1 + $0x158] sm:$0xff]  ;;  %v29_v17 = vld [vmem:[%s529_s1 + $0x50] sm:$0xff]  ;;  %v44_v18 = vld [vmem:[%s529_s1 + $0xc8] sm:$0xff] }
   0x7   :  { %237 = vmatpush3.msra.mxu0 %v32_v7  ;;  %288 = vmatprep.subr.mxu1 %v322_v3  ;;  %v61_v19 = vld [vmem:[%s529_s1 + $0x150] sm:$0xff]  ;;  %v28_v20 = vld [vmem:[%s529_s1 + $0x48] sm:$0xff]  ;;  %v43_v21 = vld [vmem:[%s529_s1 + $0xc0] sm:$0xff] }
   0x8   :  { %238 = vmatprep.subr.mxu0 %v47_v9  ;;  %289 = vmatpush3.msra.mxu1 %v64_v10  ;;  %v60_v22 = vld [vmem:[%s529_s1 + $0x148] sm:$0xff]  ;;  %v27_v23 = vld [vmem:[%s529_s1 + $0x40] sm:$0xff]  ;;  %v42_v24 = vld [vmem:[%s529_s1 + $0xb8] sm:$0xff] }
   0x9   :  { %239 = vmatpush3.msra.mxu0 %v31_v11  ;;  %290 = vmatprep.subr.mxu1 %v322_v3  ;;  %v59_v25 = vld [vmem:[%s529_s1 + $0x140] sm:$0xff]  ;;  %v26_v26 = vld [vmem:[%s529_s1 + $0x38] sm:$0xff]  ;;  %v41_v27 = vld [vmem:[%s529_s1 + $0xb0] sm:$0xff] }
   0xa   :  { %240 = vmatprep.subr.mxu0 %v46_v12  ;;  %291 = vmatpush3.msra.mxu1 %v63_v13  ;;  %v58_v28 = vld [vmem:[%s529_s1 + $0x138] sm:$0xff]  ;;  %v25_v29 = vld [vmem:[%s529_s1 + $0x30] sm:$0xff]  ;;  %v40_v30 = vld [vmem:[%s529_s1 + $0xa8] sm:$0xff] }
   0xb   :  { %241 = vmatpush3.msra.mxu0 %v30_v14  ;;  %292 = vmatprep.subr.mxu1 %v322_v3  ;;  %v57_v31 = vld [vmem:[%s529_s1 + $0x130] sm:$0xff]  ;;  %v24_v32 = vld [vmem:[%s529_s1 + $0x28] sm:$0xff]  ;;  %v39_v33 = vld [vmem:[%s529_s1 + $0xa0] sm:$0xff] }
   0xc   :  { %242 = vmatprep.subr.mxu0 %v45_v15  ;;  %293 = vmatpush3.msra.mxu1 %v62_v16  ;;  %v56_v34 = vld [vmem:[%s529_s1 + $0x128] sm:$0xff]  ;;  %v23_v35 = vld [vmem:[%s529_s1 + $0x20] sm:$0xff]  ;;  %v38_v36 = vld [vmem:[%s529_s1 + $0x98] sm:$0xff] }
   0xd   :  { %243 = vmatpush3.msra.mxu0 %v29_v17  ;;  %294 = vmatprep.subr.mxu1 %v322_v3  ;;  %v55_v37 = vld [vmem:[%s529_s1 + $0x120] sm:$0xff]  ;;  %v22_v38 = vld [vmem:[%s529_s1 + $0x18] sm:$0xff]  ;;  %v37_v39 = vld [vmem:[%s529_s1 + $0x90] sm:$0xff] }
   0xe   :  { %244 = vmatprep.subr.mxu0 %v44_v18  ;;  %295 = vmatpush3.msra.mxu1 %v61_v19  ;;  %v54_v40 = vld [vmem:[%s529_s1 + $0x118] sm:$0xff]  ;;  %v21_v41 = vld [vmem:[%s529_s1 + $0x10] sm:$0xff]  ;;  %v36_v42 = vld [vmem:[%s529_s1 + $0x88] sm:$0xff] }
   0xf   :  { %245 = vmatpush3.msra.mxu0 %v28_v20  ;;  %296 = vmatprep.subr.mxu1 %v322_v3  ;;  %v17_v43 = vld [vmem:[%s530_s0 + $0x8] sm:$0xff]  ;;  %v53_v45 = vld [vmem:[%s529_s1 + $0x110] sm:$0xff]  ;;  %v35_v46 = vld [vmem:[%s529_s1 + $0x80] sm:$0xff] }
  0x10   :  { %246 = vmatprep.subr.mxu0 %v43_v21  ;;  %297 = vmatpush3.msra.mxu1 %v60_v22  ;;  %v20_v44 = vld [vmem:[%s529_s1 + $0x8] sm:$0xff]  ;;  %v19_v47 = vld [vmem:[%s529_s1] sm:$0xff]  ;;  %v18_v51 = vld [vmem:[%s530_s0 + $0x10] sm:$0xff] }
  0x11   :  { %247 = vmatpush3.msra.mxu0 %v27_v23  ;;  %298 = vmatprep.subr.mxu1 %v322_v3  ;;  %v52_v48 = vld [vmem:[%s529_s1 + $0x108] sm:$0xff]  ;;  %v16_v49 = vld [vmem:[%s530_s0] sm:$0xff] }
  0x12   :  { %248 = vmatprep.subr.mxu0 %v42_v24  ;;  %299 = vmatpush3.msra.mxu1 %v59_v25  ;;  %v51_v50 = vld [vmem:[%s529_s1 + $0x100] sm:$0xff] }
  0x13   :  { %249 = vmatpush3.msra.mxu0 %v26_v26  ;;  %300 = vmatprep.subr.mxu1 %v322_v3  ;;  %v231_v54 = vld [vmem:[%s531_s2] ss:$0 sm:$0xff] }
  0x14   :  { %250 = vmatprep.subr.mxu0 %v41_v27  ;;  %301 = vmatpush3.msra.mxu1 %v58_v28 }
  0x15   :  { %251 = vmatpush3.msra.mxu0 %v25_v29  ;;  %302 = vmatprep.subr.mxu1 %v322_v3 }
  0x16   :  { %252 = vmatprep.subr.mxu0 %v40_v30  ;;  %303 = vmatpush3.msra.mxu1 %v57_v31 }
  0x17   :  { %253 = vmatpush3.msra.mxu0 %v24_v32  ;;  %304 = vmatprep.subr.mxu1 %v322_v3 }
  0x18   :  { %254 = vmatprep.subr.mxu0 %v39_v33  ;;  %305 = vmatpush3.msra.mxu1 %v56_v34 }
  0x19   :  { %255 = vmatpush3.msra.mxu0 %v23_v35  ;;  %306 = vmatprep.subr.mxu1 %v322_v3 }
  0x1a   :  { %256 = vmatprep.subr.mxu0 %v38_v36  ;;  %307 = vmatpush3.msra.mxu1 %v55_v37 }
  0x1b   :  { %257 = vmatpush3.msra.mxu0 %v22_v38  ;;  %308 = vmatprep.subr.mxu1 %v322_v3 }
  0x1c   :  { %258 = vmatprep.subr.mxu0 %v37_v39  ;;  %309 = vmatpush3.msra.mxu1 %v54_v40 }
  0x1d   :  { %259 = vmatpush3.msra.mxu0 %v21_v41  ;;  %310 = vmatprep.subr.mxu1 %v322_v3 }
  0x1e   :  { %260 = vmatprep.subr.mxu0 %v36_v42  ;;  %138 = vmatprep.mubr.f32.mxu0 %v17_v43 }
  0x1f   :  { %261 = vmatpush3.msra.mxu0 %v20_v44  ;;  %311 = vmatpush3.msra.mxu1 %v53_v45 }
  0x20   :  { %262 = vmatprep.subr.mxu0 %v35_v46  ;;  %312 = vmatprep.subr.mxu1 %v322_v3 }
  0x21   :  { %263 = vmatpush3.msra.mxu0 %v19_v47  ;;  %313 = vmatpush3.msra.mxu1 %v52_v48 }
  0x22   :  { %139 = vmatmul.mubr.f32.vlgmr.msra.gmra.mxu0 %v16_v49  ;;  %314 = vmatprep.subr.mxu1 %v322_v3 }
  0x23   :  { %315 = vmatpush3.msra.mxu1 %v51_v50 }
  0x24   :  { %317 = vmatmul.mubr.f32.vlgmr.msra.gmra.mxu1 %v18_v51 }
  0xe2   :  { %v264_v52 = vpop.f32.mrf.mxu0 }
  0xe4   :  { %v265_v53 = vpop.f32.mrf.mxu0  ;;  %v210_v55 = vpop.f32.mrf.mxu1 }
  0xe5   :  { %v266_v56 = vadd.f32 %v265_v53, %v264_v52 }
  0xe6   :  { %v318_v57 = vpop.f32.mrf.mxu1 }
  0xe7   :  { %v141_v58 = vadd.f32 %v266_v56, %v231_v54 }
  0xe9   :  { %v211_v59 = vadd.f32 %v210_v55, %v141_v58 }
  0xeb   :  { %v216_v60 = vmax.f32 %v211_v59, -6.0  ;;  %215 = vst.msk [vmem:[%s532_s3] sm:$0xff] %vm214_vm1, %v211_v59 }
  0xed   :  { %v217_v61 = vmin.f32 %v216_v60, 2.0 }
  0xef   :  { %219 = vrot.lane.b32.xlu0 %v217_v61, %s324_s15 }
 0x161   :  { %v220_v62 = vpop.permute.xlu0 %219 }
 0x162   :  { %222 = vst.msk [vmem:[%s533_s4] sm:$0xff] %vm214_vm1, %v220_v62 }

</bundles_post_ra>
